<compile_context>
chip_gen: v7x
topology: tpu7x:2x2x1
jax: 0.10.0
libtpu: 0.0.40
codegen_flags: <defaults>
</compile_context>

<pallas_src>
import functools
import math

import jax
import jax.numpy as jnp
from jax.experimental import pallas as pl
from jax.experimental.pallas import tpu as pltpu

D_MODEL = 128
NUM_HEADS = 8
DFF = 512
DEPTH = D_MODEL // NUM_HEADS
LN_EPS = 1e-6


def _layernorm(y, gamma, beta):
    # single-pass statistics: var = E[y^2] - E[y]^2 (values are ~zero-mean here)
    mu = jnp.mean(y, axis=-1, keepdims=True)
    ms = jnp.mean(y * y, axis=-1, keepdims=True)
    var = ms - mu * mu
    return (y - mu) * jax.lax.rsqrt(var + LN_EPS) * gamma + beta


def encoder_layer_kernel(
    x_ref, mask_ref,
    wqkv_ref, bqkv_ref, wo_ref, bo_ref,
    ln1g_ref, ln1b_ref,
    w1_ref, b1_ref, w2_ref, b2_ref,
    ln2g_ref, ln2b_ref,
    out_ref,
):
    bt, s, d = x_ref.shape
    cdt = wqkv_ref.dtype                      # MXU operand dtype (bf16 or f32)

    x = x_ref[...]                            # (Bt, S, D) f32
    x2 = x.reshape(bt * s, d)                 # leading-dim merge (layout-free)

    # ---- fused QKV projection: one MXU matmul, M = Bt*S, K = D, N = 3D ----
    # 1/sqrt(DEPTH) is already folded into the q columns at trace time.
    # Columns are permuted head-major: head h occupies lanes [h*48, (h+1)*48)
    # as [q_h(16) | k_h(16) | v_h(16)].
    qkv = jnp.dot(x2.astype(cdt), wqkv_ref[...],
                  preferred_element_type=jnp.float32) + bqkv_ref[...]
    qkv3 = qkv.reshape(bt, s, 3 * d)          # leading split (layout-free)

    # ---- head-major layout: ONE axis-0 concat of 8 per-head 48-lane slabs ----
    # batch index n = h*Bt + b
    hm = jnp.concatenate(
        [qkv3[:, :, h * 3 * DEPTH:(h + 1) * 3 * DEPTH] for h in range(NUM_HEADS)],
        axis=0)                               # (H*Bt, S, 3*DEPTH) f32
    qh = hm[:, :, 0 * DEPTH:1 * DEPTH].astype(cdt)
    kh = hm[:, :, 1 * DEPTH:2 * DEPTH].astype(cdt)
    vh = hm[:, :, 2 * DEPTH:3 * DEPTH].astype(cdt)

    # ---- attention scores for all heads / batch rows in one batched matmul ----
    scores = jnp.einsum("nqd,nkd->nqk", qh, kh,
                        preferred_element_type=jnp.float32)   # (H*Bt, S, S) f32

    # additive padding-mask bias, built once per grid step, applied in f32
    bias = mask_ref[...].astype(jnp.float32) * jnp.float32(-1e9)      # (Bt,1,S)
    scores = (scores.reshape(NUM_HEADS, bt, s, s) + bias[None]
              ).reshape(NUM_HEADS * bt, s, s)

    # ---- softmax stats in f32; normalization deferred to after the PV matmul ----
    m = jnp.max(scores, axis=-1, keepdims=True)
    e = jnp.exp(scores - m)
    denom = jnp.sum(e, axis=-1, keepdims=True)                        # (N, S, 1)

    attn = jnp.einsum("nqk,nkd->nqd", e.astype(cdt), vh,
                      preferred_element_type=jnp.float32)    # (H*Bt, S, DEPTH)
    attn = attn * pl.reciprocal(denom, approx=True)          # normalize small output

    # ---- merge heads back before Wo: one lane concat ----
    attn4 = attn.reshape(NUM_HEADS, bt, s, DEPTH)            # leading split
    concat = jnp.concatenate([attn4[h] for h in range(NUM_HEADS)], axis=-1)
    concat = concat.reshape(bt * s, d)                       # (Bt*S, D)

    attn_out = jnp.dot(concat.astype(cdt), wo_ref[...],
                       preferred_element_type=jnp.float32) + bo_ref[...]

    # dropout1 -> identity (eval)
    out1 = _layernorm(x2 + attn_out, ln1g_ref[...], ln1b_ref[...])    # f32

    # ---- position-wise feed forward ----
    hid = jnp.dot(out1.astype(cdt), w1_ref[...],
                  preferred_element_type=jnp.float32) + b1_ref[...]
    hid = jnp.maximum(hid, 0.0)
    ffn = jnp.dot(hid.astype(cdt), w2_ref[...],
                  preferred_element_type=jnp.float32) + b2_ref[...]

    # dropout2 -> identity (eval)
    out2 = _layernorm(out1 + ffn, ln2g_ref[...], ln2b_ref[...])
    out_ref[...] = out2.reshape(bt, s, d).astype(out_ref.dtype)


def _vmem_budget_bytes():
    """(resident-footprint budget, scoped VMEM limit) per chip generation."""
    try:
        kind = jax.devices()[0].device_kind.lower()
    except Exception:
        kind = ""
    if any(t in kind for t in ("v4", "v5", "v6")):
        return 72 * 1024 * 1024, 96 * 1024 * 1024     # 128 MiB physical VMEM parts
    # v7x / unknown: 64 MiB physical VMEM per TensorCore -> stay conservative
    return 36 * 1024 * 1024, 48 * 1024 * 1024


def _vmem_estimate_bytes(bt, s, weight_bytes):
    """Rough per-grid-step VMEM footprint for block picking (heuristic)."""
    rows = bt * s
    f32 = 4
    scores = 2 * NUM_HEADS * bt * s * s * f32            # scores + exp(scores)
    io = 2 * 2 * rows * D_MODEL * f32                    # double-buffered x / out
    rowspace = rows * (3 * D_MODEL + 4 * D_MODEL + 2 * DFF) * f32
    weights = 2 * (3 * D_MODEL * D_MODEL + D_MODEL * D_MODEL
                   + 2 * D_MODEL * DFF) * weight_bytes
    return scores + io + rowspace + weights


def _pick_block_b(B, S, budget_bytes, weight_bytes):
    divisors = [d for d in range(1, B + 1) if B % d == 0]
    feasible = [d for d in divisors
                if _vmem_estimate_bytes(d, S, weight_bytes) <= budget_bytes]
    if not feasible:
        # TODO(synk): flash-style KV tiling is the real fix for very long S.
        feasible = [1]
    # Smallest block reaching >= 512 matmul rows keeps the MXU full while
    # maximizing grid length; otherwise take the biggest feasible block.
    hit = [d for d in feasible if d * S >= 512]
    block_b = min(hit) if hit else max(feasible)
    # Keep >= 2 grid steps (v7x has 2 TensorCores) when it doesn't cost M < 128.
    if B // block_b < 2:
        alt = [d for d in feasible
               if B // d >= 2 and d * S >= min(128, block_b * S)]
        if alt:
            block_b = max(alt)
    return block_b


@functools.partial(jax.jit, static_argnames=("block_b", "compute_dtype"))
def encoder_layer(x, key_padding_mask, params, *, block_b=None,
                  compute_dtype=jnp.bfloat16):
    """x: (B, S, D) f32.  key_padding_mask: (B, S), 1.0 = masked key, 0.0 = attend."""
    B, S, D = x.shape
    assert D == D_MODEL

    weight_bytes = jnp.dtype(compute_dtype).itemsize
    budget, vmem_limit = _vmem_budget_bytes()
    if block_b is None:
        block_b = _pick_block_b(B, S, budget, weight_bytes)
    block_b = int(block_b)
    while B % block_b:
        block_b -= 1
    grid = (B // block_b,)

    # Fused QKV weights, columns permuted head-major ([q_h | k_h | v_h] blocks)
    # with 1/sqrt(DEPTH) folded into the q columns (zero in-kernel cost).
    inv_sqrt_depth = jnp.float32(1.0 / math.sqrt(DEPTH))
    wq_s = params["wq"] * inv_sqrt_depth
    bq_s = params["bq"] * inv_sqrt_depth
    w_parts, b_parts = [], []
    for h in range(NUM_HEADS):
        sl = slice(h * DEPTH, (h + 1) * DEPTH)
        w_parts += [wq_s[:, sl], params["wk"][:, sl], params["wv"][:, sl]]
        b_parts += [bq_s[:, sl], params["bk"][:, sl], params["bv"][:, sl]]
    wqkv = jnp.concatenate(w_parts, axis=1).astype(compute_dtype)
    bqkv = jnp.concatenate(b_parts, axis=1)                # bias stays f32

    mask3 = key_padding_mask.astype(jnp.float32).reshape(B, 1, S)

    weight_args = (
        wqkv, bqkv,
        params["wo"].astype(compute_dtype), params["bo"],
        params["ln1_g"], params["ln1_b"],
        params["w1"].astype(compute_dtype), params["b1"],
        params["w2"].astype(compute_dtype), params["b2"],
        params["ln2_g"], params["ln2_b"],
    )

    def const_spec(w):  # constant index_map -> weights stay resident across steps
        return pl.BlockSpec(w.shape, lambda i, _n=w.ndim: (0,) * _n)

    weight_specs = [const_spec(w) for w in weight_args]

    return pl.pallas_call(
        encoder_layer_kernel,
        out_shape=jax.ShapeDtypeStruct((B, S, D), jnp.float32),
        grid_spec=pltpu.PrefetchScalarGridSpec(
            num_scalar_prefetch=0,
            grid=grid,
            in_specs=[
                pl.BlockSpec((block_b, S, D), lambda i: (i, 0, 0)),
                pl.BlockSpec((block_b, 1, S), lambda i: (i, 0, 0)),
            ] + weight_specs,
            out_specs=pl.BlockSpec((block_b, S, D), lambda i: (i, 0, 0)),
        ),
        compiler_params=pltpu.CompilerParams(
            dimension_semantics=("parallel",),
            vmem_limit_bytes=vmem_limit,
        ),
    )(x, mask3, *weight_args)


def init_params(key):
    ks = jax.random.split(key, 6)
    scale = 0.02

    def lin(k, d_in, d_out):
        w = scale * jax.random.normal(k, (d_in, d_out), jnp.float32)   # (in, out)
        b = jnp.zeros((1, d_out), jnp.float32)
        return w, b

    wq, bq = lin(ks[0], D_MODEL, D_MODEL)
    wk, bk = lin(ks[1], D_MODEL, D_MODEL)
    wv, bv = lin(ks[2], D_MODEL, D_MODEL)
    wo, bo = lin(ks[3], D_MODEL, D_MODEL)
    w1, b1 = lin(ks[4], D_MODEL, DFF)
    w2, b2 = lin(ks[5], DFF, D_MODEL)
    return dict(
        wq=wq, bq=bq, wk=wk, bk=bk, wv=wv, bv=bv, wo=wo, bo=bo,
        w1=w1, b1=b1, w2=w2, b2=b2,
        ln1_g=jnp.ones((1, D_MODEL), jnp.float32),
        ln1_b=jnp.zeros((1, D_MODEL), jnp.float32),
        ln2_g=jnp.ones((1, D_MODEL), jnp.float32),
        ln2_b=jnp.zeros((1, D_MODEL), jnp.float32),
    )


def encoder_layer_ref(x, key_padding_mask, p):
    """Pure-JAX f32 reference mirroring the (intended) PyTorch forward."""
    B, S, D = x.shape
    mask = key_padding_mask.astype(jnp.float32)[:, None, None, :]   # (B,1,1,S)
    q = x @ p["wq"] + p["bq"]
    k = x @ p["wk"] + p["bk"]
    v = x @ p["wv"] + p["bv"]

    def split(t):
        return t.reshape(B, S, NUM_HEADS, DEPTH).transpose(0, 2, 1, 3)

    qh, kh, vh = split(q), split(k), split(v)
    scores = jnp.einsum("bhid,bhjd->bhij", qh, kh) / jnp.sqrt(jnp.float32(DEPTH))
    scores = scores + mask * (-1e9)
    w = jax.nn.softmax(scores, axis=-1)
    attn = jnp.einsum("bhij,bhjd->bhid", w, vh)
    attn = attn.transpose(0, 2, 1, 3).reshape(B, S, D)
    attn_out = attn @ p["wo"] + p["bo"]

    def ln(y, g, b):
        mu = jnp.mean(y, axis=-1, keepdims=True)
        var = jnp.mean((y - mu) ** 2, axis=-1, keepdims=True)
        return (y - mu) / jnp.sqrt(var + LN_EPS) * g + b

    out1 = ln(x + attn_out, p["ln1_g"], p["ln1_b"])
    ffn = jnp.maximum(out1 @ p["w1"] + p["b1"], 0.0) @ p["w2"] + p["b2"]
    return ln(out1 + ffn, p["ln2_g"], p["ln2_b"])


if __name__ == "__main__":
    B, S = 4, 64
    key = jax.random.PRNGKey(0)
    kx, kp = jax.random.split(key)
    x = jax.random.normal(kx, (B, S, D_MODEL), jnp.float32)
    # Key-padding mask: 1.0 = masked (pad), 0.0 = attend.
    lengths = jnp.array([S, 48, S, 32], dtype=jnp.int32)
    key_padding_mask = (jnp.arange(S)[None, :] >= lengths[:, None]).astype(jnp.float32)
    params = init_params(kp)

    ref = encoder_layer_ref(x, key_padding_mask, params)

    # f32 MXU-operand path (tight tolerance; approx reciprocal ~1e-3-level).
    out_f32 = jax.block_until_ready(
        encoder_layer(x, key_padding_mask, params, compute_dtype=jnp.float32))
    assert out_f32.shape == (B, S, D_MODEL)
    assert jnp.allclose(out_f32, ref, atol=1e-3, rtol=1e-3)

    # Default path: bf16 MXU operands with f32 accumulation (fast on v6e/v7x).
    out_bf16 = jax.block_until_ready(encoder_layer(x, key_padding_mask, params))
    assert out_bf16.shape == (B, S, D_MODEL)
    assert float(jnp.max(jnp.abs(out_bf16 - ref))) < 5e-2

    print("KERNEL_OK")
</pallas_src>

<mosaic_0001>
module attributes {stable_mosaic.version = 11 : i64} {
  func.func @encoder_layer_kernel(%arg0: i32, %arg1: memref<2x64x128xf32, #tpu.memory_space<vmem>>, %arg2: memref<2x1x64xf32, #tpu.memory_space<vmem>>, %arg3: memref<128x384xf32, #tpu.memory_space<vmem>>, %arg4: memref<1x384xf32, #tpu.memory_space<vmem>>, %arg5: memref<128x128xf32, #tpu.memory_space<vmem>>, %arg6: memref<1x128xf32, #tpu.memory_space<vmem>>, %arg7: memref<1x128xf32, #tpu.memory_space<vmem>>, %arg8: memref<1x128xf32, #tpu.memory_space<vmem>>, %arg9: memref<128x512xf32, #tpu.memory_space<vmem>>, %arg10: memref<1x512xf32, #tpu.memory_space<vmem>>, %arg11: memref<512x128xf32, #tpu.memory_space<vmem>>, %arg12: memref<1x128xf32, #tpu.memory_space<vmem>>, %arg13: memref<1x128xf32, #tpu.memory_space<vmem>>, %arg14: memref<1x128xf32, #tpu.memory_space<vmem>>, %arg15: memref<2x64x128xf32, #tpu.memory_space<vmem>>) attributes {dimension_semantics = [#tpu.dimension_semantics<parallel>], iteration_bounds = array<i64: 2>, scalar_prefetch = 0 : i64, scratch_operands = 0 : i64, tpu.core_type = #tpu.core_type<tc>, window_params = [{transform_indices = @transform_0, window_bounds = array<i64: 2, 64, 128>}, {transform_indices = @transform_1, window_bounds = array<i64: 2, 1, 64>}, {pipeline_mode = #tpu.pipeline_mode<synchronous>, transform_indices = @transform_2, window_bounds = array<i64: 128, 384>}, {pipeline_mode = #tpu.pipeline_mode<synchronous>, transform_indices = @transform_3, window_bounds = array<i64: 1, 384>}, {pipeline_mode = #tpu.pipeline_mode<synchronous>, transform_indices = @transform_4, window_bounds = array<i64: 128, 128>}, {pipeline_mode = #tpu.pipeline_mode<synchronous>, transform_indices = @transform_5, window_bounds = array<i64: 1, 128>}, {pipeline_mode = #tpu.pipeline_mode<synchronous>, transform_indices = @transform_6, window_bounds = array<i64: 1, 128>}, {pipeline_mode = #tpu.pipeline_mode<synchronous>, transform_indices = @transform_7, window_bounds = array<i64: 1, 128>}, {pipeline_mode = #tpu.pipeline_mode<synchronous>, transform_indices = @transform_8, window_bounds = array<i64: 128, 512>}, {pipeline_mode = #tpu.pipeline_mode<synchronous>, transform_indices = @transform_9, window_bounds = array<i64: 1, 512>}, {pipeline_mode = #tpu.pipeline_mode<synchronous>, transform_indices = @transform_10, window_bounds = array<i64: 512, 128>}, {pipeline_mode = #tpu.pipeline_mode<synchronous>, transform_indices = @transform_11, window_bounds = array<i64: 1, 128>}, {pipeline_mode = #tpu.pipeline_mode<synchronous>, transform_indices = @transform_12, window_bounds = array<i64: 1, 128>}, {pipeline_mode = #tpu.pipeline_mode<synchronous>, transform_indices = @transform_13, window_bounds = array<i64: 1, 128>}, {transform_indices = @transform_14, window_bounds = array<i64: 2, 64, 128>}]} {
    %c0 = arith.constant 0 : index
    %c0_0 = arith.constant 0 : index
    %c0_1 = arith.constant 0 : index
    %0 = vector.load %arg1[%c0, %c0_0, %c0_1] : memref<2x64x128xf32, #tpu.memory_space<vmem>>, vector<2x64x128xf32>
    %1 = vector.shape_cast %0 : vector<2x64x128xf32> to vector<128x128xf32>
    %c0_2 = arith.constant 0 : index
    %c0_3 = arith.constant 0 : index
    %2 = vector.load %arg3[%c0_2, %c0_3] : memref<128x384xf32, #tpu.memory_space<vmem>>, vector<128x384xf32>
    %cst = arith.constant dense<0.000000e+00> : vector<128x384xf32>
    %3 = tpu.matmul %1, %2, %cst {dimension_numbers = #tpu.dot_dimension_numbers<[1], [0], [0], [1], [0, 0, 1, 1], [], []>} : vector<128x128xf32>, vector<128x384xf32>, vector<128x384xf32> -> vector<128x384xf32>
    %c0_4 = arith.constant 0 : index
    %c0_5 = arith.constant 0 : index
    %4 = vector.load %arg4[%c0_4, %c0_5] : memref<1x384xf32, #tpu.memory_space<vmem>>, vector<1x384xf32>
    %5 = vector.broadcast %4 : vector<1x384xf32> to vector<128x384xf32>
    %6 = arith.addf %3, %5 : vector<128x384xf32>
    %7 = vector.shape_cast %6 : vector<128x384xf32> to vector<2x64x384xf32>
    %8 = vector.extract_strided_slice %7 {offsets = [0, 0, 0], sizes = [2, 64, 48], strides = [1, 1, 1]} : vector<2x64x384xf32> to vector<2x64x48xf32>
    %9 = vector.extract_strided_slice %7 {offsets = [0, 0, 48], sizes = [2, 64, 48], strides = [1, 1, 1]} : vector<2x64x384xf32> to vector<2x64x48xf32>
    %10 = vector.extract_strided_slice %7 {offsets = [0, 0, 96], sizes = [2, 64, 48], strides = [1, 1, 1]} : vector<2x64x384xf32> to vector<2x64x48xf32>
    %11 = vector.extract_strided_slice %7 {offsets = [0, 0, 144], sizes = [2, 64, 48], strides = [1, 1, 1]} : vector<2x64x384xf32> to vector<2x64x48xf32>
    %12 = vector.extract_strided_slice %7 {offsets = [0, 0, 192], sizes = [2, 64, 48], strides = [1, 1, 1]} : vector<2x64x384xf32> to vector<2x64x48xf32>
    %13 = vector.extract_strided_slice %7 {offsets = [0, 0, 240], sizes = [2, 64, 48], strides = [1, 1, 1]} : vector<2x64x384xf32> to vector<2x64x48xf32>
    %14 = vector.extract_strided_slice %7 {offsets = [0, 0, 288], sizes = [2, 64, 48], strides = [1, 1, 1]} : vector<2x64x384xf32> to vector<2x64x48xf32>
    %15 = vector.extract_strided_slice %7 {offsets = [0, 0, 336], sizes = [2, 64, 48], strides = [1, 1, 1]} : vector<2x64x384xf32> to vector<2x64x48xf32>
    %16 = tpu.concatenate %8, %9, %10, %11, %12, %13, %14, %15 in 0 : vector<2x64x48xf32>, vector<2x64x48xf32>, vector<2x64x48xf32>, vector<2x64x48xf32>, vector<2x64x48xf32>, vector<2x64x48xf32>, vector<2x64x48xf32>, vector<2x64x48xf32> -> vector<16x64x48xf32>
    %17 = vector.extract_strided_slice %16 {offsets = [0, 0, 0], sizes = [16, 64, 16], strides = [1, 1, 1]} : vector<16x64x48xf32> to vector<16x64x16xf32>
    %18 = vector.extract_strided_slice %16 {offsets = [0, 0, 16], sizes = [16, 64, 16], strides = [1, 1, 1]} : vector<16x64x48xf32> to vector<16x64x16xf32>
    %19 = vector.extract_strided_slice %16 {offsets = [0, 0, 32], sizes = [16, 64, 16], strides = [1, 1, 1]} : vector<16x64x48xf32> to vector<16x64x16xf32>
    "tpu.trace_start"() <{level = 10 : i32, message = "nqd,nkd->nqk"}> : () -> ()
    %cst_6 = arith.constant dense<0.000000e+00> : vector<16x64x64xf32>
    %20 = tpu.matmul %17, %18, %cst_6 {dimension_numbers = #tpu.dot_dimension_numbers<[2], [2], [1], [1], [0, 0, 0, 1, 1, 1], [0], [0]>} : vector<16x64x16xf32>, vector<16x64x16xf32>, vector<16x64x64xf32> -> vector<16x64x64xf32>
    "tpu.trace_stop"() : () -> ()
    %c0_7 = arith.constant 0 : index
    %c0_8 = arith.constant 0 : index
    %c0_9 = arith.constant 0 : index
    %21 = vector.load %arg2[%c0_7, %c0_8, %c0_9] : memref<2x1x64xf32, #tpu.memory_space<vmem>>, vector<2x1x64xf32>
    %cst_10 = arith.constant -1.000000e+09 : f32
    %22 = vector.broadcast %cst_10 : f32 to vector<2x1x64xf32>
    %23 = arith.mulf %21, %22 : vector<2x1x64xf32>
    %24 = vector.shape_cast %20 : vector<16x64x64xf32> to vector<8x2x64x64xf32>
    %25 = vector.shape_cast %23 : vector<2x1x64xf32> to vector<1x2x1x64xf32>
    %26 = vector.broadcast %25 : vector<1x2x1x64xf32> to vector<8x2x64x64xf32>
    %27 = arith.addf %24, %26 : vector<8x2x64x64xf32>
    %28 = vector.shape_cast %27 : vector<8x2x64x64xf32> to vector<16x64x64xf32>
    %cst_11 = arith.constant dense<0xFF800000> : vector<16x64xf32>
    %29 = vector.multi_reduction <maximumf>, %28, %cst_11 [2] : vector<16x64x64xf32> to vector<16x64xf32>
    %30 = vector.shape_cast %29 : vector<16x64xf32> to vector<16x64x1xf32>
    %31 = vector.broadcast %30 : vector<16x64x1xf32> to vector<16x64x64xf32>
    %32 = arith.subf %28, %31 : vector<16x64x64xf32>
    %33 = math.exp %32 : vector<16x64x64xf32>
    %cst_12 = arith.constant dense<0.000000e+00> : vector<16x64xf32>
    %34 = vector.multi_reduction <add>, %33, %cst_12 [2] : vector<16x64x64xf32> to vector<16x64xf32>
    %35 = vector.shape_cast %34 : vector<16x64xf32> to vector<16x64x1xf32>
    "tpu.trace_start"() <{level = 10 : i32, message = "nqk,nkd->nqd"}> : () -> ()
    %cst_13 = arith.constant dense<0.000000e+00> : vector<16x64x16xf32>
    %36 = tpu.matmul %33, %19, %cst_13 {dimension_numbers = #tpu.dot_dimension_numbers<[2], [1], [1], [2], [0, 0, 0, 1, 1, 2], [0], [0]>} : vector<16x64x64xf32>, vector<16x64x16xf32>, vector<16x64x16xf32> -> vector<16x64x16xf32>
    "tpu.trace_stop"() : () -> ()
    %37 = tpu.reciprocal %35 {approx = true} : vector<16x64x1xf32> -> vector<16x64x1xf32>
    %38 = vector.broadcast %37 : vector<16x64x1xf32> to vector<16x64x16xf32>
    %39 = arith.mulf %36, %38 : vector<16x64x16xf32>
    %40 = vector.shape_cast %39 : vector<16x64x16xf32> to vector<8x2x64x16xf32>
    %41 = vector.extract_strided_slice %40 {offsets = [0, 0, 0, 0], sizes = [1, 2, 64, 16], strides = [1, 1, 1, 1]} : vector<8x2x64x16xf32> to vector<1x2x64x16xf32>
    %42 = vector.shape_cast %41 : vector<1x2x64x16xf32> to vector<2x64x16xf32>
    %43 = vector.extract_strided_slice %40 {offsets = [1, 0, 0, 0], sizes = [1, 2, 64, 16], strides = [1, 1, 1, 1]} : vector<8x2x64x16xf32> to vector<1x2x64x16xf32>
    %44 = vector.shape_cast %43 : vector<1x2x64x16xf32> to vector<2x64x16xf32>
    %45 = vector.extract_strided_slice %40 {offsets = [2, 0, 0, 0], sizes = [1, 2, 64, 16], strides = [1, 1, 1, 1]} : vector<8x2x64x16xf32> to vector<1x2x64x16xf32>
    %46 = vector.shape_cast %45 : vector<1x2x64x16xf32> to vector<2x64x16xf32>
    %47 = vector.extract_strided_slice %40 {offsets = [3, 0, 0, 0], sizes = [1, 2, 64, 16], strides = [1, 1, 1, 1]} : vector<8x2x64x16xf32> to vector<1x2x64x16xf32>
    %48 = vector.shape_cast %47 : vector<1x2x64x16xf32> to vector<2x64x16xf32>
    %49 = vector.extract_strided_slice %40 {offsets = [4, 0, 0, 0], sizes = [1, 2, 64, 16], strides = [1, 1, 1, 1]} : vector<8x2x64x16xf32> to vector<1x2x64x16xf32>
    %50 = vector.shape_cast %49 : vector<1x2x64x16xf32> to vector<2x64x16xf32>
    %51 = vector.extract_strided_slice %40 {offsets = [5, 0, 0, 0], sizes = [1, 2, 64, 16], strides = [1, 1, 1, 1]} : vector<8x2x64x16xf32> to vector<1x2x64x16xf32>
    %52 = vector.shape_cast %51 : vector<1x2x64x16xf32> to vector<2x64x16xf32>
    %53 = vector.extract_strided_slice %40 {offsets = [6, 0, 0, 0], sizes = [1, 2, 64, 16], strides = [1, 1, 1, 1]} : vector<8x2x64x16xf32> to vector<1x2x64x16xf32>
    %54 = vector.shape_cast %53 : vector<1x2x64x16xf32> to vector<2x64x16xf32>
    %55 = vector.extract_strided_slice %40 {offsets = [7, 0, 0, 0], sizes = [1, 2, 64, 16], strides = [1, 1, 1, 1]} : vector<8x2x64x16xf32> to vector<1x2x64x16xf32>
    %56 = vector.shape_cast %55 : vector<1x2x64x16xf32> to vector<2x64x16xf32>
    %57 = tpu.concatenate %42, %44, %46, %48, %50, %52, %54, %56 in 2 : vector<2x64x16xf32>, vector<2x64x16xf32>, vector<2x64x16xf32>, vector<2x64x16xf32>, vector<2x64x16xf32>, vector<2x64x16xf32>, vector<2x64x16xf32>, vector<2x64x16xf32> -> vector<2x64x128xf32>
    %58 = vector.shape_cast %57 : vector<2x64x128xf32> to vector<128x128xf32>
    %c0_14 = arith.constant 0 : index
    %c0_15 = arith.constant 0 : index
    %59 = vector.load %arg5[%c0_14, %c0_15] : memref<128x128xf32, #tpu.memory_space<vmem>>, vector<128x128xf32>
    %cst_16 = arith.constant dense<0.000000e+00> : vector<128x128xf32>
    %60 = tpu.matmul %58, %59, %cst_16 {dimension_numbers = #tpu.dot_dimension_numbers<[1], [0], [0], [1], [0, 0, 1, 1], [], []>} : vector<128x128xf32>, vector<128x128xf32>, vector<128x128xf32> -> vector<128x128xf32>
    %c0_17 = arith.constant 0 : index
    %c0_18 = arith.constant 0 : index
    %61 = vector.load %arg6[%c0_17, %c0_18] : memref<1x128xf32, #tpu.memory_space<vmem>>, vector<1x128xf32>
    %62 = vector.broadcast %61 : vector<1x128xf32> to vector<128x128xf32>
    %63 = arith.addf %60, %62 : vector<128x128xf32>
    %64 = arith.addf %1, %63 : vector<128x128xf32>
    %c0_19 = arith.constant 0 : index
    %c0_20 = arith.constant 0 : index
    %65 = vector.load %arg7[%c0_19, %c0_20] : memref<1x128xf32, #tpu.memory_space<vmem>>, vector<1x128xf32>
    %c0_21 = arith.constant 0 : index
    %c0_22 = arith.constant 0 : index
    %66 = vector.load %arg8[%c0_21, %c0_22] : memref<1x128xf32, #tpu.memory_space<vmem>>, vector<1x128xf32>
    %cst_23 = arith.constant dense<0.000000e+00> : vector<128xf32>
    %67 = vector.multi_reduction <add>, %64, %cst_23 [1] : vector<128x128xf32> to vector<128xf32>
    %68 = vector.shape_cast %67 : vector<128xf32> to vector<128x1xf32>
    %cst_24 = arith.constant 1.280000e+02 : f32
    %69 = vector.broadcast %cst_24 : f32 to vector<128x1xf32>
    %70 = arith.divf %68, %69 : vector<128x1xf32>
    %71 = arith.mulf %64, %64 : vector<128x128xf32>
    %cst_25 = arith.constant dense<0.000000e+00> : vector<128xf32>
    %72 = vector.multi_reduction <add>, %71, %cst_25 [1] : vector<128x128xf32> to vector<128xf32>
    %73 = vector.shape_cast %72 : vector<128xf32> to vector<128x1xf32>
    %cst_26 = arith.constant 1.280000e+02 : f32
    %74 = vector.broadcast %cst_26 : f32 to vector<128x1xf32>
    %75 = arith.divf %73, %74 : vector<128x1xf32>
    %76 = arith.mulf %70, %70 : vector<128x1xf32>
    %77 = arith.subf %75, %76 : vector<128x1xf32>
    %78 = vector.broadcast %70 : vector<128x1xf32> to vector<128x128xf32>
    %79 = arith.subf %64, %78 : vector<128x128xf32>
    %cst_27 = arith.constant 9.99999997E-7 : f32
    %80 = vector.broadcast %cst_27 : f32 to vector<128x1xf32>
    %81 = arith.addf %77, %80 : vector<128x1xf32>
    %82 = math.rsqrt %81 : vector<128x1xf32>
    %83 = vector.broadcast %82 : vector<128x1xf32> to vector<128x128xf32>
    %84 = arith.mulf %79, %83 : vector<128x128xf32>
    %85 = vector.broadcast %65 : vector<1x128xf32> to vector<128x128xf32>
    %86 = arith.mulf %84, %85 : vector<128x128xf32>
    %87 = vector.broadcast %66 : vector<1x128xf32> to vector<128x128xf32>
    %88 = arith.addf %86, %87 : vector<128x128xf32>
    %c0_28 = arith.constant 0 : index
    %c0_29 = arith.constant 0 : index
    %89 = vector.load %arg9[%c0_28, %c0_29] : memref<128x512xf32, #tpu.memory_space<vmem>>, vector<128x512xf32>
    %cst_30 = arith.constant dense<0.000000e+00> : vector<128x512xf32>
    %90 = tpu.matmul %88, %89, %cst_30 {dimension_numbers = #tpu.dot_dimension_numbers<[1], [0], [0], [1], [0, 0, 1, 1], [], []>} : vector<128x128xf32>, vector<128x512xf32>, vector<128x512xf32> -> vector<128x512xf32>
    %c0_31 = arith.constant 0 : index
    %c0_32 = arith.constant 0 : index
    %91 = vector.load %arg10[%c0_31, %c0_32] : memref<1x512xf32, #tpu.memory_space<vmem>>, vector<1x512xf32>
    %92 = vector.broadcast %91 : vector<1x512xf32> to vector<128x512xf32>
    %93 = arith.addf %90, %92 : vector<128x512xf32>
    %cst_33 = arith.constant 0.000000e+00 : f32
    %94 = vector.broadcast %cst_33 : f32 to vector<128x512xf32>
    %95 = arith.maximumf %93, %94 : vector<128x512xf32>
    %c0_34 = arith.constant 0 : index
    %c0_35 = arith.constant 0 : index
    %96 = vector.load %arg11[%c0_34, %c0_35] : memref<512x128xf32, #tpu.memory_space<vmem>>, vector<512x128xf32>
    %cst_36 = arith.constant dense<0.000000e+00> : vector<128x128xf32>
    %97 = tpu.matmul %95, %96, %cst_36 {dimension_numbers = #tpu.dot_dimension_numbers<[1], [0], [0], [1], [0, 0, 1, 1], [], []>} : vector<128x512xf32>, vector<512x128xf32>, vector<128x128xf32> -> vector<128x128xf32>
    %c0_37 = arith.constant 0 : index
    %c0_38 = arith.constant 0 : index
    %98 = vector.load %arg12[%c0_37, %c0_38] : memref<1x128xf32, #tpu.memory_space<vmem>>, vector<1x128xf32>
    %99 = vector.broadcast %98 : vector<1x128xf32> to vector<128x128xf32>
    %100 = arith.addf %97, %99 : vector<128x128xf32>
    %101 = arith.addf %88, %100 : vector<128x128xf32>
    %c0_39 = arith.constant 0 : index
    %c0_40 = arith.constant 0 : index
    %102 = vector.load %arg13[%c0_39, %c0_40] : memref<1x128xf32, #tpu.memory_space<vmem>>, vector<1x128xf32>
    %c0_41 = arith.constant 0 : index
    %c0_42 = arith.constant 0 : index
    %103 = vector.load %arg14[%c0_41, %c0_42] : memref<1x128xf32, #tpu.memory_space<vmem>>, vector<1x128xf32>
    %cst_43 = arith.constant dense<0.000000e+00> : vector<128xf32>
    %104 = vector.multi_reduction <add>, %101, %cst_43 [1] : vector<128x128xf32> to vector<128xf32>
    %105 = vector.shape_cast %104 : vector<128xf32> to vector<128x1xf32>
    %cst_44 = arith.constant 1.280000e+02 : f32
    %106 = vector.broadcast %cst_44 : f32 to vector<128x1xf32>
    %107 = arith.divf %105, %106 : vector<128x1xf32>
    %108 = arith.mulf %101, %101 : vector<128x128xf32>
    %cst_45 = arith.constant dense<0.000000e+00> : vector<128xf32>
    %109 = vector.multi_reduction <add>, %108, %cst_45 [1] : vector<128x128xf32> to vector<128xf32>
    %110 = vector.shape_cast %109 : vector<128xf32> to vector<128x1xf32>
    %cst_46 = arith.constant 1.280000e+02 : f32
    %111 = vector.broadcast %cst_46 : f32 to vector<128x1xf32>
    %112 = arith.divf %110, %111 : vector<128x1xf32>
    %113 = arith.mulf %107, %107 : vector<128x1xf32>
    %114 = arith.subf %112, %113 : vector<128x1xf32>
    %115 = vector.broadcast %107 : vector<128x1xf32> to vector<128x128xf32>
    %116 = arith.subf %101, %115 : vector<128x128xf32>
    %cst_47 = arith.constant 9.99999997E-7 : f32
    %117 = vector.broadcast %cst_47 : f32 to vector<128x1xf32>
    %118 = arith.addf %114, %117 : vector<128x1xf32>
    %119 = math.rsqrt %118 : vector<128x1xf32>
    %120 = vector.broadcast %119 : vector<128x1xf32> to vector<128x128xf32>
    %121 = arith.mulf %116, %120 : vector<128x128xf32>
    %122 = vector.broadcast %102 : vector<1x128xf32> to vector<128x128xf32>
    %123 = arith.mulf %121, %122 : vector<128x128xf32>
    %124 = vector.broadcast %103 : vector<1x128xf32> to vector<128x128xf32>
    %125 = arith.addf %123, %124 : vector<128x128xf32>
    %126 = vector.shape_cast %125 : vector<128x128xf32> to vector<2x64x128xf32>
    %c0_48 = arith.constant 0 : index
    %c0_49 = arith.constant 0 : index
    %c0_50 = arith.constant 0 : index
    %127 = vector.load %arg15[%c0_48, %c0_49, %c0_50] : memref<2x64x128xf32, #tpu.memory_space<vmem>>, vector<2x64x128xf32>
    tpu.vector_store %arg15[%c0_48, %c0_49, %c0_50], %126 {strides = array<i32>} : memref<2x64x128xf32, #tpu.memory_space<vmem>>, vector<2x64x128xf32>,
    return
  }
  func.func @transform_0(%arg0: i32) -> (i32, i32, i32) {
    %c0_i32 = arith.constant 0 : i32
    %c0_i32_0 = arith.constant 0 : i32
    %c0_i32_1 = arith.constant 0 : i32
    return %arg0, %c0_i32, %c0_i32_0 : i32, i32, i32
  }
  func.func @transform_1(%arg0: i32) -> (i32, i32, i32) {
    %c0_i32 = arith.constant 0 : i32
    %c0_i32_0 = arith.constant 0 : i32
    %c0_i32_1 = arith.constant 0 : i32
    return %arg0, %c0_i32, %c0_i32_0 : i32, i32, i32
  }
  func.func @transform_2(%arg0: i32) -> (i32, i32) {
    %c0_i32 = arith.constant 0 : i32
    %c0_i32_0 = arith.constant 0 : i32
    %c0_i32_1 = arith.constant 0 : i32
    return %c0_i32, %c0_i32_0 : i32, i32
  }
  func.func @transform_3(%arg0: i32) -> (i32, i32) {
    %c0_i32 = arith.constant 0 : i32
    %c0_i32_0 = arith.constant 0 : i32
    %c0_i32_1 = arith.constant 0 : i32
    return %c0_i32, %c0_i32_0 : i32, i32
  }
  func.func @transform_4(%arg0: i32) -> (i32, i32) {
    %c0_i32 = arith.constant 0 : i32
    %c0_i32_0 = arith.constant 0 : i32
    %c0_i32_1 = arith.constant 0 : i32
    return %c0_i32, %c0_i32_0 : i32, i32
  }
  func.func @transform_5(%arg0: i32) -> (i32, i32) {
    %c0_i32 = arith.constant 0 : i32
    %c0_i32_0 = arith.constant 0 : i32
    %c0_i32_1 = arith.constant 0 : i32
    return %c0_i32, %c0_i32_0 : i32, i32
  }
  func.func @transform_6(%arg0: i32) -> (i32, i32) {
    %c0_i32 = arith.constant 0 : i32
    %c0_i32_0 = arith.constant 0 : i32
    %c0_i32_1 = arith.constant 0 : i32
    return %c0_i32, %c0_i32_0 : i32, i32
  }
  func.func @transform_7(%arg0: i32) -> (i32, i32) {
    %c0_i32 = arith.constant 0 : i32
    %c0_i32_0 = arith.constant 0 : i32
    %c0_i32_1 = arith.constant 0 : i32
    return %c0_i32, %c0_i32_0 : i32, i32
  }
  func.func @transform_8(%arg0: i32) -> (i32, i32) {
    %c0_i32 = arith.constant 0 : i32
    %c0_i32_0 = arith.constant 0 : i32
    %c0_i32_1 = arith.constant 0 : i32
    return %c0_i32, %c0_i32_0 : i32, i32
  }
  func.func @transform_9(%arg0: i32) -> (i32, i32) {
    %c0_i32 = arith.constant 0 : i32
    %c0_i32_0 = arith.constant 0 : i32
    %c0_i32_1 = arith.constant 0 : i32
    return %c0_i32, %c0_i32_0 : i32, i32
  }
  func.func @transform_10(%arg0: i32) -> (i32, i32) {
    %c0_i32 = arith.constant 0 : i32
    %c0_i32_0 = arith.constant 0 : i32
    %c0_i32_1 = arith.constant 0 : i32
    return %c0_i32, %c0_i32_0 : i32, i32
  }
  func.func @transform_11(%arg0: i32) -> (i32, i32) {
    %c0_i32 = arith.constant 0 : i32
    %c0_i32_0 = arith.constant 0 : i32
    %c0_i32_1 = arith.constant 0 : i32
    return %c0_i32, %c0_i32_0 : i32, i32
  }
  func.func @transform_12(%arg0: i32) -> (i32, i32) {
    %c0_i32 = arith.constant 0 : i32
    %c0_i32_0 = arith.constant 0 : i32
    %c0_i32_1 = arith.constant 0 : i32
    return %c0_i32, %c0_i32_0 : i32, i32
  }
  func.func @transform_13(%arg0: i32) -> (i32, i32) {
    %c0_i32 = arith.constant 0 : i32
    %c0_i32_0 = arith.constant 0 : i32
    %c0_i32_1 = arith.constant 0 : i32
    return %c0_i32, %c0_i32_0 : i32, i32
  }
  func.func @transform_14(%arg0: i32) -> (i32, i32, i32) {
    %c0_i32 = arith.constant 0 : i32
    %c0_i32_0 = arith.constant 0 : i32
    %c0_i32_1 = arith.constant 0 : i32
    return %arg0, %c0_i32, %c0_i32_0 : i32, i32, i32
  }
}

</mosaic_0001>

<bundles_post_ra>
// kernel: encoder_layer.1
= control target key start
LH: loop header
LB: loop body
LE: loop exit
PB: predicated region body
PF: predicated region fallthrough
CT: control target
= control target key end

     0   :  { %19 = vsyncpa [#allocation3], 0  ;;  %s21310_s0 = inlined_call_operand.vmem [shape: f32[4,64,128], index: 0, kind: input, shape index: {}]   ;;  %s21311_s1 = inlined_call_operand.vmem [shape: f32[4,1,64], index: 1, kind: input, shape index: {}]   ;;  %s21312_s2 = inlined_call_operand.vmem [shape: f32[128,384], index: 2, kind: input, shape index: {}]   ;;  %s21313_s3 = inlined_call_operand.vmem [shape: f32[1,384], index: 3, kind: input, shape index: {}]   ;;  %s21314_s4 = inlined_call_operand.vmem [shape: f32[128,128], index: 4, kind: input, shape index: {}]   ;;  %s21315_s5 = inlined_call_operand.vmem [shape: f32[1,128], index: 5, kind: input, shape index: {}]   ;;  %s21316_s6 = inlined_call_operand.vmem [shape: f32[1,128], index: 6, kind: input, shape index: {}]   ;;  %s21317_s7 = inlined_call_operand.vmem [shape: f32[1,128], index: 7, kind: input, shape index: {}]   ;;  %s21318_s8 = inlined_call_operand.vmem [shape: f32[128,512], index: 8, kind: input, shape index: {}]   ;;  %s21319_s9 = inlined_call_operand.vmem [shape: f32[1,512], index: 9, kind: input, shape index: {}]   ;;  %s21320_s10 = inlined_call_operand.vmem [shape: f32[512,128], index: 10, kind: input, shape index: {}]   ;;  %s21321_s11 = inlined_call_operand.vmem [shape: f32[1,128], index: 11, kind: input, shape index: {}]   ;;  %s21322_s12 = inlined_call_operand.vmem [shape: f32[1,128], index: 12, kind: input, shape index: {}]   ;;  %s21323_s13 = inlined_call_operand.vmem [shape: f32[1,128], index: 13, kind: input, shape index: {}]   ;;  %s21324_s14 = inlined_call_operand.hbm [shape: f32[4,64,128], index: 14, kind: output, shape index: {}]  }
   0x1   :  { %21 = vsyncpa [#allocation3 + $0x1], 0  ;;  %s14632_s29 = smov 0   ;;  %s14634_s30 = smov 0  }
   0x2   :  { %s14636_s15 = smov 0   ;;  %s14638_s16 = smov 0  }
   0x3 LB: > { %21643 = sst [smem:[#allocation5_spill]] %s14532_s29  ;;  %s14653_s17 = sadd.s32 4294967295, %s14544_s16   ;;  %s14544_s16 = sphi %s14638_s16, %s22712_s16   ;;  %s14540_s15 = sphi %s14636_s15, %s22714_s15   ;;  %s14536_s30 = sphi %s14634_s30, %s22716_s30   ;;  %s14532_s29 = sphi %s14632_s29, %s22715_s29  }
   0x4   : > { %21644 = sst [smem:[#allocation6_spill]] %s14540_s15  ;;  %s9905_s18 = sadd.s32 4294967294, %s14544_s16  }
   0x5   : > { %21645 = sst [smem:[#allocation7_spill]] %s14544_s16  ;;  %s14657_s19 = sadd.s32 1, %s14544_s16  }
   0x6   : > { %21646 = sst [smem:[#allocation8_spill]] %s14657_s19  ;;  %s338_s20 = sadd.s32 1, %s14540_s15 }
   0x7   : > { %s335_s21 = ssub.s32 %s14544_s16, %s14657_s19  ;;  %p348_p0 = scmp.ne.s32.totalorder %s14540_s15, %s14536_s30 }
   0x8   : > { %p336_p1 = scmp.eq.s32.totalorder %s335_s21, 0  ;;  %p349_p2 = scmp.eq.s32.totalorder %s14653_s17, 1 }
   0x9   : > { %p354_p3 = scmp.ne.s32.totalorder %s14536_s30, %s14532_s29  ;;  %p355_p4 = scmp.eq.s32.totalorder %s9905_s18, 1 }
   0xa   : > { %s14668_s22 = scalar_select %p336_p1, %s14540_s15, %s338_s20  }
   0xb   : > { %p14670_p5 = por %p349_p2, %p348_p0  ;;  %p14674_p6 = por %p355_p4, %p354_p3 }
   0xc   : > { %21647 = sst [smem:[#allocation9_spill]] %s14668_s22  ;;  %p9908_p7 = scmp.ge.s32.totalorder %s14544_s16, 1 }
   0xd   : > { %s21649_s24 = scalar_select %p14674_p6, 1, 0 }
   0xe   : > { %p427_p8 = scmp.lt.s32.totalorder %s14544_s16, 3 }
   0xf   : > { %21650 = sst [smem:[#allocation10_spill]] %s21649_s24 }
  0x10   : > { %p428_p9 = pnand %p9908_p7, %p427_p8 }
  0x12   : > { %431 = sbr.rel (%p428_p9) target bundleno = 4188 (0x105c), region = 76 }
  0x19   : > { %v508_v0 = vld [vmem:[%s21312_s2 + $0x8] sm:$0xff]  ;;  %v511_v1 = vld [vmem:[%s21312_s2 + $0x20] sm:$0xff]  ;;  %s21329_s21 = sshll.u32 %s14653_s17, 1  ;;  %v510_v4 = vld [vmem:[%s21312_s2 + $0x18] sm:$0xff]  ;;  %v21334_v7 = vmov 0.0   ;;  %vm1167_vm0 = vcmask 130048  }
  0x1a   : > { %v507_v2 = vld [vmem:[%s21312_s2] sm:$0xff]  ;;  %v12057_v3 = vpack.c.bf16 %v511_v1, %v508_v0  ;;  %v509_v5 = vld [vmem:[%s21312_s2 + $0x10] sm:$0xff]  ;;  %v512_v6 = vld [vmem:[%s21312_s2 + $0x28] sm:$0xff]  ;;  %636 = vmatprep.mubr.f32.mxu0 %v21334_v7  ;;  %p14720_p10 = scmp.lt.s32.totalorder %s21329_s21, 3  ;;  %s21652_s21 = sshll.u32 %s14653_s17, 1  ;;  %vm1006_vm2 = vcmask 261120  }
  0x1b   : > { %v12059_v8 = vpack.c.bf16 %v510_v4, %v507_v2  ;;  %v12089_v9 = vpack.c.bf16 %v512_v6, %v509_v5  ;;  %v514_v10 = vld [vmem:[%s21312_s2 + $0x38] sm:$0xff]  ;;  %v517_v11 = vld [vmem:[%s21312_s2 + $0x50] sm:$0xff]  ;;  %v516_v14 = vld [vmem:[%s21312_s2 + $0x48] sm:$0xff]  ;;  %s14547_s25 = smov 32   ;;  %s14548_s15 = smov 80   ;;  %vm3840_vm3 = vcmask 523264  }
  0x1c   : > { %v513_v12 = vld [vmem:[%s21312_s2 + $0x30] sm:$0xff]  ;;  %12058 = vmatprep.subr.bf16.mxu0 %v12057_v3  ;;  %v12061_v13 = vpack.c.bf16 %v517_v11, %v514_v10  ;;  %v515_v15 = vld [vmem:[%s21312_s2 + $0x40] sm:$0xff]  ;;  %v518_v16 = vld [vmem:[%s21312_s2 + $0x58] sm:$0xff]  ;;  %s22718_s21 = smov (!%p14720_p10, %s21652_s21), 3  ;;  %s14549_s26 = smov 16   ;;  %vm8177_vm4 = vcmask 392192  }
  0x1d   : > { %12060 = vmatpush1.bf16.msra.mxu0 %v12059_v8  ;;  %12090 = vmatprep.subr.bf16.mxu1 %v12089_v9  ;;  %v12063_v17 = vpack.c.bf16 %v516_v14, %v513_v12  ;;  %v12093_v18 = vpack.c.bf16 %v518_v16, %v515_v15  ;;  %v520_v19 = vld [vmem:[%s21312_s2 + $0x68] sm:$0xff]  ;;  %v523_v20 = vld [vmem:[%s21312_s2 + $0x80] sm:$0xff]  ;;  %v522_v23 = vld [vmem:[%s21312_s2 + $0x78] sm:$0xff]  ;;  %s10310_s24 = sshll.u32 %s22718_s21, 6  ;;  %s21623_s27 = smov 96   ;;  %vm8210_vm5 = vcmask 654336  }
  0x1e   : > { %v519_v21 = vld [vmem:[%s21312_s2 + $0x60] sm:$0xff]  ;;  %12062 = vmatprep.subr.bf16.mxu0 %v12061_v13  ;;  %12092 = vmatpush3.bf16.msra.mxu1 %v12089_v9  ;;  %v12065_v22 = vpack.c.bf16 %v523_v20, %v520_v19  ;;  %v521_v24 = vld [vmem:[%s21312_s2 + $0x70] sm:$0xff]  ;;  %v524_v25 = vld [vmem:[%s21312_s2 + $0x88] sm:$0xff]  ;;  %s14794_s16 = scalar_lea.vmem %s21310_s0, %s10310_s24  ;;  %s21625_s28 = smov 112   ;;  %vm8227_vm6 = vcmask 785408   ;;  %vm8244_vm7 = vcmask 916480  }
  0x1f   : > { %12094 = vmatprep.subr.bf16.mxu1 %v12093_v18  ;;  %v12097_v26 = vpack.c.bf16 %v524_v25, %v521_v24  ;;  %v526_v27 = vld [vmem:[%s21312_s2 + $0x98] sm:$0xff]  ;;  %v529_v28 = vld [vmem:[%s21312_s2 + $0xb0] sm:$0xff]  ;;  %v527_v29 = vld [vmem:[%s21312_s2 + $0xa0] sm:$0xff]  ;;  %v12067_v31 = vpack.c.bf16 %v522_v23, %v519_v21  ;;  %s14552_s29 = smov 48   ;;  %s21621_s24 = smov 64  }
  0x20   : > { %v530_v30 = vld [vmem:[%s21312_s2 + $0xb8] sm:$0xff]  ;;  %v12069_v32 = vpack.c.bf16 %v529_v28, %v526_v27  ;;  %v525_v33 = vld [vmem:[%s21312_s2 + $0x90] sm:$0xff]  ;;  %v528_v34 = vld [vmem:[%s21312_s2 + $0xa8] sm:$0xff]  ;;  %s16271_s19 = scalar_lea.vmem %s21311_s1, %s22718_s21  ;;  %s22570_s21 = smov 112  }
  0x21   : > { %12064 = vmatpush1.bf16.msra.mxu0 %v12063_v17  ;;  %v12101_v35 = vpack.c.bf16 %v530_v30, %v527_v29  ;;  %v532_v36 = vld [vmem:[%s21312_s2 + $0xc8] sm:$0xff]  ;;  %v535_v37 = vld [vmem:[%s21312_s2 + $0xe0] sm:$0xff]  ;;  %v533_v38 = vld [vmem:[%s21312_s2 + $0xd0] sm:$0xff]  ;;  %v12071_v40 = vpack.c.bf16 %v528_v34, %v525_v33  ;;  %s22572_s20 = smov 96   ;;  %s475_s22 = sand.u32 1, %s14536_s30  }
  0x22   : > { %12066 = vmatprep.subr.bf16.mxu0 %v12065_v22  ;;  %12096 = vmatpush3.bf16.msra.mxu1 %v12093_v18  ;;  %v536_v39 = vld [vmem:[%s21312_s2 + $0xe8] sm:$0xff]  ;;  %v12073_v41 = vpack.c.bf16 %v535_v37, %v532_v36  ;;  %v531_v42 = vld [vmem:[%s21312_s2 + $0xc0] sm:$0xff]  ;;  %v534_v43 = vld [vmem:[%s21312_s2 + $0xd8] sm:$0xff] }
  0x23   : > { %12098 = vmatprep.subr.bf16.mxu1 %v12097_v26  ;;  %v12105_v44 = vpack.c.bf16 %v536_v39, %v533_v38  ;;  %v538_v45 = vld [vmem:[%s21312_s2 + $0xf8] sm:$0xff]  ;;  %v541_v46 = vld [vmem:[%s21312_s2 + $0x110] sm:$0xff]  ;;  %v539_v47 = vld [vmem:[%s21312_s2 + $0x100] sm:$0xff]  ;;  %v12075_v49 = vpack.c.bf16 %v534_v43, %v531_v42 }
  0x24   : > { %v542_v48 = vld [vmem:[%s21312_s2 + $0x118] sm:$0xff]  ;;  %v12077_v50 = vpack.c.bf16 %v541_v46, %v538_v45  ;;  %v537_v51 = vld [vmem:[%s21312_s2 + $0xf0] sm:$0xff]  ;;  %v540_v52 = vld [vmem:[%s21312_s2 + $0x108] sm:$0xff] }
  0x25   : > { %12068 = vmatpush1.bf16.msra.mxu0 %v12067_v31  ;;  %v491_v53 = vld [vmem:[%s14794_s16] sm:$0xff]  ;;  %v12109_v54 = vpack.c.bf16 %v542_v48, %v539_v47  ;;  %v544_v55 = vld [vmem:[%s21312_s2 + $0x128] sm:$0xff]  ;;  %v545_v57 = vld [vmem:[%s21312_s2 + $0x130] sm:$0xff]  ;;  %v12079_v59 = vpack.c.bf16 %v540_v52, %v537_v51 }
  0x26   : > { %12070 = vmatprep.subr.bf16.mxu0 %v12069_v32  ;;  %12100 = vmatpush3.bf16.msra.mxu1 %v12097_v26  ;;  %v547_v56 = vld [vmem:[%s21312_s2 + $0x140] sm:$0xff]  ;;  %v548_v58 = vld [vmem:[%s21312_s2 + $0x148] sm:$0xff]  ;;  %v546_v62 = vld [vmem:[%s21312_s2 + $0x138] sm:$0xff]  ;;  %v557_v26 = vlaneseq }
  0x27   : > { %12102 = vmatprep.subr.bf16.mxu1 %v12101_v35  ;;  %11081 = vmatprep.mubr.f32.mxu1 %v491_v53  ;;  %v12081_v60 = vpack.c.bf16 %v547_v56, %v544_v55  ;;  %v543_v61 = vld [vmem:[%s21312_s2 + $0x120] sm:$0xff]  ;;  %v12113_v63 = vpack.c.bf16 %v548_v58, %v545_v57  ;;  %v550_v0 = vld [vmem:[%s21312_s2 + $0x158] sm:$0xff]  ;;  %v553_v1 = vld [vmem:[%s21312_s2 + $0x170] sm:$0xff] }
  0x28   : > { %v551_v2 = vld [vmem:[%s21312_s2 + $0x160] sm:$0xff]  ;;  %v554_v3 = vld [vmem:[%s21312_s2 + $0x178] sm:$0xff]  ;;  %v12083_v4 = vpack.c.bf16 %v546_v62, %v543_v61  ;;  %v12085_v5 = vpack.c.bf16 %v553_v1, %v550_v0  ;;  %v549_v6 = vld [vmem:[%s21312_s2 + $0x150] sm:$0xff]  ;;  %v14875_v27 = vshrl.u32 %v557_v26, 7 }
  0x29   : > { %12072 = vmatpush1.bf16.msra.mxu0 %v12071_v40  ;;  %v552_v8 = vld [vmem:[%s21312_s2 + $0x168] sm:$0xff]  ;;  %v12117_v9 = vpack.c.bf16 %v554_v3, %v551_v2  ;;  %v493_v12 = vld [vmem:[%s14794_s16 + $0x10] sm:$0xff]  ;;  %v494_v13 = vld [vmem:[%s14794_s16 + $0x18] sm:$0xff] }
  0x2a   : > { %12074 = vmatprep.subr.bf16.mxu0 %v12073_v41  ;;  %12104 = vmatpush3.bf16.msra.mxu1 %v12101_v35  ;;  %v12087_v10 = vpack.c.bf16 %v552_v8, %v549_v6  ;;  %v492_v11 = vld [vmem:[%s14794_s16 + $0x8] sm:$0xff]  ;;  %v495_v14 = vld [vmem:[%s14794_s16 + $0x20] sm:$0xff]  ;;  %v497_v16 = vld [vmem:[%s14794_s16 + $0x30] sm:$0xff]  ;;  %21653 = vst [vmem:[#allocation11_spill] sm:$0xff] %v14875_v27  ;;  %v14878_v28 = vsub.s32 0, %v14875_v27  ;;  %v21332_v30 = vsub.s32 2, %v14875_v27 }
  0x2b   : > { %12106 = vmatprep.subr.bf16.mxu1 %v12105_v44  ;;  %v496_v15 = vld [vmem:[%s14794_s16 + $0x28] sm:$0xff]  ;;  %v498_v17 = vld [vmem:[%s14794_s16 + $0x38] sm:$0xff]  ;;  %v499_v18 = vld [vmem:[%s14794_s16 + $0x40] sm:$0xff]  ;;  %v21333_v32 = vsub.s32 1, %v14875_v27 }
  0x2c   : > { %v500_v19 = vld [vmem:[%s14794_s16 + $0x48] sm:$0xff]  ;;  %v501_v20 = vld [vmem:[%s14794_s16 + $0x50] sm:$0xff]  ;;  %v502_v21 = vld [vmem:[%s14794_s16 + $0x58] sm:$0xff]  ;;  %21654 = vst [vmem:[#allocation12_spill] sm:$0xff] %v14878_v28 }
  0x2d   : > { %12076 = vmatpush1.bf16.msra.mxu0 %v12075_v49  ;;  %v503_v22 = vld [vmem:[%s14794_s16 + $0x60] sm:$0xff]  ;;  %v504_v23 = vld [vmem:[%s14794_s16 + $0x68] sm:$0xff]  ;;  %v505_v24 = vld [vmem:[%s14794_s16 + $0x70] sm:$0xff] }
  0x2e   : > { %12078 = vmatprep.subr.bf16.mxu0 %v12077_v50  ;;  %12108 = vmatpush3.bf16.msra.mxu1 %v12105_v44  ;;  %v506_v25 = vld [vmem:[%s14794_s16 + $0x78] sm:$0xff]  ;;  %v555_v29 = vld [vmem:[%s21313_s3] sm:$0x7]  ;;  %vm15192_vm1 = vmpackc.low %vm1167_vm0, %vm1167_vm0 }
  0x2f   : > { %12110 = vmatprep.subr.bf16.mxu1 %v12109_v54  ;;  %v14885_v31 = vrot.slane %v555_v29, %v14878_v28  ;;  %v14890_v33 = vrot.slane %v555_v29, %v21332_v30  ;;  %v14897_v36 = vrot.slane %v555_v29, %v21333_v32 }
  0x31   : > { %12080 = vmatpush1.bf16.msra.mxu0 %v12079_v59 }
  0x32   : > { %12082 = vmatprep.subr.bf16.mxu0 %v12081_v60  ;;  %12112 = vmatpush3.bf16.msra.mxu1 %v12109_v54 }
  0x33   : > { %12114 = vmatprep.subr.bf16.mxu1 %v12113_v63 }
  0x35   : > { %12084 = vmatpush1.bf16.msra.mxu0 %v12083_v4 }
  0x36   : > { %12086 = vmatprep.subr.bf16.mxu0 %v12085_v5  ;;  %12116 = vmatpush3.bf16.msra.mxu1 %v12113_v63 }
  0x37   : > { %12118 = vmatprep.subr.bf16.mxu1 %v12117_v9 }
  0x39   : > { %12088 = vmatpush1.bf16.msra.mxu0 %v12087_v10 }
  0x3a   : > { %12120 = vmatpush3.bf16.msra.mxu1 %v12117_v9 }
  0x3c   : > { %637 = vmatmul.mubr.f32.vlgmr.msra.gmra.mrb[0].mxu0 %v491_v53 }
  0x3d   : > { %642 = vmatprep.mubr.f32.mxu0 %v21334_v7  ;;  %11082 = vmatmul.mubr.f32.vlgmr.msra.gmra.mrb[0].mxu1 %v492_v11 }
  0x3e   : > { %11084 = vmatprep.mubr.f32.mxu1 %v493_v12 }
  0x40   : > { %643 = vmatmul.mubr.f32.gmra.mrb[2].mxu0 %v492_v11 }
  0x41   : > { %11085 = vmatmul.mubr.f32.gmra.mrb[2].mxu1 %v494_v13  ;;  %648 = vmatprep.mubr.f32.mxu0 %v21334_v7 }
  0x42   : > { %11087 = vmatprep.mubr.f32.mxu1 %v495_v14 }
  0x44   : > { %649 = vmatmul.mubr.f32.gmra.mrb[4].mxu0 %v493_v12 }
  0x45   : > { %654 = vmatprep.mubr.f32.mxu0 %v21334_v7  ;;  %11088 = vmatmul.mubr.f32.gmra.mrb[4].mxu1 %v496_v15 }
  0x46   : > { %11090 = vmatprep.mubr.f32.mxu1 %v497_v16 }
  0x48   : > { %655 = vmatmul.mubr.f32.gmra.mrb[6].mxu0 %v494_v13 }
  0x49   : > { %11091 = vmatmul.mubr.f32.gmra.mrb[6].mxu1 %v498_v17  ;;  %660 = vmatprep.mubr.f32.mxu0 %v21334_v7 }
  0x4a   : > { %11093 = vmatprep.mubr.f32.mxu1 %v499_v18 }
  0x4c   : > { %661 = vmatmul.mubr.f32.gmra.mrb[8].mxu0 %v495_v14 }
  0x4d   : > { %666 = vmatprep.mubr.f32.mxu0 %v21334_v7  ;;  %11094 = vmatmul.mubr.f32.gmra.mrb[8].mxu1 %v500_v19 }
  0x4e   : > { %11096 = vmatprep.mubr.f32.mxu1 %v501_v20 }
  0x50   : > { %667 = vmatmul.mubr.f32.gmra.mrb[10].mxu0 %v496_v15 }
  0x51   : > { %11097 = vmatmul.mubr.f32.gmra.mrb[10].mxu1 %v502_v21  ;;  %672 = vmatprep.mubr.f32.mxu0 %v21334_v7 }
  0x52   : > { %11099 = vmatprep.mubr.f32.mxu1 %v503_v22 }
  0x54   : > { %673 = vmatmul.mubr.f32.gmra.mrb[12].mxu0 %v497_v16 }
  0x55   : > { %678 = vmatprep.mubr.f32.mxu0 %v21334_v7  ;;  %11100 = vmatmul.mubr.f32.gmra.mrb[12].mxu1 %v504_v23 }
  0x56   : > { %11102 = vmatprep.mubr.f32.mxu1 %v505_v24 }
  0x58   : > { %679 = vmatmul.mubr.f32.gmra.mrb[14].mxu0 %v498_v17 }
  0x59   : > { %11103 = vmatmul.mubr.f32.gmra.mrb[14].mxu1 %v506_v25  ;;  %684 = vmatprep.mubr.f32.mxu0 %v21334_v7 }
  0x5c   : > { %685 = vmatmul.mubr.f32.gmra.mrb[16].mxu0 %v499_v18 }
  0x5d   : > { %690 = vmatprep.mubr.f32.mxu0 %v21334_v7 }
  0x60   : > { %691 = vmatmul.mubr.f32.gmra.mrb[18].mxu0 %v500_v19 }
  0x61   : > { %696 = vmatprep.mubr.f32.mxu0 %v21334_v7 }
  0x64   : > { %697 = vmatmul.mubr.f32.gmra.mrb[20].mxu0 %v501_v20 }
  0x65   : > { %702 = vmatprep.mubr.f32.mxu0 %v21334_v7 }
  0x68   : > { %703 = vmatmul.mubr.f32.gmra.mrb[22].mxu0 %v502_v21 }
  0x69   : > { %708 = vmatprep.mubr.f32.mxu0 %v21334_v7 }
  0x6c   : > { %709 = vmatmul.mubr.f32.gmra.mrb[24].mxu0 %v503_v22 }
  0x6d   : > { %714 = vmatprep.mubr.f32.mxu0 %v21334_v7 }
  0x70   : > { %715 = vmatmul.mubr.f32.gmra.mrb[26].mxu0 %v504_v23 }
  0x71   : > { %720 = vmatprep.mubr.f32.mxu0 %v21334_v7 }
  0x74   : > { %721 = vmatmul.mubr.f32.gmra.mrb[28].mxu0 %v505_v24 }
  0x75   : > { %726 = vmatprep.mubr.f32.mxu0 %v21334_v7 }
  0x78   : > { %727 = vmatmul.mubr.f32.gmra.mrb[30].mxu0 %v506_v25 }
 0x10f   : > { %v638_v34 = vpop.f32.mrb[0].mxu0 }
 0x110   : > { %v14893_v35 = vadd.f32 %v638_v34, %v14885_v31  ;;  %v640_v37 = vpop.f32.mrb[1].mxu0  ;;  %v11083_v38 = vpop.f32.mrb[0].mxu1 }
 0x111   : > { %v799_v39 = vpop.f32.mrb[1].mxu1  ;;  %v805_v40 = vadd.f32 %v11083_v38, %v14890_v33  ;;  %v641_v42 = vadd.f32 %v640_v37, %v14897_v36 }
 0x112   : > { %942 = vrot.lane.b32.xlu1 %v14893_v35, %s14547_s25  ;;  %894 = vrot.lane.b32.xlu0 %v14893_v35, %s14548_s15  ;;  %v800_v58 = vadd.f32 %v799_v39, %v14890_v33 }
 0x113   : > { %11121 = vmatprep.mubr.msk.f32.mxu1 %vm1167_vm0, %v14893_v35  ;;  %v644_v41 = vpop.f32.mrb[2].mxu0 }
 0x114   : > { %v646_v43 = vpop.f32.mrb[3].mxu0  ;;  %v11086_v44 = vpop.f32.mrb[2].mxu1  ;;  %v14946_v1 = vadd.f32 %v644_v41, %v14885_v31 }
 0x115   : > { %v809_v45 = vpop.f32.mrb[3].mxu1  ;;  %v815_v6 = vadd.f32 %v11086_v44, %v14890_v33  ;;  %v647_v17 = vadd.f32 %v646_v43, %v14897_v36 }
 0x116   : > { %1109 = vrot.lane.b32.xlu1 %v805_v40, %s14549_s26  ;;  %944 = vrot.lane.b32.xlu0 %v641_v42, %s14547_s25  ;;  %v14976_v15 = vpack.i.bf16 %v14946_v1, %v14893_v35  ;;  %v810_v19 = vadd.f32 %v809_v45, %v14890_v33 }
 0x117   : > { %v650_v46 = vpop.f32.mrb[4].mxu0 }
 0x118   : > { %v14909_v47 = vpop.f32.mrb[5].mxu0  ;;  %v14911_v48 = vpop.f32.mrb[4].mxu1  ;;  %21655 = vst [vmem:[#allocation13_spill] sm:$0xff] %v14976_v15  ;;  %v14996_v22 = vadd.f32 %v650_v46, %v14885_v31 }
 0x119   : > { %v819_v49 = vpop.f32.mrb[5].mxu1  ;;  %v825_v25 = vadd.f32 %v14911_v48, %v14890_v33  ;;  %v653_v34 = vadd.f32 %v14909_v47, %v14897_v36 }
 0x11a   : > { %1186 = vrot.lane.b32.xlu1 %v805_v40, %s21623_s27  ;;  %1023 = vrot.lane.b32.xlu0 %v641_v42, %s21625_s28  ;;  %v14916_v50 = vadd.f32 %v819_v49, %v14890_v33 }
 0x11b   : > { %v14918_v51 = vpop.f32.mrb[6].mxu0 }
 0x11c   : > { %v14920_v52 = vpop.f32.mrb[7].mxu0  ;;  %v11092_v53 = vpop.f32.mrb[6].mxu1  ;;  %v15034_v37 = vadd.f32 %v14918_v51, %v14885_v31 }
 0x11d   : > { %v14923_v54 = vadd.f32 %v11092_v53, %v14890_v33  ;;  %v829_v55 = vpop.f32.mrb[7].mxu1  ;;  %v659_v39 = vadd.f32 %v14920_v52, %v14897_v36 }
 0x11e   : > { %1218 = vrot.lane.b32.xlu1 %v805_v40, %s14552_s29  ;;  %1055 = vrot.lane.b32.xlu0 %v641_v42, %s21621_s24  ;;  %v14928_v56 = vadd.f32 %v829_v55, %v14890_v33  ;;  %v15042_v38 = vpack.i.bf16 %v15034_v37, %v14996_v22 }
 0x11f   : > { %v14930_v57 = vpop.f32.mrb[8].mxu0 }
 0x120   : > { %v14933_v59 = vpop.f32.mrb[9].mxu0  ;;  %v11095_v60 = vpop.f32.mrb[8].mxu1  ;;  %21656 = vst [vmem:[#allocation14_spill] sm:$0xff] %v15042_v38 }
 0x121   : > { %v14936_v61 = vadd.f32 %v11095_v60, %v14890_v33  ;;  %v839_v62 = vpop.f32.mrb[9].mxu1  ;;  %v665_v43 = vadd.f32 %v14933_v59, %v14897_v36 }
 0x122   : > { %1105 = vrot.lane.b32.xlu1 %v800_v58, %s14549_s26  ;;  %1103 = vrot.lane.b32.xlu0 %v641_v42, %s14549_s26  ;;  %v14941_v63 = vadd.f32 %v839_v62, %v14890_v33  ;;  %v15067_v42 = vadd.f32 %v14930_v57, %v14885_v31 }
 0x123   : > { %v14943_v0 = vpop.f32.mrb[10].mxu0 }
 0x124   : > { %v14948_v2 = vpop.f32.mrb[11].mxu0  ;;  %v11098_v3 = vpop.f32.mrb[10].mxu1  ;;  %v15096_v47 = vadd.f32 %v14943_v0, %v14885_v31 }
 0x125   : > { %v14951_v4 = vadd.f32 %v11098_v3, %v14890_v33  ;;  %v849_v5 = vpop.f32.mrb[11].mxu1 }
 0x126   : > { %946 = vrot.lane.b32.xlu1 %v14946_v1, %s14547_s25  ;;  %1184 = vrot.lane.b32.xlu0 %v800_v58, %s21623_s27  ;;  %v14958_v8 = vadd.f32 %v849_v5, %v14890_v33  ;;  %v15114_v53 = vpack.i.bf16 %v15096_v47, %v15067_v42 }
 0x127   : > { %v14960_v9 = vpop.f32.mrb[12].mxu0 }
 0x128   : > { %v14962_v10 = vpop.f32.mrb[13].mxu0  ;;  %v11101_v12 = vpop.f32.mrb[12].mxu1  ;;  %21657 = vst [vmem:[#allocation15_spill] sm:$0xff] %v15114_v53  ;;  %v15160_v3 = vadd.f32 %v14960_v9, %v14885_v31 }
 0x129   : > { %v14972_v13 = vadd.f32 %v11101_v12, %v14890_v33  ;;  %v859_v14 = vpop.f32.mrb[13].mxu1  ;;  %v677_v9 = vadd.f32 %v14962_v10, %v14897_v36 }
 0x12a   : > { %1117 = vrot.lane.b32.xlu1 %v815_v6, %s14549_s26  ;;  %1216 = vrot.lane.b32.xlu0 %v800_v58, %s14552_s29  ;;  %v14979_v16 = vadd.f32 %v859_v14, %v14890_v33 }
 0x12b   : > { %v14969_v11 = vpop.f32.mrb[14].mxu0 }
 0x12c   : > { %v14989_v18 = vpop.f32.mrb[15].mxu0  ;;  %v11104_v20 = vpop.f32.mrb[14].mxu1 }
 0x12d   : > { %v14993_v21 = vadd.f32 %v11104_v20, %v14890_v33  ;;  %v869_v23 = vpop.f32.mrb[15].mxu1  ;;  %v683_v28 = vadd.f32 %v14989_v18, %v14897_v36 }
 0x12e   : > { %1190 = vrot.lane.b32.xlu1 %v815_v6, %s21623_s27  ;;  %896 = vrot.lane.b32.xlu0 %v14946_v1, %s14548_s15  ;;  %v15001_v24 = vadd.f32 %v869_v23, %v14890_v33 }
 0x12f   : > { %v686_v26 = vpop.f32.mrb[16].mxu0 }
 0x130   : > { %v15012_v29 = vadd.f32 %v686_v26, %v14885_v31  ;;  %v15020_v33 = vpop.f32.mrb[17].mxu0 }
 0x132   : > { %1222 = vrot.lane.b32.xlu1 %v815_v6, %s14552_s29  ;;  %12971 = vrot.lane.b32.xlu0 %v14976_v15, %s21625_s28 }
 0x133   : > { %11149 = vmatprep.mubr.msk.f32.mxu0 %vm1167_vm0, %v15012_v29  ;;  %v15030_v35 = vpop.f32.mrb[18].mxu0 }
 0x134   : > { %v15053_v40 = vpop.f32.mrb[19].mxu0 }
 0x136   : > { %1025 = vrot.lane.b32.xlu1 %v647_v17, %s21625_s28  ;;  %948 = vrot.lane.b32.xlu0 %v647_v17, %s14547_s25 }
 0x137   : > { %v15059_v41 = vpop.f32.mrb[20].mxu0 }
 0x138   : > { %v15074_v44 = vpop.f32.mrb[21].mxu0 }
 0x13a   : > { %1057 = vrot.lane.b32.xlu1 %v647_v17, %s21621_s24  ;;  %1107 = vrot.lane.b32.xlu0 %v647_v17, %s14549_s26 }
 0x13b   : > { %v15080_v45 = vpop.f32.mrb[22].mxu0 }
 0x13c   : > { %v15088_v46 = vpop.f32.mrb[23].mxu0 }
 0x13e   : > { %1113 = vrot.lane.b32.xlu1 %v810_v19, %s14549_s26  ;;  %1188 = vrot.lane.b32.xlu0 %v810_v19, %s21623_s27 }
 0x142   : > { %898 = vrot.lane.b32.xlu1 %v14996_v22, %s14548_s15  ;;  %1220 = vrot.lane.b32.xlu0 %v810_v19, %s14552_s29 }
 0x146   : > { %1125 = vrot.lane.b32.xlu1 %v825_v25, %s14549_s26  ;;  %950 = vrot.lane.b32.xlu0 %v14996_v22, %s14547_s25 }
 0x14a   : > { %1194 = vrot.lane.b32.xlu1 %v825_v25, %s21623_s27  ;;  %1027 = vrot.lane.b32.xlu0 %v653_v34, %s21625_s28 }
 0x14e   : > { %1226 = vrot.lane.b32.xlu1 %v825_v25, %s14552_s29  ;;  %1059 = vrot.lane.b32.xlu0 %v653_v34, %s21621_s24 }
 0x152   : > { %952 = vrot.lane.b32.xlu1 %v653_v34, %s14547_s25  ;;  %1111 = vrot.lane.b32.xlu0 %v653_v34, %s14549_s26 }
 0x156   : > { %1121 = vrot.lane.b32.xlu1 %v14916_v50, %s14549_s26  ;;  %1192 = vrot.lane.b32.xlu0 %v14916_v50, %s21623_s27 }
 0x15a   : > { %900 = vrot.lane.b32.xlu1 %v15034_v37, %s14548_s15  ;;  %1224 = vrot.lane.b32.xlu0 %v14916_v50, %s14552_s29  ;;  %v15106_v50 = vpop.f32.mrb[24].mxu0 }
 0x15b   : > { %v15122_v55 = vpop.f32.mrb[25].mxu0 }
 0x15c   : > { %v15131_v58 = vpop.f32.mrb[26].mxu0 }
 0x15d   : > { %v15144_v0 = vpop.f32.mrb[27].mxu0 }
 0x15e   : > { %12976 = vrot.lane.b32.xlu1 %v15042_v38, %s21625_s28  ;;  %954 = vrot.lane.b32.xlu0 %v15034_v37, %s14547_s25  ;;  %v15170_v12 = vpop.f32.mrb[28].mxu0 }
 0x15f   : > { %v15176_v19 = vpop.f32.mrb[29].mxu0 }
 0x160   : > { %v15184_v20 = vpop.f32.mrb[30].mxu0 }
 0x162   : > { %1133 = vrot.lane.b32.xlu1 %v14923_v54, %s14549_s26  ;;  %1115 = vrot.lane.b32.xlu0 %v659_v39, %s14549_s26 }
 0x166   : > { %1198 = vrot.lane.b32.xlu1 %v14923_v54, %s21623_s27  ;;  %1196 = vrot.lane.b32.xlu0 %v14928_v56, %s21623_s27 }
 0x16a   : > { %1230 = vrot.lane.b32.xlu1 %v14923_v54, %s14552_s29  ;;  %1228 = vrot.lane.b32.xlu0 %v14928_v56, %s14552_s29  ;;  %v671_v54 = vadd.f32 %v14948_v2, %v14897_v36 }
 0x16e   : > { %956 = vrot.lane.b32.xlu1 %v659_v39, %s14547_s25  ;;  %902 = vrot.lane.b32.xlu0 %v15067_v42, %s14548_s15 }
 0x172   : > { %1029 = vrot.lane.b32.xlu1 %v659_v39, %s21625_s28  ;;  %960 = vrot.lane.b32.xlu0 %v665_v43, %s14547_s25 }
 0x176   : > { %1061 = vrot.lane.b32.xlu1 %v659_v39, %s21621_s24  ;;  %1031 = vrot.lane.b32.xlu0 %v665_v43, %s21625_s28  ;;  %v15196_v39 = vpop.f32.mrb[31].mxu0 }
 0x17a   : > { %1129 = vrot.lane.b32.xlu1 %v14928_v56, %s14549_s26  ;;  %1063 = vrot.lane.b32.xlu0 %v665_v43, %s21621_s24 }
 0x17e   : > { %958 = vrot.lane.b32.xlu1 %v15067_v42, %s14547_s25  ;;  %1119 = vrot.lane.b32.xlu0 %v665_v43, %s14549_s26 }
 0x182   : > { %1141 = vrot.lane.b32.xlu1 %v14936_v61, %s14549_s26  ;;  %1200 = vrot.lane.b32.xlu0 %v14941_v63, %s21623_s27 }
 0x184   : > { %v15098_v48 = vpop.permute.xlu1 %942  ;;  %v15100_v49 = vpop.permute.xlu0 %894 }
 0x186   : > { %1202 = vrot.lane.b32.xlu1 %v14936_v61, %s21623_s27  ;;  %1232 = vrot.lane.b32.xlu0 %v14941_v63, %s14552_s29 }
 0x188   : > { %v15108_v51 = vpop.permute.xlu1 %1109  ;;  %v15110_v52 = vpop.permute.xlu0 %944 }
 0x18a   : > { %1234 = vrot.lane.b32.xlu1 %v14936_v61, %s14552_s29  ;;  %12981 = vrot.lane.b32.xlu0 %v15114_v53, %s21625_s28 }
 0x18c   : > { %v15124_v56 = vpop.permute.xlu1 %1186  ;;  %v15126_v57 = vpop.permute.xlu0 %1023 }
 0x18d   : > { %21658 = vst [vmem:[#allocation16_spill] sm:$0xff] %v15124_v56 }
 0x18e   : > { %1137 = vrot.lane.b32.xlu1 %v14941_v63, %s14549_s26  ;;  %964 = vrot.lane.b32.xlu0 %v671_v54, %s14547_s25 }
 0x190   : > { %v15133_v59 = vpop.permute.xlu1 %1218  ;;  %v15135_v60 = vpop.permute.xlu0 %1055 }
 0x191   : > { %21659 = vst [vmem:[#allocation17_spill] sm:$0xff] %v15133_v59  ;;  %21660 = vst [vmem:[#allocation18_spill] sm:$0xff] %v15135_v60 }
 0x192   : > { %904 = vrot.lane.b32.xlu1 %v15096_v47, %s14548_s15  ;;  %1123 = vrot.lane.b32.xlu0 %v671_v54, %s14549_s26 }
 0x194   : > { %v15140_v61 = vpop.permute.xlu1 %1105  ;;  %v15142_v62 = vpop.permute.xlu0 %1103 }
 0x196   : > { %962 = vrot.lane.b32.xlu1 %v15096_v47, %s14547_s25  ;;  %1204 = vrot.lane.b32.xlu0 %v14958_v8, %s21623_s27 }
 0x198   : > { %v15150_v63 = vpop.permute.xlu1 %946  ;;  %v15152_v2 = vpop.permute.xlu0 %1184 }
 0x199   : > { %21661 = vst [vmem:[#allocation19_spill] sm:$0xff] %v15152_v2 }
 0x19a   : > { %1149 = vrot.lane.b32.xlu1 %v14951_v4, %s14549_s26  ;;  %1236 = vrot.lane.b32.xlu0 %v14958_v8, %s14552_s29 }
 0x19c   : > { %v15162_v5 = vpop.permute.xlu1 %1117  ;;  %v15164_v6 = vpop.permute.xlu0 %1216 }
 0x19d   : > { %21662 = vst [vmem:[#allocation20_spill] sm:$0xff] %v15162_v5  ;;  %21663 = vst [vmem:[#allocation21_spill] sm:$0xff] %v15164_v6 }
 0x19e   : > { %1206 = vrot.lane.b32.xlu1 %v14951_v4, %s21623_s27  ;;  %906 = vrot.lane.b32.xlu0 %v15160_v3, %s14548_s15 }
 0x1a0   : > { %v15172_v14 = vpop.permute.xlu1 %1190  ;;  %v15174_v17 = vpop.permute.xlu0 %896 }
 0x1a1   : > { %21664 = vst [vmem:[#allocation22_spill] sm:$0xff] %v15172_v14  ;;  %21665 = vst [vmem:[#allocation23_spill] sm:$0xff] %v15174_v17 }
 0x1a2   : > { %1238 = vrot.lane.b32.xlu1 %v14951_v4, %s14552_s29  ;;  %966 = vrot.lane.b32.xlu0 %v15160_v3, %s14547_s25 }
 0x1a4   : > { %v15186_v23 = vpop.permute.xlu1 %1222  ;;  %v12972_v25 = vpop.permute.xlu0 %12971 }
 0x1a5   : > { %21666 = vst [vmem:[#allocation24_spill] sm:$0xff] %v15186_v23  ;;  %v12974_v26 = vunpack.i.h.bf16 %v12972_v25  ;;  %v12973_v34 = vunpack.i.l.bf16 %v12972_v25  ;;  %v689_v23 = vadd.f32 %v15020_v33, %v14897_v36 }
 0x1a6   : > { %1033 = vrot.lane.b32.xlu1 %v671_v54, %s21625_s28  ;;  %1035 = vrot.lane.b32.xlu0 %v677_v9, %s21625_s28 }
 0x1a7   : > { %v12121_v10 = vpack.c.bf16 %v12974_v26, %v12973_v34 }
 0x1a8   : > { %v15198_v43 = vpop.permute.xlu1 %1025  ;;  %v15200_v30 = vpop.permute.xlu0 %948 }
 0x1a9   : > { %21669 = vst [vmem:[#allocation25_spill] sm:$0xff] %v15198_v43  ;;  %12123 = vmatprep.subr.msk.bf16.mxu1 %vm15192_vm1, %v12121_v10 }
 0x1aa   : > { %1065 = vrot.lane.b32.xlu1 %v671_v54, %s21621_s24  ;;  %1067 = vrot.lane.b32.xlu0 %v677_v9, %s21621_s24 }
 0x1ab   : > { %12126 = vmatpush3.bf16.xpose.msk.msra.mxu1 %vm15192_vm1, %v12121_v10 }
 0x1ac   : > { %v15208_v25 = vpop.permute.xlu1 %1057  ;;  %v15210_v32 = vpop.permute.xlu0 %1107 }
 0x1ad   : > { %21670 = vst [vmem:[#allocation26_spill] sm:$0xff] %v15208_v25 }
 0x1ae   : > { %1145 = vrot.lane.b32.xlu1 %v14958_v8, %s14549_s26  ;;  %1127 = vrot.lane.b32.xlu0 %v677_v9, %s14549_s26  ;;  %v15233_v8 = vadd.f32 %v14969_v11, %v14885_v31 }
 0x1b0   : > { %v15215_v26 = vpop.permute.xlu1 %1113  ;;  %v15217_v34 = vpop.permute.xlu0 %1188 }
 0x1b1   : > { %21671 = vst [vmem:[#allocation27_spill] sm:$0xff] %v15215_v26  ;;  %21672 = vst [vmem:[#allocation28_spill] sm:$0xff] %v15217_v34 }
 0x1b2   : > { %1157 = vrot.lane.b32.xlu1 %v14972_v13, %s14549_s26  ;;  %1208 = vrot.lane.b32.xlu0 %v14979_v16, %s21623_s27 }
 0x1b4   : > { %v15223_v54 = vpop.permute.xlu1 %898  ;;  %v15225_v10 = vpop.permute.xlu0 %1220 }
 0x1b5   : > { %21673 = vst [vmem:[#allocation29_spill] sm:$0xff] %v15225_v10 }
 0x1b6   : > { %1210 = vrot.lane.b32.xlu1 %v14972_v13, %s21623_s27  ;;  %1240 = vrot.lane.b32.xlu0 %v14979_v16, %s14552_s29 }
 0x1b8   : > { %v15235_v7 = vpop.permute.xlu1 %1125  ;;  %v15237_v27 = vpop.permute.xlu0 %950 }
 0x1b9   : > { %21674 = vst [vmem:[#allocation30_spill] sm:$0xff] %v15235_v7  ;;  %21675 = vst [vmem:[#allocation31_spill] sm:$0xff] %v15237_v27 }
 0x1ba   : > { %1242 = vrot.lane.b32.xlu1 %v14972_v13, %s14552_s29  ;;  %970 = vrot.lane.b32.xlu0 %v15233_v8, %s14547_s25 }
 0x1bc   : > { %v15245_v53 = vpop.permute.xlu1 %1194  ;;  %v15247_v15 = vpop.permute.xlu0 %1027 }
 0x1bd   : > { %21676 = vst [vmem:[#allocation32_spill] sm:$0xff] %v15245_v53 }
 0x1be   : > { %968 = vrot.lane.b32.xlu1 %v677_v9, %s14547_s25  ;;  %1131 = vrot.lane.b32.xlu0 %v683_v28, %s14549_s26 }
 0x1c0   : > { %v15251_v11 = vpop.permute.xlu1 %1226  ;;  %v15253_v38 = vpop.permute.xlu0 %1059 }
 0x1c1   : > { %21677 = vst [vmem:[#allocation33_spill] sm:$0xff] %v15251_v11  ;;  %21678 = vst [vmem:[#allocation34_spill] sm:$0xff] %v15253_v38 }
 0x1c2   : > { %1153 = vrot.lane.b32.xlu1 %v14979_v16, %s14549_s26  ;;  %1212 = vrot.lane.b32.xlu0 %v15001_v24, %s21623_s27  ;;  %v15273_v16 = vpack.i.bf16 %v15233_v8, %v15160_v3 }
 0x1c4   : > { %v15259_v13 = vpop.permute.xlu1 %952  ;;  %v15261_v18 = vpop.permute.xlu0 %1111  ;;  %21683 = vst [vmem:[#allocation39_spill] sm:$0xff] %v15273_v16 }
 0x1c5   : > { %21679 = vst [vmem:[#allocation35_spill] sm:$0xff] %v15259_v13  ;;  %21680 = vst [vmem:[#allocation36_spill] sm:$0xff] %v15261_v18 }
 0x1c6   : > { %908 = vrot.lane.b32.xlu1 %v15233_v8, %s14548_s15  ;;  %1244 = vrot.lane.b32.xlu0 %v15001_v24, %s14552_s29 }
 0x1c8   : > { %v15267_v9 = vpop.permute.xlu1 %1121  ;;  %v15269_v11 = vpop.permute.xlu0 %1192 }
 0x1c9   : > { %21681 = vst [vmem:[#allocation37_spill] sm:$0xff] %v15267_v9  ;;  %21682 = vst [vmem:[#allocation38_spill] sm:$0xff] %v15269_v11 }
 0x1ca   : > { %12986 = vrot.lane.b32.xlu1 %v15273_v16, %s21625_s28  ;;  %974 = vrot.lane.b32.xlu0 %v15012_v29, %s14547_s25 }
 0x1cc   : > { %v15281_v10 = vpop.permute.xlu1 %900  ;;  %v15283_v7 = vpop.permute.xlu0 %1224 }
 0x1cd   : > { %21684 = vst [vmem:[#allocation40_spill] sm:$0xff] %v15283_v7 }
 0x1ce   : > { %1165 = vrot.lane.b32.xlu1 %v14993_v21, %s14549_s26  ;;  %1039 = vrot.lane.b32.xlu0 %v689_v23, %s21625_s28 }
 0x1d0   : > { %v12977_v9 = vpop.permute.xlu1 %12976  ;;  %v15288_v18 = vpop.permute.xlu0 %954 }
 0x1d1   : > { %21685 = vst [vmem:[#allocation41_spill] sm:$0xff] %v15288_v18  ;;  %v12979_v26 = vunpack.i.h.bf16 %v12977_v9  ;;  %v12978_v16 = vunpack.i.l.bf16 %v12977_v9  ;;  %v15304_v9 = vadd.f32 %v15030_v35, %v14885_v31 }
 0x1d2   : > { %1214 = vrot.lane.b32.xlu1 %v14993_v21, %s21623_s27  ;;  %1071 = vrot.lane.b32.xlu0 %v689_v23, %s21621_s24 }
 0x1d3   : > { %v12127_v33 = vpack.c.bf16 %v12979_v26, %v12978_v16  ;;  %21688 = vst [vmem:[#allocation44_spill] sm:$0xff] %v15304_v9 }
 0x1d4   : > { %v15293_v5 = vpop.permute.xlu1 %1133  ;;  %v15295_v27 = vpop.permute.xlu0 %1115 }
 0x1d5   : > { %21686 = vst [vmem:[#allocation42_spill] sm:$0xff] %v15293_v5  ;;  %21687 = vst [vmem:[#allocation43_spill] sm:$0xff] %v15295_v27  ;;  %12129 = vmatprep.subr.msk.bf16.mxu1 %vm15192_vm1, %v12127_v33  ;;  %v695_v27 = vadd.f32 %v15053_v40, %v14897_v36 }
 0x1d6   : > { %1246 = vrot.lane.b32.xlu1 %v14993_v21, %s14552_s29  ;;  %1135 = vrot.lane.b32.xlu0 %v689_v23, %s14549_s26  ;;  %v15317_v21 = vpack.i.bf16 %v15304_v9, %v15012_v29 }
 0x1d7   : > { %12132 = vmatpush3.bf16.xpose.msk.msra.mxu1 %vm15192_vm1, %v12127_v33 }
 0x1d8   : > { %v15308_v26 = vpop.permute.xlu1 %1198  ;;  %v15310_v16 = vpop.permute.xlu0 %1196  ;;  %21691 = vst [vmem:[#allocation47_spill] sm:$0xff] %v15317_v21 }
 0x1d9   : > { %21689 = vst [vmem:[#allocation45_spill] sm:$0xff] %v15308_v26  ;;  %21690 = vst [vmem:[#allocation46_spill] sm:$0xff] %v15310_v16 }
 0x1da   : > { %972 = vrot.lane.b32.xlu1 %v683_v28, %s14547_s25  ;;  %912 = vrot.lane.b32.xlu0 %v15304_v9, %s14548_s15 }
 0x1dc   : > { %v15319_v7 = vpop.permute.xlu1 %1230  ;;  %v15321_v35 = vpop.permute.xlu0 %1228 }
 0x1dd   : > { %21692 = vst [vmem:[#allocation48_spill] sm:$0xff] %v15319_v7  ;;  %21693 = vst [vmem:[#allocation49_spill] sm:$0xff] %v15321_v35 }
 0x1de   : > { %1037 = vrot.lane.b32.xlu1 %v683_v28, %s21625_s28  ;;  %12991 = vrot.lane.b32.xlu0 %v15317_v21, %s21625_s28  ;;  %v15344_v21 = vadd.f32 %v15059_v41, %v14885_v31 }
 0x1e0   : > { %v15326_v33 = vpop.permute.xlu1 %956  ;;  %v15328_v5 = vpop.permute.xlu0 %902  ;;  %21696 = vst [vmem:[#allocation52_spill] sm:$0xff] %v15344_v21 }
 0x1e1   : > { %21694 = vst [vmem:[#allocation50_spill] sm:$0xff] %v15328_v5 }
 0x1e2   : > { %1069 = vrot.lane.b32.xlu1 %v683_v28, %s21621_s24  ;;  %978 = vrot.lane.b32.xlu0 %v15304_v9, %s14547_s25 }
 0x1e4   : > { %v15335_v7 = vpop.permute.xlu1 %1029  ;;  %v15337_v35 = vpop.permute.xlu0 %960 }
 0x1e5   : > { %21695 = vst [vmem:[#allocation51_spill] sm:$0xff] %v15337_v35 }
 0x1e6   : > { %1161 = vrot.lane.b32.xlu1 %v15001_v24, %s14549_s26  ;;  %1139 = vrot.lane.b32.xlu0 %v695_v27, %s14549_s26  ;;  %v701_v24 = vadd.f32 %v15074_v44, %v14897_v36 }
 0x1e8   : > { %v15346_v28 = vpop.permute.xlu1 %1061  ;;  %v15348_v5 = vpop.permute.xlu0 %1031 }
 0x1e9   : > { %21697 = vst [vmem:[#allocation53_spill] sm:$0xff] %v15346_v28  ;;  %21698 = vst [vmem:[#allocation54_spill] sm:$0xff] %v15348_v5 }
 0x1ea   : > { %910 = vrot.lane.b32.xlu1 %v15012_v29, %s14548_s15  ;;  %914 = vrot.lane.b32.xlu0 %v15344_v21, %s14548_s15 }
 0x1ec   : > { %v15354_v40 = vpop.permute.xlu1 %1129  ;;  %v15356_v9 = vpop.permute.xlu0 %1063 }
 0x1ed   : > { %21699 = vst [vmem:[#allocation55_spill] sm:$0xff] %v15354_v40  ;;  %21700 = vst [vmem:[#allocation56_spill] sm:$0xff] %v15356_v9 }
 0x1ee   : > { %976 = vrot.lane.b32.xlu1 %v689_v23, %s14547_s25  ;;  %982 = vrot.lane.b32.xlu0 %v15344_v21, %s14547_s25  ;;  %v15377_v23 = vadd.f32 %v15080_v45, %v14885_v31 }
 0x1f0   : > { %v15363_v41 = vpop.permute.xlu1 %958  ;;  %v15365_v35 = vpop.permute.xlu0 %1119  ;;  %21705 = vst [vmem:[#allocation61_spill] sm:$0xff] %v15377_v23 }
 0x1f1   : > { %21701 = vst [vmem:[#allocation57_spill] sm:$0xff] %v15363_v41  ;;  %21702 = vst [vmem:[#allocation58_spill] sm:$0xff] %v15365_v35  ;;  %v15387_v35 = vpack.i.bf16 %v15377_v23, %v15344_v21 }
 0x1f2   : > { %980 = vrot.lane.b32.xlu1 %v695_v27, %s14547_s25  ;;  %1043 = vrot.lane.b32.xlu0 %v701_v24, %s21625_s28 }
 0x1f3   : > { %21708 = vst [vmem:[#allocation64_spill] sm:$0xff] %v15387_v35 }
 0x1f4   : > { %v15369_v29 = vpop.permute.xlu1 %1141  ;;  %v15371_v40 = vpop.permute.xlu0 %1200 }
 0x1f5   : > { %21703 = vst [vmem:[#allocation59_spill] sm:$0xff] %v15369_v29  ;;  %21704 = vst [vmem:[#allocation60_spill] sm:$0xff] %v15371_v40 }
 0x1f6   : > { %1041 = vrot.lane.b32.xlu1 %v695_v27, %s21625_s28  ;;  %1075 = vrot.lane.b32.xlu0 %v701_v24, %s21621_s24 }
 0x1f8   : > { %v15379_v44 = vpop.permute.xlu1 %1202  ;;  %v15381_v41 = vpop.permute.xlu0 %1232 }
 0x1f9   : > { %21706 = vst [vmem:[#allocation62_spill] sm:$0xff] %v15379_v44  ;;  %21707 = vst [vmem:[#allocation63_spill] sm:$0xff] %v15381_v41 }
 0x1fa   : > { %1073 = vrot.lane.b32.xlu1 %v695_v27, %s21621_s24  ;;  %1143 = vrot.lane.b32.xlu0 %v701_v24, %s14549_s26 }
 0x1fc   : > { %v15389_v9 = vpop.permute.xlu1 %1234  ;;  %v12982_v5 = vpop.permute.xlu0 %12981 }
 0x1fd   : > { %21709 = vst [vmem:[#allocation65_spill] sm:$0xff] %v15389_v9  ;;  %v12984_v29 = vunpack.i.h.bf16 %v12982_v5  ;;  %v12983_v13 = vunpack.i.l.bf16 %v12982_v5  ;;  %v707_v5 = vadd.f32 %v15088_v46, %v14897_v36  ;;  %v713_v46 = vadd.f32 %v15122_v55, %v14897_v36 }
 0x1fe   : > { %984 = vrot.lane.b32.xlu1 %v701_v24, %s14547_s25  ;;  %12996 = vrot.lane.b32.xlu0 %v15387_v35, %s21625_s28 }
 0x1ff   : > { %v12133_v45 = vpack.c.bf16 %v12984_v29, %v12983_v13  ;;  %v15416_v29 = vadd.f32 %v15106_v50, %v14885_v31 }
 0x200   : > { %v15394_v18 = vpop.permute.xlu1 %1137  ;;  %v15396_v27 = vpop.permute.xlu0 %964 }
 0x201   : > { %21710 = vst [vmem:[#allocation66_spill] sm:$0xff] %v15396_v27  ;;  %12135 = vmatprep.subr.msk.bf16.mxu1 %vm15192_vm1, %v12133_v45  ;;  %21712 = vst [vmem:[#allocation68_spill] sm:$0xff] %v15416_v29 }
 0x202   : > { %916 = vrot.lane.b32.xlu1 %v15377_v23, %s14548_s15  ;;  %986 = vrot.lane.b32.xlu0 %v15377_v23, %s14547_s25 }
 0x203   : > { %12138 = vmatpush3.bf16.xpose.msk.msra.mxu1 %vm15192_vm1, %v12133_v45 }
 0x204   : > { %v15408_v13 = vpop.permute.xlu1 %904  ;;  %v15410_v24 = vpop.permute.xlu0 %1123 }
 0x205   : > { %21711 = vst [vmem:[#allocation67_spill] sm:$0xff] %v15410_v24 }
 0x206   : > { %988 = vrot.lane.b32.xlu1 %v707_v5, %s14547_s25  ;;  %1147 = vrot.lane.b32.xlu0 %v707_v5, %s14549_s26 }
 0x208   : > { %v15418_v21 = vpop.permute.xlu1 %962  ;;  %v15420_v23 = vpop.permute.xlu0 %1204 }
 0x209   : > { %21713 = vst [vmem:[#allocation69_spill] sm:$0xff] %v15418_v21  ;;  %21714 = vst [vmem:[#allocation70_spill] sm:$0xff] %v15420_v23 }
 0x20a   : > { %1045 = vrot.lane.b32.xlu1 %v707_v5, %s21625_s28  ;;  %990 = vrot.lane.b32.xlu0 %v15416_v29, %s14547_s25 }
 0x20c   : > { %v15427_v45 = vpop.permute.xlu1 %1149  ;;  %v15429_v35 = vpop.permute.xlu0 %1236 }
 0x20d   : > { %21715 = vst [vmem:[#allocation71_spill] sm:$0xff] %v15427_v45  ;;  %21716 = vst [vmem:[#allocation72_spill] sm:$0xff] %v15429_v35  ;;  %v719_v35 = vadd.f32 %v15144_v0, %v14897_v36 }
 0x20e   : > { %1077 = vrot.lane.b32.xlu1 %v707_v5, %s21621_s24  ;;  %1047 = vrot.lane.b32.xlu0 %v713_v46, %s21625_s28  ;;  %v15450_v5 = vadd.f32 %v15131_v58, %v14885_v31 }
 0x210   : > { %v15433_v50 = vpop.permute.xlu1 %1206  ;;  %v15435_v24 = vpop.permute.xlu0 %906  ;;  %21721 = vst [vmem:[#allocation77_spill] sm:$0xff] %v15450_v5 }
 0x211   : > { %21717 = vst [vmem:[#allocation73_spill] sm:$0xff] %v15433_v50  ;;  %21718 = vst [vmem:[#allocation74_spill] sm:$0xff] %v15435_v24 }
 0x212   : > { %918 = vrot.lane.b32.xlu1 %v15416_v29, %s14548_s15  ;;  %1079 = vrot.lane.b32.xlu0 %v713_v46, %s21621_s24 }
 0x214   : > { %v15440_v21 = vpop.permute.xlu1 %1238  ;;  %v15442_v55 = vpop.permute.xlu0 %966 }
 0x215   : > { %21719 = vst [vmem:[#allocation75_spill] sm:$0xff] %v15440_v21  ;;  %21720 = vst [vmem:[#allocation76_spill] sm:$0xff] %v15442_v55 }
 0x216   : > { %992 = vrot.lane.b32.xlu1 %v713_v46, %s14547_s25  ;;  %1151 = vrot.lane.b32.xlu0 %v713_v46, %s14549_s26  ;;  %v15465_v46 = vpack.i.bf16 %v15450_v5, %v15416_v29 }
 0x218   : > { %v15452_v24 = vpop.permute.xlu1 %1033  ;;  %v15454_v45 = vpop.permute.xlu0 %1035  ;;  %21725 = vst [vmem:[#allocation81_spill] sm:$0xff] %v15465_v46 }
 0x219   : > { %21722 = vst [vmem:[#allocation78_spill] sm:$0xff] %v15454_v45  ;;  %v725_v45 = vadd.f32 %v15176_v19, %v14897_v36  ;;  %v15491_v19 = vadd.f32 %v15184_v20, %v14885_v31 }
 0x21a   : > { %996 = vrot.lane.b32.xlu1 %v719_v35, %s14547_s25  ;;  %920 = vrot.lane.b32.xlu0 %v15450_v5, %s14548_s15 }
 0x21c   : > { %v15459_v21 = vpop.permute.xlu1 %1065  ;;  %v15461_v0 = vpop.permute.xlu0 %1067 }
 0x21d   : > { %21723 = vst [vmem:[#allocation79_spill] sm:$0xff] %v15459_v21  ;;  %21724 = vst [vmem:[#allocation80_spill] sm:$0xff] %v15461_v0 }
 0x21e   : > { %1049 = vrot.lane.b32.xlu1 %v719_v35, %s21625_s28  ;;  %13001 = vrot.lane.b32.xlu0 %v15465_v46, %s21625_s28  ;;  %v15487_v46 = vadd.f32 %v15170_v12, %v14885_v31 }
 0x220   : > { %v15470_v58 = vpop.permute.xlu1 %1145  ;;  %v15472_v55 = vpop.permute.xlu0 %1127 }
 0x221   : > { %21726 = vst [vmem:[#allocation82_spill] sm:$0xff] %v15470_v58  ;;  %21727 = vst [vmem:[#allocation83_spill] sm:$0xff] %v15472_v55 }
 0x222   : > { %1081 = vrot.lane.b32.xlu1 %v719_v35, %s21621_s24  ;;  %994 = vrot.lane.b32.xlu0 %v15450_v5, %s14547_s25 }
 0x224   : > { %v15479_v0 = vpop.permute.xlu1 %1157  ;;  %v15481_v29 = vpop.permute.xlu0 %1208 }
 0x225   : > { %21728 = vst [vmem:[#allocation84_spill] sm:$0xff] %v15479_v0  ;;  %21729 = vst [vmem:[#allocation85_spill] sm:$0xff] %v15481_v29 }
 0x226   : > { %1000 = vrot.lane.b32.xlu1 %v725_v45, %s14547_s25  ;;  %1155 = vrot.lane.b32.xlu0 %v719_v35, %s14549_s26  ;;  %v731_v35 = vadd.f32 %v15196_v39, %v14897_v36  ;;  %v15524_v39 = vpack.i.bf16 %v15124_v56, %v15152_v2  ;;  %v15541_v56 = vpack.i.bf16 %v15491_v19, %v15487_v46 }
 0x228   : > { %v15493_v55 = vpop.permute.xlu1 %1210  ;;  %v15495_v58 = vpop.permute.xlu0 %1240  ;;  %21738 = vst [vmem:[#allocation94_spill] sm:$0xff] %v15524_v39 }
 0x229   : > { %21730 = vst [vmem:[#allocation86_spill] sm:$0xff] %v15493_v55  ;;  %21731 = vst [vmem:[#allocation87_spill] sm:$0xff] %v15495_v58 }
 0x22a   : > { %924 = vrot.lane.b32.xlu1 %v15491_v19, %s14548_s15  ;;  %922 = vrot.lane.b32.xlu0 %v15487_v46, %s14548_s15 }
 0x22c   : > { %v15503_v5 = vpop.permute.xlu1 %1242  ;;  %v15505_v12 = vpop.permute.xlu0 %970 }
 0x22d   : > { %21732 = vst [vmem:[#allocation88_spill] sm:$0xff] %v15503_v5  ;;  %21733 = vst [vmem:[#allocation89_spill] sm:$0xff] %v15505_v12 }
 0x22e   : > { %1004 = vrot.lane.b32.xlu1 %v731_v35, %s14547_s25  ;;  %998 = vrot.lane.b32.xlu0 %v15487_v46, %s14547_s25 }
 0x230   : > { %v15510_v31 = vpop.permute.xlu1 %968  ;;  %v15512_v20 = vpop.permute.xlu0 %1131 }
 0x231   : > { %21734 = vst [vmem:[#allocation90_spill] sm:$0xff] %v15510_v31  ;;  %21735 = vst [vmem:[#allocation91_spill] sm:$0xff] %v15512_v20 }
 0x232   : > { %1053 = vrot.lane.b32.xlu1 %v731_v35, %s21625_s28  ;;  %1051 = vrot.lane.b32.xlu0 %v725_v45, %s21625_s28 }
 0x234   : > { %v15516_v0 = vpop.permute.xlu1 %1153  ;;  %v15518_v36 = vpop.permute.xlu0 %1212 }
 0x235   : > { %21736 = vst [vmem:[#allocation92_spill] sm:$0xff] %v15516_v0  ;;  %21737 = vst [vmem:[#allocation93_spill] sm:$0xff] %v15518_v36  ;;  %v15535_v0 = vpack.i.bf16 %v15133_v59, %v15164_v6 }
 0x236   : > { %1085 = vrot.lane.b32.xlu1 %v731_v35, %s21621_s24  ;;  %1083 = vrot.lane.b32.xlu0 %v725_v45, %s21621_s24 }
 0x237   : > { %21741 = vst [vmem:[#allocation97_spill] sm:$0xff] %v15535_v0 }
 0x238   : > { %v15526_v12 = vpop.permute.xlu1 %908  ;;  %v15528_v31 = vpop.permute.xlu0 %1244 }
 0x239   : > { %21739 = vst [vmem:[#allocation95_spill] sm:$0xff] %v15526_v12  ;;  %21740 = vst [vmem:[#allocation96_spill] sm:$0xff] %v15528_v31 }
 0x23a   : > { %13011 = vrot.lane.b32.xlu1 %v15524_v39, %s21625_s28  ;;  %1159 = vrot.lane.b32.xlu0 %v725_v45, %s14549_s26  ;;  %v15549_v39 = vpack.i.bf16 %v15174_v17, %v15100_v49 }
 0x23c   : > { %v12987_v20 = vpop.permute.xlu1 %12986  ;;  %v15537_v27 = vpop.permute.xlu0 %974 }
 0x23d   : > { %v12989_v2 = vunpack.i.h.bf16 %v12987_v20  ;;  %v12988_v12 = vunpack.i.l.bf16 %v12987_v20 }
 0x23e   : > { %13016 = vrot.lane.b32.xlu1 %v15535_v0, %s21625_s28  ;;  %13006 = vrot.lane.b32.xlu0 %v15541_v56, %s21625_s28  ;;  %v15576_v0 = vpack.i.bf16 %v15208_v25, %v15135_v60 }
 0x23f   : > { %v12139_v45 = vpack.c.bf16 %v12989_v2, %v12988_v12  ;;  %v15565_v2 = vpack.i.bf16 %v15198_v43, %v15126_v57  ;;  %v15584_v43 = vpack.i.bf16 %v15379_v44, %v15371_v40 }
 0x240   : > { %v15551_v59 = vpop.permute.xlu1 %1165  ;;  %v15553_v6 = vpop.permute.xlu0 %1039  ;;  %21745 = vst [vmem:[#allocation101_spill] sm:$0xff] %v15576_v0 }
 0x241   : > { %12141 = vmatprep.subr.msk.bf16.mxu1 %vm15192_vm1, %v12139_v45  ;;  %21742 = vst [vmem:[#allocation98_spill] sm:$0xff] %v15565_v2  ;;  %21747 = vst [vmem:[#allocation103_spill] sm:$0xff] %v15584_v43 }
 0x242   : > { %13021 = vrot.lane.b32.xlu1 %v15549_v39, %s21625_s28  ;;  %1002 = vrot.lane.b32.xlu0 %v15491_v19, %s14547_s25 }
 0x243   : > { %12144 = vmatpush3.bf16.xpose.msk.msra.mxu1 %vm15192_vm1, %v12139_v45 }
 0x244   : > { %v15567_v12 = vpop.permute.xlu1 %1214  ;;  %v15569_v20 = vpop.permute.xlu0 %1071 }
 0x245   : > { %21743 = vst [vmem:[#allocation99_spill] sm:$0xff] %v15567_v12  ;;  %21744 = vst [vmem:[#allocation100_spill] sm:$0xff] %v15569_v20 }
 0x246   : > { %13026 = vrot.lane.b32.xlu1 %v15565_v2, %s21625_s28  ;;  %1163 = vrot.lane.b32.xlu0 %v731_v35, %s14549_s26  ;;  %v15596_v35 = vpack.i.bf16 %v15172_v14, %v15217_v34  ;;  %v21792_v34 = vld [vmem:[#allocation66_spill] sm:$0xff] }
 0x248   : > { %v15578_v17 = vpop.permute.xlu1 %1246  ;;  %v15580_v45 = vpop.permute.xlu0 %1135  ;;  %21748 = vst [vmem:[#allocation104_spill] sm:$0xff] %v15596_v35 }
 0x249   : > { %21746 = vst [vmem:[#allocation102_spill] sm:$0xff] %v15578_v17  ;;  %v15806_v14 = vsel %vm1167_vm0, %v15580_v45, %v15394_v18  ;;  %v21786_v18 = vld [vmem:[#allocation54_spill] sm:$0xff] }
 0x24a   : > { %11122 = vmatmul.mubr.msk.f32.vlgmr.msra.gmra.mrb[16].mxu1 %vm1167_vm0, %v14946_v1  ;;  %13031 = vrot.lane.b32.xlu1 %v15576_v0, %s21625_s28  ;;  %v15605_v1 = vsel %vm1006_vm2, %v15150_v63, %v15200_v30  ;;  %21784 = vst [vmem:[#allocation122_spill] sm:$0xff] %v15806_v14 }
 0x24b   : > { %13086 = vrot.lane.b32.xlu0 %v15584_v43, %s21625_s28  ;;  %11124 = vmatprep.mubr.msk.f32.mxu1 %vm1167_vm0, %v14996_v22  ;;  %v15609_v43 = vpack.i.bf16 %v15433_v50, %v15420_v23  ;;  %v15618_v22 = vsel %vm1006_vm2, %v15098_v48, %v15110_v52  ;;  %v15637_v48 = vpack.i.bf16 %v15493_v55, %v15481_v29  ;;  %v21771_v50 = vld [vmem:[#allocation20_spill] sm:$0xff]  ;;  %v21772_v23 = vld [vmem:[#allocation43_spill] sm:$0xff] }
 0x24c   : > { %v15598_v2 = vpop.permute.xlu1 %972  ;;  %v15600_v44 = vpop.permute.xlu0 %912  ;;  %v15626_v30 = vpack.i.bf16 %v15605_v1, %v15618_v22 }
 0x24d   : > { %21749 = vst [vmem:[#allocation105_spill] sm:$0xff] %v15609_v43  ;;  %21751 = vst [vmem:[#allocation107_spill] sm:$0xff] %v15637_v48 }
 0x24e   : > { %11125 = vmatmul.mubr.msk.f32.gmra.mrb[18].mxu1 %vm1167_vm0, %v15034_v37  ;;  %13036 = vrot.lane.b32.xlu1 %v15596_v35, %s21625_s28  ;;  %v15633_v35 = vsel %vm1167_vm0, %v15210_v32, %v15108_v51 }
 0x24f   : > { %13106 = vrot.lane.b32.xlu0 %v15609_v43, %s21625_s28  ;;  %11127 = vmatprep.mubr.msk.f32.mxu1 %vm1167_vm0, %v15067_v42  ;;  %21750 = vst [vmem:[#allocation106_spill] sm:$0xff] %v15633_v35  ;;  %v15646_v42 = vsel %vm1167_vm0, %v15142_v62, %v15140_v61  ;;  %v15674_v61 = vpack.i.bf16 %v15245_v53, %v15269_v11 }
 0x250   : > { %v15628_v63 = vpop.permute.xlu1 %1037  ;;  %v12992_v37 = vpop.permute.xlu0 %12991  ;;  %21752 = vst [vmem:[#allocation108_spill] sm:$0xff] %v15646_v42  ;;  %v15654_v32 = vpack.i.bf16 %v15633_v35, %v15646_v42  ;;  %v21801_v42 = vld [vmem:[#allocation67_spill] sm:$0xff] }
 0x251   : > { %v12994_v52 = vunpack.i.h.bf16 %v12992_v37  ;;  %v12993_v43 = vunpack.i.l.bf16 %v12992_v37  ;;  %v15660_v37 = vpack.i.bf16 %v15567_v12, %v15518_v36  ;;  %21756 = vst [vmem:[#allocation112_spill] sm:$0xff] %v15674_v61  ;;  %v21769_v36 = vld [vmem:[#allocation31_spill] sm:$0xff] }
 0x252   : > { %11128 = vmatmul.mubr.msk.f32.gmra.mrb[20].mxu1 %vm1167_vm0, %v15096_v47  ;;  %13041 = vrot.lane.b32.xlu1 %v15626_v30, %s21625_s28  ;;  %21753 = vst [vmem:[#allocation109_spill] sm:$0xff] %v15654_v32 }
 0x253   : > { %v12145_v0 = vpack.c.bf16 %v12994_v52, %v12993_v43  ;;  %13151 = vrot.lane.b32.xlu0 %v15637_v48, %s21625_s28  ;;  %11130 = vmatprep.mubr.msk.f32.mxu1 %vm1167_vm0, %v15160_v3  ;;  %21755 = vst [vmem:[#allocation111_spill] sm:$0xff] %v15660_v37  ;;  %v15682_v43 = vpack.i.bf16 %v15389_v9, %v15381_v41 }
 0x254   : > { %v15656_v47 = vpop.permute.xlu1 %1069  ;;  %v979_v51 = vpop.permute.xlu0 %978  ;;  %v15698_v52 = vpack.i.bf16 %v15503_v5, %v15495_v58  ;;  %v15728_v58 = vpack.i.bf16 %v15308_v26, %v15310_v16  ;;  %v15761_v26 = vsel %vm1167_vm0, %v21772_v23, %v21771_v50 }
 0x255   : > { %21754 = vst [vmem:[#allocation110_spill] sm:$0xff] %v15656_v47  ;;  %12147 = vmatprep.subr.msk.bf16.mxu0 %vm15192_vm1, %v12145_v0  ;;  %21757 = vst [vmem:[#allocation113_spill] sm:$0xff] %v15682_v43 }
 0x256   : > { %11131 = vmatmul.mubr.msk.f32.gmra.mrb[22].mxu1 %vm1167_vm0, %v15233_v8  ;;  %13046 = vrot.lane.b32.xlu1 %v15654_v32, %s21625_s28  ;;  %v15690_v8 = vpack.i.bf16 %v15281_v10, %v15223_v54  ;;  %21758 = vst [vmem:[#allocation114_spill] sm:$0xff] %v15698_v52  ;;  %21763 = vst [vmem:[#allocation119_spill] sm:$0xff] %v15728_v58 }
 0x257   : > { %13161 = vrot.lane.b32.xlu0 %v15660_v37, %s21625_s28  ;;  %12150 = vmatpush3.bf16.xpose.msk.msra.mxu0 %vm15192_vm1, %v12145_v0  ;;  %21773 = vst [vmem:[#allocation31_spill] sm:$0xff] %v15761_v26 }
 0x258   : > { %11177 = vmatprep.mubr.msk.f32.mxu1 %vm1167_vm0, %v15100_v49  ;;  %v15678_v62 = vpop.permute.xlu1 %1161  ;;  %v1140_v3 = vpop.permute.xlu0 %1139 }
 0x25a   : > { %13051 = vrot.lane.b32.xlu1 %v15674_v61, %s21625_s28 }
 0x25b   : > { %13171 = vrot.lane.b32.xlu0 %v15682_v43, %s21625_s28  ;;  %v15706_v43 = vpack.i.bf16 %v15335_v7, %v15247_v15 }
 0x25c   : > { %v15692_v0 = vpop.permute.xlu1 %910  ;;  %v15694_v49 = vpop.permute.xlu0 %914 }
 0x25d   : > { %21759 = vst [vmem:[#allocation115_spill] sm:$0xff] %v15706_v43  ;;  %v15712_v61 = vpack.i.bf16 %v15600_v44, %v15692_v0 }
 0x25e   : > { %13056 = vrot.lane.b32.xlu1 %v15690_v8, %s21625_s28 }
 0x25f   : > { %13181 = vrot.lane.b32.xlu0 %v15698_v52, %s21625_s28  ;;  %21760 = vst [vmem:[#allocation116_spill] sm:$0xff] %v15712_v61  ;;  %v15720_v52 = vpack.i.bf16 %v15346_v28, %v15253_v38 }
 0x260   : > { %v977_v37 = vpop.permute.xlu1 %976  ;;  %v15708_v48 = vpop.permute.xlu0 %982 }
 0x261   : > { %21761 = vst [vmem:[#allocation117_spill] sm:$0xff] %v15720_v52  ;;  %v15785_v50 = vsel %vm1006_vm2, %v15537_v27, %v977_v37  ;;  %v21782_v27 = vld [vmem:[#allocation50_spill] sm:$0xff] }
 0x262   : > { %13061 = vrot.lane.b32.xlu1 %v15706_v43, %s21625_s28  ;;  %v15801_v37 = vpack.i.bf16 %v15408_v13, %v21782_v27 }
 0x263   : > { %13191 = vrot.lane.b32.xlu0 %v15712_v61, %s21625_s28  ;;  %v21766_v61 = vld [vmem:[#allocation41_spill] sm:$0xff] }
 0x264   : > { %v981_v32 = vpop.permute.xlu1 %980  ;;  %v15722_v5 = vpop.permute.xlu0 %1043  ;;  %v15737_v41 = vsel %vm1006_vm2, %v21766_v61, %v15326_v33  ;;  %21783 = vst [vmem:[#allocation50_spill] sm:$0xff] %v15801_v37 }
 0x265   : > { %21762 = vst [vmem:[#allocation118_spill] sm:$0xff] %v15722_v5 }
 0x266   : > { %13066 = vrot.lane.b32.xlu1 %v15720_v52, %s21625_s28  ;;  %v21768_v52 = vld [vmem:[#allocation35_spill] sm:$0xff] }
 0x267   : > { %v15748_v55 = vsel %vm1006_vm2, %v21769_v36, %v21768_v52  ;;  %v15768_v36 = vsel %vm1006_vm2, %v979_v51, %v981_v32  ;;  %v21775_v52 = vld [vmem:[#allocation27_spill] sm:$0xff] }
 0x268   : > { %v15730_v9 = vpop.permute.xlu1 %1041  ;;  %v15732_v43 = vpop.permute.xlu0 %1075  ;;  %v15754_v29 = vpack.i.bf16 %v15737_v41, %v15748_v55  ;;  %v15789_v53 = vpack.i.bf16 %v15768_v36, %v15785_v50 }
 0x269   : > { %21764 = vst [vmem:[#allocation120_spill] sm:$0xff] %v15730_v9  ;;  %21765 = vst [vmem:[#allocation121_spill] sm:$0xff] %v15732_v43  ;;  %v15741_v12 = vpack.i.bf16 %v15730_v9, %v15553_v6 }
 0x26a   : > { %13071 = vrot.lane.b32.xlu1 %v15728_v58, %s21625_s28 }
 0x26b   : > { %21767 = vst [vmem:[#allocation41_spill] sm:$0xff] %v15741_v12  ;;  %13196 = vrot.lane.b32.xlu0 %v15741_v12, %s21625_s28  ;;  %v21776_v12 = vld [vmem:[#allocation36_spill] sm:$0xff] }
 0x26c   : > { %v15756_v33 = vpop.permute.xlu1 %1073  ;;  %v1144_v61 = vpop.permute.xlu0 %1143  ;;  %v15775_v16 = vsel %vm1167_vm0, %v21776_v12, %v21775_v52  ;;  %21779 = vst [vmem:[#allocation36_spill] sm:$0xff] %v15789_v53  ;;  %v21780_v52 = vld [vmem:[#allocation59_spill] sm:$0xff] }
 0x26d   : > { %21770 = vst [vmem:[#allocation35_spill] sm:$0xff] %v15756_v33  ;;  %v15765_v58 = vpack.i.bf16 %v15756_v33, %v15569_v20  ;;  %21777 = vst [vmem:[#allocation43_spill] sm:$0xff] %v15775_v16  ;;  %v15781_v23 = vpack.i.bf16 %v15761_v26, %v15775_v16  ;;  %v15793_v11 = vsel %vm1167_vm0, %v1140_v3, %v21780_v52  ;;  %v21800_v33 = vld [vmem:[#allocation30_spill] sm:$0xff] }
 0x26e   : > { %13076 = vrot.lane.b32.xlu1 %v15754_v29, %s21625_s28  ;;  %21781 = vst [vmem:[#allocation59_spill] sm:$0xff] %v15793_v11  ;;  %v15812_v52 = vpack.i.bf16 %v15793_v11, %v15806_v14  ;;  %v21793_v11 = vld [vmem:[#allocation69_spill] sm:$0xff] }
 0x26f   : > { %21774 = vst [vmem:[#allocation20_spill] sm:$0xff] %v15765_v58  ;;  %13201 = vrot.lane.b32.xlu0 %v15765_v58, %s21625_s28  ;;  %21778 = vst [vmem:[#allocation27_spill] sm:$0xff] %v15781_v23  ;;  %v15843_v14 = vsel %vm1006_vm2, %v21793_v11, %v21792_v34 }
 0x270   : > { %v985_v32 = vpop.permute.xlu1 %984  ;;  %v12997_v51 = vpop.permute.xlu0 %12996  ;;  %21785 = vst [vmem:[#allocation123_spill] sm:$0xff] %v15812_v52 }
 0x271   : > { %v12999_v40 = vunpack.i.h.bf16 %v12997_v51  ;;  %v12998_v12 = vunpack.i.l.bf16 %v12997_v51 }
 0x272   : > { %13081 = vrot.lane.b32.xlu1 %v15781_v23, %s21625_s28 }
 0x273   : > { %v12151_v58 = vpack.c.bf16 %v12999_v40, %v12998_v12  ;;  %13206 = vrot.lane.b32.xlu0 %v15789_v53, %s21625_s28  ;;  %v15824_v40 = vpack.i.bf16 %v15452_v24, %v21786_v18 }
 0x274   : > { %v15808_v51 = vpop.permute.xlu1 %916  ;;  %v987_v3 = vpop.permute.xlu0 %986 }
 0x275   : > { %12153 = vmatprep.subr.msk.bf16.mxu0 %vm15192_vm1, %v12151_v58  ;;  %21787 = vst [vmem:[#allocation54_spill] sm:$0xff] %v15824_v40  ;;  %v15828_v23 = vpack.i.bf16 %v15808_v51, %v15694_v49 }
 0x276   : > { %13091 = vrot.lane.b32.xlu1 %v15801_v37, %s21625_s28  ;;  %12156 = vmatpush3.bf16.xpose.msk.msra.mxu0 %vm15192_vm1, %v12151_v58  ;;  %v21789_v58 = vld [vmem:[#allocation56_spill] sm:$0xff] }
 0x277   : > { %13211 = vrot.lane.b32.xlu0 %v15812_v52, %s21625_s28  ;;  %21788 = vst [vmem:[#allocation124_spill] sm:$0xff] %v15828_v23  ;;  %v15836_v53 = vpack.i.bf16 %v15459_v21, %v21789_v58  ;;  %v21805_v21 = vld [vmem:[#allocation58_spill] sm:$0xff] }
 0x278   : > { %v989_v45 = vpop.permute.xlu1 %988  ;;  %v1148_v12 = vpop.permute.xlu0 %1147 }
 0x279   : > { %21790 = vst [vmem:[#allocation125_spill] sm:$0xff] %v15836_v53 }
 0x27a   : > { %13096 = vrot.lane.b32.xlu1 %v15824_v40, %s21625_s28  ;;  %v21795_v40 = vld [vmem:[#allocation51_spill] sm:$0xff] }
 0x27b   : > { %13216 = vrot.lane.b32.xlu0 %v15828_v23, %s21625_s28  ;;  %v21796_v23 = vld [vmem:[#allocation57_spill] sm:$0xff] }
 0x27c   : > { %v15838_v52 = vpop.permute.xlu1 %1045  ;;  %v991_v37 = vpop.permute.xlu0 %990  ;;  %v15854_v16 = vsel %vm1006_vm2, %v21796_v23, %v21795_v40  ;;  %v15876_v40 = vsel %vm1006_vm2, %v987_v3, %v989_v45 }
 0x27d   : > { %21791 = vst [vmem:[#allocation126_spill] sm:$0xff] %v15838_v52  ;;  %v15847_v26 = vpack.i.bf16 %v15838_v52, %v15722_v5  ;;  %v15860_v35 = vpack.i.bf16 %v15843_v14, %v15854_v16 }
 0x27e   : > { %13101 = vrot.lane.b32.xlu1 %v15836_v53, %s21625_s28  ;;  %v15869_v53 = vsel %vm1167_vm0, %v21801_v42, %v21800_v33  ;;  %v15893_v33 = vsel %vm1006_vm2, %v15708_v48, %v985_v32  ;;  %v21812_v48 = vld [vmem:[#allocation74_spill] sm:$0xff]  ;;  %v21813_v32 = vld [vmem:[#allocation95_spill] sm:$0xff] }
 0x27f   : > { %21794 = vst [vmem:[#allocation66_spill] sm:$0xff] %v15847_v26  ;;  %13221 = vrot.lane.b32.xlu0 %v15847_v26, %s21625_s28  ;;  %21797 = vst [vmem:[#allocation69_spill] sm:$0xff] %v15860_v35  ;;  %v21804_v26 = vld [vmem:[#allocation37_spill] sm:$0xff] }
 0x280   : > { %v15862_v34 = vpop.permute.xlu1 %1077  ;;  %v15864_v11 = vpop.permute.xlu0 %1047  ;;  %21802 = vst [vmem:[#allocation30_spill] sm:$0xff] %v15869_v53  ;;  %v15883_v20 = vsel %vm1167_vm0, %v21805_v21, %v21804_v26  ;;  %v21810_v26 = vld [vmem:[#allocation71_spill] sm:$0xff] }
 0x281   : > { %21798 = vst [vmem:[#allocation51_spill] sm:$0xff] %v15862_v34  ;;  %21799 = vst [vmem:[#allocation57_spill] sm:$0xff] %v15864_v11  ;;  %v15873_v23 = vpack.i.bf16 %v15862_v34, %v15732_v43  ;;  %v15889_v42 = vpack.i.bf16 %v15869_v53, %v15883_v20  ;;  %v15905_v21 = vsel %vm1167_vm0, %v1148_v12, %v21810_v26  ;;  %v21815_v53 = vld [vmem:[#allocation82_spill] sm:$0xff] }
 0x282   : > { %13111 = vrot.lane.b32.xlu1 %v15860_v35, %s21625_s28  ;;  %21806 = vst [vmem:[#allocation37_spill] sm:$0xff] %v15883_v20  ;;  %v15901_v35 = vpack.i.bf16 %v15876_v40, %v15893_v33  ;;  %21811 = vst [vmem:[#allocation71_spill] sm:$0xff] %v15905_v21  ;;  %v15917_v20 = vsel %vm1167_vm0, %v1144_v61, %v21815_v53  ;;  %v21818_v26 = vld [vmem:[#allocation78_spill] sm:$0xff]  ;;  %v21821_v61 = vld [vmem:[#allocation80_spill] sm:$0xff] }
 0x283   : > { %21803 = vst [vmem:[#allocation67_spill] sm:$0xff] %v15873_v23  ;;  %13226 = vrot.lane.b32.xlu0 %v15873_v23, %s21625_s28  ;;  %21807 = vst [vmem:[#allocation58_spill] sm:$0xff] %v15889_v42  ;;  %v15913_v23 = vpack.i.bf16 %v21813_v32, %v21812_v48  ;;  %v15921_v12 = vpack.i.bf16 %v15905_v21, %v15917_v20 }
 0x284   : > { %v15895_v3 = vpop.permute.xlu1 %918  ;;  %v15897_v45 = vpop.permute.xlu0 %1079  ;;  %21809 = vst [vmem:[#allocation128_spill] sm:$0xff] %v15901_v35  ;;  %21816 = vst [vmem:[#allocation95_spill] sm:$0xff] %v15917_v20  ;;  %v21824_v20 = vld [vmem:[#allocation89_spill] sm:$0xff] }
 0x285   : > { %21808 = vst [vmem:[#allocation127_spill] sm:$0xff] %v15897_v45  ;;  %21814 = vst [vmem:[#allocation74_spill] sm:$0xff] %v15913_v23  ;;  %v15950_v28 = vsel %vm1006_vm2, %v21824_v20, %v15598_v2 }
 0x286   : > { %13116 = vrot.lane.b32.xlu1 %v15889_v42, %s21625_s28  ;;  %21817 = vst [vmem:[#allocation82_spill] sm:$0xff] %v15921_v12  ;;  %v15929_v42 = vpack.i.bf16 %v15628_v63, %v21818_v26 }
 0x287   : > { %13231 = vrot.lane.b32.xlu0 %v15901_v35, %s21625_s28 }
 0x288   : > { %v993_v34 = vpop.permute.xlu1 %992  ;;  %v1152_v43 = vpop.permute.xlu0 %1151  ;;  %21819 = vst [vmem:[#allocation78_spill] sm:$0xff] %v15929_v42 }
 0x28a   : > { %13121 = vrot.lane.b32.xlu1 %v15913_v23, %s21625_s28 }
 0x28b   : > { %13236 = vrot.lane.b32.xlu0 %v15921_v12, %s21625_s28  ;;  %v15943_v12 = vpack.i.bf16 %v15656_v47, %v21821_v61  ;;  %v21827_v47 = vld [vmem:[#allocation76_spill] sm:$0xff] }
 0x28c   : > { %v997_v35 = vpop.permute.xlu1 %996  ;;  %v15931_v58 = vpop.permute.xlu0 %920 }
 0x28d   : > { %v15935_v53 = vpack.i.bf16 %v15931_v58, %v15895_v3  ;;  %21822 = vst [vmem:[#allocation130_spill] sm:$0xff] %v15943_v12 }
 0x28e   : > { %13126 = vrot.lane.b32.xlu1 %v15929_v42, %s21625_s28 }
 0x28f   : > { %21820 = vst [vmem:[#allocation129_spill] sm:$0xff] %v15935_v53  ;;  %13241 = vrot.lane.b32.xlu0 %v15935_v53, %s21625_s28  ;;  %v21826_v53 = vld [vmem:[#allocation90_spill] sm:$0xff] }
 0x290   : > { %v15945_v23 = vpop.permute.xlu1 %1049  ;;  %v13002_v21 = vpop.permute.xlu0 %13001  ;;  %v15961_v61 = vsel %vm1006_vm2, %v21827_v47, %v21826_v53  ;;  %v21835_v53 = vld [vmem:[#allocation83_spill] sm:$0xff] }
 0x291   : > { %21823 = vst [vmem:[#allocation131_spill] sm:$0xff] %v15945_v23  ;;  %v15954_v38 = vpack.i.bf16 %v15945_v23, %v15864_v11  ;;  %v13004_v42 = vunpack.i.h.bf16 %v13002_v21  ;;  %v13003_v25 = vunpack.i.l.bf16 %v13002_v21  ;;  %v15967_v2 = vpack.i.bf16 %v15950_v28, %v15961_v61  ;;  %v21830_v21 = vld [vmem:[#allocation42_spill] sm:$0xff]  ;;  %v21831_v11 = vld [vmem:[#allocation91_spill] sm:$0xff] }
 0x292   : > { %13131 = vrot.lane.b32.xlu1 %v15943_v12, %s21625_s28  ;;  %v15974_v12 = vsel %vm1167_vm0, %v21831_v11, %v21830_v21 }
 0x293   : > { %21825 = vst [vmem:[#allocation89_spill] sm:$0xff] %v15954_v38  ;;  %v12157_v52 = vpack.c.bf16 %v13004_v42, %v13003_v25  ;;  %13246 = vrot.lane.b32.xlu0 %v15954_v38, %s21625_s28  ;;  %21828 = vst [vmem:[#allocation90_spill] sm:$0xff] %v15967_v2  ;;  %v21834_v42 = vld [vmem:[#allocation55_spill] sm:$0xff] }
 0x294   : > { %v15969_v20 = vpop.permute.xlu1 %1081  ;;  %v995_v23 = vpop.permute.xlu0 %994  ;;  %21832 = vst [vmem:[#allocation42_spill] sm:$0xff] %v15974_v12  ;;  %v15992_v11 = vsel %vm1167_vm0, %v21835_v53, %v21834_v42  ;;  %v21841_v53 = vld [vmem:[#allocation29_spill] sm:$0xff] }
 0x295   : > { %21829 = vst [vmem:[#allocation76_spill] sm:$0xff] %v15969_v20  ;;  %v15978_v47 = vpack.i.bf16 %v15969_v20, %v15897_v45  ;;  %12159 = vmatprep.subr.msk.bf16.mxu0 %vm15192_vm1, %v12157_v52  ;;  %v15983_v25 = vsel %vm1006_vm2, %v995_v23, %v997_v35  ;;  %21836 = vst [vmem:[#allocation55_spill] sm:$0xff] %v15992_v11  ;;  %v15998_v21 = vpack.i.bf16 %v15974_v12, %v15992_v11 }
 0x296   : > { %13136 = vrot.lane.b32.xlu1 %v15967_v2, %s21625_s28  ;;  %12162 = vmatpush3.bf16.xpose.msk.msra.mxu0 %vm15192_vm1, %v12157_v52  ;;  %v16001_v35 = vsel %vm1006_vm2, %v991_v37, %v993_v34  ;;  %v21839_v2 = vld [vmem:[#allocation84_spill] sm:$0xff] }
 0x297   : > { %21833 = vst [vmem:[#allocation91_spill] sm:$0xff] %v15978_v47  ;;  %13251 = vrot.lane.b32.xlu0 %v15978_v47, %s21625_s28  ;;  %21837 = vst [vmem:[#allocation83_spill] sm:$0xff] %v15998_v21  ;;  %v16005_v52 = vpack.i.bf16 %v15983_v25, %v16001_v35  ;;  %v21842_v47 = vld [vmem:[#allocation24_spill] sm:$0xff] }
 0x298   : > { %v1001_v23 = vpop.permute.xlu1 %1000  ;;  %v1156_v38 = vpop.permute.xlu0 %1155  ;;  %v16017_v37 = vpack.i.bf16 %v21842_v47, %v21841_v53  ;;  %v21844_v34 = vld [vmem:[#allocation92_spill] sm:$0xff] }
 0x299   : > { %21838 = vst [vmem:[#allocation132_spill] sm:$0xff] %v16005_v52  ;;  %v16009_v42 = vsel %vm1167_vm0, %v1156_v38, %v21839_v2  ;;  %v16021_v12 = vsel %vm1167_vm0, %v1152_v43, %v21844_v34  ;;  %v21847_v2 = vld [vmem:[#allocation40_spill] sm:$0xff] }
 0x29a   : > { %21840 = vst [vmem:[#allocation84_spill] sm:$0xff] %v16009_v42  ;;  %13141 = vrot.lane.b32.xlu1 %v15998_v21, %s21625_s28  ;;  %21843 = vst [vmem:[#allocation133_spill] sm:$0xff] %v16017_v37  ;;  %v16029_v38 = vpack.i.bf16 %v16009_v42, %v16021_v12  ;;  %v21848_v21 = vld [vmem:[#allocation33_spill] sm:$0xff]  ;;  %v21852_v53 = vld [vmem:[#allocation48_spill] sm:$0xff] }
 0x29b   : > { %13256 = vrot.lane.b32.xlu0 %v16005_v52, %s21625_s28  ;;  %21845 = vst [vmem:[#allocation92_spill] sm:$0xff] %v16021_v12  ;;  %v16037_v52 = vpack.i.bf16 %v21848_v21, %v21847_v2 }
 0x29c   : > { %v16023_v11 = vpop.permute.xlu1 %924  ;;  %v16025_v20 = vpop.permute.xlu0 %922  ;;  %21846 = vst [vmem:[#allocation134_spill] sm:$0xff] %v16029_v38 }
 0x29d   : > { %21849 = vst [vmem:[#allocation135_spill] sm:$0xff] %v16037_v52  ;;  %v16041_v47 = vpack.i.bf16 %v16023_v11, %v16025_v20 }
 0x29e   : > { %13146 = vrot.lane.b32.xlu1 %v16017_v37, %s21625_s28  ;;  %v21851_v37 = vld [vmem:[#allocation49_spill] sm:$0xff] }
 0x29f   : > { %13261 = vrot.lane.b32.xlu0 %v16029_v38, %s21625_s28  ;;  %21850 = vst [vmem:[#allocation136_spill] sm:$0xff] %v16041_v47  ;;  %v16049_v42 = vpack.i.bf16 %v21852_v53, %v21851_v37 }
 0x2a0   : > { %v1005_v43 = vpop.permute.xlu1 %1004  ;;  %v999_v34 = vpop.permute.xlu0 %998 }
 0x2a1   : > { %21853 = vst [vmem:[#allocation137_spill] sm:$0xff] %v16049_v42 }
 0x2a2   : > { %13156 = vrot.lane.b32.xlu1 %v16037_v52, %s21625_s28  ;;  %v21857_v52 = vld [vmem:[#allocation72_spill] sm:$0xff] }
 0x2a3   : > { %13266 = vrot.lane.b32.xlu0 %v16041_v47, %s21625_s28  ;;  %v21858_v47 = vld [vmem:[#allocation75_spill] sm:$0xff] }
 0x2a4   : > { %v16051_v38 = vpop.permute.xlu1 %1053  ;;  %v16053_v21 = vpop.permute.xlu0 %1051  ;;  %v16065_v12 = vpack.i.bf16 %v21858_v47, %v21857_v52 }
 0x2a5   : > { %21854 = vst [vmem:[#allocation138_spill] sm:$0xff] %v16051_v38  ;;  %21855 = vst [vmem:[#allocation139_spill] sm:$0xff] %v16053_v21  ;;  %v16057_v2 = vpack.i.bf16 %v16051_v38, %v16053_v21 }
 0x2a6   : > { %13166 = vrot.lane.b32.xlu1 %v16049_v42, %s21625_s28  ;;  %21859 = vst [vmem:[#allocation141_spill] sm:$0xff] %v16065_v12  ;;  %v16081_v42 = vpack.i.bf16 %v15578_v17, %v15528_v31  ;;  %v16092_v17 = vsel %vm1006_vm2, %v999_v34, %v1001_v23  ;;  %v21877_v34 = vld [vmem:[#allocation13_spill] sm:$0xff] }
 0x2a7   : > { %21856 = vst [vmem:[#allocation140_spill] sm:$0xff] %v16057_v2  ;;  %13271 = vrot.lane.b32.xlu0 %v16057_v2, %s21625_s28 }
 0x2a8   : > { %v16067_v53 = vpop.permute.xlu1 %1085  ;;  %v16069_v37 = vpop.permute.xlu0 %1083  ;;  %21863 = vst [vmem:[#allocation145_spill] sm:$0xff] %v16081_v42 }
 0x2a9   : > { %21860 = vst [vmem:[#allocation142_spill] sm:$0xff] %v16067_v53  ;;  %21861 = vst [vmem:[#allocation143_spill] sm:$0xff] %v16069_v37  ;;  %v16073_v45 = vpack.i.bf16 %v16067_v53, %v16069_v37 }
 0x2aa   : > { %13176 = vrot.lane.b32.xlu1 %v16065_v12, %s21625_s28  ;;  %v21866_v12 = vld [vmem:[#allocation14_spill] sm:$0xff] }
 0x2ab   : > { %21862 = vst [vmem:[#allocation144_spill] sm:$0xff] %v16073_v45  ;;  %13276 = vrot.lane.b32.xlu0 %v16073_v45, %s21625_s28 }
 0x2ac   : > { %v16083_v2 = vpop.permute.xlu1 %13011  ;;  %v1160_v47 = vpop.permute.xlu0 %1159 }
 0x2ad   : > { %21864 = vst [vmem:[#allocation146_spill] sm:$0xff] %v16083_v2 }
 0x2ae   : > { %13186 = vrot.lane.b32.xlu1 %v16081_v42, %s21625_s28 }
 0x2b0   : > { %v16087_v52 = vpop.permute.xlu1 %13016  ;;  %v13007_v53 = vpop.permute.xlu0 %13006 }
 0x2b1   : > { %21865 = vst [vmem:[#allocation147_spill] sm:$0xff] %v16087_v52  ;;  %v13009_v37 = vunpack.i.h.bf16 %v13007_v53  ;;  %v13008_v38 = vunpack.i.l.bf16 %v13007_v53 }
 0x2b2   : > { %13296 = vrot.lane.b32.xlu1 %v21866_v12, %s21623_s27  ;;  %v21868_v12 = vld [vmem:[#allocation39_spill] sm:$0xff] }
 0x2b3   : > { %v12163_v21 = vpack.c.bf16 %v13009_v37, %v13008_v38 }
 0x2b4   : > { %v13022_v45 = vpop.permute.xlu1 %13021  ;;  %v1003_v5 = vpop.permute.xlu0 %1002 }
 0x2b5   : > { %v13024_v31 = vunpack.i.h.bf16 %v13022_v45  ;;  %v13023_v2 = vunpack.i.l.bf16 %v13022_v45  ;;  %v16095_v9 = vsel %vm1006_vm2, %v1003_v5, %v1005_v43  ;;  %12165 = vmatprep.subr.msk.bf16.mxu0 %vm15192_vm1, %v12163_v21  ;;  %v16113_v45 = vsel %vm1167_vm0, %v1160_v47, %v15678_v62  ;;  %v21874_v62 = vld [vmem:[#allocation44_spill] sm:$0xff] }
 0x2b6   : > { %v16101_v53 = vpack.i.bf16 %v16095_v9, %v16092_v17  ;;  %13306 = vrot.lane.b32.xlu1 %v21868_v12, %s21623_s27  ;;  %12168 = vmatpush3.bf16.xpose.msk.msra.mxu0 %vm15192_vm1, %v12163_v21  ;;  %21869 = vst [vmem:[#allocation39_spill] sm:$0xff] %v16113_v45  ;;  %v21872_v21 = vld [vmem:[#allocation64_spill] sm:$0xff] }
 0x2b7   : > { %v12169_v23 = vpack.c.bf16 %v13024_v31, %v13023_v2  ;;  %v21875_v47 = vld [vmem:[#allocation52_spill] sm:$0xff] }
 0x2b8   : > { %21867 = vst [vmem:[#allocation14_spill] sm:$0xff] %v16101_v53  ;;  %v16107_v37 = vpop.permute.xlu1 %13026  ;;  %13281 = vrot.lane.b32.xlu0 %v16101_v53, %s21625_s28  ;;  %v1164_v5 = vpop.permute.xlu0 %1163 }
 0x2b9   : > { %v16117_v38 = vsel %vm1167_vm0, %v1164_v5, %v15551_v59  ;;  %12171 = vmatprep.subr.msk.bf16.mxu1 %vm15192_vm1, %v12169_v23  ;;  %v21880_v5 = vld [vmem:[#allocation68_spill] sm:$0xff] }
 0x2ba   : > { %21870 = vst [vmem:[#allocation148_spill] sm:$0xff] %v16117_v38  ;;  %v16123_v31 = vpack.i.bf16 %v16117_v38, %v16113_v45  ;;  %13316 = vrot.lane.b32.xlu1 %v21872_v21, %s21623_s27  ;;  %12174 = vmatpush3.bf16.xpose.msk.msra.mxu1 %vm15192_vm1, %v12169_v23  ;;  %v21879_v23 = vld [vmem:[#allocation61_spill] sm:$0xff]  ;;  %v21881_v21 = vld [vmem:[#allocation15_spill] sm:$0xff] }
 0x2bc   : > { %21871 = vst [vmem:[#allocation149_spill] sm:$0xff] %v16123_v31  ;;  %v16129_v2 = vpop.permute.xlu1 %13031  ;;  %13286 = vrot.lane.b32.xlu0 %v16123_v31, %s21625_s28  ;;  %s9909_s28 = sshll.u32 %s475_s22, 7 }
 0x2bd   : > { %v16133_v59 = vpop.permute.xlu0 %13086  ;;  %11150 = vmatmul.mubr.msk.f32.vlgmr.msra.gmra.mrb[32].mxu0 %vm1167_vm0, %v21874_v62 }
 0x2be   : > { %21873 = vst [vmem:[#allocation64_spill] sm:$0xff] %v16133_v59  ;;  %13326 = vrot.lane.b32.xlu1 %v15541_v56, %s21623_s27  ;;  %11152 = vmatprep.mubr.msk.f32.mxu0 %vm1167_vm0, %v21875_v47  ;;  %v21883_v47 = vld [vmem:[#allocation77_spill] sm:$0xff] }
 0x2c0   : > { %v16141_v43 = vpop.permute.xlu1 %13036  ;;  %13291 = vrot.lane.b32.xlu0 %v21877_v34, %s21623_s27  ;;  %v21885_v34 = vld [vmem:[#allocation47_spill] sm:$0xff] }
 0x2c1   : > { %21876 = vst [vmem:[#allocation44_spill] sm:$0xff] %v16141_v43  ;;  %v16145_v12 = vpop.permute.xlu0 %13106  ;;  %11153 = vmatmul.mubr.msk.f32.gmra.mrb[34].mxu0 %vm1167_vm0, %v21879_v23 }
 0x2c2   : > { %21878 = vst [vmem:[#allocation52_spill] sm:$0xff] %v16145_v12  ;;  %13336 = vrot.lane.b32.xlu1 %v15626_v30, %s21623_s27  ;;  %11155 = vmatprep.mubr.msk.f32.mxu0 %vm1167_vm0, %v21880_v5 }
 0x2c4   : > { %v16153_v56 = vpop.permute.xlu1 %13041  ;;  %13301 = vrot.lane.b32.xlu0 %v21881_v21, %s21623_s27 }
 0x2c5   : > { %v16157_v62 = vpop.permute.xlu0 %13151  ;;  %11156 = vmatmul.mubr.msk.f32.gmra.mrb[36].mxu0 %vm1167_vm0, %v21883_v47 }
 0x2c6   : > { %21882 = vst [vmem:[#allocation13_spill] sm:$0xff] %v16157_v62  ;;  %13346 = vrot.lane.b32.xlu1 %v15754_v29, %s21623_s27  ;;  %11158 = vmatprep.mubr.msk.f32.mxu0 %vm1167_vm0, %v15487_v46  ;;  %v21888_v29 = vld [vmem:[#allocation81_spill] sm:$0xff] }
 0x2c8   : > { %v16165_v30 = vpop.permute.xlu1 %13046  ;;  %13311 = vrot.lane.b32.xlu0 %v21885_v34, %s21623_s27 }
 0x2c9   : > { %21884 = vst [vmem:[#allocation61_spill] sm:$0xff] %v16165_v30  ;;  %v16169_v23 = vpop.permute.xlu0 %13161  ;;  %11159 = vmatmul.mubr.msk.f32.gmra.mrb[38].mxu0 %vm1167_vm0, %v15491_v19 }
 0x2ca   : > { %21886 = vst [vmem:[#allocation68_spill] sm:$0xff] %v16169_v23  ;;  %11205 = vmatprep.mubr.msk.f32.mxu0 %vm1167_vm0, %v15692_v0 }
 0x2cc   : > { %v16175_v5 = vpop.permute.xlu1 %13051  ;;  %13321 = vrot.lane.b32.xlu0 %v21888_v29, %s21623_s27 }
 0x2cd   : > { %21887 = vst [vmem:[#allocation15_spill] sm:$0xff] %v16175_v5  ;;  %v16179_v21 = vpop.permute.xlu0 %13171 }
 0x2ce   : > { %21889 = vst [vmem:[#allocation77_spill] sm:$0xff] %v16179_v21 }
 0x2d0   : > { %v13057_v46 = vpop.permute.xlu1 %13056  ;;  %13331 = vrot.lane.b32.xlu0 %v15549_v39, %s21623_s27 }
 0x2d1   : > { %v13059_v47 = vunpack.i.h.bf16 %v13057_v46  ;;  %v13058_v34 = vunpack.i.l.bf16 %v13057_v46  ;;  %v16183_v42 = vpop.permute.xlu0 %13181 }
 0x2d2   : > { %21890 = vst [vmem:[#allocation47_spill] sm:$0xff] %v16183_v42 }
 0x2d3   : > { %v12175_v31 = vpack.c.bf16 %v13059_v47, %v13058_v34 }
 0x2d4   : > { %v16185_v19 = vpop.permute.xlu1 %13061  ;;  %13341 = vrot.lane.b32.xlu0 %v15690_v8, %s21623_s27 }
 0x2d5   : > { %v13192_v0 = vpop.permute.xlu0 %13191  ;;  %12177 = vmatprep.subr.msk.bf16.mxu1 %vm15192_vm1, %v12175_v31 }
 0x2d6   : > { %v13194_v29 = vunpack.i.h.bf16 %v13192_v0  ;;  %v13193_v53 = vunpack.i.l.bf16 %v13192_v0  ;;  %12180 = vmatpush3.bf16.xpose.msk.msra.mxu1 %vm15192_vm1, %v12175_v31 }
 0x2d8   : > { %v12193_v39 = vpack.c.bf16 %v13194_v29, %v13193_v53  ;;  %v16193_v21 = vpop.permute.xlu1 %13066 }
 0x2da   : > { %12195 = vmatprep.subr.msk.bf16.mxu0 %vm15192_vm1, %v12193_v39 }
 0x2db   : > { %12198 = vmatpush3.bf16.xpose.msk.msra.mxu0 %vm15192_vm1, %v12193_v39 }
 0x2dc   : > { %v16199_v46 = vpop.permute.xlu1 %13071 }
 0x2dd   : > { %21891 = vst [vmem:[#allocation81_spill] sm:$0xff] %v16199_v46  ;;  %v16201_v8 = vpop.permute.xlu0 %13196 }
 0x2e0   : > { %v13077_v47 = vpop.permute.xlu1 %13076 }
 0x2e1   : > { %v16203_v34 = vpop.permute.xlu0 %13201 }
 0x2e2   : > { %21892 = vst [vmem:[#allocation150_spill] sm:$0xff] %v16203_v34  ;;  %v13078_v34 = vunpack.i.l.bf16 %v13077_v47 }
 0x2e4   : > { %v16205_v0 = vpop.permute.xlu1 %13081 }
 0x2e5   : > { %21893 = vst [vmem:[#allocation151_spill] sm:$0xff] %v16205_v0  ;;  %v16207_v42 = vpop.permute.xlu0 %13206 }
 0x2e8   : > { %v13092_v53 = vpop.permute.xlu1 %13091 }
 0x2e9   : > { %v13094_v31 = vunpack.i.h.bf16 %v13092_v53  ;;  %v13093_v29 = vunpack.i.l.bf16 %v13092_v53  ;;  %v16209_v23 = vpop.permute.xlu0 %13211 }
 0x2ea   : > { %21894 = vst [vmem:[#allocation152_spill] sm:$0xff] %v16209_v23 }
 0x2eb   : > { %v12181_v38 = vpack.c.bf16 %v13094_v31, %v13093_v29 }
 0x2ec   : > { %v16211_v45 = vpop.permute.xlu1 %13096 }
 0x2ed   : > { %v13217_v39 = vpop.permute.xlu0 %13216  ;;  %12183 = vmatprep.subr.msk.bf16.mxu1 %vm15192_vm1, %v12181_v38 }
 0x2ee   : > { %v13219_v62 = vunpack.i.h.bf16 %v13217_v39  ;;  %v13218_v12 = vunpack.i.l.bf16 %v13217_v39  ;;  %12186 = vmatpush3.bf16.xpose.msk.msra.mxu1 %vm15192_vm1, %v12181_v38  ;;  %v13044_v38 = vunpack.i.h.bf16 %v16153_v56 }
 0x2f0   : > { %v12199_v52 = vpack.c.bf16 %v13219_v62, %v13218_v12  ;;  %v16217_v59 = vpop.permute.xlu1 %13101  ;;  %v13043_v12 = vunpack.i.l.bf16 %v16153_v56  ;;  %v13079_v56 = vunpack.i.h.bf16 %v13077_v47 }
 0x2f1   : > { %v16219_v46 = vpop.permute.xlu0 %13221 }
 0x2f2   : > { %12201 = vmatprep.subr.msk.bf16.mxu0 %vm15192_vm1, %v12199_v52  ;;  %v12217_v30 = vpack.c.bf16 %v13044_v38, %v13043_v12 }
 0x2f3   : > { %12204 = vmatpush3.bf16.xpose.msk.msra.mxu0 %vm15192_vm1, %v12199_v52 }
 0x2f4   : > { %v13112_v53 = vpop.permute.xlu1 %13111 }
 0x2f5   : > { %v16225_v31 = vpop.permute.xlu0 %13226  ;;  %v13113_v12 = vunpack.i.l.bf16 %v13112_v53 }
 0x2f6   : > { %21895 = vst [vmem:[#allocation153_spill] sm:$0xff] %v16225_v31 }
 0x2f8   : > { %v16227_v29 = vpop.permute.xlu1 %13116 }
 0x2f9   : > { %21896 = vst [vmem:[#allocation154_spill] sm:$0xff] %v16227_v29  ;;  %v16229_v39 = vpop.permute.xlu0 %13231 }
 0x2fc   : > { %v13122_v5 = vpop.permute.xlu1 %13121 }
 0x2fd   : > { %v13124_v62 = vunpack.i.h.bf16 %v13122_v5  ;;  %v13123_v43 = vunpack.i.l.bf16 %v13122_v5  ;;  %v16233_v23 = vpop.permute.xlu0 %13236 }
 0x2ff   : > { %v12187_v0 = vpack.c.bf16 %v13124_v62, %v13123_v43 }
 0x300   : > { %v16243_v43 = vpop.permute.xlu1 %13126 }
 0x301   : > { %v13242_v60 = vpop.permute.xlu0 %13241  ;;  %12189 = vmatprep.subr.msk.bf16.mxu1 %vm15192_vm1, %v12187_v0 }
 0x302   : > { %v13244_v52 = vunpack.i.h.bf16 %v13242_v60  ;;  %v13243_v31 = vunpack.i.l.bf16 %v13242_v60  ;;  %12192 = vmatpush3.bf16.xpose.msk.msra.mxu1 %vm15192_vm1, %v12187_v0  ;;  %v12223_v60 = vpack.c.bf16 %v13079_v56, %v13078_v34  ;;  %v21897_v0 = vld [vmem:[#allocation23_spill] sm:$0xff]  ;;  %v13208_v56 = vunpack.i.l.bf16 %v16207_v42 }
 0x303   : > { %12219 = vmatprep.subr.msk.bf16.mxu1 %vm15192_vm1, %v12217_v30  ;;  %v3696_v34 = vld [vmem:[%s16271_s19] sm:$0x1] }
 0x304   : > { %v12205_v29 = vpack.c.bf16 %v13244_v52, %v13243_v31  ;;  %v16259_v47 = vpop.permute.xlu1 %13131  ;;  %v13114_v31 = vunpack.i.h.bf16 %v13112_v53 }
 0x305   : > { %v16241_v5 = vpop.permute.xlu0 %13246 }
 0x306   : > { %12207 = vmatprep.subr.msk.bf16.mxu0 %vm15192_vm1, %v12205_v29 }
 0x307   : > { %12210 = vmatpush3.bf16.xpose.msk.msra.mxu0 %vm15192_vm1, %v12205_v29 }
 0x308   : > { %v13137_v53 = vpop.permute.xlu1 %13136 }
 0x309   : > { %v16249_v38 = vpop.permute.xlu0 %13251  ;;  %11178 = vmatmul.mubr.msk.f32.vlgmr.msra.gmra.mrb[24].mxu1 %vm1167_vm0, %v21897_v0  ;;  %v13138_v62 = vunpack.i.l.bf16 %v13137_v53 }
 0x30a   : > { %11180 = vmatprep.mubr.msk.f32.mxu1 %vm1167_vm0, %v15223_v54  ;;  %12222 = vmatpush3.bf16.xpose.msk.msra.mxu1 %vm15192_vm1, %v12217_v30  ;;  %v12229_v54 = vpack.c.bf16 %v13114_v31, %v13113_v12  ;;  %v21899_v12 = vld [vmem:[#allocation12_spill] sm:$0xff] }
 0x30b   : > { %12225 = vmatprep.subr.msk.bf16.mxu1 %vm15192_vm1, %v12223_v60 }
 0x30d   : > { %v16261_v29 = vpop.permute.xlu0 %13256  ;;  %11181 = vmatmul.mubr.msk.f32.gmra.mrb[26].mxu1 %vm1167_vm0, %v15281_v10  ;;  %v3698_v10 = vmul.f32 -1e+09, %v3696_v34 }
 0x30e   : > { %11183 = vmatprep.mubr.msk.f32.mxu1 %vm1167_vm0, %v21782_v27  ;;  %v13139_v27 = vunpack.i.h.bf16 %v13137_v53 }
 0x311   : > { %v16273_v30 = vpop.permute.xlu0 %13261  ;;  %11184 = vmatmul.mubr.msk.f32.gmra.mrb[28].mxu1 %vm1167_vm0, %v15408_v13  ;;  %v13209_v13 = vunpack.i.h.bf16 %v16207_v42  ;;  %v13028_v42 = vunpack.i.l.bf16 %v16107_v37 }
 0x312   : > { %21898 = vst [vmem:[#allocation23_spill] sm:$0xff] %v16273_v30  ;;  %11186 = vmatprep.mubr.msk.f32.mxu1 %vm1167_vm0, %v21812_v48  ;;  %12228 = vmatpush3.bf16.xpose.msk.msra.mxu1 %vm15192_vm1, %v12223_v60  ;;  %v12235_v60 = vpack.c.bf16 %v13139_v27, %v13138_v62  ;;  %v16291_v30 = vrot.slane %v3698_v10, %v21899_v12  ;;  %v13233_v27 = vunpack.i.l.bf16 %v16229_v39 }
 0x313   : > { %12231 = vmatprep.subr.msk.bf16.mxu1 %vm15192_vm1, %v12229_v54  ;;  %v12241_v34 = vpack.c.bf16 %v13209_v13, %v13208_v56 }
 0x315   : > { %v13267_v52 = vpop.permute.xlu0 %13266  ;;  %11187 = vmatmul.mubr.msk.f32.gmra.mrb[30].mxu1 %vm1167_vm0, %v21813_v32  ;;  %v13029_v32 = vunpack.i.h.bf16 %v16107_v37 }
 0x316   : > { %v13269_v0 = vunpack.i.h.bf16 %v13267_v52  ;;  %v13268_v31 = vunpack.i.l.bf16 %v13267_v52  ;;  %11233 = vmatprep.mubr.msk.f32.mxu1 %vm1167_vm0, %v15618_v22 }
 0x317   : > { %v12265_v37 = vpack.c.bf16 %v13029_v32, %v13028_v42  ;;  %v13063_v42 = vunpack.i.l.bf16 %v16185_v19 }
 0x318   : > { %v12211_v48 = vpack.c.bf16 %v13269_v0, %v13268_v31 }
 0x31a   : > { %12213 = vmatprep.subr.msk.bf16.mxu0 %vm15192_vm1, %v12211_v48  ;;  %12234 = vmatpush3.bf16.xpose.msk.msra.mxu1 %vm15192_vm1, %v12229_v54  ;;  %v13234_v54 = vunpack.i.h.bf16 %v16229_v39 }
 0x31b   : > { %12216 = vmatpush3.bf16.xpose.msk.msra.mxu0 %vm15192_vm1, %v12211_v48  ;;  %12237 = vmatprep.subr.msk.bf16.mxu1 %vm15192_vm1, %v12235_v60  ;;  %v16322_v48 = vpop.permute.xlu0 %13271 }
 0x31c   : > { %12243 = vmatprep.subr.msk.bf16.mxu0 %vm15192_vm1, %v12241_v34  ;;  %v12247_v39 = vpack.c.bf16 %v13234_v54, %v13233_v27  ;;  %v13258_v54 = vunpack.i.l.bf16 %v16261_v29 }
 0x31d   : > { %v11123_v22 = vpop.f32.mrb[16].mxu1 }
 0x31e   : > { %v16306_v53 = vadd.f32 %v11123_v22, %v16291_v30  ;;  %v1362_v10 = vpop.f32.mrb[17].mxu1 }
 0x31f   : > { %v16311_v62 = vadd.f32 %v16291_v30, %v1362_v10  ;;  %v13259_v10 = vunpack.i.h.bf16 %v16261_v29  ;;  %v16350_v27 = vpop.permute.xlu0 %13276 }
 0x320   : > { %v3844_v52 = vsel %vm3840_vm3, %v16306_v53, -inf }
 0x321   : > { %3845 = vmax.xlane.f32.xlu1 %v3844_v52  ;;  %v11126_v13 = vpop.f32.mrb[18].mxu1  ;;  %v3841_v56 = vsel %vm3840_vm3, %v16311_v62, -inf }
 0x322   : > { %v16318_v0 = vadd.f32 %v11126_v13, %v16291_v30  ;;  %3842 = vmax.xlane.f32.xlu0 %v3841_v56  ;;  %v1372_v31 = vpop.f32.mrb[19].mxu1  ;;  %11206 = vmatmul.mubr.msk.f32.vlgmr.msra.gmra.mrb[40].mxu0 %vm1167_vm0, %v15600_v44 }
 0x323   : > { %12240 = vmatpush3.bf16.xpose.msk.msra.mxu1 %vm15192_vm1, %v12235_v60  ;;  %11208 = vmatprep.mubr.msk.f32.mxu0 %vm1167_vm0, %v15694_v49  ;;  %v16335_v44 = vadd.f32 %v16291_v30, %v1372_v31  ;;  %v12253_v31 = vpack.c.bf16 %v13259_v10, %v13258_v54  ;;  %v21900_v54 = vld [vmem:[#allocation25_spill] sm:$0xff] }
 0x324   : > { %12246 = vmatpush3.bf16.xpose.msk.msra.mxu0 %vm15192_vm1, %v12241_v34  ;;  %12267 = vmatprep.subr.msk.bf16.mxu1 %vm15192_vm1, %v12265_v37  ;;  %v3850_v22 = vsel %vm3840_vm3, %v16318_v0, -inf  ;;  %v13064_v34 = vunpack.i.h.bf16 %v16185_v19 }
 0x325   : > { %v11129_v32 = vpop.f32.mrb[20].mxu1  ;;  %12249 = vmatprep.subr.msk.bf16.mxu0 %vm15192_vm1, %v12247_v39 }
 0x326   : > { %3851 = vmax.xlane.f32.xlu0 %v3850_v22  ;;  %v1382_v60 = vpop.f32.mrb[21].mxu1  ;;  %11209 = vmatmul.mubr.msk.f32.gmra.mrb[42].mxu0 %vm1167_vm0, %v15808_v51  ;;  %v3847_v51 = vsel %vm3840_vm3, %v16335_v44, -inf  ;;  %v16357_v56 = vadd.f32 %v11129_v32, %v16291_v30  ;;  %v12271_v29 = vpack.c.bf16 %v13064_v34, %v13063_v42 }
 0x327   : > { %v16342_v49 = vadd.f32 %v16291_v30, %v1382_v60  ;;  %11211 = vmatprep.mubr.msk.f32.mxu0 %vm1167_vm0, %v15895_v3 }
 0x329   : > { %v11132_v52 = vpop.f32.mrb[22].mxu1  ;;  %v3853_v13 = vsel %vm3840_vm3, %v16342_v49, -inf }
 0x32a   : > { %v16360_v3 = vadd.f32 %v11132_v52, %v16291_v30  ;;  %11234 = vmatmul.mubr.msk.f32.vlgmr.msra.gmra.mrb[32].mxu1 %vm1167_vm0, %v15605_v1  ;;  %3848 = vmax.xlane.f32.xlu0 %v3847_v51  ;;  %v1392_v19 = vpop.f32.mrb[23].mxu1  ;;  %v13282_v22 = vpop.permute.xlu0 %13281 }
 0x32b   : > { %3854 = vmax.xlane.f32.xlu1 %v3853_v13  ;;  %11212 = vmatmul.mubr.msk.f32.gmra.mrb[44].mxu0 %vm1167_vm0, %v15931_v58  ;;  %v16383_v58 = vadd.f32 %v16291_v30, %v1392_v19  ;;  %v13283_v32 = vunpack.i.l.bf16 %v13282_v22  ;;  %v21904_v13 = vld [vmem:[#allocation153_spill] sm:$0xff] }
 0x32c   : > { %11236 = vmatprep.mubr.msk.f32.mxu1 %vm1167_vm0, %v15748_v55  ;;  %12270 = vmatpush3.bf16.xpose.msk.msra.mxu1 %vm15192_vm1, %v12265_v37  ;;  %v3862_v1 = vsel %vm3840_vm3, %v16360_v3, -inf  ;;  %v3856_v55 = vsel %vm3840_vm3, %v16357_v56, -inf  ;;  %v13098_v37 = vunpack.i.l.bf16 %v16211_v45  ;;  %v13229_v19 = vunpack.i.h.bf16 %v21904_v13 }
 0x32d   : > { %11214 = vmatprep.mubr.msk.f32.mxu0 %vm1167_vm0, %v16025_v20  ;;  %12252 = vmatpush3.bf16.xpose.msk.msra.mxu0 %vm15192_vm1, %v12247_v39  ;;  %v13099_v20 = vunpack.i.h.bf16 %v16211_v45  ;;  %v13284_v39 = vunpack.i.h.bf16 %v13282_v22 }
 0x32e   : > { %12273 = vmatprep.subr.msk.bf16.mxu1 %vm15192_vm1, %v12271_v29  ;;  %12255 = vmatprep.subr.msk.bf16.mxu0 %vm15192_vm1, %v12253_v31 }
 0x32f   : > { %11237 = vmatmul.mubr.msk.f32.gmra.mrb[34].mxu1 %vm1167_vm0, %v15737_v41  ;;  %3857 = vmax.xlane.f32.xlu0 %v3856_v55  ;;  %v3859_v41 = vsel %vm3840_vm3, %v16383_v58, -inf  ;;  %v12277_v60 = vpack.c.bf16 %v13099_v20, %v13098_v37  ;;  %v12259_v45 = vpack.c.bf16 %v13284_v39, %v13283_v32  ;;  %v21906_v55 = vld [vmem:[#allocation118_spill] sm:$0xff]  ;;  %v21907_v20 = vld [vmem:[#allocation151_spill] sm:$0xff] }
 0x330   : > { %3863 = vmax.xlane.f32.xlu1 %v3862_v1  ;;  %11215 = vmatmul.mubr.msk.f32.gmra.mrb[46].mxu0 %vm1167_vm0, %v16023_v11  ;;  %v21905_v1 = vld [vmem:[#allocation120_spill] sm:$0xff]  ;;  %v13084_v37 = vunpack.i.h.bf16 %v21907_v20  ;;  %v13083_v39 = vunpack.i.l.bf16 %v21907_v20  ;;  %v21908_v32 = vld [vmem:[#allocation126_spill] sm:$0xff]  ;;  %v21929_v20 = vld [vmem:[#allocation23_spill] sm:$0xff] }
 0x331   : > { %11239 = vmatprep.mubr.msk.f32.mxu1 %vm1167_vm0, %v15854_v16  ;;  %11261 = vmatprep.mubr.msk.f32.mxu0 %vm1167_vm0, %v15785_v50  ;;  %v13198_v16 = vunpack.i.l.bf16 %v16201_v8  ;;  %v13129_v50 = vunpack.i.h.bf16 %v16243_v43 }
 0x333   : > { %11240 = vmatmul.mubr.msk.f32.gmra.mrb[36].mxu1 %vm1167_vm0, %v15843_v14  ;;  %v13199_v14 = vunpack.i.h.bf16 %v16201_v8  ;;  %v13033_v8 = vunpack.i.l.bf16 %v16129_v2 }
 0x334   : > { %3860 = vmax.xlane.f32.xlu1 %v3859_v41  ;;  %11242 = vmatprep.mubr.msk.f32.mxu1 %vm1167_vm0, %v15961_v61  ;;  %v13128_v61 = vunpack.i.l.bf16 %v16243_v43  ;;  %v13223_v43 = vunpack.i.l.bf16 %v16219_v46  ;;  %v13254_v41 = vunpack.i.h.bf16 %v16249_v38 }
 0x335   : > { %12276 = vmatpush3.bf16.xpose.msk.msra.mxu1 %vm15192_vm1, %v12271_v29  ;;  %12258 = vmatpush3.bf16.xpose.msk.msra.mxu0 %vm15192_vm1, %v12253_v31  ;;  %v12289_v11 = vpack.c.bf16 %v13199_v14, %v13198_v16  ;;  %v13228_v29 = vunpack.i.l.bf16 %v21904_v13  ;;  %v21910_v14 = vld [vmem:[#allocation26_spill] sm:$0xff]  ;;  %v12367_v16 = vpack.c.bf16 %v13084_v37, %v13083_v39  ;;  %v21925_v13 = vld [vmem:[#allocation35_spill] sm:$0xff]  ;;  %v13264_v37 = vunpack.i.h.bf16 %v21929_v20 }
 0x336   : > { %12279 = vmatprep.subr.msk.bf16.mxu1 %vm15192_vm1, %v12277_v60  ;;  %12261 = vmatprep.subr.msk.bf16.mxu0 %vm15192_vm1, %v12259_v45  ;;  %v12283_v34 = vpack.c.bf16 %v13129_v50, %v13128_v61  ;;  %v21911_v50 = vld [vmem:[#allocation131_spill] sm:$0xff]  ;;  %v21912_v61 = vld [vmem:[#allocation34_spill] sm:$0xff]  ;;  %v13263_v39 = vunpack.i.l.bf16 %v21929_v20 }
 0x337   : > { %11243 = vmatmul.mubr.msk.f32.gmra.mrb[38].mxu1 %vm1167_vm0, %v15950_v28  ;;  %v13034_v28 = vunpack.i.h.bf16 %v16129_v2  ;;  %v13068_v2 = vunpack.i.l.bf16 %v16193_v21  ;;  %v12343_v22 = vpack.c.bf16 %v13229_v19, %v13228_v29  ;;  %v21926_v19 = vld [vmem:[#allocation121_spill] sm:$0xff] }
 0x338   : > { %11289 = vmatprep.mubr.msk.f32.mxu1 %vm1167_vm0, %v15126_v57  ;;  %v13224_v57 = vunpack.i.h.bf16 %v16219_v46  ;;  %v13249_v46 = vunpack.i.h.bf16 %v16241_v5 }
 0x339   : > { %v12313_v42 = vpack.c.bf16 %v13034_v28, %v13033_v8  ;;  %v21915_v28 = vld [vmem:[#allocation154_spill] sm:$0xff] }
 0x33a   : > { %v12295_v10 = vpack.c.bf16 %v13224_v57, %v13223_v43  ;;  %v13119_v8 = vunpack.i.h.bf16 %v21915_v28  ;;  %v13118_v57 = vunpack.i.l.bf16 %v21915_v28  ;;  %v21916_v43 = vld [vmem:[#allocation138_spill] sm:$0xff]  ;;  %v21935_v28 = vld [vmem:[#allocation31_spill] sm:$0xff] }
 0x33d   : > { %12282 = vmatpush3.bf16.xpose.msk.msra.mxu1 %vm15192_vm1, %v12277_v60  ;;  %12264 = vmatpush3.bf16.xpose.msk.msra.mxu0 %vm15192_vm1, %v12259_v45  ;;  %v13253_v60 = vunpack.i.l.bf16 %v16249_v38  ;;  %v21909_v45 = vld [vmem:[#allocation57_spill] sm:$0xff] }
 0x33e   : > { %12285 = vmatprep.subr.msk.bf16.mxu1 %vm15192_vm1, %v12283_v34  ;;  %12291 = vmatprep.subr.msk.bf16.mxu0 %vm15192_vm1, %v12289_v11  ;;  %v21914_v38 = vld [vmem:[#allocation53_spill] sm:$0xff] }
 0x344   : > { %11262 = vmatmul.mubr.msk.f32.vlgmr.msra.gmra.mrb[48].mxu0 %vm1167_vm0, %v15768_v36  ;;  %v13069_v36 = vunpack.i.h.bf16 %v16193_v21 }
 0x345   : > { %12288 = vmatpush3.bf16.xpose.msk.msra.mxu1 %vm15192_vm1, %v12283_v34  ;;  %11264 = vmatprep.mubr.msk.f32.mxu0 %vm1167_vm0, %v15893_v33  ;;  %v13248_v33 = vunpack.i.l.bf16 %v16241_v5  ;;  %v21913_v34 = vld [vmem:[#allocation139_spill] sm:$0xff] }
 0x346   : > { %12294 = vmatpush3.bf16.xpose.msk.msra.mxu0 %vm15192_vm1, %v12289_v11  ;;  %12315 = vmatprep.subr.msk.bf16.mxu1 %vm15192_vm1, %v12313_v42  ;;  %v12319_v52 = vpack.c.bf16 %v13069_v36, %v13068_v2  ;;  %v12349_v11 = vpack.c.bf16 %v13254_v41, %v13253_v60  ;;  %v13278_v36 = vunpack.i.l.bf16 %v16350_v27  ;;  %v21918_v2 = vld [vmem:[#allocation100_spill] sm:$0xff]  ;;  %v21931_v60 = vld [vmem:[#allocation106_spill] sm:$0xff] }
 0x347   : > { %12297 = vmatprep.subr.msk.bf16.mxu0 %vm15192_vm1, %v12295_v10  ;;  %v12301_v51 = vpack.c.bf16 %v13249_v46, %v13248_v33  ;;  %v21919_v46 = vld [vmem:[#allocation79_spill] sm:$0xff]  ;;  %v12373_v33 = vpack.c.bf16 %v13119_v8, %v13118_v57 }
 0x348   : > { %11265 = vmatmul.mubr.msk.f32.gmra.mrb[50].mxu0 %vm1167_vm0, %v15876_v40  ;;  %v13104_v40 = vunpack.i.h.bf16 %v16217_v59 }
 0x349   : > { %11267 = vmatprep.mubr.msk.f32.mxu0 %vm1167_vm0, %v16001_v35 }
 0x34c   : > { %11290 = vmatmul.mubr.msk.f32.vlgmr.msra.gmra.mrb[40].mxu1 %vm1167_vm0, %v21900_v54  ;;  %11268 = vmatmul.mubr.msk.f32.gmra.mrb[52].mxu0 %vm1167_vm0, %v15983_v25  ;;  %v13103_v25 = vunpack.i.l.bf16 %v16217_v59  ;;  %v21920_v54 = vld [vmem:[#allocation80_spill] sm:$0xff] }
 0x34d   : > { %11292 = vmatprep.mubr.msk.f32.mxu1 %vm1167_vm0, %v15247_v15  ;;  %12318 = vmatpush3.bf16.xpose.msk.msra.mxu1 %vm15192_vm1, %v12313_v42  ;;  %v13274_v15 = vunpack.i.h.bf16 %v16322_v48  ;;  %v21917_v42 = vld [vmem:[#allocation56_spill] sm:$0xff] }
 0x34e   : > { %11270 = vmatprep.mubr.msk.f32.mxu0 %vm1167_vm0, %v16092_v17  ;;  %12300 = vmatpush3.bf16.xpose.msk.msra.mxu0 %vm15192_vm1, %v12295_v10  ;;  %v13273_v17 = vunpack.i.l.bf16 %v16322_v48  ;;  %v12325_v35 = vpack.c.bf16 %v13104_v40, %v13103_v25  ;;  %v13279_v10 = vunpack.i.h.bf16 %v16350_v27  ;;  %v21921_v27 = vld [vmem:[#allocation110_spill] sm:$0xff] }
 0x34f   : > { %12321 = vmatprep.subr.msk.bf16.mxu1 %vm15192_vm1, %v12319_v52  ;;  %12303 = vmatprep.subr.msk.bf16.mxu0 %vm15192_vm1, %v12301_v51 }
 0x350   : > { %11293 = vmatmul.mubr.msk.f32.gmra.mrb[42].mxu1 %vm1167_vm0, %v15335_v7  ;;  %11271 = vmatmul.mubr.msk.f32.gmra.mrb[54].mxu0 %vm1167_vm0, %v16095_v9  ;;  %v12307_v59 = vpack.c.bf16 %v13274_v15, %v13273_v17  ;;  %v13134_v7 = vunpack.i.h.bf16 %v16259_v47  ;;  %v21901_v9 = vld [vmem:[#allocation150_spill] sm:$0xff]  ;;  %v21922_v15 = vld [vmem:[#allocation108_spill] sm:$0xff] }
 0x351   : > { %11295 = vmatprep.mubr.msk.f32.mxu1 %vm1167_vm0, %v21786_v18  ;;  %11317 = vmatprep.mubr.msk.f32.mxu0 %vm1167_vm0, %v15553_v6  ;;  %v13133_v6 = vunpack.i.l.bf16 %v16259_v47  ;;  %v13203_v18 = vunpack.i.l.bf16 %v21901_v9  ;;  %v21923_v17 = vld [vmem:[#allocation152_spill] sm:$0xff] }
 0x353   : > { %v12331_v21 = vpack.c.bf16 %v13134_v7, %v13133_v6 }
 0x354   : > { %11296 = vmatmul.mubr.msk.f32.gmra.mrb[44].mxu1 %vm1167_vm0, %v15452_v24  ;;  %v13204_v24 = vunpack.i.h.bf16 %v21901_v9  ;;  %v21924_v9 = vld [vmem:[#allocation146_spill] sm:$0xff] }
 0x355   : > { %11298 = vmatprep.mubr.msk.f32.mxu1 %vm1167_vm0, %v21818_v26  ;;  %12324 = vmatpush3.bf16.xpose.msk.msra.mxu1 %vm15192_vm1, %v12319_v52  ;;  %v21902_v26 = vld [vmem:[#allocation18_spill] sm:$0xff]  ;;  %v13142_v52 = vpop.permute.xlu1 %13141 }
 0x356   : > { %12306 = vmatpush3.bf16.xpose.msk.msra.mxu0 %vm15192_vm1, %v12301_v51  ;;  %12327 = vmatprep.subr.msk.bf16.mxu1 %vm15192_vm1, %v12325_v35  ;;  %v12337_v5 = vpack.c.bf16 %v13204_v24, %v13203_v18  ;;  %v12355_v51 = vpack.c.bf16 %v13279_v10, %v13278_v36  ;;  %v13144_v40 = vunpack.i.h.bf16 %v13142_v52  ;;  %v13143_v25 = vunpack.i.l.bf16 %v13142_v52  ;;  %v21937_v36 = vld [vmem:[#allocation142_spill] sm:$0xff] }
 0x357   : > { %12309 = vmatprep.subr.msk.bf16.mxu0 %vm15192_vm1, %v12307_v59  ;;  %v13014_v24 = vunpack.i.h.bf16 %v21924_v9  ;;  %v13013_v18 = vunpack.i.l.bf16 %v21924_v9  ;;  %v21939_v52 = vld [vmem:[#allocation122_spill] sm:$0xff] }
 0x358   : > { %11299 = vmatmul.mubr.msk.f32.gmra.mrb[46].mxu1 %vm1167_vm0, %v15628_v63  ;;  %v21903_v63 = vld [vmem:[#allocation61_spill] sm:$0xff]  ;;  %v12379_v7 = vpack.c.bf16 %v13144_v40, %v13143_v25 }
 0x359   : > { %11345 = vmatprep.mubr.msk.f32.mxu1 %vm1167_vm0, %v21902_v26  ;;  %v13049_v47 = vunpack.i.h.bf16 %v21903_v63  ;;  %v13048_v48 = vunpack.i.l.bf16 %v21903_v63  ;;  %v13239_v26 = vunpack.i.h.bf16 %v16233_v23  ;;  %v3697_v63 = vld [vmem:[%s16271_s19 + $0x1] sm:$0x1] }
 0x35b   : > { %v12361_v31 = vpack.c.bf16 %v13049_v47, %v13048_v48  ;;  %v12409_v47 = vpack.c.bf16 %v13014_v24, %v13013_v18 }
 0x35d   : > { %12330 = vmatpush3.bf16.xpose.msk.msra.mxu1 %vm15192_vm1, %v12325_v35  ;;  %v13214_v35 = vunpack.i.h.bf16 %v21923_v17 }
 0x35e   : > { %12312 = vmatpush3.bf16.xpose.msk.msra.mxu0 %vm15192_vm1, %v12307_v59  ;;  %12333 = vmatprep.subr.msk.bf16.mxu1 %vm15192_vm1, %v12331_v21  ;;  %v13213_v59 = vunpack.i.l.bf16 %v21923_v17 }
 0x35f   : > { %12339 = vmatprep.subr.msk.bf16.mxu0 %vm15192_vm1, %v12337_v5 }
 0x360   : > { %v12385_v6 = vpack.c.bf16 %v13214_v35, %v13213_v59 }
 0x365   : > { %11318 = vmatmul.mubr.msk.f32.vlgmr.msra.gmra.mrb[56].mxu0 %vm1167_vm0, %v21905_v1  ;;  %12336 = vmatpush3.bf16.xpose.msk.msra.mxu1 %vm15192_vm1, %v12331_v21  ;;  %v13238_v21 = vunpack.i.l.bf16 %v16233_v23  ;;  %v3699_v23 = vmul.f32 -1e+09, %v3697_v63 }
 0x366   : > { %11320 = vmatprep.mubr.msk.f32.mxu0 %vm1167_vm0, %v21906_v55  ;;  %12342 = vmatpush3.bf16.xpose.msk.msra.mxu0 %vm15192_vm1, %v12337_v5  ;;  %v16587_v5 = vpop.permute.xlu1 %13146  ;;  %v21928_v55 = vld [vmem:[#allocation51_spill] sm:$0xff] }
 0x367   : > { %12363 = vmatprep.subr.msk.bf16.mxu1 %vm15192_vm1, %v12361_v31  ;;  %12345 = vmatprep.subr.msk.bf16.mxu0 %vm15192_vm1, %v12343_v22  ;;  %v12391_v48 = vpack.c.bf16 %v13239_v26, %v13238_v21  ;;  %v16613_v41 = vrot.slane %v3699_v23, %v21899_v12  ;;  %v21942_v26 = vld [vmem:[#allocation42_spill] sm:$0xff]  ;;  %v21945_v23 = vld [vmem:[#allocation64_spill] sm:$0xff] }
 0x369   : > { %11321 = vmatmul.mubr.msk.f32.gmra.mrb[58].mxu0 %vm1167_vm0, %v21908_v32  ;;  %v21930_v32 = vld [vmem:[#allocation127_spill] sm:$0xff] }
 0x36a   : > { %11323 = vmatprep.mubr.msk.f32.mxu0 %vm1167_vm0, %v21909_v45  ;;  %v16602_v29 = vpop.permute.xlu1 %13156 }
 0x36c   : > { %11346 = vmatmul.mubr.msk.f32.vlgmr.msra.gmra.mrb[48].mxu1 %vm1167_vm0, %v21910_v14  ;;  %v21932_v14 = vld [vmem:[#allocation76_spill] sm:$0xff] }
 0x36d   : > { %11324 = vmatmul.mubr.msk.f32.gmra.mrb[60].mxu0 %vm1167_vm0, %v21911_v50  ;;  %11348 = vmatprep.mubr.msk.f32.mxu1 %vm1167_vm0, %v21912_v61  ;;  %v12397_v50 = vpack.c.bf16 %v13264_v37, %v13263_v39 }
 0x36e   : > { %12366 = vmatpush3.bf16.xpose.msk.msra.mxu1 %vm15192_vm1, %v12361_v31  ;;  %11326 = vmatprep.mubr.msk.f32.mxu0 %vm1167_vm0, %v21913_v34  ;;  %v21927_v31 = vld [vmem:[#allocation44_spill] sm:$0xff]  ;;  %v16621_v61 = vpop.permute.xlu1 %13166  ;;  %v13287_v34 = vpop.permute.xlu0 %13286 }
 0x36f   : > { %12348 = vmatpush3.bf16.xpose.msk.msra.mxu0 %vm15192_vm1, %v12343_v22  ;;  %12369 = vmatprep.subr.msk.bf16.mxu1 %vm15192_vm1, %v12367_v16  ;;  %v13039_v22 = vunpack.i.h.bf16 %v21927_v31  ;;  %v13038_v1 = vunpack.i.l.bf16 %v21927_v31  ;;  %v13089_v31 = vunpack.i.h.bf16 %v21945_v23 }
 0x370   : > { %12351 = vmatprep.subr.msk.bf16.mxu0 %vm15192_vm1, %v12349_v11  ;;  %11349 = vmatmul.mubr.msk.f32.gmra.mrb[50].mxu1 %vm1167_vm0, %v21914_v38 }
 0x371   : > { %11327 = vmatmul.mubr.msk.f32.gmra.mrb[62].mxu0 %vm1167_vm0, %v21916_v43  ;;  %11351 = vmatprep.mubr.msk.f32.mxu1 %vm1167_vm0, %v21917_v42  ;;  %v12415_v45 = vpack.c.bf16 %v13039_v22, %v13038_v1  ;;  %v21936_v43 = vld [vmem:[#allocation15_spill] sm:$0xff]  ;;  %v13088_v22 = vunpack.i.l.bf16 %v21945_v23 }
 0x372   : > { %11373 = vmatprep.mubr.msk.f32.mxu0 %vm1167_vm0, %v21918_v2  ;;  %v13054_v42 = vunpack.i.h.bf16 %v21936_v43  ;;  %v13053_v10 = vunpack.i.l.bf16 %v21936_v43  ;;  %v21938_v2 = vld [vmem:[#allocation37_spill] sm:$0xff]  ;;  %v16653_v25 = vpop.permute.xlu1 %13176  ;;  %v16690_v37 = vpop.permute.xlu0 %13291 }
 0x374   : > { %11352 = vmatmul.mubr.msk.f32.gmra.mrb[52].mxu1 %vm1167_vm0, %v21919_v46  ;;  %v12421_v59 = vpack.c.bf16 %v13054_v42, %v13053_v10 }
 0x375   : > { %11354 = vmatprep.mubr.msk.f32.mxu1 %vm1167_vm0, %v21920_v54  ;;  %v13288_v54 = vunpack.i.l.bf16 %v13287_v34 }
 0x376   : > { %12372 = vmatpush3.bf16.xpose.msk.msra.mxu1 %vm15192_vm1, %v12367_v16  ;;  %v21933_v16 = vld [vmem:[#allocation43_spill] sm:$0xff]  ;;  %v16686_v1 = vpop.permute.xlu1 %13186  ;;  %v16716_v10 = vpop.permute.xlu0 %13301 }
 0x377   : > { %12354 = vmatpush3.bf16.xpose.msk.msra.mxu0 %vm15192_vm1, %v12349_v11  ;;  %12375 = vmatprep.subr.msk.bf16.mxu1 %vm15192_vm1, %v12373_v33  ;;  %v21934_v11 = vld [vmem:[#allocation143_spill] sm:$0xff] }
 0x378   : > { %12357 = vmatprep.subr.msk.bf16.mxu0 %vm15192_vm1, %v12355_v51  ;;  %11355 = vmatmul.mubr.msk.f32.gmra.mrb[54].mxu1 %vm1167_vm0, %v21921_v27 }
 0x379   : > { %11401 = vmatprep.mubr.msk.f32.mxu1 %vm1167_vm0, %v21922_v15  ;;  %v21940_v15 = vld [vmem:[#allocation30_spill] sm:$0xff] }
 0x37e   : > { %12378 = vmatpush3.bf16.xpose.msk.msra.mxu1 %vm15192_vm1, %v12373_v33  ;;  %v13289_v33 = vunpack.i.h.bf16 %v13287_v34  ;;  %v21946_v34 = vld [vmem:[#allocation147_spill] sm:$0xff] }
 0x37f   : > { %12360 = vmatpush3.bf16.xpose.msk.msra.mxu0 %vm15192_vm1, %v12355_v51  ;;  %12381 = vmatprep.subr.msk.bf16.mxu1 %vm15192_vm1, %v12379_v7 }
 0x380   : > { %12387 = vmatprep.subr.msk.bf16.mxu0 %vm15192_vm1, %v12385_v6 }
 0x386   : > { %11374 = vmatmul.mubr.msk.f32.vlgmr.msra.gmra.mrb[64].mxu0 %vm1167_vm0, %v21925_v13  ;;  %12384 = vmatpush3.bf16.xpose.msk.msra.mxu1 %vm15192_vm1, %v12379_v7  ;;  %v21941_v7 = vld [vmem:[#allocation55_spill] sm:$0xff] }
 0x387   : > { %11376 = vmatprep.mubr.msk.f32.mxu0 %vm1167_vm0, %v21926_v19  ;;  %12390 = vmatpush3.bf16.xpose.msk.msra.mxu0 %vm15192_vm1, %v12385_v6  ;;  %v12403_v6 = vpack.c.bf16 %v13289_v33, %v13288_v54  ;;  %v21944_v19 = vld [vmem:[#allocation19_spill] sm:$0xff] }
 0x388   : > { %12411 = vmatprep.subr.msk.bf16.mxu1 %vm15192_vm1, %v12409_v47  ;;  %12393 = vmatprep.subr.msk.bf16.mxu0 %vm15192_vm1, %v12391_v48 }
 0x38a   : > { %11377 = vmatmul.mubr.msk.f32.gmra.mrb[66].mxu0 %vm1167_vm0, %v21928_v55 }
 0x38b   : > { %11379 = vmatprep.mubr.msk.f32.mxu0 %vm1167_vm0, %v21930_v32 }
 0x38d   : > { %11402 = vmatmul.mubr.msk.f32.vlgmr.msra.gmra.mrb[56].mxu1 %vm1167_vm0, %v21931_v60 }
 0x38e   : > { %11380 = vmatmul.mubr.msk.f32.gmra.mrb[68].mxu0 %vm1167_vm0, %v21932_v14  ;;  %11404 = vmatprep.mubr.msk.f32.mxu1 %vm1167_vm0, %v21933_v16  ;;  %v12433_v14 = vpack.c.bf16 %v13089_v31, %v13088_v22  ;;  %v16703_v16 = vpop.permute.xlu1 %13296  ;;  %v21956_v31 = vld [vmem:[#allocation39_spill] sm:$0xff]  ;;  %v21957_v22 = vld [vmem:[#allocation22_spill] sm:$0xff] }
 0x38f   : > { %12414 = vmatpush3.bf16.xpose.msk.msra.mxu1 %vm15192_vm1, %v12409_v47  ;;  %11382 = vmatprep.mubr.msk.f32.mxu0 %vm1167_vm0, %v21934_v11  ;;  %v21943_v47 = vld [vmem:[#allocation81_spill] sm:$0xff] }
 0x390   : > { %12396 = vmatpush3.bf16.xpose.msk.msra.mxu0 %vm15192_vm1, %v12391_v48  ;;  %12417 = vmatprep.subr.msk.bf16.mxu1 %vm15192_vm1, %v12415_v45  ;;  %v11151_v38 = vpop.f32.mrb[32].mxu0  ;;  %v13074_v48 = vunpack.i.h.bf16 %v21943_v47  ;;  %v13073_v13 = vunpack.i.l.bf16 %v21943_v47  ;;  %v21953_v47 = vld [vmem:[#allocation16_spill] sm:$0xff] }
 0x391   : > { %12399 = vmatprep.subr.msk.bf16.mxu0 %vm15192_vm1, %v12397_v50  ;;  %11405 = vmatmul.mubr.msk.f32.gmra.mrb[58].mxu1 %vm1167_vm0, %v21935_v28  ;;  %v16636_v8 = vadd.f32 %v11151_v38, %v16613_v41  ;;  %v1515_v57 = vpop.f32.mrb[33].mxu0  ;;  %v13019_v38 = vunpack.i.h.bf16 %v21946_v34  ;;  %v13018_v28 = vunpack.i.l.bf16 %v21946_v34 }
 0x392   : > { %11383 = vmatmul.mubr.msk.f32.gmra.mrb[70].mxu0 %vm1167_vm0, %v21937_v36  ;;  %11407 = vmatprep.mubr.msk.f32.mxu1 %vm1167_vm0, %v21938_v2  ;;  %v16645_v46 = vadd.f32 %v16613_v41, %v1515_v57  ;;  %v21947_v57 = vld [vmem:[#allocation52_spill] sm:$0xff] }
 0x393   : > { %11429 = vmatprep.mubr.msk.f32.mxu0 %vm1167_vm0, %v21939_v52  ;;  %v3868_v51 = vsel %vm3840_vm3, %v16636_v8, -inf  ;;  %v13109_v43 = vunpack.i.h.bf16 %v21947_v57  ;;  %v13108_v42 = vunpack.i.l.bf16 %v21947_v57  ;;  %v12457_v33 = vpack.c.bf16 %v13019_v38, %v13018_v28  ;;  %v16723_v52 = vpop.permute.xlu1 %13306  ;;  %v21961_v38 = vld [vmem:[#allocation60_spill] sm:$0xff] }
 0x394   : > { %v11154_v27 = vpop.f32.mrb[34].mxu0  ;;  %3869 = vmax.xlane.f32.xlu0 %v3868_v51  ;;  %v3865_v40 = vsel %vm3840_vm3, %v16645_v46, -inf  ;;  %v21948_v51 = vld [vmem:[#allocation59_spill] sm:$0xff]  ;;  %v21962_v57 = vld [vmem:[#allocation32_spill] sm:$0xff] }
 0x395   : > { %11408 = vmatmul.mubr.msk.f32.gmra.mrb[60].mxu1 %vm1167_vm0, %v21940_v15  ;;  %v16658_v17 = vadd.f32 %v11154_v27, %v16613_v41  ;;  %v1525_v35 = vpop.f32.mrb[35].mxu0  ;;  %3866 = vmax.xlane.f32.xlu1 %v3865_v40  ;;  %v12439_v54 = vpack.c.bf16 %v13109_v43, %v13108_v42  ;;  %v21949_v27 = vld [vmem:[#allocation95_spill] sm:$0xff]  ;;  %v16733_v40 = vpop.permute.xlu0 %13311  ;;  %v21963_v43 = vld [vmem:[#allocation46_spill] sm:$0xff] }
 0x396   : > { %11410 = vmatprep.mubr.msk.f32.mxu1 %vm1167_vm0, %v21941_v7  ;;  %v16673_v18 = vadd.f32 %v16613_v41, %v1525_v35  ;;  %v13149_v35 = vunpack.i.h.bf16 %v16587_v5  ;;  %v21950_v7 = vld [vmem:[#allocation71_spill] sm:$0xff] }
 0x397   : > { %12420 = vmatpush3.bf16.xpose.msk.msra.mxu1 %vm15192_vm1, %v12415_v45  ;;  %v3874_v9 = vsel %vm3840_vm3, %v16658_v17, -inf  ;;  %v12427_v45 = vpack.c.bf16 %v13074_v48, %v13073_v13 }
 0x398   : > { %12402 = vmatpush3.bf16.xpose.msk.msra.mxu0 %vm15192_vm1, %v12397_v50  ;;  %12423 = vmatprep.subr.msk.bf16.mxu1 %vm15192_vm1, %v12421_v59  ;;  %v11157_v24 = vpop.f32.mrb[36].mxu0  ;;  %v3871_v60 = vsel %vm3840_vm3, %v16673_v18, -inf }
 0x399   : > { %12405 = vmatprep.subr.msk.bf16.mxu0 %vm15192_vm1, %v12403_v6  ;;  %11411 = vmatmul.mubr.msk.f32.gmra.mrb[62].mxu1 %vm1167_vm0, %v21942_v26  ;;  %v16678_v21 = vadd.f32 %v11157_v24, %v16613_v41  ;;  %v1535_v63 = vpop.f32.mrb[37].mxu0  ;;  %v21952_v26 = vld [vmem:[#allocation92_spill] sm:$0xff]  ;;  %v16753_v13 = vpop.permute.xlu0 %13321 }
 0x39a   : > { %11457 = vmatprep.mubr.msk.f32.mxu1 %vm1167_vm0, %v21944_v19  ;;  %3875 = vmax.xlane.f32.xlu1 %v3874_v9  ;;  %v16693_v39 = vadd.f32 %v16613_v41, %v1535_v63  ;;  %v16749_v63 = vpop.permute.xlu1 %13316  ;;  %v21954_v19 = vld [vmem:[#allocation84_spill] sm:$0xff] }
 0x39b   : > { %v3880_v55 = vsel %vm3840_vm3, %v16678_v21, -inf }
 0x39c   : > { %v11160_v20 = vpop.f32.mrb[38].mxu0  ;;  %3881 = vmax.xlane.f32.xlu0 %v3880_v55  ;;  %v3877_v11 = vsel %vm3840_vm3, %v16693_v39, -inf  ;;  %v13159_v55 = vunpack.i.h.bf16 %v16602_v29 }
 0x39d   : > { %v1545_v32 = vpop.f32.mrb[39].mxu0  ;;  %v16706_v50 = vadd.f32 %v11160_v20, %v16613_v41  ;;  %v13158_v20 = vunpack.i.l.bf16 %v16602_v29  ;;  %v16783_v28 = vpop.permute.xlu0 %13331 }
 0x39e   : > { %3872 = vmax.xlane.f32.xlu1 %v3871_v60  ;;  %v16719_v36 = vadd.f32 %v16613_v41, %v1545_v32  ;;  %v16773_v32 = vpop.permute.xlu1 %13326  ;;  %v21958_v60 = vld [vmem:[#allocation148_spill] sm:$0xff] }
 0x39f   : > { %12426 = vmatpush3.bf16.xpose.msk.msra.mxu1 %vm15192_vm1, %v12421_v59  ;;  %v3886_v2 = vsel %vm3840_vm3, %v16706_v50, -inf  ;;  %v13148_v59 = vunpack.i.l.bf16 %v16587_v5  ;;  %v21955_v5 = vld [vmem:[#allocation28_spill] sm:$0xff]  ;;  %v12469_v29 = vpack.c.bf16 %v13159_v55, %v13158_v20  ;;  %v21967_v55 = vld [vmem:[#allocation62_spill] sm:$0xff] }
 0x3a0   : > { %12408 = vmatpush3.bf16.xpose.msk.msra.mxu0 %vm15192_vm1, %v12403_v6  ;;  %12429 = vmatprep.subr.msk.bf16.mxu1 %vm15192_vm1, %v12427_v45  ;;  %v3883_v15 = vsel %vm3840_vm3, %v16719_v36, -inf  ;;  %v21951_v6 = vld [vmem:[#allocation13_spill] sm:$0xff] }
 0x3a1   : > { %12435 = vmatprep.subr.msk.bf16.mxu0 %vm15192_vm1, %v12433_v14  ;;  %v13154_v9 = vunpack.i.h.bf16 %v21951_v6  ;;  %v13153_v24 = vunpack.i.l.bf16 %v21951_v6  ;;  %v12463_v48 = vpack.c.bf16 %v13149_v35, %v13148_v59  ;;  %v21966_v35 = vld [vmem:[#allocation77_spill] sm:$0xff] }
 0x3a2   : > { %3878 = vmax.xlane.f32.xlu1 %v3877_v11  ;;  %v13174_v59 = vunpack.i.h.bf16 %v21966_v35 }
 0x3a3   : > { %v12445_v23 = vpack.c.bf16 %v13154_v9, %v13153_v24 }
 0x3a6   : > { %3887 = vmax.xlane.f32.xlu1 %v3886_v2  ;;  %v16791_v2 = vpop.permute.xlu1 %13336 }
 0x3a7   : > { %11430 = vmatmul.mubr.msk.f32.vlgmr.msra.gmra.mrb[72].mxu0 %vm1167_vm0, %v21948_v51  ;;  %12432 = vmatpush3.bf16.xpose.msk.msra.mxu1 %vm15192_vm1, %v12427_v45  ;;  %v21959_v45 = vld [vmem:[#allocation38_spill] sm:$0xff]  ;;  %v13168_v51 = vunpack.i.l.bf16 %v16621_v61 }
 0x3a8   : > { %11432 = vmatprep.mubr.msk.f32.mxu0 %vm1167_vm0, %v21949_v27  ;;  %12438 = vmatpush3.bf16.xpose.msk.msra.mxu0 %vm15192_vm1, %v12433_v14  ;;  %v21960_v14 = vld [vmem:[#allocation68_spill] sm:$0xff]  ;;  %v16803_v27 = vpop.permute.xlu0 %13341 }
 0x3a9   : > { %12459 = vmatprep.subr.msk.bf16.mxu1 %vm15192_vm1, %v12457_v33  ;;  %12441 = vmatprep.subr.msk.bf16.mxu0 %vm15192_vm1, %v12439_v54  ;;  %v13164_v11 = vunpack.i.h.bf16 %v21960_v14  ;;  %v13163_v34 = vunpack.i.l.bf16 %v21960_v14  ;;  %v13298_v14 = vunpack.i.l.bf16 %v16703_v16 }
 0x3aa   : > { %3884 = vmax.xlane.f32.xlu1 %v3883_v15  ;;  %v21965_v15 = vld [vmem:[#allocation21_spill] sm:$0xff]  ;;  %v16809_v9 = vpop.permute.xlu1 %13346 }
 0x3ab   : > { %11433 = vmatmul.mubr.msk.f32.gmra.mrb[74].mxu0 %vm1167_vm0, %v21950_v7  ;;  %v12451_v42 = vpack.c.bf16 %v13164_v11, %v13163_v34  ;;  %v13173_v7 = vunpack.i.l.bf16 %v21966_v35  ;;  %v21969_v11 = vld [vmem:[#allocation73_spill] sm:$0xff]  ;;  %v21970_v34 = vld [vmem:[#allocation47_spill] sm:$0xff] }
 0x3ac   : > { %11435 = vmatprep.mubr.msk.f32.mxu0 %vm1167_vm0, %v21952_v26  ;;  %v21974_v35 = vld [vmem:[#allocation29_spill] sm:$0xff] }
 0x3ad   : > { %v12481_v26 = vpack.c.bf16 %v13174_v59, %v13173_v7 }
 0x3ae   : > { %11458 = vmatmul.mubr.msk.f32.vlgmr.msra.gmra.mrb[64].mxu1 %vm1167_vm0, %v21953_v47  ;;  %v13179_v47 = vunpack.i.h.bf16 %v16653_v25 }
 0x3af   : > { %11436 = vmatmul.mubr.msk.f32.gmra.mrb[76].mxu0 %vm1167_vm0, %v21954_v19  ;;  %11460 = vmatprep.mubr.msk.f32.mxu1 %vm1167_vm0, %v21955_v5  ;;  %v3843_v24 = vpop.xlane.xlu0 %3842  ;;  %v13294_v19 = vunpack.i.h.bf16 %v16690_v37  ;;  %v13293_v5 = vunpack.i.l.bf16 %v16690_v37  ;;  %v13299_v37 = vunpack.i.h.bf16 %v16703_v16  ;;  %v13304_v16 = vunpack.i.h.bf16 %v16716_v10 }
 0x3b0   : > { %12462 = vmatpush3.bf16.xpose.msk.msra.mxu1 %vm15192_vm1, %v12457_v33  ;;  %11438 = vmatprep.mubr.msk.f32.mxu0 %vm1167_vm0, %v21956_v31  ;;  %v21964_v33 = vld [vmem:[#allocation45_spill] sm:$0xff] }
 0x3b1   : > { %12444 = vmatpush3.bf16.xpose.msk.msra.mxu0 %vm15192_vm1, %v12439_v54  ;;  %12465 = vmatprep.subr.msk.bf16.mxu1 %vm15192_vm1, %v12463_v48  ;;  %v13169_v54 = vunpack.i.h.bf16 %v16621_v61  ;;  %v3846_v61 = vpop.xlane.xlu1 %3845  ;;  %v12505_v20 = vpack.c.bf16 %v13294_v19, %v13293_v5  ;;  %v13308_v19 = vunpack.i.l.bf16 %v16723_v52  ;;  %v21977_v5 = vld [vmem:[#allocation99_spill] sm:$0xff] }
 0x3b2   : > { %12447 = vmatprep.subr.msk.bf16.mxu0 %vm15192_vm1, %v12445_v23  ;;  %11461 = vmatmul.mubr.msk.f32.gmra.mrb[66].mxu1 %vm1167_vm0, %v21957_v22 }
 0x3b3   : > { %11439 = vmatmul.mubr.msk.f32.gmra.mrb[78].mxu0 %vm1167_vm0, %v21958_v60  ;;  %11463 = vmatprep.mubr.msk.f32.mxu1 %vm1167_vm0, %v21959_v45  ;;  %v12475_v6 = vpack.c.bf16 %v13169_v54, %v13168_v51  ;;  %v4225_v60 = vsub.f32 %v16311_v62, %v3843_v24  ;;  %v21968_v45 = vld [vmem:[#allocation70_spill] sm:$0xff]  ;;  %v13184_v62 = vunpack.i.h.bf16 %v21970_v34  ;;  %v21972_v54 = vld [vmem:[#allocation17_spill] sm:$0xff]  ;;  %v13303_v51 = vunpack.i.l.bf16 %v16716_v10 }
 0x3b4   : > { %11485 = vmatprep.mubr.msk.f32.mxu0 %vm1167_vm0, %v21961_v38  ;;  %v13183_v38 = vunpack.i.l.bf16 %v21970_v34 }
 0x3b6   : > { %11464 = vmatmul.mubr.msk.f32.gmra.mrb[68].mxu1 %vm1167_vm0, %v21962_v57  ;;  %v4226_v57 = vsub.f32 %v16306_v53, %v3846_v61  ;;  %v12509_v53 = vpack.c.bf16 %v13299_v37, %v13298_v14  ;;  %v12493_v59 = vpack.c.bf16 %v13184_v62, %v13183_v38  ;;  %v21981_v37 = vld [vmem:[#allocation49_spill] sm:$0xff]  ;;  %v13319_v38 = vunpack.i.h.bf16 %v16749_v63 }
 0x3b7   : > { %11466 = vmatprep.mubr.msk.f32.mxu1 %vm1167_vm0, %v21963_v43 }
 0x3b8   : > { %12468 = vmatpush3.bf16.xpose.msk.msra.mxu1 %vm15192_vm1, %v12463_v48  ;;  %v13178_v48 = vunpack.i.l.bf16 %v16653_v25  ;;  %v3855_v31 = vpop.xlane.xlu1 %3854  ;;  %v4355_v7 = vmul.f32 1.442695, %v4226_v57  ;;  %v13318_v57 = vunpack.i.l.bf16 %v16749_v63 }
 0x3b9   : > { %12450 = vmatpush3.bf16.xpose.msk.msra.mxu0 %vm15192_vm1, %v12445_v23  ;;  %12471 = vmatprep.subr.msk.bf16.mxu1 %vm15192_vm1, %v12469_v29  ;;  %v3852_v23 = vpop.xlane.xlu0 %3851 }
 0x3ba   : > { %12453 = vmatprep.subr.msk.bf16.mxu0 %vm15192_vm1, %v12451_v42  ;;  %11467 = vmatmul.mubr.msk.f32.gmra.mrb[70].mxu1 %vm1167_vm0, %v21964_v33  ;;  %v12487_v22 = vpack.c.bf16 %v13179_v47, %v13178_v48  ;;  %v21976_v47 = vld [vmem:[#allocation24_spill] sm:$0xff]  ;;  %v13309_v48 = vunpack.i.h.bf16 %v16723_v52 }
 0x3bb   : > { %11513 = vmatprep.mubr.msk.f32.mxu1 %vm1167_vm0, %v21965_v15  ;;  %v21973_v15 = vld [vmem:[#allocation86_spill] sm:$0xff] }
 0x3bd   : > { %v3849_v25 = vpop.xlane.xlu0 %3848  ;;  %v16841_v43 = vpop.xlane.xlu1 %3863 }
 0x3be   : > { %v4227_v33 = vsub.f32 %v16335_v44, %v3849_v25  ;;  %v21975_v44 = vld [vmem:[#allocation93_spill] sm:$0xff]  ;;  %v13314_v25 = vunpack.i.h.bf16 %v16733_v40  ;;  %v4232_v34 = vsub.f32 %v16360_v3, %v16841_v43  ;;  %v13339_v3 = vunpack.i.h.bf16 %v16791_v2 }
 0x3c0   : > { %12474 = vmatpush3.bf16.xpose.msk.msra.mxu1 %vm15192_vm1, %v12469_v29  ;;  %v4353_v29 = vmul.f32 1.442695, %v4225_v60  ;;  %v4357_v24 = vmul.f32 1.442695, %v4227_v33  ;;  %v4367_v33 = vmul.f32 1.442695, %v4232_v34 }
 0x3c1   : > { %12456 = vmatpush3.bf16.xpose.msk.msra.mxu0 %vm15192_vm1, %v12451_v42  ;;  %12477 = vmatprep.subr.msk.bf16.mxu1 %vm15192_vm1, %v12475_v6  ;;  %v21971_v42 = vld [vmem:[#allocation85_spill] sm:$0xff]  ;;  %v3858_v10 = vpop.xlane.xlu0 %3857  ;;  %v3861_v61 = vpop.xlane.xlu1 %3860  ;;  %v21993_v34 = vld [vmem:[#allocation75_spill] sm:$0xff] }
 0x3c2   : > { %12483 = vmatprep.subr.msk.bf16.mxu0 %vm15192_vm1, %v12481_v26  ;;  %13890 = vpow2.f32 %v4353_v29  ;;  %v4231_v52 = vsub.f32 %v16383_v58, %v3861_v61 }
 0x3c3   : > { %13892 = vpow2.f32 %v4355_v7 }
 0x3c4   : > { %13894 = vpow2.f32 %v4357_v24  ;;  %v4365_v58 = vmul.f32 1.442695, %v4231_v52  ;;  %v21990_v52 = vld [vmem:[#allocation65_spill] sm:$0xff] }
 0x3c8   : > { %11486 = vmatmul.mubr.msk.f32.vlgmr.msra.gmra.mrb[80].mxu0 %vm1167_vm0, %v21967_v55  ;;  %12480 = vmatpush3.bf16.xpose.msk.msra.mxu1 %vm15192_vm1, %v12475_v6  ;;  %v4228_v6 = vsub.f32 %v16318_v0, %v3852_v23  ;;  %v13189_v0 = vunpack.i.h.bf16 %v16686_v1  ;;  %v12513_v23 = vpack.c.bf16 %v13304_v16, %v13303_v51  ;;  %v4230_v55 = vsub.f32 %v16357_v56, %v3858_v10 }
 0x3c9   : > { %11488 = vmatprep.mubr.msk.f32.mxu0 %vm1167_vm0, %v21968_v45  ;;  %12486 = vmatpush3.bf16.xpose.msk.msra.mxu0 %vm15192_vm1, %v12481_v26  ;;  %v4229_v26 = vsub.f32 %v16342_v49, %v3855_v31  ;;  %v21978_v49 = vld [vmem:[#allocation40_spill] sm:$0xff]  ;;  %v13188_v31 = vunpack.i.l.bf16 %v16686_v1  ;;  %v21980_v45 = vld [vmem:[#allocation33_spill] sm:$0xff]  ;;  %v13313_v1 = vunpack.i.l.bf16 %v16733_v40  ;;  %v12517_v56 = vpack.c.bf16 %v13309_v48, %v13308_v19 }
 0x3ca   : > { %12506 = vmatprep.subr.bf16.mxu1 %v12505_v20  ;;  %12489 = vmatprep.subr.msk.bf16.mxu0 %vm15192_vm1, %v12487_v22  ;;  %v21983_v40 = vld [vmem:[#allocation48_spill] sm:$0xff]  ;;  %v13329_v48 = vunpack.i.h.bf16 %v16773_v32  ;;  %v13328_v19 = vunpack.i.l.bf16 %v16773_v32 }
 0x3cb   : > { %v4361_v60 = vmul.f32 1.442695, %v4229_v26  ;;  %v12499_v14 = vpack.c.bf16 %v13189_v0, %v13188_v31  ;;  %v12521_v29 = vpack.c.bf16 %v13314_v25, %v13313_v1 }
 0x3cc   : > { %11489 = vmatmul.mubr.msk.f32.gmra.mrb[82].mxu0 %vm1167_vm0, %v21969_v11  ;;  %v4363_v11 = vmul.f32 1.442695, %v4230_v55  ;;  %v16886_v62 = vpop.eup %13890 }
 0x3cd   : > { %11491 = vmatprep.mubr.msk.f32.mxu0 %vm1167_vm0, %v21971_v42  ;;  %21982 = vst [vmem:[#allocation25_spill] sm:$0xff] %v16886_v62  ;;  %v13338_v42 = vunpack.i.l.bf16 %v16791_v2  ;;  %v16901_v51 = vpop.eup %13892  ;;  %v13324_v2 = vunpack.i.h.bf16 %v16753_v13 }
 0x3ce   : > { %21984 = vst [vmem:[#allocation150_spill] sm:$0xff] %v16901_v51 }
 0x3cf   : > { %11514 = vmatmul.mubr.msk.f32.vlgmr.msra.gmra.mrb[72].mxu1 %vm1167_vm0, %v21972_v54 }
 0x3d0   : > { %11492 = vmatmul.mubr.msk.f32.gmra.mrb[84].mxu0 %vm1167_vm0, %v21973_v15  ;;  %11516 = vmatprep.mubr.msk.f32.mxu1 %vm1167_vm0, %v21974_v35  ;;  %v16908_v35 = vpop.eup %13894 }
 0x3d1   : > { %12508 = vmatpush3.bf16.msra.mxu1 %v12505_v20  ;;  %11494 = vmatprep.mubr.msk.f32.mxu0 %vm1167_vm0, %v21975_v44  ;;  %v21979_v20 = vld [vmem:[#allocation63_spill] sm:$0xff]  ;;  %21985 = vst [vmem:[#allocation18_spill] sm:$0xff] %v16908_v35 }
 0x3d2   : > { %12492 = vmatpush3.bf16.xpose.msk.msra.mxu0 %vm15192_vm1, %v12487_v22  ;;  %12510 = vmatprep.subr.bf16.mxu1 %v12509_v53  ;;  %v4359_v22 = vmul.f32 1.442695, %v4228_v6  ;;  %v12569_v6 = vpack.c.bf16 %v13339_v3, %v13338_v42 }
 0x3d3   : > { %12495 = vmatprep.subr.msk.bf16.mxu0 %vm15192_vm1, %v12493_v59  ;;  %11517 = vmatmul.mubr.msk.f32.gmra.mrb[74].mxu1 %vm1167_vm0, %v21976_v47 }
 0x3d4   : > { %11495 = vmatmul.mubr.msk.f32.gmra.mrb[86].mxu0 %vm1167_vm0, %v21977_v5  ;;  %11519 = vmatprep.mubr.msk.f32.mxu1 %vm1167_vm0, %v21978_v49  ;;  %13896 = vpow2.f32 %v4359_v22  ;;  %v13349_v49 = vunpack.i.h.bf16 %v16809_v9 }
 0x3d5   : > { %12512 = vmatpush3.bf16.msra.mxu1 %v12509_v53  ;;  %11541 = vmatprep.mubr.msk.f32.mxu0 %vm1167_vm0, %v21979_v20  ;;  %13898 = vpow2.f32 %v4361_v60  ;;  %v13323_v53 = vunpack.i.l.bf16 %v16753_v13  ;;  %v13334_v60 = vunpack.i.h.bf16 %v16783_v28 }
 0x3d6   : > { %12514 = vmatprep.subr.bf16.mxu1 %v12513_v23  ;;  %13900 = vpow2.f32 %v4363_v11 }
 0x3d7   : > { %11520 = vmatmul.mubr.msk.f32.gmra.mrb[76].mxu1 %vm1167_vm0, %v21980_v45  ;;  %13902 = vpow2.f32 %v4365_v58  ;;  %v12529_v4 = vpack.c.bf16 %v13324_v2, %v13323_v53  ;;  %v12533_v45 = vpack.c.bf16 %v13329_v48, %v13328_v19 }
 0x3d8   : > { %11522 = vmatprep.mubr.msk.f32.mxu1 %vm1167_vm0, %v21981_v37  ;;  %13904 = vpow2.f32 %v4367_v33  ;;  %v21991_v37 = vld [vmem:[#allocation72_spill] sm:$0xff]  ;;  %v21997_v33 = vld [vmem:[#allocation102_spill] sm:$0xff] }
 0x3d9   : > { %12516 = vmatpush3.bf16.msra.mxu1 %v12513_v23  ;;  %v13348_v23 = vunpack.i.l.bf16 %v16809_v9  ;;  %v13333_v9 = vunpack.i.l.bf16 %v16783_v28 }
 0x3da   : > { %12498 = vmatpush3.bf16.xpose.msk.msra.mxu0 %vm15192_vm1, %v12493_v59  ;;  %12518 = vmatprep.subr.bf16.mxu1 %v12517_v56  ;;  %v12525_v59 = vpack.c.bf16 %v13319_v38, %v13318_v57  ;;  %v21994_v38 = vld [vmem:[#allocation87_spill] sm:$0xff] }
 0x3db   : > { %12501 = vmatprep.subr.msk.bf16.mxu0 %vm15192_vm1, %v12499_v14  ;;  %11523 = vmatmul.mubr.msk.f32.gmra.mrb[78].mxu1 %vm1167_vm0, %v21983_v40  ;;  %v16973_v58 = vpack.c.bf16 %v13334_v60, %v13333_v9 }
 0x3dc   : > { %11569 = vmatprep.mubr.msk.f32.mxu1 %vm3840_vm3, %v16886_v62  ;;  %v11179_v43 = vpop.f32.mrb[24].mxu1 }
 0x3dd   : > { %12520 = vmatpush3.bf16.msra.mxu1 %v12517_v56  ;;  %v16899_v54 = vadd.f32 %v11179_v43, %v16291_v30  ;;  %v1668_v16 = vpop.f32.mrb[25].mxu1  ;;  %v12573_v56 = vpack.c.bf16 %v13349_v49, %v13348_v23  ;;  %v21996_v43 = vld [vmem:[#allocation96_spill] sm:$0xff] }
 0x3de   : > { %12522 = vmatprep.subr.bf16.mxu1 %v12521_v29  ;;  %v16904_v63 = vadd.f32 %v16291_v30, %v1668_v16  ;;  %v16921_v13 = vpop.eup %13896 }
 0x3df   : > { %v3892_v15 = vsel %vm3840_vm3, %v16899_v54, -inf  ;;  %21986 = vst [vmem:[#allocation61_spill] sm:$0xff] %v16921_v13  ;;  %v16928_v61 = vpop.eup %13898 }
 0x3e0   : > { %11570 = vmatmul.mubr.msk.f32.vlgmr.msra.gmra.mrb[80].mxu1 %vm3840_vm3, %v16901_v51  ;;  %3893 = vmax.xlane.f32.xlu1 %v3892_v15  ;;  %v11182_v7 = vpop.f32.mrb[26].mxu1  ;;  %v3889_v10 = vsel %vm3840_vm3, %v16904_v63, -inf  ;;  %21987 = vst [vmem:[#allocation153_spill] sm:$0xff] %v16928_v61  ;;  %v16940_v31 = vpop.eup %13900 }
 0x3e1   : > { %11572 = vmatprep.mubr.msk.f32.mxu1 %vm3840_vm3, %v16908_v35  ;;  %12524 = vmatpush3.bf16.msra.mxu1 %v12521_v29  ;;  %v1678_v44 = vpop.f32.mrb[27].mxu1  ;;  %v16924_v26 = vadd.f32 %v11182_v7, %v16291_v30  ;;  %21988 = vst [vmem:[#allocation120_spill] sm:$0xff] %v16940_v31  ;;  %v16944_v55 = vpop.eup %13902  ;;  %v21995_v29 = vld [vmem:[#allocation88_spill] sm:$0xff] }
 0x3e2   : > { %12504 = vmatpush3.bf16.xpose.msk.msra.mxu0 %vm15192_vm1, %v12499_v14  ;;  %12526 = vmatprep.subr.bf16.mxu1 %v12525_v59  ;;  %v16919_v24 = vadd.f32 %v16291_v30, %v1678_v44  ;;  %21989 = vst [vmem:[#allocation118_spill] sm:$0xff] %v16944_v55  ;;  %v16962_v14 = vpop.eup %13904 }
 0x3e3   : > { %12570 = vmatprep.subr.bf16.mxu0 %v12569_v6  ;;  %v3898_v22 = vsel %vm3840_vm3, %v16924_v26, -inf  ;;  %21992 = vst [vmem:[#allocation151_spill] sm:$0xff] %v16962_v14 }
 0x3e4   : > { %11573 = vmatmul.mubr.msk.f32.gmra.mrb[82].mxu1 %vm3840_vm3, %v16921_v13  ;;  %3890 = vmax.xlane.f32.xlu1 %v3889_v10  ;;  %v11185_v47 = vpop.f32.mrb[28].mxu1  ;;  %v3895_v0 = vsel %vm3840_vm3, %v16919_v24, -inf }
 0x3e5   : > { %11575 = vmatprep.mubr.msk.f32.mxu1 %vm3840_vm3, %v16928_v61  ;;  %12528 = vmatpush3.bf16.msra.mxu1 %v12525_v59  ;;  %v1688_v5 = vpop.f32.mrb[29].mxu1  ;;  %v16949_v32 = vadd.f32 %v11185_v47, %v16291_v30 }
 0x3e6   : > { %12530 = vmatprep.subr.bf16.mxu1 %v12529_v4  ;;  %3896 = vmax.xlane.f32.xlu0 %v3895_v0  ;;  %v16967_v28 = vadd.f32 %v16291_v30, %v1688_v5 }
 0x3e7   : > { %v3904_v11 = vsel %vm3840_vm3, %v16949_v32, -inf }
 0x3e8   : > { %11576 = vmatmul.mubr.msk.f32.gmra.mrb[84].mxu1 %vm3840_vm3, %v16940_v31  ;;  %3899 = vmax.xlane.f32.xlu1 %v3898_v22  ;;  %v11188_v20 = vpop.f32.mrb[30].mxu1  ;;  %v3901_v3 = vsel %vm3840_vm3, %v16967_v28, -inf }
 0x3e9   : > { %11542 = vmatmul.mubr.msk.f32.vlgmr.msra.gmra.mrb[88].mxu0 %vm1167_vm0, %v21990_v52  ;;  %11578 = vmatprep.mubr.msk.f32.mxu1 %vm3840_vm3, %v16944_v55  ;;  %v16958_v25 = vadd.f32 %v11188_v20, %v16291_v30  ;;  %v1698_v1 = vpop.f32.mrb[31].mxu1 }
 0x3ea   : > { %12532 = vmatpush3.bf16.msra.mxu1 %v12529_v4  ;;  %11544 = vmatprep.mubr.msk.f32.mxu0 %vm1167_vm0, %v21991_v37  ;;  %v16981_v57 = vadd.f32 %v16291_v30, %v1698_v1 }
 0x3eb   : > { %12534 = vmatprep.subr.bf16.mxu1 %v12533_v45  ;;  %12572 = vmatpush3.bf16.msra.mxu0 %v12569_v6  ;;  %v3910_v40 = vsel %vm3840_vm3, %v16958_v25, -inf }
 0x3ec   : > { %12574 = vmatprep.subr.bf16.mxu0 %v12573_v56  ;;  %11579 = vmatmul.mubr.msk.f32.gmra.mrb[86].mxu1 %vm3840_vm3, %v16962_v14  ;;  %v3907_v42 = vsel %vm3840_vm3, %v16981_v57, -inf }
 0x3ed   : > { %11545 = vmatmul.mubr.msk.f32.gmra.mrb[90].mxu0 %vm1167_vm0, %v21993_v34  ;;  %3905 = vmax.xlane.f32.xlu1 %v3904_v11 }
 0x3ee   : > { %12536 = vmatpush3.bf16.msra.mxu1 %v12533_v45  ;;  %11547 = vmatprep.mubr.msk.f32.mxu0 %vm1167_vm0, %v21994_v38 }
 0x3ef   : > { %12538 = vmatprep.subr.bf16.mxu1 %v16973_v58  ;;  %12576 = vmatpush3.bf16.msra.mxu0 %v12573_v56 }
 0x3f0   : > { %3911 = vmax.xlane.f32.xlu0 %v3910_v40 }
 0x3f1   : > { %11548 = vmatmul.mubr.msk.f32.gmra.mrb[92].mxu0 %vm1167_vm0, %v21995_v29  ;;  %3902 = vmax.xlane.f32.xlu1 %v3901_v3 }
 0x3f2   : > { %11550 = vmatprep.mubr.msk.f32.mxu0 %vm1167_vm0, %v21996_v43 }
 0x3f4   : > { %3908 = vmax.xlane.f32.xlu0 %v3907_v42 }
 0x3f5   : > { %11551 = vmatmul.mubr.msk.f32.gmra.mrb[94].mxu0 %vm1167_vm0, %v21997_v33  ;;  %v11207_v16 = vpop.f32.mrb[40].mxu0 }
 0x3f6   : > { %v1821_v15 = vpop.f32.mrb[41].mxu0 }
 0x3f7   : > { %v17015_v49 = vadd.f32 %v16613_v41, %v1821_v15 }
 0x3f9   : > { %v16993_v2 = vpop.f32.mrb[42].mxu0  ;;  %v3913_v45 = vsel %vm3840_vm3, %v17015_v49, -inf }
 0x3fa   : > { %v16995_v53 = vpop.f32.mrb[43].mxu0 }
 0x3fd   : > { %v11235_v59 = vpop.f32.mrb[32].mxu1 }
 0x3fe   : > { %v16998_v7 = vadd.f32 %v11235_v59, %v16291_v30  ;;  %v17000_v6 = vpop.f32.mrb[44].mxu0  ;;  %v1974_v44 = vpop.f32.mrb[33].mxu1 }
 0x3ff   : > { %v17002_v10 = vpop.f32.mrb[45].mxu0  ;;  %v17005_v4 = vadd.f32 %v16291_v30, %v1974_v44 }
 0x400   : > { %v3940_v47 = vsel %vm3840_vm3, %v16998_v7, -inf }
 0x401   : > { %3941 = vmax.xlane.f32.xlu0 %v3940_v47  ;;  %v3937_v22 = vsel %vm3840_vm3, %v17005_v4, -inf }
 0x402   : > { %v11238_v0 = vpop.f32.mrb[34].mxu1 }
 0x403   : > { %v17010_v48 = vadd.f32 %v11238_v0, %v16291_v30  ;;  %v17012_v19 = vpop.f32.mrb[46].mxu0  ;;  %v1984_v5 = vpop.f32.mrb[35].mxu1 }
 0x404   : > { %v17017_v23 = vpop.f32.mrb[47].mxu0  ;;  %v17024_v52 = vadd.f32 %v16291_v30, %v1984_v5 }
 0x405   : > { %3938 = vmax.xlane.f32.xlu0 %v3937_v22  ;;  %v3946_v20 = vsel %vm3840_vm3, %v17010_v48, -inf }
 0x406   : > { %3947 = vmax.xlane.f32.xlu1 %v3946_v20  ;;  %v11241_v60 = vpop.f32.mrb[36].mxu1  ;;  %v3943_v34 = vsel %vm3840_vm3, %v17024_v52, -inf }
 0x407   : > { %v1994_v9 = vpop.f32.mrb[37].mxu1  ;;  %v17032_v11 = vadd.f32 %v11241_v60, %v16291_v30 }
 0x408   : > { %v17039_v38 = vadd.f32 %v16291_v30, %v1994_v9 }
 0x409   : > { %3914 = vmax.xlane.f32.xlu0 %v3913_v45  ;;  %v3952_v3 = vsel %vm3840_vm3, %v17032_v11, -inf }
 0x40a   : > { %v11244_v1 = vpop.f32.mrb[38].mxu1  ;;  %v3949_v43 = vsel %vm3840_vm3, %v17039_v38, -inf }
 0x40b   : > { %v17029_v37 = vadd.f32 %v11244_v1, %v16291_v30  ;;  %v2004_v56 = vpop.f32.mrb[39].mxu1 }
 0x40c   : > { %v17044_v29 = vadd.f32 %v16291_v30, %v2004_v56 }
 0x40d   : > { %3944 = vmax.xlane.f32.xlu0 %v3943_v34  ;;  %v3958_v40 = vsel %vm3840_vm3, %v17029_v37, -inf  ;;  %v17072_v34 = vadd.f32 %v11207_v16, %v16613_v41  ;;  %v17085_v16 = vadd.f32 %v16613_v41, %v16995_v53 }
 0x40e   : > { %3959 = vmax.xlane.f32.xlu1 %v3958_v40  ;;  %v3955_v15 = vsel %vm3840_vm3, %v17044_v29, -inf }
 0x40f   : > { %21999 = vst [vmem:[#allocation57_spill] sm:$0xff] %v17072_v34  ;;  %22000 = vst [vmem:[#allocation26_spill] sm:$0xff] %v17085_v16  ;;  %v3919_v53 = vsel %vm3840_vm3, %v17085_v16, -inf }
 0x411   : > { %3953 = vmax.xlane.f32.xlu0 %v3952_v3 }
 0x415   : > { %3950 = vmax.xlane.f32.xlu0 %v3949_v43 }
 0x417   : > { %v17048_v42 = vpop.f32.mrb[48].mxu0 }
 0x418   : > { %v17050_v33 = vpop.f32.mrb[49].mxu0 }
 0x419   : > { %3956 = vmax.xlane.f32.xlu0 %v3955_v15 }
 0x41b   : > { %v17054_v59 = vpop.f32.mrb[50].mxu0 }
 0x41c   : > { %v17056_v44 = vpop.f32.mrb[51].mxu0 }
 0x41f   : > { %v11291_v47 = vpop.f32.mrb[40].mxu1  ;;  %v17058_v0 = vpop.f32.mrb[52].mxu0 }
 0x420   : > { %v17061_v5 = vadd.f32 %v11291_v47, %v16291_v30  ;;  %v2280_v22 = vpop.f32.mrb[41].mxu1  ;;  %v17063_v20 = vpop.f32.mrb[53].mxu0 }
 0x421   : > { %v17066_v60 = vadd.f32 %v16291_v30, %v2280_v22  ;;  %v3870_v9 = vpop.xlane.xlu0 %3869 }
 0x422   : > { %21998 = vst [vmem:[#allocation126_spill] sm:$0xff] %v17061_v5  ;;  %v3988_v45 = vsel %vm3840_vm3, %v17061_v5, -inf  ;;  %v4234_v1 = vsub.f32 %v16636_v8, %v3870_v9  ;;  %v3867_v56 = vpop.xlane.xlu1 %3866 }
 0x423   : > { %3989 = vmax.xlane.f32.xlu1 %v3988_v45  ;;  %v17074_v40 = vpop.f32.mrb[42].mxu1  ;;  %v17076_v3 = vpop.f32.mrb[54].mxu0  ;;  %v3985_v43 = vsel %vm3840_vm3, %v17066_v60, -inf  ;;  %v4233_v15 = vsub.f32 %v16645_v46, %v3867_v56  ;;  %v3916_v45 = vsel %vm3840_vm3, %v17072_v34, -inf }
 0x424   : > { %v4371_v47 = vmul.f32 1.442695, %v4234_v1  ;;  %3986 = vmax.xlane.f32.xlu0 %v3985_v43  ;;  %v2290_v22 = vpop.f32.mrb[43].mxu1  ;;  %v17081_v12 = vpop.f32.mrb[55].mxu0 }
 0x425   : > { %v4369_v8 = vmul.f32 1.442695, %v4233_v15  ;;  %v17095_v43 = vadd.f32 %v16291_v30, %v2290_v22 }
 0x427   : > { %13906 = vpow2.f32 %v4369_v8  ;;  %v17087_v9 = vpop.f32.mrb[44].mxu1  ;;  %v3876_v55 = vpop.xlane.xlu1 %3875  ;;  %22001 = vst [vmem:[#allocation131_spill] sm:$0xff] %v17095_v43  ;;  %v3991_v22 = vsel %vm3840_vm3, %v17095_v43, -inf }
 0x428   : > { %13908 = vpow2.f32 %v4371_v47  ;;  %3917 = vmax.xlane.f32.xlu0 %v3916_v45  ;;  %v17091_v46 = vpop.f32.mrb[45].mxu1  ;;  %v4236_v1 = vsub.f32 %v16658_v17, %v3876_v55  ;;  %v13344_v17 = vunpack.i.h.bf16 %v16803_v27  ;;  %v13343_v55 = vunpack.i.l.bf16 %v16803_v27 }
 0x429   : > { %v3882_v56 = vpop.xlane.xlu0 %3881 }
 0x42a   : > { %v4375_v45 = vmul.f32 1.442695, %v4236_v1  ;;  %v4238_v35 = vsub.f32 %v16678_v21, %v3882_v56  ;;  %v12541_v27 = vpack.c.bf16 %v13344_v17, %v13343_v55 }
 0x42b   : > { %v17097_v15 = vpop.f32.mrb[46].mxu1  ;;  %v3873_v8 = vpop.xlane.xlu1 %3872 }
 0x42c   : > { %3920 = vmax.xlane.f32.xlu0 %v3919_v53  ;;  %v17101_v61 = vpop.f32.mrb[47].mxu1  ;;  %v4235_v47 = vsub.f32 %v16673_v18, %v3873_v8  ;;  %v4379_v18 = vmul.f32 1.442695, %v4238_v35 }
 0x42e   : > { %v4373_v14 = vmul.f32 1.442695, %v4235_v47 }
 0x42f   : > { %v3879_v31 = vpop.xlane.xlu1 %3878 }
 0x430   : > { %13910 = vpow2.f32 %v4373_v14  ;;  %3992 = vmax.xlane.f32.xlu0 %v3991_v22  ;;  %v4237_v53 = vsub.f32 %v16693_v39, %v3879_v31  ;;  %v22004_v14 = vld [vmem:[#allocation50_spill] sm:$0xff] }
 0x431   : > { %v17110_v13 = vpop.eup %13906  ;;  %13912 = vpow2.f32 %v4375_v45 }
 0x432   : > { %22002 = vst [vmem:[#allocation34_spill] sm:$0xff] %v17110_v13  ;;  %v17112_v1 = vpop.eup %13908  ;;  %v4377_v21 = vmul.f32 1.442695, %v4237_v53  ;;  %11597 = vmatprep.mubr.msk.f32.mxu1 %vm3840_vm3, %v17110_v13  ;;  %v17183_v13 = vadd.f32 %v16993_v2, %v16613_v41 }
 0x433   : > { %22003 = vst [vmem:[#allocation139_spill] sm:$0xff] %v17112_v1  ;;  %v3888_v56 = vpop.xlane.xlu1 %3887  ;;  %11598 = vmatmul.mubr.msk.f32.vlgmr.msra.gmra.mrb[88].mxu1 %vm3840_vm3, %v17112_v1 }
 0x434   : > { %13914 = vpow2.f32 %v4377_v21  ;;  %13351 = vrot.lane.b32.xlu1 %v22004_v14, %s21623_s27  ;;  %12540 = vmatpush3.bf16.msra.mxu1 %v16973_v58  ;;  %v4240_v39 = vsub.f32 %v16706_v50, %v3888_v56  ;;  %22020 = vst [vmem:[#allocation51_spill] sm:$0xff] %v17183_v13 }
 0x435   : > { %13916 = vpow2.f32 %v4379_v18  ;;  %12542 = vmatprep.subr.bf16.mxu1 %v12541_v27 }
 0x436   : > { %v4383_v47 = vmul.f32 1.442695, %v4240_v39 }
 0x437   : > { %v3885_v35 = vpop.xlane.xlu1 %3884 }
 0x438   : > { %v17122_v31 = vpop.f32.mrb[56].mxu0  ;;  %v4239_v8 = vsub.f32 %v16719_v36, %v3885_v35  ;;  %12544 = vmatpush3.bf16.msra.mxu1 %v12541_v27 }
 0x439   : > { %22005 = vst [vmem:[#allocation53_spill] sm:$0xff] %v17122_v31  ;;  %v17125_v45 = vpop.f32.mrb[57].mxu0 }
 0x43a   : > { %v17127_v17 = vpop.eup %13910  ;;  %v4381_v55 = vmul.f32 1.442695, %v4239_v8 }
 0x43b   : > { %22006 = vst [vmem:[#allocation154_spill] sm:$0xff] %v17127_v17  ;;  %v17129_v22 = vpop.eup %13912  ;;  %11600 = vmatprep.mubr.msk.f32.mxu1 %vm3840_vm3, %v17127_v17 }
 0x43c   : > { %22007 = vst [vmem:[#allocation138_spill] sm:$0xff] %v17129_v22  ;;  %13918 = vpow2.f32 %v4381_v55  ;;  %v17133_v50 = vpop.f32.mrb[58].mxu0  ;;  %11601 = vmatmul.mubr.msk.f32.gmra.mrb[90].mxu1 %vm3840_vm3, %v17129_v22  ;;  %v22017_v55 = vld [vmem:[#allocation69_spill] sm:$0xff] }
 0x43d   : > { %22008 = vst [vmem:[#allocation56_spill] sm:$0xff] %v17133_v50  ;;  %13920 = vpow2.f32 %v4383_v47  ;;  %v17137_v36 = vpop.f32.mrb[59].mxu0 }
 0x43e   : > { %22009 = vst [vmem:[#allocation100_spill] sm:$0xff] %v17137_v36  ;;  %v17139_v58 = vpop.eup %13914 }
 0x43f   : > { %22010 = vst [vmem:[#allocation79_spill] sm:$0xff] %v17139_v58  ;;  %v17141_v53 = vpop.eup %13916  ;;  %v17143_v18 = vpop.f32.mrb[48].mxu1  ;;  %11603 = vmatprep.mubr.msk.f32.mxu1 %vm3840_vm3, %v17139_v58 }
 0x440   : > { %22011 = vst [vmem:[#allocation80_spill] sm:$0xff] %v17141_v53  ;;  %v17147_v21 = vpop.f32.mrb[60].mxu0  ;;  %v17149_v56 = vpop.f32.mrb[49].mxu1  ;;  %11604 = vmatmul.mubr.msk.f32.gmra.mrb[92].mxu1 %vm3840_vm3, %v17141_v53 }
 0x441   : > { %22012 = vst [vmem:[#allocation110_spill] sm:$0xff] %v17147_v21  ;;  %v17153_v27 = vpop.f32.mrb[61].mxu0 }
 0x442   : > { %22013 = vst [vmem:[#allocation108_spill] sm:$0xff] %v17153_v27 }
 0x443   : > { %v17155_v14 = vpop.f32.mrb[50].mxu1 }
 0x444   : > { %v17157_v39 = vpop.f32.mrb[62].mxu0  ;;  %v17159_v35 = vpop.f32.mrb[51].mxu1 }
 0x445   : > { %22014 = vst [vmem:[#allocation152_spill] sm:$0xff] %v17157_v39  ;;  %v17161_v8 = vpop.f32.mrb[63].mxu0 }
 0x446   : > { %22015 = vst [vmem:[#allocation146_spill] sm:$0xff] %v17161_v8  ;;  %v17163_v47 = vpop.eup %13918  ;;  %13356 = vrot.lane.b32.xlu0 %v22017_v55, %s21623_s27  ;;  %v17187_v55 = vadd.f32 %v16613_v41, %v17002_v10  ;;  %v17203_v10 = vadd.f32 %v17074_v40, %v16291_v30 }
 0x447   : > { %22016 = vst [vmem:[#allocation35_spill] sm:$0xff] %v17163_v47  ;;  %v17167_v58 = vpop.eup %13920  ;;  %v17169_v22 = vpop.f32.mrb[52].mxu1  ;;  %11606 = vmatprep.mubr.msk.f32.mxu1 %vm3840_vm3, %v17163_v47  ;;  %v3922_v47 = vsel %vm3840_vm3, %v17183_v13, -inf }
 0x448   : > { %22018 = vst [vmem:[#allocation121_spill] sm:$0xff] %v17167_v58  ;;  %v17173_v53 = vpop.f32.mrb[53].mxu1  ;;  %11607 = vmatmul.mubr.msk.f32.gmra.mrb[94].mxu1 %vm3840_vm3, %v17167_v58  ;;  %22021 = vst [vmem:[#allocation23_spill] sm:$0xff] %v17187_v55  ;;  %v3925_v58 = vsel %vm3840_vm3, %v17187_v55, -inf }
 0x449   : > { %22026 = vst [vmem:[#allocation143_spill] sm:$0xff] %v17203_v10 }
 0x44b   : > { %v17177_v17 = vpop.f32.mrb[54].mxu1 }
 0x44c   : > { %22019 = vst [vmem:[#allocation44_spill] sm:$0xff] %v17177_v17  ;;  %v17179_v1 = vpop.f32.mrb[55].mxu1 }
 0x458   : > { %3923 = vmax.xlane.f32.xlu1 %v3922_v47 }
 0x459   : > { %v17191_v51 = vpop.f32.mrb[64].mxu0 }
 0x45a   : > { %22022 = vst [vmem:[#allocation127_spill] sm:$0xff] %v17191_v51  ;;  %v17193_v62 = vpop.f32.mrb[65].mxu0 }
 0x45b   : > { %22023 = vst [vmem:[#allocation106_spill] sm:$0xff] %v17193_v62  ;;  %v17215_v62 = vadd.f32 %v16291_v30, %v17091_v46 }
 0x45c   : > { %3926 = vmax.xlane.f32.xlu1 %v3925_v58 }
 0x45d   : > { %v17197_v39 = vpop.f32.mrb[66].mxu0  ;;  %22031 = vst [vmem:[#allocation122_spill] sm:$0xff] %v17215_v62 }
 0x45e   : > { %22024 = vst [vmem:[#allocation76_spill] sm:$0xff] %v17197_v39  ;;  %v17199_v2 = vpop.f32.mrb[67].mxu0  ;;  %v3994_v39 = vsel %vm3840_vm3, %v17203_v10, -inf }
 0x45f   : > { %22025 = vst [vmem:[#allocation43_spill] sm:$0xff] %v17199_v2 }
 0x460   : > { %v17205_v8 = vpop.f32.mrb[56].mxu1 }
 0x461   : > { %22027 = vst [vmem:[#allocation31_spill] sm:$0xff] %v17205_v8  ;;  %v17207_v21 = vpop.f32.mrb[68].mxu0  ;;  %v17209_v47 = vpop.f32.mrb[57].mxu1  ;;  %v22040_v8 = vld [vmem:[#allocation74_spill] sm:$0xff] }
 0x462   : > { %22028 = vst [vmem:[#allocation15_spill] sm:$0xff] %v17207_v21  ;;  %22029 = vst [vmem:[#allocation142_spill] sm:$0xff] %v17209_v47  ;;  %v17211_v51 = vpop.f32.mrb[69].mxu0 }
 0x463   : > { %22030 = vst [vmem:[#allocation37_spill] sm:$0xff] %v17211_v51  ;;  %v3997_v51 = vsel %vm3840_vm3, %v17215_v62, -inf }
 0x464   : > { %v17217_v58 = vpop.f32.mrb[58].mxu1 }
 0x465   : > { %22032 = vst [vmem:[#allocation30_spill] sm:$0xff] %v17217_v58  ;;  %v17221_v2 = vpop.f32.mrb[70].mxu0  ;;  %v17223_v40 = vpop.f32.mrb[59].mxu1  ;;  %3995 = vmax.xlane.f32.xlu0 %v3994_v39 }
 0x466   : > { %22033 = vst [vmem:[#allocation55_spill] sm:$0xff] %v17221_v2  ;;  %22034 = vst [vmem:[#allocation42_spill] sm:$0xff] %v17223_v40  ;;  %v17225_v27 = vpop.f32.mrb[71].mxu0 }
 0x467   : > { %22035 = vst [vmem:[#allocation81_spill] sm:$0xff] %v17225_v27 }
 0x468   : > { %v17227_v21 = vpop.f32.mrb[60].mxu1 }
 0x469   : > { %22036 = vst [vmem:[#allocation19_spill] sm:$0xff] %v17227_v21  ;;  %v17231_v50 = vpop.f32.mrb[61].mxu1  ;;  %3998 = vmax.xlane.f32.xlu0 %v3997_v51 }
 0x46a   : > { %22037 = vst [vmem:[#allocation64_spill] sm:$0xff] %v17231_v50 }
 0x46c   : > { %v17233_v46 = vpop.f32.mrb[62].mxu1 }
 0x46d   : > { %22038 = vst [vmem:[#allocation147_spill] sm:$0xff] %v17233_v46  ;;  %v17235_v58 = vpop.f32.mrb[63].mxu1  ;;  %13361 = vrot.lane.b32.xlu1 %v22040_v8, %s21623_s27  ;;  %v17239_v2 = vpop.xlane.xlu1 %3893  ;;  %v22045_v46 = vld [vmem:[#allocation90_spill] sm:$0xff] }
 0x46e   : > { %22039 = vst [vmem:[#allocation52_spill] sm:$0xff] %v17235_v58 }
 0x471   : > { %v3891_v39 = vpop.xlane.xlu1 %3890 }
 0x472   : > { %v4241_v27 = vsub.f32 %v16904_v63, %v3891_v39 }
 0x473   : > { %v17254_v8 = vpop.xlane.xlu0 %3896 }
 0x474   : > { %v4385_v40 = vmul.f32 1.442695, %v4241_v27 }
 0x476   : > { %13922 = vpow2.f32 %v4385_v40 }
 0x47a   : > { %v17242_v21 = vpop.f32.mrb[72].mxu0 }
 0x47b   : > { %22041 = vst [vmem:[#allocation59_spill] sm:$0xff] %v17242_v21  ;;  %v17244_v36 = vpop.f32.mrb[73].mxu0 }
 0x47c   : > { %22042 = vst [vmem:[#allocation95_spill] sm:$0xff] %v17244_v36 }
 0x47d   : > { %v17266_v39 = vpop.xlane.xlu0 %3911 }
 0x47e   : > { %v17246_v50 = vpop.f32.mrb[74].mxu0 }
 0x47f   : > { %22043 = vst [vmem:[#allocation71_spill] sm:$0xff] %v17246_v50  ;;  %v17248_v51 = vpop.f32.mrb[75].mxu0  ;;  %13366 = vrot.lane.b32.xlu0 %v22045_v46, %s21623_s27 }
 0x480   : > { %22044 = vst [vmem:[#allocation13_spill] sm:$0xff] %v17248_v51  ;;  %v17252_v58 = vpop.eup %13922 }
 0x481   : > { %22046 = vst [vmem:[#allocation92_spill] sm:$0xff] %v17252_v58  ;;  %v17256_v31 = vpop.f32.mrb[64].mxu1  ;;  %11625 = vmatprep.mubr.msk.f32.mxu1 %vm3840_vm3, %v17252_v58 }
 0x482   : > { %22047 = vst [vmem:[#allocation16_spill] sm:$0xff] %v17256_v31  ;;  %v17260_v63 = vpop.f32.mrb[76].mxu0  ;;  %v17262_v27 = vpop.f32.mrb[65].mxu1 }
 0x483   : > { %22048 = vst [vmem:[#allocation84_spill] sm:$0xff] %v17260_v63  ;;  %22049 = vst [vmem:[#allocation28_spill] sm:$0xff] %v17262_v27  ;;  %v17264_v40 = vpop.f32.mrb[77].mxu0  ;;  %v17278_v31 = vpop.xlane.xlu0 %3908  ;;  %v17284_v63 = vadd.f32 %v17000_v6, %v16613_v41 }
 0x484   : > { %22050 = vst [vmem:[#allocation39_spill] sm:$0xff] %v17264_v40 }
 0x485   : > { %v17268_v50 = vpop.f32.mrb[66].mxu1  ;;  %22057 = vst [vmem:[#allocation46_spill] sm:$0xff] %v17284_v63 }
 0x486   : > { %22051 = vst [vmem:[#allocation22_spill] sm:$0xff] %v17268_v50  ;;  %v17270_v46 = vpop.f32.mrb[78].mxu0  ;;  %v17272_v51 = vpop.f32.mrb[67].mxu1 }
 0x487   : > { %22052 = vst [vmem:[#allocation148_spill] sm:$0xff] %v17270_v46  ;;  %22053 = vst [vmem:[#allocation38_spill] sm:$0xff] %v17272_v51  ;;  %v17274_v21 = vpop.f32.mrb[79].mxu0  ;;  %v17294_v46 = vadd.f32 %v16613_v41, %v17017_v23  ;;  %v17307_v23 = vadd.f32 %v17087_v9, %v16291_v30 }
 0x488   : > { %22054 = vst [vmem:[#allocation68_spill] sm:$0xff] %v17274_v21  ;;  %v3928_v21 = vsel %vm3840_vm3, %v17284_v63, -inf }
 0x489   : > { %v17276_v36 = vpop.f32.mrb[68].mxu1  ;;  %22060 = vst [vmem:[#allocation77_spill] sm:$0xff] %v17294_v46  ;;  %v3931_v6 = vsel %vm3840_vm3, %v17294_v46, -inf  ;;  %22061 = vst [vmem:[#allocation62_spill] sm:$0xff] %v17307_v23 }
 0x48a   : > { %22055 = vst [vmem:[#allocation60_spill] sm:$0xff] %v17276_v36  ;;  %v17280_v58 = vpop.f32.mrb[69].mxu1 }
 0x48b   : > { %22056 = vst [vmem:[#allocation32_spill] sm:$0xff] %v17280_v58 }
 0x48d   : > { %v17286_v40 = vpop.f32.mrb[70].mxu1 }
 0x48e   : > { %22058 = vst [vmem:[#allocation45_spill] sm:$0xff] %v17286_v40  ;;  %v17288_v27 = vpop.f32.mrb[71].mxu1  ;;  %v17290_v50 = vpop.xlane.xlu0 %3941 }
 0x48f   : > { %22059 = vst [vmem:[#allocation21_spill] sm:$0xff] %v17288_v27  ;;  %v17303_v27 = vpop.xlane.xlu1 %3899 }
 0x491   : > { %3929 = vmax.xlane.f32.xlu1 %v3928_v21 }
 0x492   : > { %v3939_v36 = vpop.xlane.xlu0 %3938 }
 0x493   : > { %v4257_v58 = vsub.f32 %v17005_v4, %v3939_v36  ;;  %v17317_v4 = vadd.f32 %v16291_v30, %v17101_v61  ;;  %v4000_v36 = vsel %vm3840_vm3, %v17307_v23, -inf }
 0x495   : > { %v4417_v51 = vmul.f32 1.442695, %v4257_v58  ;;  %3932 = vmax.xlane.f32.xlu1 %v3931_v6  ;;  %22064 = vst [vmem:[#allocation47_spill] sm:$0xff] %v17317_v4  ;;  %v17321_v58 = vpop.xlane.xlu1 %3905 }
 0x496   : > { %v17301_v40 = vpop.xlane.xlu0 %3914 }
 0x497   : > { %13924 = vpow2.f32 %v4417_v51 }
 0x49a   : > { %v17309_v62 = vpop.xlane.xlu0 %3944 }
 0x49b   : > { %v17311_v21 = vpop.f32.mrb[80].mxu0 }
 0x49c   : > { %22062 = vst [vmem:[#allocation70_spill] sm:$0xff] %v17311_v21  ;;  %v17313_v10 = vpop.f32.mrb[81].mxu0  ;;  %v4003_v21 = vsel %vm3840_vm3, %v17317_v4, -inf  ;;  %v22073_v4 = vld [vmem:[#allocation116_spill] sm:$0xff] }
 0x49d   : > { %22063 = vst [vmem:[#allocation73_spill] sm:$0xff] %v17313_v10 }
 0x49e   : > { %4001 = vmax.xlane.f32.xlu0 %v4000_v36  ;;  %v17327_v6 = vpop.xlane.xlu0 %3953 }
 0x49f   : > { %v17323_v51 = vpop.f32.mrb[82].mxu0 }
 0x4a0   : > { %22065 = vst [vmem:[#allocation85_spill] sm:$0xff] %v17323_v51  ;;  %v17325_v9 = vpop.f32.mrb[83].mxu0  ;;  %v17341_v51 = vpop.xlane.xlu1 %3902 }
 0x4a1   : > { %22066 = vst [vmem:[#allocation17_spill] sm:$0xff] %v17325_v9  ;;  %v17329_v43 = vpop.eup %13924 }
 0x4a2   : > { %22067 = vst [vmem:[#allocation86_spill] sm:$0xff] %v17329_v43  ;;  %v17333_v10 = vpop.f32.mrb[72].mxu1  ;;  %4004 = vmax.xlane.f32.xlu0 %v4003_v21  ;;  %11681 = vmatprep.mubr.msk.f32.mxu0 %vm3840_vm3, %v17329_v43  ;;  %v17347_v5 = vpop.xlane.xlu0 %3950 }
 0x4a3   : > { %22068 = vst [vmem:[#allocation29_spill] sm:$0xff] %v17333_v10  ;;  %v17337_v61 = vpop.f32.mrb[84].mxu0  ;;  %v17339_v36 = vpop.f32.mrb[73].mxu1 }
 0x4a4   : > { %22069 = vst [vmem:[#allocation93_spill] sm:$0xff] %v17337_v61  ;;  %22070 = vst [vmem:[#allocation24_spill] sm:$0xff] %v17339_v36  ;;  %v17343_v9 = vpop.f32.mrb[85].mxu0  ;;  %v17355_v43 = vpop.xlane.xlu1 %3947 }
 0x4a5   : > { %22071 = vst [vmem:[#allocation99_spill] sm:$0xff] %v17343_v9 }
 0x4a6   : > { %v17345_v23 = vpop.f32.mrb[74].mxu1  ;;  %13371 = vrot.lane.b32.xlu1 %v22073_v4, %s21623_s27 }
 0x4a7   : > { %22072 = vst [vmem:[#allocation40_spill] sm:$0xff] %v17345_v23  ;;  %v17351_v10 = vpop.f32.mrb[86].mxu0  ;;  %v17353_v21 = vpop.f32.mrb[75].mxu1 }
 0x4a8   : > { %22074 = vst [vmem:[#allocation63_spill] sm:$0xff] %v17351_v10  ;;  %22075 = vst [vmem:[#allocation33_spill] sm:$0xff] %v17353_v21  ;;  %v17357_v61 = vpop.f32.mrb[87].mxu0  ;;  %v17363_v9 = vpop.xlane.xlu1 %3959 }
 0x4a9   : > { %22076 = vst [vmem:[#allocation49_spill] sm:$0xff] %v17357_v61  ;;  %v17365_v23 = vpop.xlane.xlu0 %3956 }
 0x4aa   : > { %v17359_v36 = vpop.f32.mrb[76].mxu1 }
 0x4ab   : > { %22077 = vst [vmem:[#allocation48_spill] sm:$0xff] %v17359_v36  ;;  %v17361_v46 = vpop.f32.mrb[77].mxu1 }
 0x4ac   : > { %22078 = vst [vmem:[#allocation65_spill] sm:$0xff] %v17361_v46 }
 0x4ae   : > { %v17367_v63 = vpop.f32.mrb[78].mxu1 }
 0x4af   : > { %22079 = vst [vmem:[#allocation72_spill] sm:$0xff] %v17367_v63  ;;  %v17369_v55 = vpop.f32.mrb[79].mxu1  ;;  %v22087_v63 = vld [vmem:[#allocation98_spill] sm:$0xff] }
 0x4b0   : > { %22080 = vst [vmem:[#allocation75_spill] sm:$0xff] %v17369_v55  ;;  %v17371_v4 = vpop.xlane.xlu1 %3989 }
 0x4b1   : > { %22081 = vst [vmem:[#allocation87_spill] sm:$0xff] %v17371_v4  ;;  %v17373_v10 = vpop.xlane.xlu0 %3986 }
 0x4b3   : > { %v17375_v21 = vpop.f32.mrb[80].mxu1 }
 0x4b4   : > { %22082 = vst [vmem:[#allocation88_spill] sm:$0xff] %v17375_v21  ;;  %v17377_v13 = vpop.f32.mrb[81].mxu1  ;;  %v13352_v61 = vpop.permute.xlu1 %13351 }
 0x4b5   : > { %22083 = vst [vmem:[#allocation96_spill] sm:$0xff] %v17377_v13  ;;  %v13354_v36 = vunpack.i.h.bf16 %v13352_v61  ;;  %v13353_v16 = vunpack.i.l.bf16 %v13352_v61  ;;  %v17379_v46 = vpop.xlane.xlu0 %3917 }
 0x4b6   : > { %22084 = vst [vmem:[#allocation102_spill] sm:$0xff] %v17379_v46 }
 0x4b7   : > { %v17381_v34 = vpop.f32.mrb[82].mxu1  ;;  %v12545_v47 = vpack.c.bf16 %v13354_v36, %v13353_v16 }
 0x4b8   : > { %22085 = vst [vmem:[#allocation50_spill] sm:$0xff] %v17381_v34  ;;  %v17383_v17 = vpop.f32.mrb[83].mxu1  ;;  %13376 = vrot.lane.b32.xlu0 %v22087_v63, %s21623_s27 }
 0x4b9   : > { %22086 = vst [vmem:[#allocation69_spill] sm:$0xff] %v17383_v17  ;;  %12546 = vmatprep.subr.bf16.mxu1 %v12545_v47  ;;  %v17387_v55 = vpop.xlane.xlu0 %3920 }
 0x4ba   : > { %22088 = vst [vmem:[#allocation74_spill] sm:$0xff] %v17387_v55  ;;  %12548 = vmatpush3.bf16.msra.mxu1 %v12545_v47 }
 0x4bb   : > { %v17389_v21 = vpop.f32.mrb[84].mxu1 }
 0x4bc   : > { %22089 = vst [vmem:[#allocation90_spill] sm:$0xff] %v17389_v21  ;;  %v17391_v13 = vpop.f32.mrb[88].mxu0  ;;  %v17393_v4 = vpop.f32.mrb[85].mxu1 }
 0x4bd   : > { %22090 = vst [vmem:[#allocation116_spill] sm:$0xff] %v17391_v13  ;;  %22091 = vst [vmem:[#allocation98_spill] sm:$0xff] %v17393_v4  ;;  %v17395_v61 = vpop.f32.mrb[89].mxu0  ;;  %v17397_v46 = vpop.xlane.xlu0 %3992  ;;  %v17411_v4 = vadd.f32 %v17012_v19, %v16613_v41 }
 0x4be   : > { %22092 = vst [vmem:[#allocation155_spill] sm:$0xff] %v17395_v61 }
 0x4bf   : > { %v17399_v16 = vpop.f32.mrb[86].mxu1 }
 0x4c0   : > { %22093 = vst [vmem:[#allocation156_spill] sm:$0xff] %v17399_v16  ;;  %v17401_v36 = vpop.f32.mrb[90].mxu0  ;;  %v17403_v17 = vpop.f32.mrb[87].mxu1 }
 0x4c1   : > { %22094 = vst [vmem:[#allocation157_spill] sm:$0xff] %v17401_v36  ;;  %22095 = vst [vmem:[#allocation158_spill] sm:$0xff] %v17403_v17  ;;  %v17405_v63 = vpop.f32.mrb[91].mxu0  ;;  %v13357_v34 = vpop.permute.xlu0 %13356  ;;  %v17419_v17 = vadd.f32 %v16613_v41, %v17050_v33 }
 0x4c2   : > { %22096 = vst [vmem:[#allocation159_spill] sm:$0xff] %v17405_v63  ;;  %v13359_v47 = vunpack.i.h.bf16 %v13357_v34  ;;  %v13358_v55 = vunpack.i.l.bf16 %v13357_v34  ;;  %v3934_v34 = vsel %vm3840_vm3, %v17411_v4, -inf }
 0x4c3   : > { %v3961_v19 = vsel %vm3840_vm3, %v17419_v17, -inf }
 0x4c4   : > { %v17407_v21 = vpop.f32.mrb[92].mxu0  ;;  %v12577_v13 = vpack.c.bf16 %v13359_v47, %v13358_v55  ;;  %v17429_v55 = vadd.f32 %v17097_v15, %v16291_v30  ;;  %v4243_v15 = vsub.f32 %v16919_v24, %v17254_v8  ;;  %v4247_v24 = vsub.f32 %v16981_v57, %v17278_v31 }
 0x4c5   : > { %22097 = vst [vmem:[#allocation160_spill] sm:$0xff] %v17407_v21  ;;  %v17413_v61 = vpop.f32.mrb[93].mxu0  ;;  %v4245_v21 = vsub.f32 %v16967_v28, %v17341_v51  ;;  %v4248_v28 = vsub.f32 %v16958_v25, %v17266_v39  ;;  %v4249_v51 = vsub.f32 %v17015_v49, %v17301_v40  ;;  %v4259_v57 = vsub.f32 %v17024_v52, %v17309_v62 }
 0x4c6   : > { %22098 = vst [vmem:[#allocation161_spill] sm:$0xff] %v17413_v61  ;;  %12578 = vmatprep.subr.bf16.mxu0 %v12577_v13  ;;  %v4006_v33 = vsel %vm3840_vm3, %v17429_v55, -inf  ;;  %v4261_v62 = vsub.f32 %v17039_v38, %v17347_v5  ;;  %v4263_v5 = vsub.f32 %v17044_v29, %v17365_v23  ;;  %v17503_v29 = vadd.f32 %v17048_v42, %v16613_v41 }
 0x4c7   : > { %12580 = vmatpush3.bf16.msra.mxu0 %v12577_v13  ;;  %v17433_v13 = vadd.f32 %v16291_v30, %v17149_v56  ;;  %v4399_v25 = vmul.f32 1.442695, %v4248_v28  ;;  %v4401_v39 = vmul.f32 1.442695, %v4249_v51  ;;  %v4421_v40 = vmul.f32 1.442695, %v4259_v57 }
 0x4c8   : > { %v17415_v16 = vpop.f32.mrb[94].mxu0  ;;  %v4425_v38 = vmul.f32 1.442695, %v4261_v62  ;;  %v4429_v23 = vmul.f32 1.442695, %v4263_v5  ;;  %v17517_v42 = vadd.f32 %v16613_v41, %v17056_v44  ;;  %v17551_v57 = vadd.f32 %v17143_v18, %v16291_v30 }
 0x4c9   : > { %22099 = vst [vmem:[#allocation162_spill] sm:$0xff] %v17415_v16  ;;  %v17421_v36 = vpop.f32.mrb[95].mxu0  ;;  %v4033_v47 = vsel %vm3840_vm3, %v17433_v13, -inf }
 0x4ca   : > { %22100 = vst [vmem:[#allocation163_spill] sm:$0xff] %v17421_v36  ;;  %3935 = vmax.xlane.f32.xlu1 %v3934_v34  ;;  %v22101_v34 = vld [vmem:[#allocation124_spill] sm:$0xff]  ;;  %v4244_v36 = vsub.f32 %v16924_v26, %v17303_v27  ;;  %v4397_v27 = vmul.f32 1.442695, %v4247_v24  ;;  %v3967_v44 = vsel %vm3840_vm3, %v17517_v42, -inf }
 0x4ce   : > { %3962 = vmax.xlane.f32.xlu1 %v3961_v19  ;;  %v4242_v19 = vsub.f32 %v16899_v54, %v17239_v2  ;;  %v4246_v54 = vsub.f32 %v16949_v32, %v17321_v58  ;;  %v4393_v2 = vmul.f32 1.442695, %v4245_v21  ;;  %v4258_v32 = vsub.f32 %v16998_v7, %v17290_v50  ;;  %v22102_v58 = vld [vmem:[#allocation115_spill] sm:$0xff] }
 0x4cf   : > { %v4260_v7 = vsub.f32 %v17010_v48, %v17355_v43  ;;  %v4262_v43 = vsub.f32 %v17032_v11, %v17327_v6  ;;  %v4264_v11 = vsub.f32 %v17029_v37, %v17363_v9 }
 0x4d0   : > { %v4387_v56 = vmul.f32 1.442695, %v4242_v19  ;;  %v4395_v26 = vmul.f32 1.442695, %v4246_v54  ;;  %v4419_v49 = vmul.f32 1.442695, %v4258_v32 }
 0x4d1   : > { %v4423_v48 = vmul.f32 1.442695, %v4260_v7  ;;  %v4427_v6 = vmul.f32 1.442695, %v4262_v43  ;;  %v4431_v9 = vmul.f32 1.442695, %v4264_v11 }
 0x4d2   : > { %13926 = vpow2.f32 %v4387_v56  ;;  %v4036_v7 = vsel %vm3840_vm3, %v17551_v57, -inf }
 0x4d7   : > { %4007 = vmax.xlane.f32.xlu0 %v4006_v33  ;;  %v4389_v33 = vmul.f32 1.442695, %v4243_v15 }
 0x4d9   : > { %13928 = vpow2.f32 %v4389_v33 }
 0x4db   : > { %4034 = vmax.xlane.f32.xlu0 %v4033_v47 }
 0x4dc   : > { %v17469_v21 = vpop.eup %13926 }
 0x4dd   : > { %22103 = vst [vmem:[#allocation124_spill] sm:$0xff] %v17469_v21 }
 0x4df   : > { %13381 = vrot.lane.b32.xlu1 %v22101_v34, %s21623_s27  ;;  %v4391_v34 = vmul.f32 1.442695, %v4244_v36 }
 0x4e1   : > { %13930 = vpow2.f32 %v4391_v34 }
 0x4e2   : > { %13932 = vpow2.f32 %v4393_v2 }
 0x4e3   : > { %13934 = vpow2.f32 %v4395_v26  ;;  %v17473_v50 = vpop.eup %13928 }
 0x4e4   : > { %13936 = vpow2.f32 %v4397_v27  ;;  %22104 = vst [vmem:[#allocation115_spill] sm:$0xff] %v17473_v50 }
 0x4e5   : > { %v17445_v16 = vpop.xlane.xlu1 %3923  ;;  %13938 = vpow2.f32 %v4399_v25 }
 0x4e6   : > { %13940 = vpow2.f32 %v4401_v39 }
 0x4e7   : > { %13942 = vpow2.f32 %v4419_v49  ;;  %v17563_v49 = vadd.f32 %v16291_v30, %v17159_v35 }
 0x4e8   : > { %13944 = vpow2.f32 %v4421_v40 }
 0x4e9   : > { %v17451_v47 = vpop.xlane.xlu1 %3926  ;;  %13946 = vpow2.f32 %v4423_v48  ;;  %v4039_v35 = vsel %vm3840_vm3, %v17563_v49, -inf }
 0x4ea   : > { %13948 = vpow2.f32 %v4425_v38  ;;  %v22125_v38 = vld [vmem:[#allocation129_spill] sm:$0xff] }
 0x4eb   : > { %13950 = vpow2.f32 %v4427_v6 }
 0x4ec   : > { %13952 = vpow2.f32 %v4429_v23 }
 0x4ed   : > { %v13362_v8 = vpop.permute.xlu1 %13361  ;;  %13954 = vpow2.f32 %v4431_v9 }
 0x4ee   : > { %v13364_v19 = vunpack.i.h.bf16 %v13362_v8  ;;  %v13363_v61 = vunpack.i.l.bf16 %v13362_v8  ;;  %v4273_v8 = vsub.f32 %v17066_v60, %v17373_v10  ;;  %v3964_v10 = vsel %vm3840_vm3, %v17503_v29, -inf }
 0x4f0   : > { %v12549_v36 = vpack.c.bf16 %v13364_v19, %v13363_v61  ;;  %v17483_v61 = vpop.eup %13930  ;;  %v4449_v60 = vmul.f32 1.442695, %v4273_v8  ;;  %v22128_v8 = vld [vmem:[#allocation54_spill] sm:$0xff] }
 0x4f1   : > { %13386 = vrot.lane.b32.xlu0 %v22102_v58, %s21623_s27  ;;  %22105 = vst [vmem:[#allocation164_spill] sm:$0xff] %v17483_v61  ;;  %v17487_v15 = vpop.eup %13932 }
 0x4f2   : > { %12550 = vmatprep.subr.bf16.mxu1 %v12549_v36  ;;  %v17467_v31 = vpop.xlane.xlu0 %3995  ;;  %22106 = vst [vmem:[#allocation165_spill] sm:$0xff] %v17487_v15  ;;  %v17495_v54 = vpop.eup %13934  ;;  %13956 = vpow2.f32 %v4449_v60 }
 0x4f3   : > { %12552 = vmatpush3.bf16.msra.mxu1 %v12549_v36  ;;  %22107 = vst [vmem:[#allocation166_spill] sm:$0xff] %v17495_v54  ;;  %v17499_v24 = vpop.eup %13936 }
 0x4f4   : > { %22108 = vst [vmem:[#allocation167_spill] sm:$0xff] %v17499_v24  ;;  %v17511_v37 = vpop.eup %13938 }
 0x4f5   : > { %22109 = vst [vmem:[#allocation168_spill] sm:$0xff] %v17511_v37  ;;  %v17513_v19 = vpop.eup %13940 }
 0x4f6   : > { %11626 = vmatmul.mubr.msk.f32.vlgmr.msra.gmra.mrb[96].mxu1 %vm3840_vm3, %v17469_v21  ;;  %v17479_v52 = vpop.xlane.xlu0 %3998  ;;  %22110 = vst [vmem:[#allocation169_spill] sm:$0xff] %v17513_v19  ;;  %v17523_v26 = vpop.eup %13942 }
 0x4f7   : > { %11628 = vmatprep.mubr.msk.f32.mxu1 %vm3840_vm3, %v17473_v50  ;;  %22111 = vst [vmem:[#allocation170_spill] sm:$0xff] %v17523_v26  ;;  %v17527_v28 = vpop.eup %13944 }
 0x4f8   : > { %22112 = vst [vmem:[#allocation171_spill] sm:$0xff] %v17527_v28  ;;  %v17537_v51 = vpop.eup %13946 }
 0x4f9   : > { %22114 = vst [vmem:[#allocation173_spill] sm:$0xff] %v17537_v51  ;;  %v17541_v32 = vpop.eup %13948 }
 0x4fa   : > { %11629 = vmatmul.mubr.msk.f32.gmra.mrb[98].mxu1 %vm3840_vm3, %v17483_v61  ;;  %v13367_v56 = vpop.permute.xlu0 %13366  ;;  %22116 = vst [vmem:[#allocation175_spill] sm:$0xff] %v17541_v32  ;;  %v17547_v58 = vpop.eup %13950 }
 0x4fb   : > { %v13369_v33 = vunpack.i.h.bf16 %v13367_v56  ;;  %v13368_v34 = vunpack.i.l.bf16 %v13367_v56  ;;  %11631 = vmatprep.mubr.msk.f32.mxu1 %vm3840_vm3, %v17487_v15  ;;  %22117 = vst [vmem:[#allocation176_spill] sm:$0xff] %v17547_v58  ;;  %v17553_v25 = vpop.eup %13952  ;;  %v22143_v15 = vld [vmem:[#allocation23_spill] sm:$0xff] }
 0x4fc   : > { %22118 = vst [vmem:[#allocation177_spill] sm:$0xff] %v17553_v25  ;;  %v17559_v39 = vpop.eup %13954 }
 0x4fd   : > { %v12581_v2 = vpack.c.bf16 %v13369_v33, %v13368_v34  ;;  %22119 = vst [vmem:[#allocation178_spill] sm:$0xff] %v17559_v39  ;;  %v17569_v18 = vpop.eup %13956 }
 0x4fe   : > { %11632 = vmatmul.mubr.msk.f32.gmra.mrb[100].mxu1 %vm3840_vm3, %v17495_v54  ;;  %22121 = vst [vmem:[#allocation180_spill] sm:$0xff] %v17569_v18 }
 0x4ff   : > { %11634 = vmatprep.mubr.msk.f32.mxu1 %vm3840_vm3, %v17499_v24  ;;  %12582 = vmatprep.subr.bf16.mxu0 %v12581_v2 }
 0x500   : > { %12584 = vmatpush3.bf16.msra.mxu0 %v12581_v2 }
 0x502   : > { %11635 = vmatmul.mubr.msk.f32.gmra.mrb[102].mxu1 %vm3840_vm3, %v17511_v37  ;;  %v22142_v37 = vld [vmem:[#allocation51_spill] sm:$0xff] }
 0x503   : > { %3965 = vmax.xlane.f32.xlu1 %v3964_v10  ;;  %11653 = vmatprep.mubr.msk.f32.mxu1 %vm3840_vm3, %v17513_v19  ;;  %v22139_v19 = vld [vmem:[#allocation26_spill] sm:$0xff] }
 0x504   : > { %11682 = vmatmul.mubr.msk.f32.vlgmr.msra.gmra.mrb[96].mxu0 %vm3840_vm3, %v17523_v26 }
 0x505   : > { %11684 = vmatprep.mubr.msk.f32.mxu0 %vm3840_vm3, %v17527_v28 }
 0x506   : > { %v17535_v27 = vpop.f32.mrb[88].mxu1 }
 0x507   : > { %22113 = vst [vmem:[#allocation172_spill] sm:$0xff] %v17535_v27  ;;  %3968 = vmax.xlane.f32.xlu1 %v3967_v44  ;;  %v17539_v36 = vpop.f32.mrb[89].mxu1 }
 0x508   : > { %22115 = vst [vmem:[#allocation174_spill] sm:$0xff] %v17539_v36  ;;  %11685 = vmatmul.mubr.msk.f32.gmra.mrb[98].mxu0 %vm3840_vm3, %v17537_v51  ;;  %v17673_v36 = vadd.f32 %v17076_v3, %v16613_v41  ;;  %v22134_v3 = vld [vmem:[#allocation142_spill] sm:$0xff] }
 0x509   : > { %11687 = vmatprep.mubr.msk.f32.mxu0 %vm3840_vm3, %v17541_v32  ;;  %v4252_v32 = vsub.f32 %v22142_v37, %v17445_v16 }
 0x50c   : > { %11688 = vmatmul.mubr.msk.f32.gmra.mrb[100].mxu0 %vm3840_vm3, %v17547_v58 }
 0x50d   : > { %11690 = vmatprep.mubr.msk.f32.mxu0 %vm3840_vm3, %v17553_v25 }
 0x50f   : > { %v17567_v40 = vpop.f32.mrb[90].mxu1 }
 0x510   : > { %22120 = vst [vmem:[#allocation179_spill] sm:$0xff] %v17567_v40  ;;  %11691 = vmatmul.mubr.msk.f32.gmra.mrb[102].mxu0 %vm3840_vm3, %v17559_v39  ;;  %4037 = vmax.xlane.f32.xlu0 %v4036_v7  ;;  %v17573_v62 = vpop.f32.mrb[91].mxu1 }
 0x511   : > { %22122 = vst [vmem:[#allocation181_spill] sm:$0xff] %v17573_v62  ;;  %11737 = vmatprep.mubr.msk.f32.mxu0 %vm3840_vm3, %v17569_v18 }
 0x513   : > { %v17579_v48 = vpop.f32.mrb[92].mxu1 }
 0x514   : > { %22123 = vst [vmem:[#allocation182_spill] sm:$0xff] %v17579_v48  ;;  %4040 = vmax.xlane.f32.xlu0 %v4039_v35  ;;  %v17581_v43 = vpop.f32.mrb[93].mxu1 }
 0x515   : > { %22124 = vst [vmem:[#allocation183_spill] sm:$0xff] %v17581_v43  ;;  %v17637_v43 = vadd.f32 %v17058_v0, %v16613_v41  ;;  %v17653_v0 = vadd.f32 %v16291_v30, %v17179_v1 }
 0x518   : > { %13391 = vrot.lane.b32.xlu1 %v22125_v38, %s21623_s27  ;;  %v17601_v38 = vadd.f32 %v17054_v59, %v16613_v41  ;;  %v17617_v59 = vadd.f32 %v16291_v30, %v17173_v53 }
 0x51b   : > { %v17585_v5 = vpop.f32.mrb[94].mxu1 }
 0x51c   : > { %22126 = vst [vmem:[#allocation129_spill] sm:$0xff] %v17585_v5  ;;  %v17587_v56 = vpop.f32.mrb[95].mxu1 }
 0x51d   : > { %22127 = vst [vmem:[#allocation184_spill] sm:$0xff] %v17587_v56 }
 0x51e   : > { %v17589_v33 = vpop.xlane.xlu1 %3929 }
 0x522   : > { %v17591_v34 = vpop.xlane.xlu1 %3932 }
 0x526   : > { %v13372_v11 = vpop.permute.xlu1 %13371 }
 0x527   : > { %v13374_v6 = vunpack.i.h.bf16 %v13372_v11  ;;  %v13373_v2 = vunpack.i.l.bf16 %v13372_v11  ;;  %v17605_v11 = vadd.f32 %v16613_v41, %v17063_v20 }
 0x529   : > { %v12553_v23 = vpack.c.bf16 %v13374_v6, %v13373_v2  ;;  %v3970_v6 = vsel %vm3840_vm3, %v17601_v38, -inf  ;;  %v3973_v2 = vsel %vm3840_vm3, %v17605_v11, -inf }
 0x52a   : > { %13396 = vrot.lane.b32.xlu0 %v22128_v8, %s21623_s27  ;;  %v4045_v8 = vsel %vm3840_vm3, %v17617_v59, -inf }
 0x52b   : > { %12554 = vmatprep.subr.bf16.mxu1 %v12553_v23  ;;  %v17595_v9 = vpop.xlane.xlu0 %4001 }
 0x52c   : > { %12556 = vmatpush3.bf16.msra.mxu1 %v12553_v23  ;;  %v17613_v23 = vadd.f32 %v17155_v14, %v16291_v30 }
 0x52e   : > { %v4042_v20 = vsel %vm3840_vm3, %v17613_v23, -inf }
 0x52f   : > { %v17597_v60 = vpop.xlane.xlu0 %4004 }
 0x533   : > { %v13377_v10 = vpop.permute.xlu0 %13376 }
 0x534   : > { %v13379_v44 = vunpack.i.h.bf16 %v13377_v10  ;;  %v13378_v7 = vunpack.i.l.bf16 %v13377_v10  ;;  %v22129_v10 = vld [vmem:[#allocation136_spill] sm:$0xff] }
 0x536   : > { %v12601_v35 = vpack.c.bf16 %v13379_v44, %v13378_v7 }
 0x538   : > { %12602 = vmatprep.subr.bf16.mxu0 %v12601_v35 }
 0x539   : > { %12604 = vmatpush3.bf16.msra.mxu0 %v12601_v35 }
 0x53c   : > { %3971 = vmax.xlane.f32.xlu1 %v3970_v6 }
 0x540   : > { %3974 = vmax.xlane.f32.xlu1 %v3973_v2  ;;  %v22130_v2 = vld [vmem:[#allocation78_spill] sm:$0xff] }
 0x549   : > { %4043 = vmax.xlane.f32.xlu0 %v4042_v20 }
 0x54d   : > { %4046 = vmax.xlane.f32.xlu0 %v4045_v8 }
 0x551   : > { %13401 = vrot.lane.b32.xlu1 %v22129_v10, %s21623_s27 }
 0x557   : > { %v17625_v44 = vpop.xlane.xlu1 %3935 }
 0x55b   : > { %v17627_v7 = vpop.xlane.xlu1 %3962 }
 0x55f   : > { %v13382_v14 = vpop.permute.xlu1 %13381 }
 0x560   : > { %v13384_v35 = vunpack.i.h.bf16 %v13382_v14  ;;  %v13383_v6 = vunpack.i.l.bf16 %v13382_v14  ;;  %v17641_v14 = vadd.f32 %v16613_v41, %v17081_v12 }
 0x562   : > { %v12557_v53 = vpack.c.bf16 %v13384_v35, %v13383_v6  ;;  %v3976_v35 = vsel %vm3840_vm3, %v17637_v43, -inf  ;;  %v3979_v6 = vsel %vm3840_vm3, %v17641_v14, -inf }
 0x563   : > { %13406 = vrot.lane.b32.xlu0 %v22130_v2, %s21623_s27 }
 0x564   : > { %12558 = vmatprep.subr.bf16.mxu1 %v12557_v53  ;;  %v17631_v20 = vpop.xlane.xlu0 %4007 }
 0x565   : > { %12560 = vmatpush3.bf16.msra.mxu1 %v12557_v53  ;;  %v22131_v53 = vld [vmem:[#allocation36_spill] sm:$0xff] }
 0x568   : > { %v17633_v56 = vpop.xlane.xlu0 %4034 }
 0x56c   : > { %v13387_v8 = vpop.permute.xlu0 %13386 }
 0x56d   : > { %v13389_v5 = vunpack.i.h.bf16 %v13387_v8  ;;  %v13388_v10 = vunpack.i.l.bf16 %v13387_v8 }
 0x56f   : > { %v12605_v48 = vpack.c.bf16 %v13389_v5, %v13388_v10  ;;  %v17649_v5 = vadd.f32 %v17169_v22, %v16291_v30 }
 0x571   : > { %12606 = vmatprep.subr.bf16.mxu0 %v12605_v48  ;;  %v4048_v12 = vsel %vm3840_vm3, %v17649_v5, -inf }
 0x572   : > { %12608 = vmatpush3.bf16.msra.mxu0 %v12605_v48  ;;  %v4051_v48 = vsel %vm3840_vm3, %v17653_v0, -inf }
 0x575   : > { %3977 = vmax.xlane.f32.xlu1 %v3976_v35 }
 0x579   : > { %3980 = vmax.xlane.f32.xlu1 %v3979_v6  ;;  %v22132_v6 = vld [vmem:[#allocation101_spill] sm:$0xff] }
 0x582   : > { %4049 = vmax.xlane.f32.xlu0 %v4048_v12 }
 0x586   : > { %4052 = vmax.xlane.f32.xlu0 %v4051_v48 }
 0x58a   : > { %13411 = vrot.lane.b32.xlu1 %v22131_v53, %s21623_s27 }
 0x590   : > { %v17661_v2 = vpop.xlane.xlu1 %3965 }
 0x594   : > { %v17663_v8 = vpop.xlane.xlu1 %3968 }
 0x598   : > { %v13392_v22 = vpop.permute.xlu1 %13391 }
 0x599   : > { %v13394_v10 = vunpack.i.h.bf16 %v13392_v22  ;;  %v13393_v35 = vunpack.i.l.bf16 %v13392_v22  ;;  %v17677_v22 = vadd.f32 %v16613_v41, %v17125_v45 }
 0x59b   : > { %v12561_v1 = vpack.c.bf16 %v13394_v10, %v13393_v35  ;;  %v3982_v10 = vsel %vm3840_vm3, %v17673_v36, -inf  ;;  %v4009_v35 = vsel %vm3840_vm3, %v17677_v22, -inf }
 0x59c   : > { %13416 = vrot.lane.b32.xlu0 %v22132_v6, %s21623_s27  ;;  %v17689_v6 = vadd.f32 %v16291_v30, %v22134_v3 }
 0x59d   : > { %12562 = vmatprep.subr.bf16.mxu1 %v12561_v1  ;;  %v17667_v12 = vpop.xlane.xlu0 %4037 }
 0x59e   : > { %12564 = vmatpush3.bf16.msra.mxu1 %v12561_v1 }
 0x5a1   : > { %v17669_v62 = vpop.xlane.xlu0 %4040 }
 0x5a5   : > { %v13397_v48 = vpop.permute.xlu0 %13396 }
 0x5a6   : > { %v13399_v40 = vunpack.i.h.bf16 %v13397_v48  ;;  %v13398_v53 = vunpack.i.l.bf16 %v13397_v48  ;;  %v22135_v48 = vld [vmem:[#allocation128_spill] sm:$0xff] }
 0x5a8   : > { %v12609_v27 = vpack.c.bf16 %v13399_v40, %v13398_v53  ;;  %v22133_v40 = vld [vmem:[#allocation44_spill] sm:$0xff]  ;;  %v22136_v53 = vld [vmem:[#allocation102_spill] sm:$0xff] }
 0x5a9   : > { %v17685_v1 = vadd.f32 %v22133_v40, %v16291_v30  ;;  %v22138_v40 = vld [vmem:[#allocation74_spill] sm:$0xff] }
 0x5aa   : > { %12610 = vmatprep.subr.bf16.mxu0 %v12609_v27  ;;  %v4251_v25 = vsub.f32 %v22139_v19, %v22138_v40  ;;  %v4407_v19 = vmul.f32 1.442695, %v4252_v32  ;;  %v22146_v40 = vld [vmem:[#allocation46_spill] sm:$0xff]  ;;  %v4256_v32 = vsub.f32 %v17411_v4, %v17625_v44 }
 0x5ab   : > { %12612 = vmatpush3.bf16.msra.mxu0 %v12609_v27  ;;  %v4054_v45 = vsel %vm3840_vm3, %v17685_v1, -inf  ;;  %v4081_v27 = vsel %vm3840_vm3, %v17689_v6, -inf }
 0x5ac   : > { %v4415_v44 = vmul.f32 1.442695, %v4256_v32 }
 0x5ae   : > { %3983 = vmax.xlane.f32.xlu1 %v3982_v10  ;;  %v22137_v10 = vld [vmem:[#allocation57_spill] sm:$0xff] }
 0x5b2   : > { %4010 = vmax.xlane.f32.xlu1 %v4009_v35  ;;  %v4250_v35 = vsub.f32 %v22137_v10, %v22136_v53 }
 0x5bb   : > { %4055 = vmax.xlane.f32.xlu0 %v4054_v45  ;;  %v4403_v45 = vmul.f32 1.442695, %v4250_v35 }
 0x5bd   : > { %13958 = vpow2.f32 %v4403_v45 }
 0x5bf   : > { %4082 = vmax.xlane.f32.xlu0 %v4081_v27  ;;  %v4405_v27 = vmul.f32 1.442695, %v4251_v25 }
 0x5c1   : > { %13960 = vpow2.f32 %v4405_v27 }
 0x5c2   : > { %13962 = vpow2.f32 %v4407_v19  ;;  %v22154_v19 = vld [vmem:[#allocation131_spill] sm:$0xff] }
 0x5c3   : > { %13421 = vrot.lane.b32.xlu1 %v22135_v48, %s21623_s27  ;;  %v4253_v48 = vsub.f32 %v22143_v15, %v17451_v47 }
 0x5c5   : > { %v4409_v35 = vmul.f32 1.442695, %v4253_v48  ;;  %v22150_v48 = vld [vmem:[#allocation87_spill] sm:$0xff] }
 0x5c7   : > { %13964 = vpow2.f32 %v4409_v35 }
 0x5c9   : > { %v17701_v24 = vpop.xlane.xlu1 %3971  ;;  %v17703_v3 = vpop.f32.mrb[96].mxu1 }
 0x5ca   : > { %22140 = vst [vmem:[#allocation54_spill] sm:$0xff] %v17703_v3  ;;  %v17705_v39 = vpop.f32.mrb[97].mxu1  ;;  %v4254_v3 = vsub.f32 %v22146_v40, %v17589_v33  ;;  %v4265_v33 = vsub.f32 %v17419_v17, %v17627_v7  ;;  %v22152_v40 = vld [vmem:[#allocation117_spill] sm:$0xff]  ;;  %v4268_v21 = vsub.f32 %v17601_v38, %v17701_v24 }
 0x5cb   : > { %22141 = vst [vmem:[#allocation136_spill] sm:$0xff] %v17705_v39  ;;  %v22147_v39 = vld [vmem:[#allocation77_spill] sm:$0xff] }
 0x5cc   : > { %v4255_v16 = vsub.f32 %v22147_v39, %v17591_v34  ;;  %v22151_v39 = vld [vmem:[#allocation126_spill] sm:$0xff]  ;;  %v4433_v7 = vmul.f32 1.442695, %v4265_v33 }
 0x5cd   : > { %v17711_v58 = vpop.xlane.xlu1 %3974  ;;  %v17713_v53 = vpop.f32.mrb[98].mxu1  ;;  %v4274_v34 = vsub.f32 %v22151_v39, %v22150_v48 }
 0x5ce   : > { %22144 = vst [vmem:[#allocation78_spill] sm:$0xff] %v17713_v53  ;;  %v17715_v10 = vpop.f32.mrb[99].mxu1  ;;  %v4411_v53 = vmul.f32 1.442695, %v4254_v3  ;;  %v4413_v45 = vmul.f32 1.442695, %v4255_v16  ;;  %v4275_v3 = vsub.f32 %v22154_v19, %v17397_v46  ;;  %v17745_v16 = vpop.eup %13958 }
 0x5cf   : > { %22145 = vst [vmem:[#allocation36_spill] sm:$0xff] %v17715_v10  ;;  %22158 = vst [vmem:[#allocation74_spill] sm:$0xff] %v17745_v16  ;;  %v17749_v48 = vpop.eup %13960 }
 0x5d0   : > { %13966 = vpow2.f32 %v4411_v53  ;;  %22160 = vst [vmem:[#allocation26_spill] sm:$0xff] %v17749_v48  ;;  %v4453_v39 = vmul.f32 1.442695, %v4275_v3 }
 0x5d1   : > { %v13402_v37 = vpop.permute.xlu1 %13401  ;;  %v17721_v25 = vpop.f32.mrb[100].mxu1  ;;  %13968 = vpow2.f32 %v4413_v45 }
 0x5d2   : > { %22148 = vst [vmem:[#allocation101_spill] sm:$0xff] %v17721_v25  ;;  %v13404_v47 = vunpack.i.h.bf16 %v13402_v37  ;;  %v13403_v15 = vunpack.i.l.bf16 %v13402_v37  ;;  %v17723_v54 = vpop.f32.mrb[101].mxu1  ;;  %13970 = vpow2.f32 %v4415_v44  ;;  %v22167_v44 = vld [vmem:[#allocation47_spill] sm:$0xff] }
 0x5d3   : > { %22149 = vst [vmem:[#allocation44_spill] sm:$0xff] %v17723_v54  ;;  %13972 = vpow2.f32 %v4433_v7 }
 0x5d4   : > { %v12565_v27 = vpack.c.bf16 %v13404_v47, %v13403_v15  ;;  %v4451_v47 = vmul.f32 1.442695, %v4274_v34  ;;  %v22159_v15 = vld [vmem:[#allocation143_spill] sm:$0xff] }
 0x5d5   : > { %13426 = vrot.lane.b32.xlu0 %v22152_v40, %s21623_s27  ;;  %v17733_v37 = vpop.f32.mrb[102].mxu1  ;;  %v4276_v46 = vsub.f32 %v22159_v15, %v17467_v31  ;;  %v22161_v40 = vld [vmem:[#allocation122_spill] sm:$0xff]  ;;  %v17763_v31 = vpop.eup %13962  ;;  %v4279_v15 = vsub.f32 %v22167_v44, %v17597_v60  ;;  %v4280_v60 = vsub.f32 %v17429_v55, %v17631_v20 }
 0x5d6   : > { %22153 = vst [vmem:[#allocation142_spill] sm:$0xff] %v17733_v37  ;;  %12566 = vmatprep.subr.bf16.mxu1 %v12565_v27  ;;  %v17737_v25 = vpop.xlane.xlu0 %4043  ;;  %v17739_v4 = vpop.f32.mrb[103].mxu1  ;;  %v4277_v53 = vsub.f32 %v22161_v40, %v17479_v52  ;;  %22164 = vst [vmem:[#allocation46_spill] sm:$0xff] %v17763_v31  ;;  %13974 = vpow2.f32 %v4451_v47  ;;  %v22165_v52 = vld [vmem:[#allocation62_spill] sm:$0xff] }
 0x5d7   : > { %22155 = vst [vmem:[#allocation128_spill] sm:$0xff] %v17739_v4  ;;  %v17741_v17 = vpop.f32.mrb[96].mxu0  ;;  %12568 = vmatpush3.bf16.msra.mxu1 %v12565_v27  ;;  %v4455_v27 = vmul.f32 1.442695, %v4276_v46  ;;  %v4278_v34 = vsub.f32 %v22165_v52, %v17595_v9  ;;  %v17767_v19 = vpop.eup %13964  ;;  %13976 = vpow2.f32 %v4453_v39  ;;  %v22172_v52 = vld [vmem:[#allocation53_spill] sm:$0xff] }
 0x5d8   : > { %22156 = vst [vmem:[#allocation102_spill] sm:$0xff] %v17741_v17  ;;  %v17743_v35 = vpop.f32.mrb[97].mxu0  ;;  %22166 = vst [vmem:[#allocation77_spill] sm:$0xff] %v17767_v19  ;;  %v4457_v3 = vmul.f32 1.442695, %v4277_v53  ;;  %v17787_v44 = vadd.f32 %v22172_v52, %v16613_v41 }
 0x5d9   : > { %22157 = vst [vmem:[#allocation57_spill] sm:$0xff] %v17743_v35  ;;  %13978 = vpow2.f32 %v4455_v27  ;;  %v4459_v46 = vmul.f32 1.442695, %v4278_v34  ;;  %v22177_v34 = vld [vmem:[#allocation100_spill] sm:$0xff] }
 0x5da   : > { %11654 = vmatmul.mubr.msk.f32.vlgmr.msra.gmra.mrb[104].mxu1 %vm3840_vm3, %v17745_v16  ;;  %v17755_v32 = vpop.xlane.xlu0 %4046  ;;  %v17779_v9 = vpop.eup %13966  ;;  %13980 = vpow2.f32 %v4457_v3  ;;  %v4012_v3 = vsel %vm3840_vm3, %v17787_v44, -inf  ;;  %v22190_v35 = vld [vmem:[#allocation56_spill] sm:$0xff]  ;;  %v22195_v16 = vld [vmem:[#allocation130_spill] sm:$0xff] }
 0x5db   : > { %v17757_v45 = vpop.f32.mrb[98].mxu0  ;;  %11656 = vmatprep.mubr.msk.f32.mxu1 %vm3840_vm3, %v17749_v48  ;;  %22170 = vst [vmem:[#allocation117_spill] sm:$0xff] %v17779_v9  ;;  %v17783_v53 = vpop.eup %13968  ;;  %13982 = vpow2.f32 %v4459_v46  ;;  %v17873_v48 = vadd.f32 %v22190_v35, %v16613_v41  ;;  %v22193_v35 = vld [vmem:[#allocation64_spill] sm:$0xff] }
 0x5dc   : > { %22162 = vst [vmem:[#allocation51_spill] sm:$0xff] %v17757_v45  ;;  %v17761_v33 = vpop.f32.mrb[99].mxu0  ;;  %22171 = vst [vmem:[#allocation131_spill] sm:$0xff] %v17783_v53  ;;  %v17799_v20 = vpop.eup %13970 }
 0x5dd   : > { %22163 = vst [vmem:[#allocation23_spill] sm:$0xff] %v17761_v33  ;;  %22175 = vst [vmem:[#allocation62_spill] sm:$0xff] %v17799_v20 }
 0x5de   : > { %11657 = vmatmul.mubr.msk.f32.gmra.mrb[106].mxu1 %vm3840_vm3, %v17763_v31  ;;  %v13407_v7 = vpop.permute.xlu0 %13406 }
 0x5df   : > { %v17773_v40 = vpop.f32.mrb[100].mxu0  ;;  %v13409_v37 = vunpack.i.h.bf16 %v13407_v7  ;;  %v13408_v4 = vunpack.i.l.bf16 %v13407_v7  ;;  %11659 = vmatprep.mubr.msk.f32.mxu1 %vm3840_vm3, %v17767_v19  ;;  %v4461_v7 = vmul.f32 1.442695, %v4279_v15 }
 0x5e0   : > { %22168 = vst [vmem:[#allocation87_spill] sm:$0xff] %v17773_v40  ;;  %v17777_v47 = vpop.f32.mrb[101].mxu0  ;;  %v4289_v40 = vsub.f32 %v17433_v13, %v17633_v56  ;;  %v17805_v13 = vadd.f32 %v16613_v41, %v22177_v34 }
 0x5e1   : > { %22169 = vst [vmem:[#allocation126_spill] sm:$0xff] %v17777_v47  ;;  %v12613_v39 = vpack.c.bf16 %v13409_v37, %v13408_v4  ;;  %v4463_v37 = vmul.f32 1.442695, %v4280_v60  ;;  %v17801_v4 = vpop.eup %13972  ;;  %13984 = vpow2.f32 %v4461_v7  ;;  %v22183_v7 = vld [vmem:[#allocation31_spill] sm:$0xff]  ;;  %v22188_v47 = vld [vmem:[#allocation132_spill] sm:$0xff] }
 0x5e2   : > { %11660 = vmatmul.mubr.msk.f32.gmra.mrb[108].mxu1 %vm3840_vm3, %v17779_v9  ;;  %22176 = vst [vmem:[#allocation47_spill] sm:$0xff] %v17801_v4  ;;  %v4481_v56 = vmul.f32 1.442695, %v4289_v40  ;;  %v17811_v15 = vpop.eup %13974  ;;  %v4015_v40 = vsel %vm3840_vm3, %v17805_v13, -inf }
 0x5e3   : > { %v17793_v27 = vpop.f32.mrb[102].mxu0  ;;  %11662 = vmatprep.mubr.msk.f32.mxu1 %vm3840_vm3, %v17783_v53  ;;  %12614 = vmatprep.subr.bf16.mxu0 %v12613_v39  ;;  %22178 = vst [vmem:[#allocation53_spill] sm:$0xff] %v17811_v15  ;;  %v17815_v46 = vpop.eup %13976  ;;  %13986 = vpow2.f32 %v4463_v37  ;;  %v17835_v37 = vadd.f32 %v22183_v7, %v16291_v30 }
 0x5e4   : > { %22173 = vst [vmem:[#allocation143_spill] sm:$0xff] %v17793_v27  ;;  %v17797_v55 = vpop.f32.mrb[103].mxu0  ;;  %12616 = vmatpush3.bf16.msra.mxu0 %v12613_v39  ;;  %22179 = vst [vmem:[#allocation100_spill] sm:$0xff] %v17815_v46  ;;  %13988 = vpow2.f32 %v4481_v56  ;;  %v17823_v60 = vpop.eup %13978 }
 0x5e5   : > { %22174 = vst [vmem:[#allocation122_spill] sm:$0xff] %v17797_v55  ;;  %22180 = vst [vmem:[#allocation185_spill] sm:$0xff] %v17823_v60  ;;  %v17825_v39 = vpop.eup %13980  ;;  %v4084_v27 = vsel %vm3840_vm3, %v17835_v37, -inf }
 0x5e6   : > { %11663 = vmatmul.mubr.msk.f32.gmra.mrb[110].mxu1 %vm3840_vm3, %v17799_v20  ;;  %22181 = vst [vmem:[#allocation186_spill] sm:$0xff] %v17825_v39  ;;  %v17831_v52 = vpop.eup %13982 }
 0x5e7   : > { %4013 = vmax.xlane.f32.xlu1 %v4012_v3  ;;  %11709 = vmatprep.mubr.msk.f32.mxu1 %vm3840_vm3, %v17801_v4  ;;  %22182 = vst [vmem:[#allocation187_spill] sm:$0xff] %v17831_v52  ;;  %v22186_v3 = vld [vmem:[#allocation42_spill] sm:$0xff] }
 0x5e8   : > { %11738 = vmatmul.mubr.msk.f32.vlgmr.msra.gmra.mrb[104].mxu0 %vm3840_vm3, %v17811_v15  ;;  %v22202_v15 = vld [vmem:[#allocation152_spill] sm:$0xff] }
 0x5e9   : > { %11740 = vmatprep.mubr.msk.f32.mxu0 %vm3840_vm3, %v17815_v46  ;;  %v17945_v18 = vadd.f32 %v22202_v15, %v16613_v41  ;;  %v22205_v15 = vld [vmem:[#allocation28_spill] sm:$0xff] }
 0x5eb   : > { %4016 = vmax.xlane.f32.xlu1 %v4015_v40  ;;  %v17837_v34 = vpop.eup %13984  ;;  %v17847_v40 = vadd.f32 %v16291_v30, %v22186_v3 }
 0x5ec   : > { %11741 = vmatmul.mubr.msk.f32.gmra.mrb[106].mxu0 %vm3840_vm3, %v17823_v60  ;;  %22184 = vst [vmem:[#allocation31_spill] sm:$0xff] %v17837_v34  ;;  %v22201_v60 = vld [vmem:[#allocation109_spill] sm:$0xff] }
 0x5ed   : > { %11743 = vmatprep.mubr.msk.f32.mxu0 %vm3840_vm3, %v17825_v39  ;;  %v17843_v56 = vpop.eup %13986  ;;  %v4087_v7 = vsel %vm3840_vm3, %v17847_v40, -inf }
 0x5ee   : > { %22185 = vst [vmem:[#allocation188_spill] sm:$0xff] %v17843_v56  ;;  %v17851_v55 = vpop.eup %13988 }
 0x5ef   : > { %22187 = vst [vmem:[#allocation42_spill] sm:$0xff] %v17851_v55 }
 0x5f0   : > { %11744 = vmatmul.mubr.msk.f32.gmra.mrb[108].mxu0 %vm3840_vm3, %v17831_v52  ;;  %v22196_v52 = vld [vmem:[#allocation110_spill] sm:$0xff] }
 0x5f1   : > { %11746 = vmatprep.mubr.msk.f32.mxu0 %vm3840_vm3, %v17837_v34  ;;  %v17909_v46 = vadd.f32 %v22196_v52, %v16613_v41  ;;  %v22199_v52 = vld [vmem:[#allocation52_spill] sm:$0xff] }
 0x5f4   : > { %11747 = vmatmul.mubr.msk.f32.gmra.mrb[110].mxu0 %vm3840_vm3, %v17843_v56  ;;  %4085 = vmax.xlane.f32.xlu0 %v4084_v27  ;;  %v22189_v27 = vld [vmem:[#allocation125_spill] sm:$0xff] }
 0x5f5   : > { %11793 = vmatprep.mubr.msk.f32.mxu0 %vm3840_vm3, %v17851_v55 }
 0x5f8   : > { %4088 = vmax.xlane.f32.xlu0 %v4087_v7 }
 0x5fc   : > { %13431 = vrot.lane.b32.xlu1 %v22188_v47, %s21623_s27 }
 0x602   : > { %v17861_v3 = vpop.xlane.xlu1 %3977 }
 0x606   : > { %v17863_v54 = vpop.xlane.xlu1 %3980 }
 0x607   : > { %v4271_v24 = vsub.f32 %v17641_v14, %v17863_v54  ;;  %v4290_v54 = vsub.f32 %v17551_v57, %v17667_v12  ;;  %v22213_v14 = vld [vmem:[#allocation27_spill] sm:$0xff] }
 0x60a   : > { %v13412_v53 = vpop.permute.xlu1 %13411 }
 0x60b   : > { %v13414_v33 = vunpack.i.h.bf16 %v13412_v53  ;;  %v13413_v20 = vunpack.i.l.bf16 %v13412_v53 }
 0x60d   : > { %v12585_v10 = vpack.c.bf16 %v13414_v33, %v13413_v20  ;;  %v22191_v33 = vld [vmem:[#allocation108_spill] sm:$0xff]  ;;  %v4018_v20 = vsel %vm3840_vm3, %v17873_v48, -inf }
 0x60e   : > { %13436 = vrot.lane.b32.xlu0 %v22189_v27, %s21623_s27  ;;  %v17877_v53 = vadd.f32 %v16613_v41, %v22191_v33  ;;  %v22194_v33 = vld [vmem:[#allocation14_spill] sm:$0xff] }
 0x60f   : > { %12586 = vmatprep.subr.bf16.mxu1 %v12585_v10  ;;  %v17867_v45 = vpop.xlane.xlu0 %4049 }
 0x610   : > { %12588 = vmatpush3.bf16.msra.mxu1 %v12585_v10  ;;  %v4021_v10 = vsel %vm3840_vm3, %v17877_v53, -inf }
 0x613   : > { %v17869_v19 = vpop.xlane.xlu0 %4052 }
 0x617   : > { %v13417_v7 = vpop.permute.xlu0 %13416 }
 0x618   : > { %v13419_v9 = vunpack.i.h.bf16 %v13417_v7  ;;  %v13418_v47 = vunpack.i.l.bf16 %v13417_v7  ;;  %v17889_v7 = vadd.f32 %v16291_v30, %v22193_v35 }
 0x61a   : > { %v12633_v17 = vpack.c.bf16 %v13419_v9, %v13418_v47  ;;  %v22192_v9 = vld [vmem:[#allocation30_spill] sm:$0xff]  ;;  %v4093_v47 = vsel %vm3840_vm3, %v17889_v7, -inf }
 0x61b   : > { %v17885_v27 = vadd.f32 %v22192_v9, %v16291_v30 }
 0x61c   : > { %12634 = vmatprep.subr.bf16.mxu0 %v12633_v17 }
 0x61d   : > { %12636 = vmatpush3.bf16.msra.mxu0 %v12633_v17  ;;  %v4090_v17 = vsel %vm3840_vm3, %v17885_v27, -inf }
 0x620   : > { %4019 = vmax.xlane.f32.xlu1 %v4018_v20 }
 0x624   : > { %4022 = vmax.xlane.f32.xlu1 %v4021_v10 }
 0x62d   : > { %4091 = vmax.xlane.f32.xlu0 %v4090_v17 }
 0x631   : > { %4094 = vmax.xlane.f32.xlu0 %v4093_v47 }
 0x635   : > { %13441 = vrot.lane.b32.xlu1 %v22194_v33, %s21623_s27 }
 0x63b   : > { %v17897_v20 = vpop.xlane.xlu1 %3983 }
 0x63f   : > { %v17899_v10 = vpop.xlane.xlu1 %4010 }
 0x643   : > { %v13422_v9 = vpop.permute.xlu1 %13421 }
 0x644   : > { %v13424_v31 = vunpack.i.h.bf16 %v13422_v9  ;;  %v13423_v4 = vunpack.i.l.bf16 %v13422_v9 }
 0x646   : > { %v12589_v35 = vpack.c.bf16 %v13424_v31, %v13423_v4  ;;  %v22197_v31 = vld [vmem:[#allocation146_spill] sm:$0xff] }
 0x647   : > { %13446 = vrot.lane.b32.xlu0 %v22195_v16, %s21623_s27  ;;  %v17913_v4 = vadd.f32 %v16613_v41, %v22197_v31  ;;  %v4024_v16 = vsel %vm3840_vm3, %v17909_v46, -inf  ;;  %v22200_v31 = vld [vmem:[#allocation41_spill] sm:$0xff] }
 0x648   : > { %12590 = vmatprep.subr.bf16.mxu1 %v12589_v35  ;;  %v17903_v17 = vpop.xlane.xlu0 %4055 }
 0x649   : > { %12592 = vmatpush3.bf16.msra.mxu1 %v12589_v35  ;;  %v4027_v9 = vsel %vm3840_vm3, %v17913_v4, -inf }
 0x64c   : > { %v17905_v34 = vpop.xlane.xlu0 %4082 }
 0x650   : > { %v13427_v47 = vpop.permute.xlu0 %13426 }
 0x651   : > { %v13429_v56 = vunpack.i.h.bf16 %v13427_v47  ;;  %v13428_v33 = vunpack.i.l.bf16 %v13427_v47  ;;  %v17925_v47 = vadd.f32 %v16291_v30, %v22199_v52 }
 0x653   : > { %v12637_v39 = vpack.c.bf16 %v13429_v56, %v13428_v33  ;;  %v22198_v56 = vld [vmem:[#allocation19_spill] sm:$0xff]  ;;  %v4099_v33 = vsel %vm3840_vm3, %v17925_v47, -inf }
 0x654   : > { %v17921_v35 = vadd.f32 %v22198_v56, %v16291_v30 }
 0x655   : > { %12638 = vmatprep.subr.bf16.mxu0 %v12637_v39 }
 0x656   : > { %12640 = vmatpush3.bf16.msra.mxu0 %v12637_v39  ;;  %v4096_v39 = vsel %vm3840_vm3, %v17921_v35, -inf }
 0x659   : > { %4025 = vmax.xlane.f32.xlu1 %v4024_v16 }
 0x65d   : > { %4028 = vmax.xlane.f32.xlu1 %v4027_v9 }
 0x666   : > { %4097 = vmax.xlane.f32.xlu0 %v4096_v39 }
 0x66a   : > { %4100 = vmax.xlane.f32.xlu0 %v4099_v33 }
 0x66e   : > { %13451 = vrot.lane.b32.xlu1 %v22200_v31, %s21623_s27 }
 0x674   : > { %v17933_v16 = vpop.xlane.xlu1 %4013 }
 0x678   : > { %v17935_v9 = vpop.xlane.xlu1 %4016 }
 0x67c   : > { %v13432_v56 = vpop.permute.xlu1 %13431 }
 0x67d   : > { %v13434_v28 = vunpack.i.h.bf16 %v13432_v56  ;;  %v13433_v50 = vunpack.i.l.bf16 %v13432_v56 }
 0x67f   : > { %v12593_v52 = vpack.c.bf16 %v13434_v28, %v13433_v50  ;;  %v22203_v50 = vld [vmem:[#allocation106_spill] sm:$0xff] }
 0x680   : > { %13456 = vrot.lane.b32.xlu0 %v22201_v60, %s21623_s27  ;;  %v17949_v28 = vadd.f32 %v16613_v41, %v22203_v50  ;;  %v4030_v60 = vsel %vm3840_vm3, %v17945_v18, -inf  ;;  %v22206_v50 = vld [vmem:[#allocation66_spill] sm:$0xff] }
 0x681   : > { %12594 = vmatprep.subr.bf16.mxu1 %v12593_v52  ;;  %v17939_v39 = vpop.xlane.xlu0 %4085 }
 0x682   : > { %12596 = vmatpush3.bf16.msra.mxu1 %v12593_v52  ;;  %v4057_v56 = vsel %vm3840_vm3, %v17949_v28, -inf }
 0x685   : > { %v17941_v51 = vpop.xlane.xlu0 %4088 }
 0x689   : > { %v13437_v33 = vpop.permute.xlu0 %13436 }
 0x68a   : > { %v13439_v61 = vunpack.i.h.bf16 %v13437_v33  ;;  %v13438_v31 = vunpack.i.l.bf16 %v13437_v33  ;;  %v17961_v33 = vadd.f32 %v16291_v30, %v22205_v15 }
 0x68c   : > { %v12641_v55 = vpack.c.bf16 %v13439_v61, %v13438_v31  ;;  %v22204_v61 = vld [vmem:[#allocation147_spill] sm:$0xff]  ;;  %v4129_v31 = vsel %vm3840_vm3, %v17961_v33, -inf }
 0x68d   : > { %v17957_v52 = vadd.f32 %v22204_v61, %v16291_v30 }
 0x68e   : > { %12642 = vmatprep.subr.bf16.mxu0 %v12641_v55 }
 0x68f   : > { %12644 = vmatpush3.bf16.msra.mxu0 %v12641_v55  ;;  %v4102_v55 = vsel %vm3840_vm3, %v17957_v52, -inf }
 0x692   : > { %4031 = vmax.xlane.f32.xlu1 %v4030_v60  ;;  %v4266_v60 = vsub.f32 %v17503_v29, %v17661_v2 }
 0x696   : > { %4058 = vmax.xlane.f32.xlu1 %v4057_v56  ;;  %v4267_v56 = vsub.f32 %v17517_v42, %v17663_v8  ;;  %v4439_v42 = vmul.f32 1.442695, %v4268_v21  ;;  %v4270_v8 = vsub.f32 %v17637_v43, %v17861_v3  ;;  %v4272_v21 = vsub.f32 %v17673_v36, %v17897_v20 }
 0x697   : > { %v4281_v43 = vsub.f32 %v17677_v22, %v17899_v10 }
 0x698   : > { %v4447_v20 = vmul.f32 1.442695, %v4272_v21  ;;  %v4295_v21 = vsub.f32 %v17653_v0, %v17869_v19  ;;  %v4296_v0 = vsub.f32 %v17685_v1, %v17903_v17 }
 0x699   : > { %v4465_v57 = vmul.f32 1.442695, %v4281_v43 }
 0x69f   : > { %4103 = vmax.xlane.f32.xlu0 %v4102_v55  ;;  %v4435_v55 = vmul.f32 1.442695, %v4266_v60 }
 0x6a1   : > { %13990 = vpow2.f32 %v4435_v55  ;;  %v4445_v55 = vmul.f32 1.442695, %v4271_v24 }
 0x6a3   : > { %4130 = vmax.xlane.f32.xlu0 %v4129_v31  ;;  %v4437_v31 = vmul.f32 1.442695, %v4267_v56 }
 0x6a5   : > { %13992 = vpow2.f32 %v4437_v31 }
 0x6a6   : > { %13994 = vpow2.f32 %v4439_v42 }
 0x6a7   : > { %13461 = vrot.lane.b32.xlu1 %v22206_v50, %s21623_s27  ;;  %v4269_v50 = vsub.f32 %v17605_v11, %v17711_v58 }
 0x6a9   : > { %v4441_v60 = vmul.f32 1.442695, %v4269_v50  ;;  %v4291_v50 = vsub.f32 %v17563_v49, %v17669_v62  ;;  %v4292_v49 = vsub.f32 %v17613_v23, %v17737_v25 }
 0x6ab   : > { %13996 = vpow2.f32 %v4441_v60  ;;  %v18017_v10 = vpop.eup %13990  ;;  %v4485_v60 = vmul.f32 1.442695, %v4291_v50  ;;  %v4487_v25 = vmul.f32 1.442695, %v4292_v49  ;;  %v4305_v49 = vsub.f32 %v17689_v6, %v17905_v34 }
 0x6ac   : > { %22218 = vst [vmem:[#allocation19_spill] sm:$0xff] %v18017_v10 }
 0x6ad   : > { %v17973_v61 = vpop.xlane.xlu1 %4019  ;;  %v17975_v15 = vpop.f32.mrb[104].mxu1  ;;  %v4513_v34 = vmul.f32 1.442695, %v4305_v49 }
 0x6ae   : > { %22207 = vst [vmem:[#allocation132_spill] sm:$0xff] %v17975_v15  ;;  %v17977_v26 = vpop.f32.mrb[105].mxu1 }
 0x6af   : > { %22208 = vst [vmem:[#allocation125_spill] sm:$0xff] %v17977_v26  ;;  %v18021_v62 = vpop.eup %13992 }
 0x6b0   : > { %22219 = vst [vmem:[#allocation52_spill] sm:$0xff] %v18021_v62  ;;  %v18035_v23 = vpop.eup %13994 }
 0x6b1   : > { %v17983_v63 = vpop.xlane.xlu1 %4022  ;;  %v17985_v29 = vpop.f32.mrb[106].mxu1  ;;  %22222 = vst [vmem:[#allocation152_spill] sm:$0xff] %v18035_v23 }
 0x6b2   : > { %22209 = vst [vmem:[#allocation56_spill] sm:$0xff] %v17985_v29  ;;  %v17987_v2 = vpop.f32.mrb[107].mxu1  ;;  %v4443_v29 = vmul.f32 1.442695, %v4270_v8  ;;  %v4483_v8 = vmul.f32 1.442695, %v4290_v54 }
 0x6b3   : > { %22210 = vst [vmem:[#allocation108_spill] sm:$0xff] %v17987_v2 }
 0x6b4   : > { %13998 = vpow2.f32 %v4443_v29  ;;  %v4293_v29 = vsub.f32 %v17617_v59, %v17755_v32  ;;  %v4294_v59 = vsub.f32 %v17649_v5, %v17867_v45 }
 0x6b5   : > { %v13442_v38 = vpop.permute.xlu1 %13441  ;;  %v17993_v56 = vpop.f32.mrb[108].mxu1  ;;  %14000 = vpow2.f32 %v4445_v55 }
 0x6b6   : > { %22211 = vst [vmem:[#allocation30_spill] sm:$0xff] %v17993_v56  ;;  %v13444_v58 = vunpack.i.h.bf16 %v13442_v38  ;;  %v13443_v11 = vunpack.i.l.bf16 %v13442_v38  ;;  %v17995_v15 = vpop.f32.mrb[109].mxu1  ;;  %14002 = vpow2.f32 %v4447_v20  ;;  %v18039_v32 = vpop.eup %13996  ;;  %v4491_v45 = vmul.f32 1.442695, %v4294_v59  ;;  %v22228_v20 = vld [vmem:[#allocation127_spill] sm:$0xff] }
 0x6b7   : > { %22212 = vst [vmem:[#allocation64_spill] sm:$0xff] %v17995_v15  ;;  %14004 = vpow2.f32 %v4465_v57  ;;  %22223 = vst [vmem:[#allocation106_spill] sm:$0xff] %v18039_v32  ;;  %v18059_v57 = vadd.f32 %v22228_v20, %v16613_v41  ;;  %v22233_v59 = vld [vmem:[#allocation43_spill] sm:$0xff] }
 0x6b8   : > { %v12597_v3 = vpack.c.bf16 %v13444_v58, %v13443_v11  ;;  %14006 = vpow2.f32 %v4483_v8  ;;  %v4489_v11 = vmul.f32 1.442695, %v4293_v29  ;;  %v4493_v8 = vmul.f32 1.442695, %v4295_v21 }
 0x6b9   : > { %13466 = vrot.lane.b32.xlu0 %v22213_v14, %s21623_s27  ;;  %v18005_v31 = vpop.f32.mrb[110].mxu1  ;;  %14008 = vpow2.f32 %v4485_v60  ;;  %v4495_v29 = vmul.f32 1.442695, %v4296_v0  ;;  %v18077_v6 = vadd.f32 %v16613_v41, %v22233_v59 }
 0x6ba   : > { %22214 = vst [vmem:[#allocation14_spill] sm:$0xff] %v18005_v31  ;;  %12598 = vmatprep.subr.bf16.mxu1 %v12597_v3  ;;  %v18009_v42 = vpop.xlane.xlu0 %4091  ;;  %v18011_v36 = vpop.f32.mrb[111].mxu1  ;;  %14010 = vpow2.f32 %v4487_v25 }
 0x6bb   : > { %22215 = vst [vmem:[#allocation130_spill] sm:$0xff] %v18011_v36  ;;  %v18013_v22 = vpop.f32.mrb[104].mxu0  ;;  %12600 = vmatpush3.bf16.msra.mxu1 %v12597_v3  ;;  %14012 = vpow2.f32 %v4489_v11  ;;  %v4060_v11 = vsel %vm3840_vm3, %v18059_v57, -inf }
 0x6bc   : > { %22216 = vst [vmem:[#allocation110_spill] sm:$0xff] %v18013_v22  ;;  %v18015_v12 = vpop.f32.mrb[105].mxu0  ;;  %14014 = vpow2.f32 %v4491_v45 }
 0x6bd   : > { %22217 = vst [vmem:[#allocation146_spill] sm:$0xff] %v18015_v12  ;;  %14016 = vpow2.f32 %v4493_v8  ;;  %v22252_v12 = vld [vmem:[#allocation15_spill] sm:$0xff] }
 0x6be   : > { %11710 = vmatmul.mubr.msk.f32.vlgmr.msra.gmra.mrb[112].mxu1 %vm3840_vm3, %v18017_v10  ;;  %v18027_v24 = vpop.xlane.xlu0 %4094  ;;  %v18051_v5 = vpop.eup %13998  ;;  %14018 = vpow2.f32 %v4495_v29  ;;  %v22242_v29 = vld [vmem:[#allocation38_spill] sm:$0xff] }
 0x6bf   : > { %v18029_v38 = vpop.f32.mrb[106].mxu0  ;;  %11712 = vmatprep.mubr.msk.f32.mxu1 %vm3840_vm3, %v18021_v62  ;;  %22226 = vst [vmem:[#allocation66_spill] sm:$0xff] %v18051_v5  ;;  %v18055_v50 = vpop.eup %14000  ;;  %14020 = vpow2.f32 %v4513_v34  ;;  %v18119_v59 = vadd.f32 %v16291_v30, %v22242_v29  ;;  %v18181_v62 = vadd.f32 %v22252_v12, %v16613_v41  ;;  %v22255_v12 = vld [vmem:[#allocation21_spill] sm:$0xff]  ;;  %v22257_v10 = vld [vmem:[#allocation94_spill] sm:$0xff] }
 0x6c0   : > { %22220 = vst [vmem:[#allocation41_spill] sm:$0xff] %v18029_v38  ;;  %v18033_v58 = vpop.f32.mrb[107].mxu0  ;;  %22227 = vst [vmem:[#allocation27_spill] sm:$0xff] %v18055_v50  ;;  %v18071_v17 = vpop.eup %14002  ;;  %v22251_v38 = vld [vmem:[#allocation83_spill] sm:$0xff] }
 0x6c1   : > { %22221 = vst [vmem:[#allocation109_spill] sm:$0xff] %v18033_v58  ;;  %22231 = vst [vmem:[#allocation190_spill] sm:$0xff] %v18071_v17  ;;  %v18073_v25 = vpop.eup %14004 }
 0x6c2   : > { %11713 = vmatmul.mubr.msk.f32.gmra.mrb[114].mxu1 %vm3840_vm3, %v18035_v23  ;;  %v13447_v55 = vpop.permute.xlu0 %13446  ;;  %22232 = vst [vmem:[#allocation191_spill] sm:$0xff] %v18073_v25  ;;  %v18083_v21 = vpop.eup %14006 }
 0x6c3   : > { %v18045_v43 = vpop.f32.mrb[108].mxu0  ;;  %v13449_v3 = vunpack.i.h.bf16 %v13447_v55  ;;  %v13448_v54 = vunpack.i.l.bf16 %v13447_v55  ;;  %11715 = vmatprep.mubr.msk.f32.mxu1 %vm3840_vm3, %v18039_v32  ;;  %22234 = vst [vmem:[#allocation43_spill] sm:$0xff] %v18083_v21  ;;  %v18087_v55 = vpop.eup %14008 }
 0x6c4   : > { %22224 = vst [vmem:[#allocation147_spill] sm:$0xff] %v18045_v43  ;;  %v18049_v14 = vpop.f32.mrb[109].mxu0  ;;  %22235 = vst [vmem:[#allocation192_spill] sm:$0xff] %v18087_v55 }
 0x6c5   : > { %22225 = vst [vmem:[#allocation28_spill] sm:$0xff] %v18049_v14  ;;  %v12645_v19 = vpack.c.bf16 %v13449_v3, %v13448_v54  ;;  %v4063_v3 = vsel %vm3840_vm3, %v18077_v6, -inf  ;;  %v18095_v54 = vpop.eup %14010  ;;  %v22246_v14 = vld [vmem:[#allocation76_spill] sm:$0xff] }
 0x6c6   : > { %11716 = vmatmul.mubr.msk.f32.gmra.mrb[116].mxu1 %vm3840_vm3, %v18051_v5  ;;  %22236 = vst [vmem:[#allocation193_spill] sm:$0xff] %v18095_v54  ;;  %v18097_v45 = vpop.eup %14012 }
 0x6c7   : > { %v18065_v60 = vpop.f32.mrb[110].mxu0  ;;  %11718 = vmatprep.mubr.msk.f32.mxu1 %vm3840_vm3, %v18055_v50  ;;  %12646 = vmatprep.subr.bf16.mxu0 %v12645_v19  ;;  %22237 = vst [vmem:[#allocation194_spill] sm:$0xff] %v18097_v45  ;;  %v18103_v0 = vpop.eup %14014 }
 0x6c8   : > { %22229 = vst [vmem:[#allocation127_spill] sm:$0xff] %v18065_v60  ;;  %v18069_v1 = vpop.f32.mrb[111].mxu0  ;;  %12648 = vmatpush3.bf16.msra.mxu0 %v12645_v19  ;;  %22238 = vst [vmem:[#allocation195_spill] sm:$0xff] %v18103_v0  ;;  %v22239_v19 = vld [vmem:[#allocation16_spill] sm:$0xff]  ;;  %v18109_v8 = vpop.eup %14016 }
 0x6c9   : > { %22230 = vst [vmem:[#allocation189_spill] sm:$0xff] %v18069_v1  ;;  %v18107_v20 = vadd.f32 %v22239_v19, %v16291_v30  ;;  %22240 = vst [vmem:[#allocation16_spill] sm:$0xff] %v18109_v8  ;;  %v18115_v49 = vpop.eup %14018  ;;  %v22244_v19 = vld [vmem:[#allocation89_spill] sm:$0xff] }
 0x6ca   : > { %11719 = vmatmul.mubr.msk.f32.gmra.mrb[118].mxu1 %vm3840_vm3, %v18071_v17  ;;  %22241 = vst [vmem:[#allocation196_spill] sm:$0xff] %v18115_v49  ;;  %v18145_v17 = vadd.f32 %v22246_v14, %v16613_v41  ;;  %v22249_v14 = vld [vmem:[#allocation32_spill] sm:$0xff] }
 0x6cb   : > { %4061 = vmax.xlane.f32.xlu1 %v4060_v11  ;;  %11765 = vmatprep.mubr.msk.f32.mxu1 %vm3840_vm3, %v18073_v25  ;;  %v4132_v34 = vsel %vm3840_vm3, %v18107_v20, -inf  ;;  %v18123_v11 = vpop.eup %14020 }
 0x6cc   : > { %11794 = vmatmul.mubr.msk.f32.vlgmr.msra.gmra.mrb[112].mxu0 %vm3840_vm3, %v18083_v21  ;;  %22243 = vst [vmem:[#allocation38_spill] sm:$0xff] %v18123_v11 }
 0x6cd   : > { %11796 = vmatprep.mubr.msk.f32.mxu0 %vm3840_vm3, %v18087_v55 }
 0x6cf   : > { %4064 = vmax.xlane.f32.xlu1 %v4063_v3  ;;  %v4135_v3 = vsel %vm3840_vm3, %v18119_v59, -inf }
 0x6d0   : > { %11797 = vmatmul.mubr.msk.f32.gmra.mrb[114].mxu0 %vm3840_vm3, %v18095_v54 }
 0x6d1   : > { %11799 = vmatprep.mubr.msk.f32.mxu0 %vm3840_vm3, %v18097_v45 }
 0x6d4   : > { %11800 = vmatmul.mubr.msk.f32.gmra.mrb[116].mxu0 %vm3840_vm3, %v18103_v0  ;;  %v22258_v0 = vld [vmem:[#allocation55_spill] sm:$0xff] }
 0x6d5   : > { %11802 = vmatprep.mubr.msk.f32.mxu0 %vm3840_vm3, %v18109_v8  ;;  %v18217_v55 = vadd.f32 %v22258_v0, %v16613_v41  ;;  %v22261_v0 = vld [vmem:[#allocation24_spill] sm:$0xff] }
 0x6d8   : > { %11803 = vmatmul.mubr.msk.f32.gmra.mrb[118].mxu0 %vm3840_vm3, %v18115_v49  ;;  %4133 = vmax.xlane.f32.xlu0 %v4132_v34  ;;  %v22245_v34 = vld [vmem:[#allocation58_spill] sm:$0xff] }
 0x6d9   : > { %11849 = vmatprep.mubr.msk.f32.mxu0 %vm3840_vm3, %v18123_v11  ;;  %v4284_v11 = vsub.f32 %v17873_v48, %v17973_v61 }
 0x6dc   : > { %4136 = vmax.xlane.f32.xlu0 %v4135_v3 }
 0x6e0   : > { %13471 = vrot.lane.b32.xlu1 %v22244_v19, %s21623_s27 }
 0x6e6   : > { %v18133_v29 = vpop.xlane.xlu1 %4025 }
 0x6ea   : > { %v18135_v31 = vpop.xlane.xlu1 %4028 }
 0x6eb   : > { %v4287_v48 = vsub.f32 %v17913_v4, %v18135_v31  ;;  %v4306_v4 = vsub.f32 %v17835_v37, %v17939_v39  ;;  %v22269_v31 = vld [vmem:[#allocation104_spill] sm:$0xff] }
 0x6ee   : > { %v13452_v36 = vpop.permute.xlu1 %13451 }
 0x6ef   : > { %v13454_v56 = vunpack.i.h.bf16 %v13452_v36  ;;  %v13453_v15 = vunpack.i.l.bf16 %v13452_v36  ;;  %v4066_v36 = vsel %vm3840_vm3, %v18145_v17, -inf }
 0x6f1   : > { %v12617_v2 = vpack.c.bf16 %v13454_v56, %v13453_v15  ;;  %v22247_v15 = vld [vmem:[#allocation37_spill] sm:$0xff] }
 0x6f2   : > { %13476 = vrot.lane.b32.xlu0 %v22245_v34, %s21623_s27  ;;  %v18149_v56 = vadd.f32 %v16613_v41, %v22247_v15  ;;  %v22250_v15 = vld [vmem:[#allocation140_spill] sm:$0xff] }
 0x6f3   : > { %12618 = vmatprep.subr.bf16.mxu1 %v12617_v2  ;;  %v18139_v26 = vpop.xlane.xlu0 %4097 }
 0x6f4   : > { %12620 = vmatpush3.bf16.msra.mxu1 %v12617_v2  ;;  %v4069_v2 = vsel %vm3840_vm3, %v18149_v56, -inf }
 0x6f7   : > { %v18141_v60 = vpop.xlane.xlu0 %4100 }
 0x6fb   : > { %v13457_v3 = vpop.permute.xlu0 %13456 }
 0x6fc   : > { %v13459_v1 = vunpack.i.h.bf16 %v13457_v3  ;;  %v13458_v19 = vunpack.i.l.bf16 %v13457_v3  ;;  %v18161_v3 = vadd.f32 %v16291_v30, %v22249_v14 }
 0x6fe   : > { %v12665_v43 = vpack.c.bf16 %v13459_v1, %v13458_v19  ;;  %v22248_v1 = vld [vmem:[#allocation22_spill] sm:$0xff]  ;;  %v4141_v19 = vsel %vm3840_vm3, %v18161_v3, -inf }
 0x6ff   : > { %v18157_v34 = vadd.f32 %v22248_v1, %v16291_v30 }
 0x700   : > { %12666 = vmatprep.subr.bf16.mxu0 %v12665_v43 }
 0x701   : > { %12668 = vmatpush3.bf16.msra.mxu0 %v12665_v43  ;;  %v4138_v43 = vsel %vm3840_vm3, %v18157_v34, -inf }
 0x704   : > { %4067 = vmax.xlane.f32.xlu1 %v4066_v36 }
 0x708   : > { %4070 = vmax.xlane.f32.xlu1 %v4069_v2 }
 0x711   : > { %4139 = vmax.xlane.f32.xlu0 %v4138_v43 }
 0x715   : > { %4142 = vmax.xlane.f32.xlu0 %v4141_v19 }
 0x719   : > { %13481 = vrot.lane.b32.xlu1 %v22250_v15, %s21623_s27 }
 0x71f   : > { %v18169_v36 = vpop.xlane.xlu1 %4031 }
 0x723   : > { %v18171_v2 = vpop.xlane.xlu1 %4058 }
 0x727   : > { %v13462_v1 = vpop.permute.xlu1 %13461 }
 0x728   : > { %v13464_v50 = vunpack.i.h.bf16 %v13462_v1  ;;  %v13463_v58 = vunpack.i.l.bf16 %v13462_v1 }
 0x72a   : > { %v12621_v14 = vpack.c.bf16 %v13464_v50, %v13463_v58  ;;  %v22253_v58 = vld [vmem:[#allocation81_spill] sm:$0xff] }
 0x72b   : > { %13486 = vrot.lane.b32.xlu0 %v22251_v38, %s21623_s27  ;;  %v18185_v50 = vadd.f32 %v16613_v41, %v22253_v58  ;;  %v4072_v38 = vsel %vm3840_vm3, %v18181_v62, -inf  ;;  %v22256_v58 = vld [vmem:[#allocation20_spill] sm:$0xff] }
 0x72c   : > { %12622 = vmatprep.subr.bf16.mxu1 %v12621_v14  ;;  %v18175_v43 = vpop.xlane.xlu0 %4103 }
 0x72d   : > { %12624 = vmatpush3.bf16.msra.mxu1 %v12621_v14  ;;  %v4075_v1 = vsel %vm3840_vm3, %v18185_v50, -inf }
 0x730   : > { %v18177_v32 = vpop.xlane.xlu0 %4130 }
 0x734   : > { %v13467_v19 = vpop.permute.xlu0 %13466 }
 0x735   : > { %v13469_v5 = vunpack.i.h.bf16 %v13467_v19  ;;  %v13468_v15 = vunpack.i.l.bf16 %v13467_v19  ;;  %v18197_v19 = vadd.f32 %v16291_v30, %v22255_v12 }
 0x737   : > { %v12669_v22 = vpack.c.bf16 %v13469_v5, %v13468_v15  ;;  %v22254_v5 = vld [vmem:[#allocation60_spill] sm:$0xff]  ;;  %v4147_v15 = vsel %vm3840_vm3, %v18197_v19, -inf }
 0x738   : > { %v18193_v14 = vadd.f32 %v22254_v5, %v16291_v30 }
 0x739   : > { %12670 = vmatprep.subr.bf16.mxu0 %v12669_v22 }
 0x73a   : > { %12672 = vmatpush3.bf16.msra.mxu0 %v12669_v22  ;;  %v4144_v22 = vsel %vm3840_vm3, %v18193_v14, -inf }
 0x73d   : > { %4073 = vmax.xlane.f32.xlu1 %v4072_v38 }
 0x741   : > { %4076 = vmax.xlane.f32.xlu1 %v4075_v1 }
 0x74a   : > { %4145 = vmax.xlane.f32.xlu0 %v4144_v22 }
 0x74e   : > { %4148 = vmax.xlane.f32.xlu0 %v4147_v15 }
 0x752   : > { %13491 = vrot.lane.b32.xlu1 %v22256_v58, %s21623_s27 }
 0x758   : > { %v18205_v38 = vpop.xlane.xlu1 %4061 }
 0x75c   : > { %v18207_v1 = vpop.xlane.xlu1 %4064 }
 0x760   : > { %v13472_v5 = vpop.permute.xlu1 %13471 }
 0x761   : > { %v13474_v23 = vunpack.i.h.bf16 %v13472_v5  ;;  %v13473_v25 = vunpack.i.l.bf16 %v13472_v5 }
 0x763   : > { %v12625_v12 = vpack.c.bf16 %v13474_v23, %v13473_v25  ;;  %v22259_v23 = vld [vmem:[#allocation95_spill] sm:$0xff] }
 0x764   : > { %13496 = vrot.lane.b32.xlu0 %v22257_v10, %s21623_s27  ;;  %v18221_v25 = vadd.f32 %v16613_v41, %v22259_v23  ;;  %v4078_v10 = vsel %vm3840_vm3, %v18217_v55, -inf  ;;  %v22262_v23 = vld [vmem:[#allocation67_spill] sm:$0xff] }
 0x765   : > { %12626 = vmatprep.subr.bf16.mxu1 %v12625_v12  ;;  %v18211_v22 = vpop.xlane.xlu0 %4133 }
 0x766   : > { %12628 = vmatpush3.bf16.msra.mxu1 %v12625_v12  ;;  %v4105_v5 = vsel %vm3840_vm3, %v18221_v25, -inf }
 0x769   : > { %v18213_v8 = vpop.xlane.xlu0 %4136 }
 0x76d   : > { %v13477_v15 = vpop.permute.xlu0 %13476 }
 0x76e   : > { %v13479_v49 = vunpack.i.h.bf16 %v13477_v15  ;;  %v13478_v58 = vunpack.i.l.bf16 %v13477_v15  ;;  %v18233_v15 = vadd.f32 %v16291_v30, %v22261_v0 }
 0x770   : > { %v12673_v45 = vpack.c.bf16 %v13479_v49, %v13478_v58  ;;  %v22260_v49 = vld [vmem:[#allocation45_spill] sm:$0xff]  ;;  %v4177_v58 = vsel %vm3840_vm3, %v18233_v15, -inf }
 0x771   : > { %v18229_v12 = vadd.f32 %v22260_v49, %v16291_v30 }
 0x772   : > { %12674 = vmatprep.subr.bf16.mxu0 %v12673_v45 }
 0x773   : > { %12676 = vmatpush3.bf16.msra.mxu0 %v12673_v45  ;;  %v4150_v45 = vsel %vm3840_vm3, %v18229_v12, -inf }
 0x776   : > { %4079 = vmax.xlane.f32.xlu1 %v4078_v10  ;;  %v4282_v10 = vsub.f32 %v17787_v44, %v17933_v16 }
 0x77a   : > { %4106 = vmax.xlane.f32.xlu1 %v4105_v5  ;;  %v4283_v5 = vsub.f32 %v17805_v13, %v17935_v9  ;;  %v4471_v13 = vmul.f32 1.442695, %v4284_v11  ;;  %v4286_v9 = vsub.f32 %v17909_v46, %v18133_v29  ;;  %v4288_v11 = vsub.f32 %v17945_v18, %v18169_v36 }
 0x77b   : > { %v4297_v46 = vsub.f32 %v17949_v28, %v18171_v2 }
 0x77c   : > { %v4479_v36 = vmul.f32 1.442695, %v4288_v11  ;;  %v4311_v11 = vsub.f32 %v17925_v47, %v18141_v60  ;;  %v4312_v47 = vsub.f32 %v17957_v52, %v18175_v43 }
 0x77d   : > { %v4497_v37 = vmul.f32 1.442695, %v4297_v46 }
 0x783   : > { %4151 = vmax.xlane.f32.xlu0 %v4150_v45  ;;  %v4467_v45 = vmul.f32 1.442695, %v4282_v10 }
 0x785   : > { %14022 = vpow2.f32 %v4467_v45  ;;  %v4477_v45 = vmul.f32 1.442695, %v4287_v48 }
 0x787   : > { %4178 = vmax.xlane.f32.xlu0 %v4177_v58  ;;  %v4469_v58 = vmul.f32 1.442695, %v4283_v5 }
 0x789   : > { %14024 = vpow2.f32 %v4469_v58 }
 0x78a   : > { %14026 = vpow2.f32 %v4471_v13 }
 0x78b   : > { %13501 = vrot.lane.b32.xlu1 %v22262_v23, %s21623_s27  ;;  %v4285_v23 = vsub.f32 %v17877_v53, %v17983_v63 }
 0x78d   : > { %v4473_v10 = vmul.f32 1.442695, %v4285_v23  ;;  %v4307_v23 = vsub.f32 %v17847_v40, %v17941_v51  ;;  %v4308_v51 = vsub.f32 %v17885_v27, %v18009_v42 }
 0x78f   : > { %14028 = vpow2.f32 %v4473_v10  ;;  %v18289_v2 = vpop.eup %14022  ;;  %v4517_v10 = vmul.f32 1.442695, %v4307_v23  ;;  %v4519_v42 = vmul.f32 1.442695, %v4308_v51  ;;  %v4321_v51 = vsub.f32 %v17961_v33, %v18177_v32 }
 0x790   : > { %22274 = vst [vmem:[#allocation60_spill] sm:$0xff] %v18289_v2 }
 0x791   : > { %v18245_v49 = vpop.xlane.xlu1 %4067  ;;  %v18247_v0 = vpop.f32.mrb[112].mxu1  ;;  %v4545_v32 = vmul.f32 1.442695, %v4321_v51 }
 0x792   : > { %22263 = vst [vmem:[#allocation89_spill] sm:$0xff] %v18247_v0  ;;  %v18249_v54 = vpop.f32.mrb[113].mxu1 }
 0x793   : > { %22264 = vst [vmem:[#allocation58_spill] sm:$0xff] %v18249_v54  ;;  %v18293_v40 = vpop.eup %14024 }
 0x794   : > { %22275 = vst [vmem:[#allocation21_spill] sm:$0xff] %v18293_v40  ;;  %v18307_v27 = vpop.eup %14026 }
 0x795   : > { %v18255_v21 = vpop.xlane.xlu1 %4070  ;;  %v18257_v44 = vpop.f32.mrb[114].mxu1  ;;  %22278 = vst [vmem:[#allocation55_spill] sm:$0xff] %v18307_v27 }
 0x796   : > { %22265 = vst [vmem:[#allocation76_spill] sm:$0xff] %v18257_v44  ;;  %v18259_v16 = vpop.f32.mrb[115].mxu1  ;;  %v4475_v44 = vmul.f32 1.442695, %v4286_v9  ;;  %v4515_v9 = vmul.f32 1.442695, %v4306_v4 }
 0x797   : > { %22266 = vst [vmem:[#allocation37_spill] sm:$0xff] %v18259_v16 }
 0x798   : > { %14030 = vpow2.f32 %v4475_v44  ;;  %v4309_v44 = vsub.f32 %v17889_v7, %v18027_v24  ;;  %v4310_v7 = vsub.f32 %v17921_v35, %v18139_v26 }
 0x799   : > { %v13482_v61 = vpop.permute.xlu1 %13481  ;;  %v18265_v5 = vpop.f32.mrb[116].mxu1  ;;  %14032 = vpow2.f32 %v4477_v45 }
 0x79a   : > { %22267 = vst [vmem:[#allocation22_spill] sm:$0xff] %v18265_v5  ;;  %v13484_v63 = vunpack.i.h.bf16 %v13482_v61  ;;  %v13483_v53 = vunpack.i.l.bf16 %v13482_v61  ;;  %v18267_v0 = vpop.f32.mrb[117].mxu1  ;;  %14034 = vpow2.f32 %v4479_v36  ;;  %v18311_v24 = vpop.eup %14028  ;;  %v4523_v35 = vmul.f32 1.442695, %v4310_v7  ;;  %v22284_v36 = vld [vmem:[#allocation59_spill] sm:$0xff]  ;;  %v22289_v7 = vld [vmem:[#allocation13_spill] sm:$0xff] }
 0x79b   : > { %22268 = vst [vmem:[#allocation32_spill] sm:$0xff] %v18267_v0  ;;  %14036 = vpow2.f32 %v4497_v37  ;;  %22279 = vst [vmem:[#allocation95_spill] sm:$0xff] %v18311_v24  ;;  %v18331_v37 = vadd.f32 %v22284_v36, %v16613_v41  ;;  %v18349_v33 = vadd.f32 %v16613_v41, %v22289_v7 }
 0x79c   : > { %v12629_v29 = vpack.c.bf16 %v13484_v63, %v13483_v53  ;;  %14038 = vpow2.f32 %v4515_v9  ;;  %v4521_v53 = vmul.f32 1.442695, %v4309_v44  ;;  %v4525_v9 = vmul.f32 1.442695, %v4311_v11 }
 0x79d   : > { %13506 = vrot.lane.b32.xlu0 %v22269_v31, %s21623_s27  ;;  %v18277_v58 = vpop.f32.mrb[118].mxu1  ;;  %14040 = vpow2.f32 %v4517_v10  ;;  %v4527_v44 = vmul.f32 1.442695, %v4312_v47 }
 0x79e   : > { %22270 = vst [vmem:[#allocation140_spill] sm:$0xff] %v18277_v58  ;;  %12630 = vmatprep.subr.bf16.mxu1 %v12629_v29  ;;  %v18281_v13 = vpop.xlane.xlu0 %4139  ;;  %v18283_v18 = vpop.f32.mrb[119].mxu1  ;;  %14042 = vpow2.f32 %v4519_v42  ;;  %v22295_v58 = vld [vmem:[#allocation91_spill] sm:$0xff] }
 0x79f   : > { %22271 = vst [vmem:[#allocation83_spill] sm:$0xff] %v18283_v18  ;;  %v18285_v28 = vpop.f32.mrb[112].mxu0  ;;  %12632 = vmatpush3.bf16.msra.mxu1 %v12629_v29  ;;  %14044 = vpow2.f32 %v4521_v53  ;;  %v4108_v53 = vsel %vm3840_vm3, %v18331_v37, -inf }
 0x7a0   : > { %22272 = vst [vmem:[#allocation15_spill] sm:$0xff] %v18285_v28  ;;  %v18287_v39 = vpop.f32.mrb[113].mxu0  ;;  %14046 = vpow2.f32 %v4523_v35 }
 0x7a1   : > { %22273 = vst [vmem:[#allocation81_spill] sm:$0xff] %v18287_v39  ;;  %14048 = vpow2.f32 %v4525_v9  ;;  %v22302_v39 = vld [vmem:[#allocation68_spill] sm:$0xff] }
 0x7a2   : > { %11766 = vmatmul.mubr.msk.f32.vlgmr.msra.gmra.mrb[120].mxu1 %vm3840_vm3, %v18289_v2  ;;  %v18299_v48 = vpop.xlane.xlu0 %4142  ;;  %v18323_v26 = vpop.eup %14030  ;;  %14050 = vpow2.f32 %v4527_v44 }
 0x7a3   : > { %v18301_v61 = vpop.f32.mrb[114].mxu0  ;;  %11768 = vmatprep.mubr.msk.f32.mxu1 %vm3840_vm3, %v18293_v40  ;;  %22282 = vst [vmem:[#allocation67_spill] sm:$0xff] %v18323_v26  ;;  %v18327_v23 = vpop.eup %14032  ;;  %14052 = vpow2.f32 %v4545_v32  ;;  %v22294_v32 = vld [vmem:[#allocation112_spill] sm:$0xff] }
 0x7a4   : > { %22276 = vst [vmem:[#allocation20_spill] sm:$0xff] %v18301_v61  ;;  %v18305_v63 = vpop.f32.mrb[115].mxu0  ;;  %22283 = vst [vmem:[#allocation104_spill] sm:$0xff] %v18327_v23  ;;  %v18343_v43 = vpop.eup %14034 }
 0x7a5   : > { %22277 = vst [vmem:[#allocation94_spill] sm:$0xff] %v18305_v63  ;;  %22287 = vst [vmem:[#allocation198_spill] sm:$0xff] %v18343_v43  ;;  %v18345_v42 = vpop.eup %14036 }
 0x7a6   : > { %11769 = vmatmul.mubr.msk.f32.gmra.mrb[122].mxu1 %vm3840_vm3, %v18307_v27  ;;  %v13487_v45 = vpop.permute.xlu0 %13486  ;;  %22288 = vst [vmem:[#allocation199_spill] sm:$0xff] %v18345_v42  ;;  %v18355_v11 = vpop.eup %14038 }
 0x7a7   : > { %v18317_v46 = vpop.f32.mrb[116].mxu0  ;;  %v13489_v29 = vunpack.i.h.bf16 %v13487_v45  ;;  %v13488_v4 = vunpack.i.l.bf16 %v13487_v45  ;;  %11771 = vmatprep.mubr.msk.f32.mxu1 %vm3840_vm3, %v18311_v24  ;;  %v18359_v45 = vpop.eup %14040 }
 0x7a8   : > { %22280 = vst [vmem:[#allocation45_spill] sm:$0xff] %v18317_v46  ;;  %v18321_v31 = vpop.f32.mrb[117].mxu0  ;;  %v22296_v46 = vld [vmem:[#allocation71_spill] sm:$0xff] }
 0x7a9   : > { %22281 = vst [vmem:[#allocation24_spill] sm:$0xff] %v18321_v31  ;;  %v12677_v60 = vpack.c.bf16 %v13489_v29, %v13488_v4  ;;  %v4111_v29 = vsel %vm3840_vm3, %v18349_v33, -inf  ;;  %v18367_v4 = vpop.eup %14042  ;;  %v18411_v31 = vadd.f32 %v22296_v46, %v16613_v41 }
 0x7aa   : > { %11772 = vmatmul.mubr.msk.f32.gmra.mrb[124].mxu1 %vm3840_vm3, %v18323_v26  ;;  %v18369_v35 = vpop.eup %14044 }
 0x7ab   : > { %v18337_v10 = vpop.f32.mrb[118].mxu0  ;;  %11774 = vmatprep.mubr.msk.f32.mxu1 %vm3840_vm3, %v18327_v23  ;;  %12678 = vmatprep.subr.bf16.mxu0 %v12677_v60  ;;  %22290 = vst [vmem:[#allocation13_spill] sm:$0xff] %v18369_v35  ;;  %v18375_v47 = vpop.eup %14046 }
 0x7ac   : > { %22285 = vst [vmem:[#allocation59_spill] sm:$0xff] %v18337_v10  ;;  %v18341_v52 = vpop.f32.mrb[119].mxu0  ;;  %12680 = vmatpush3.bf16.msra.mxu0 %v12677_v60  ;;  %v22291_v60 = vld [vmem:[#allocation29_spill] sm:$0xff]  ;;  %v18381_v9 = vpop.eup %14048 }
 0x7ad   : > { %22286 = vst [vmem:[#allocation197_spill] sm:$0xff] %v18341_v52  ;;  %v18379_v36 = vadd.f32 %v22291_v60, %v16291_v30  ;;  %22292 = vst [vmem:[#allocation29_spill] sm:$0xff] %v18381_v9  ;;  %v18387_v51 = vpop.eup %14050 }
 0x7ae   : > { %11775 = vmatmul.mubr.msk.f32.gmra.mrb[126].mxu1 %vm3840_vm3, %v18343_v43  ;;  %22293 = vst [vmem:[#allocation200_spill] sm:$0xff] %v18387_v51  ;;  %v18391_v7 = vpop.eup %14052 }
 0x7af   : > { %4109 = vmax.xlane.f32.xlu1 %v4108_v53  ;;  %11821 = vmatprep.mubr.msk.f32.mxu1 %vm3840_vm3, %v18345_v42  ;;  %v4180_v44 = vsel %vm3840_vm3, %v18379_v36, -inf }
 0x7b0   : > { %11850 = vmatmul.mubr.msk.f32.vlgmr.msra.gmra.mrb[120].mxu0 %vm3840_vm3, %v18355_v11 }
 0x7b1   : > { %11852 = vmatprep.mubr.msk.f32.mxu0 %vm3840_vm3, %v18359_v45 }
 0x7b3   : > { %4112 = vmax.xlane.f32.xlu1 %v4111_v29 }
 0x7b4   : > { %11853 = vmatmul.mubr.msk.f32.gmra.mrb[122].mxu0 %vm3840_vm3, %v18367_v4 }
 0x7b5   : > { %11855 = vmatprep.mubr.msk.f32.mxu0 %vm3840_vm3, %v18369_v35 }
 0x7b8   : > { %11856 = vmatmul.mubr.msk.f32.gmra.mrb[124].mxu0 %vm3840_vm3, %v18375_v47 }
 0x7b9   : > { %11858 = vmatprep.mubr.msk.f32.mxu0 %vm3840_vm3, %v18381_v9 }
 0x7bc   : > { %11859 = vmatmul.mubr.msk.f32.gmra.mrb[126].mxu0 %vm3840_vm3, %v18387_v51  ;;  %4181 = vmax.xlane.f32.xlu0 %v4180_v44 }
 0x7bd   : > { %11905 = vmatprep.mubr.msk.f32.mxu0 %vm3840_vm3, %v18391_v7 }
 0x7c4   : > { %13516 = vrot.lane.b32.xlu1 %v22294_v32, %s21623_s27 }
 0x7ca   : > { %v18399_v53 = vpop.xlane.xlu1 %4073 }
 0x7ce   : > { %v18401_v29 = vpop.xlane.xlu1 %4076 }
 0x7d2   : > { %v13492_v60 = vpop.permute.xlu1 %13491  ;;  %13511 = vrot.lane.b32.xlu0 %v22295_v58, %s21623_s27  ;;  %v4114_v58 = vsel %vm3840_vm3, %v18411_v31, -inf }
 0x7d3   : > { %v13494_v18 = vunpack.i.h.bf16 %v13492_v60  ;;  %v13493_v5 = vunpack.i.l.bf16 %v13492_v60 }
 0x7d5   : > { %v12649_v0 = vpack.c.bf16 %v13494_v18, %v13493_v5  ;;  %v22297_v5 = vld [vmem:[#allocation39_spill] sm:$0xff] }
 0x7d6   : > { %v18417_v18 = vadd.f32 %v16613_v41, %v22297_v5  ;;  %v22300_v5 = vld [vmem:[#allocation119_spill] sm:$0xff] }
 0x7d7   : > { %12650 = vmatprep.subr.bf16.mxu1 %v12649_v0  ;;  %v18405_v16 = vpop.xlane.xlu0 %4145 }
 0x7d8   : > { %12652 = vmatpush3.bf16.msra.mxu1 %v12649_v0  ;;  %v22298_v0 = vld [vmem:[#allocation33_spill] sm:$0xff] }
 0x7d9   : > { %v18421_v60 = vadd.f32 %v16291_v30, %v22298_v0 }
 0x7db   : > { %v18407_v44 = vpop.xlane.xlu0 %4148  ;;  %v4183_v46 = vsel %vm3840_vm3, %v18421_v60, -inf }
 0x7df   : > { %v13497_v54 = vpop.permute.xlu0 %13496 }
 0x7e0   : > { %v13499_v10 = vunpack.i.h.bf16 %v13497_v54  ;;  %v13498_v32 = vunpack.i.l.bf16 %v13497_v54  ;;  %v4117_v54 = vsel %vm3840_vm3, %v18417_v18, -inf }
 0x7e2   : > { %v12697_v52 = vpack.c.bf16 %v13499_v10, %v13498_v32  ;;  %v22299_v10 = vld [vmem:[#allocation144_spill] sm:$0xff] }
 0x7e4   : > { %12698 = vmatprep.subr.bf16.mxu0 %v12697_v52 }
 0x7e5   : > { %12700 = vmatpush3.bf16.msra.mxu0 %v12697_v52 }
 0x7e8   : > { %4115 = vmax.xlane.f32.xlu1 %v4114_v58 }
 0x7f1   : > { %4118 = vmax.xlane.f32.xlu0 %v4117_v54 }
 0x7f5   : > { %4184 = vmax.xlane.f32.xlu0 %v4183_v46  ;;  %v22301_v46 = vld [vmem:[#allocation84_spill] sm:$0xff] }
 0x7f9   : > { %13521 = vrot.lane.b32.xlu1 %v22299_v10, %s21623_s27  ;;  %v18441_v10 = vadd.f32 %v22301_v46, %v16613_v41 }
 0x803   : > { %v18429_v52 = vpop.xlane.xlu1 %4079 }
 0x807   : > { %v18431_v32 = vpop.xlane.xlu1 %4106 }
 0x80b   : > { %v13502_v58 = vpop.permute.xlu1 %13501  ;;  %13526 = vrot.lane.b32.xlu0 %v22300_v5, %s21623_s27  ;;  %v18445_v5 = vadd.f32 %v16613_v41, %v22302_v39  ;;  %v22304_v39 = vld [vmem:[#allocation97_spill] sm:$0xff] }
 0x80c   : > { %v13504_v0 = vunpack.i.h.bf16 %v13502_v58  ;;  %v13503_v43 = vunpack.i.l.bf16 %v13502_v58  ;;  %v22303_v58 = vld [vmem:[#allocation40_spill] sm:$0xff] }
 0x80e   : > { %v12653_v63 = vpack.c.bf16 %v13504_v0, %v13503_v43  ;;  %v4120_v43 = vsel %vm3840_vm3, %v18441_v10, -inf  ;;  %v18453_v0 = vadd.f32 %v22303_v58, %v16291_v30 }
 0x810   : > { %12654 = vmatprep.subr.bf16.mxu1 %v12653_v63  ;;  %v18435_v54 = vpop.xlane.xlu0 %4151 }
 0x811   : > { %12656 = vmatpush3.bf16.msra.mxu1 %v12653_v63  ;;  %v4123_v63 = vsel %vm3840_vm3, %v18445_v5, -inf }
 0x814   : > { %v18437_v23 = vpop.xlane.xlu0 %4178 }
 0x818   : > { %v13507_v61 = vpop.permute.xlu0 %13506 }
 0x819   : > { %v13509_v24 = vunpack.i.h.bf16 %v13507_v61  ;;  %v13508_v26 = vunpack.i.l.bf16 %v13507_v61  ;;  %v4186_v61 = vsel %vm3840_vm3, %v18453_v0, -inf }
 0x81b   : > { %v12701_v28 = vpack.c.bf16 %v13509_v24, %v13508_v26 }
 0x81d   : > { %4121 = vmax.xlane.f32.xlu1 %v4120_v43  ;;  %12702 = vmatprep.subr.bf16.mxu0 %v12701_v28 }
 0x81e   : > { %12704 = vmatpush3.bf16.msra.mxu0 %v12701_v28  ;;  %v22305_v28 = vld [vmem:[#allocation123_spill] sm:$0xff] }
 0x821   : > { %4124 = vmax.xlane.f32.xlu1 %v4123_v63 }
 0x82a   : > { %4187 = vmax.xlane.f32.xlu0 %v4186_v61 }
 0x832   : > { %13536 = vrot.lane.b32.xlu1 %v22304_v39, %s21623_s27  ;;  %v22306_v39 = vld [vmem:[#allocation148_spill] sm:$0xff] }
 0x833   : > { %v18469_v9 = vadd.f32 %v22306_v39, %v16613_v41  ;;  %v4299_v39 = vsub.f32 %v18077_v6, %v18207_v1  ;;  %v22312_v1 = vld [vmem:[#allocation133_spill] sm:$0xff] }
 0x83c   : > { %v18459_v24 = vpop.xlane.xlu1 %4109 }
 0x840   : > { %v18461_v26 = vpop.xlane.xlu1 %4112  ;;  %13531 = vrot.lane.b32.xlu0 %v22305_v28, %s21623_s27  ;;  %v4126_v28 = vsel %vm3840_vm3, %v18469_v9, -inf }
 0x844   : > { %v13517_v46 = vpop.permute.xlu1 %13516 }
 0x845   : > { %v13519_v43 = vunpack.i.h.bf16 %v13517_v46  ;;  %v13518_v63 = vunpack.i.l.bf16 %v13517_v46  ;;  %v22307_v46 = vld [vmem:[#allocation73_spill] sm:$0xff] }
 0x847   : > { %v12705_v40 = vpack.c.bf16 %v13519_v43, %v13518_v63  ;;  %v18475_v43 = vadd.f32 %v16613_v41, %v22307_v46  ;;  %v22308_v63 = vld [vmem:[#allocation65_spill] sm:$0xff]  ;;  %v4300_v46 = vsub.f32 %v18145_v17, %v18245_v49  ;;  %v4303_v17 = vsub.f32 %v18185_v50, %v18401_v29 }
 0x848   : > { %v4313_v50 = vsub.f32 %v18221_v25, %v18431_v32 }
 0x849   : > { %v18465_v58 = vpop.xlane.xlu0 %4181  ;;  %12706 = vmatprep.subr.bf16.mxu0 %v12705_v40 }
 0x84a   : > { %12708 = vmatpush3.bf16.msra.mxu0 %v12705_v40  ;;  %v18479_v40 = vadd.f32 %v16291_v30, %v22308_v63  ;;  %v4501_v63 = vmul.f32 1.442695, %v4299_v39 }
 0x84d   : > { %v13512_v27 = vpop.permute.xlu0 %13511 }
 0x84e   : > { %v13514_v61 = vunpack.i.h.bf16 %v13512_v27  ;;  %v13513_v42 = vunpack.i.l.bf16 %v13512_v27  ;;  %v4153_v27 = vsel %vm3840_vm3, %v18475_v43, -inf }
 0x850   : > { %v12657_v2 = vpack.c.bf16 %v13514_v61, %v13513_v42  ;;  %v4189_v42 = vsel %vm3840_vm3, %v18479_v40, -inf  ;;  %v4298_v61 = vsub.f32 %v18059_v57, %v18205_v38  ;;  %v4302_v57 = vsub.f32 %v18181_v62, %v18399_v53 }
 0x851   : > { %v4304_v62 = vsub.f32 %v18217_v55, %v18429_v52  ;;  %v4509_v53 = vmul.f32 1.442695, %v4303_v17  ;;  %v4529_v52 = vmul.f32 1.442695, %v4313_v50 }
 0x852   : > { %12658 = vmatprep.subr.bf16.mxu1 %v12657_v2  ;;  %v4507_v39 = vmul.f32 1.442695, %v4302_v57 }
 0x853   : > { %12660 = vmatpush3.bf16.msra.mxu1 %v12657_v2  ;;  %v22309_v2 = vld [vmem:[#allocation82_spill] sm:$0xff]  ;;  %v4511_v55 = vmul.f32 1.442695, %v4304_v62  ;;  %v4327_v62 = vsub.f32 %v18197_v19, %v18407_v44  ;;  %v4328_v44 = vsub.f32 %v18229_v12, %v18435_v54 }
 0x856   : > { %4127 = vmax.xlane.f32.xlu1 %v4126_v28  ;;  %v4499_v28 = vmul.f32 1.442695, %v4298_v61 }
 0x858   : > { %14054 = vpow2.f32 %v4499_v28  ;;  %v4322_v28 = vsub.f32 %v18107_v20, %v18211_v22  ;;  %v4324_v20 = vsub.f32 %v18157_v34, %v18281_v13  ;;  %v22322_v34 = vld [vmem:[#allocation70_spill] sm:$0xff] }
 0x859   : > { %14056 = vpow2.f32 %v4501_v63  ;;  %v4323_v63 = vsub.f32 %v18119_v59, %v18213_v8  ;;  %v4325_v59 = vsub.f32 %v18161_v3, %v18299_v48  ;;  %v18547_v13 = vadd.f32 %v22322_v34, %v16613_v41 }
 0x85a   : > { %v4547_v32 = vmul.f32 1.442695, %v4322_v28  ;;  %v4551_v48 = vmul.f32 1.442695, %v4324_v20 }
 0x85b   : > { %v4549_v8 = vmul.f32 1.442695, %v4323_v63 }
 0x85f   : > { %4154 = vmax.xlane.f32.xlu0 %v4153_v27  ;;  %v4301_v27 = vsub.f32 %v18149_v56, %v18255_v21 }
 0x861   : > { %v4505_v6 = vmul.f32 1.442695, %v4301_v27 }
 0x862   : > { %v18525_v25 = vpop.eup %14054 }
 0x863   : > { %4190 = vmax.xlane.f32.xlu0 %v4189_v42  ;;  %22317 = vst [vmem:[#allocation119_spill] sm:$0xff] %v18525_v25  ;;  %v18531_v57 = vpop.eup %14056 }
 0x864   : > { %22319 = vst [vmem:[#allocation68_spill] sm:$0xff] %v18531_v57 }
 0x867   : > { %13541 = vrot.lane.b32.xlu1 %v22309_v2, %s21623_s27  ;;  %v4503_v2 = vmul.f32 1.442695, %v4300_v46 }
 0x869   : > { %14058 = vpow2.f32 %v4503_v2 }
 0x86a   : > { %14060 = vpow2.f32 %v4505_v6 }
 0x86b   : > { %14062 = vpow2.f32 %v4507_v39  ;;  %v4553_v39 = vmul.f32 1.442695, %v4325_v59  ;;  %v4337_v59 = vsub.f32 %v18233_v15, %v18437_v23 }
 0x86c   : > { %14064 = vpow2.f32 %v4509_v53 }
 0x86d   : > { %14066 = vpow2.f32 %v4511_v55  ;;  %v4577_v15 = vmul.f32 1.442695, %v4337_v59 }
 0x86e   : > { %14068 = vpow2.f32 %v4529_v52 }
 0x86f   : > { %14070 = vpow2.f32 %v4547_v32  ;;  %v22330_v32 = vld [vmem:[#allocation17_spill] sm:$0xff] }
 0x870   : > { %14072 = vpow2.f32 %v4549_v8  ;;  %v18577_v20 = vadd.f32 %v16613_v41, %v22330_v32  ;;  %v4557_v8 = vmul.f32 1.442695, %v4327_v62 }
 0x871   : > { %14074 = vpow2.f32 %v4551_v48  ;;  %v4559_v48 = vmul.f32 1.442695, %v4328_v44 }
 0x872   : > { %14076 = vpow2.f32 %v4553_v39  ;;  %v4159_v23 = vsel %vm3840_vm3, %v18577_v20, -inf }
 0x873   : > { %v18551_v3 = vpop.eup %14058 }
 0x874   : > { %22324 = vst [vmem:[#allocation148_spill] sm:$0xff] %v18551_v3 }
 0x875   : > { %v18495_v51 = vpop.xlane.xlu1 %4115  ;;  %v18497_v42 = vpop.f32.mrb[120].mxu1 }
 0x876   : > { %22310 = vst [vmem:[#allocation112_spill] sm:$0xff] %v18497_v42  ;;  %v18499_v35 = vpop.f32.mrb[121].mxu1 }
 0x877   : > { %22311 = vst [vmem:[#allocation91_spill] sm:$0xff] %v18499_v35 }
 0x879   : > { %v13522_v38 = vpop.permute.xlu1 %13521  ;;  %13546 = vrot.lane.b32.xlu0 %v22312_v1, %s21623_s27  ;;  %v18507_v21 = vpop.f32.mrb[122].mxu1 }
 0x87a   : > { %22313 = vst [vmem:[#allocation71_spill] sm:$0xff] %v18507_v21  ;;  %v13524_v56 = vunpack.i.h.bf16 %v13522_v38  ;;  %v13523_v49 = vunpack.i.l.bf16 %v13522_v38  ;;  %v18509_v61 = vpop.f32.mrb[123].mxu1 }
 0x87b   : > { %22314 = vst [vmem:[#allocation39_spill] sm:$0xff] %v18509_v61 }
 0x87c   : > { %v12661_v29 = vpack.c.bf16 %v13524_v56, %v13523_v49  ;;  %v4326_v56 = vsub.f32 %v18193_v14, %v18405_v16  ;;  %v18555_v49 = vpop.eup %14060  ;;  %v4156_v14 = vsel %vm3840_vm3, %v18547_v13, -inf }
 0x87d   : > { %v18517_v46 = vpop.f32.mrb[124].mxu1  ;;  %22325 = vst [vmem:[#allocation73_spill] sm:$0xff] %v18555_v49  ;;  %v18569_v16 = vpop.eup %14062 }
 0x87e   : > { %22315 = vst [vmem:[#allocation33_spill] sm:$0xff] %v18517_v46  ;;  %v18521_v27 = vpop.xlane.xlu0 %4118  ;;  %v18523_v2 = vpop.f32.mrb[125].mxu1  ;;  %12662 = vmatprep.subr.bf16.mxu1 %v12661_v29  ;;  %22328 = vst [vmem:[#allocation133_spill] sm:$0xff] %v18569_v16  ;;  %v4555_v19 = vmul.f32 1.442695, %v4326_v56 }
 0x87f   : > { %22316 = vst [vmem:[#allocation144_spill] sm:$0xff] %v18523_v2  ;;  %12664 = vmatpush3.bf16.msra.mxu1 %v12661_v29  ;;  %v18573_v52 = vpop.eup %14064 }
 0x880   : > { %22329 = vst [vmem:[#allocation70_spill] sm:$0xff] %v18573_v52  ;;  %v18589_v54 = vpop.eup %14066  ;;  %14078 = vpow2.f32 %v4555_v19 }
 0x881   : > { %v18529_v22 = vpop.f32.mrb[126].mxu1  ;;  %22333 = vst [vmem:[#allocation202_spill] sm:$0xff] %v18589_v54  ;;  %v18591_v56 = vpop.eup %14068  ;;  %14080 = vpow2.f32 %v4557_v8 }
 0x882   : > { %22318 = vst [vmem:[#allocation84_spill] sm:$0xff] %v18529_v22  ;;  %11822 = vmatmul.mubr.msk.f32.vlgmr.msra.gmra.mrb[128].mxu1 %vm3840_vm3, %v18525_v25  ;;  %v18537_v6 = vpop.xlane.xlu0 %4184  ;;  %v18539_v17 = vpop.f32.mrb[127].mxu1  ;;  %22334 = vst [vmem:[#allocation203_spill] sm:$0xff] %v18591_v56  ;;  %14082 = vpow2.f32 %v4559_v48  ;;  %v22354_v25 = vld [vmem:[#allocation159_spill] sm:$0xff] }
 0x883   : > { %22320 = vst [vmem:[#allocation40_spill] sm:$0xff] %v18539_v17  ;;  %v18541_v38 = vpop.f32.mrb[120].mxu0  ;;  %11824 = vmatprep.mubr.msk.f32.mxu1 %vm3840_vm3, %v18531_v57  ;;  %v18597_v39 = vpop.eup %14070  ;;  %14084 = vpow2.f32 %v4577_v15  ;;  %v22338_v15 = vld [vmem:[#allocation135_spill] sm:$0xff] }
 0x884   : > { %22321 = vst [vmem:[#allocation97_spill] sm:$0xff] %v18541_v38  ;;  %v18549_v1 = vpop.f32.mrb[121].mxu0 }
 0x885   : > { %22323 = vst [vmem:[#allocation123_spill] sm:$0xff] %v18549_v1 }
 0x886   : > { %11825 = vmatmul.mubr.msk.f32.gmra.mrb[130].mxu1 %vm3840_vm3, %v18551_v3  ;;  %v13527_v53 = vpop.permute.xlu0 %13526 }
 0x887   : > { %v18561_v50 = vpop.f32.mrb[122].mxu0  ;;  %v13529_v29 = vunpack.i.h.bf16 %v13527_v53  ;;  %v13528_v28 = vunpack.i.l.bf16 %v13527_v53  ;;  %11827 = vmatprep.mubr.msk.f32.mxu1 %vm3840_vm3, %v18555_v49  ;;  %v18603_v53 = vpop.eup %14072  ;;  %v22346_v49 = vld [vmem:[#allocation49_spill] sm:$0xff] }
 0x888   : > { %22326 = vst [vmem:[#allocation65_spill] sm:$0xff] %v18561_v50  ;;  %v18565_v63 = vpop.f32.mrb[123].mxu0 }
 0x889   : > { %22327 = vst [vmem:[#allocation82_spill] sm:$0xff] %v18565_v63  ;;  %v12709_v55 = vpack.c.bf16 %v13529_v29, %v13528_v28  ;;  %v18611_v28 = vpop.eup %14074 }
 0x88a   : > { %11828 = vmatmul.mubr.msk.f32.gmra.mrb[132].mxu1 %vm3840_vm3, %v18569_v16  ;;  %v18617_v44 = vpop.eup %14076 }
 0x88b   : > { %v18583_v34 = vpop.f32.mrb[124].mxu0  ;;  %4157 = vmax.xlane.f32.xlu1 %v4156_v14  ;;  %11830 = vmatprep.mubr.msk.f32.mxu1 %vm3840_vm3, %v18573_v52  ;;  %v22337_v14 = vld [vmem:[#allocation48_spill] sm:$0xff] }
 0x88c   : > { %22331 = vst [vmem:[#allocation17_spill] sm:$0xff] %v18583_v34  ;;  %v18587_v12 = vpop.f32.mrb[125].mxu0  ;;  %12710 = vmatprep.subr.bf16.mxu0 %v12709_v55  ;;  %v18615_v19 = vadd.f32 %v22337_v14, %v16291_v30 }
 0x88d   : > { %22332 = vst [vmem:[#allocation201_spill] sm:$0xff] %v18587_v12  ;;  %12712 = vmatpush3.bf16.msra.mxu0 %v12709_v55  ;;  %v18623_v55 = vpop.eup %14078 }
 0x88e   : > { %11831 = vmatmul.mubr.msk.f32.gmra.mrb[134].mxu1 %vm3840_vm3, %v18589_v54  ;;  %v4192_v32 = vsel %vm3840_vm3, %v18615_v19, -inf  ;;  %v18627_v8 = vpop.eup %14080 }
 0x88f   : > { %v18599_v62 = vpop.f32.mrb[126].mxu0  ;;  %4160 = vmax.xlane.f32.xlu1 %v4159_v23  ;;  %11877 = vmatprep.mubr.msk.f32.mxu1 %vm3840_vm3, %v18591_v56  ;;  %v18633_v59 = vpop.eup %14082 }
 0x890   : > { %22335 = vst [vmem:[#allocation204_spill] sm:$0xff] %v18599_v62  ;;  %v18605_v29 = vpop.f32.mrb[127].mxu0  ;;  %11906 = vmatmul.mubr.msk.f32.vlgmr.msra.gmra.mrb[128].mxu0 %vm3840_vm3, %v18597_v39  ;;  %v18635_v48 = vpop.eup %14084 }
 0x891   : > { %22336 = vst [vmem:[#allocation205_spill] sm:$0xff] %v18605_v29  ;;  %11908 = vmatprep.mubr.msk.f32.mxu0 %vm3840_vm3, %v18603_v53 }
 0x894   : > { %11909 = vmatmul.mubr.msk.f32.gmra.mrb[130].mxu0 %vm3840_vm3, %v18611_v28 }
 0x895   : > { %11911 = vmatprep.mubr.msk.f32.mxu0 %vm3840_vm3, %v18617_v44 }
 0x898   : > { %11912 = vmatmul.mubr.msk.f32.gmra.mrb[132].mxu0 %vm3840_vm3, %v18623_v55  ;;  %4193 = vmax.xlane.f32.xlu0 %v4192_v32  ;;  %v22339_v32 = vld [vmem:[#allocation134_spill] sm:$0xff] }
 0x899   : > { %11914 = vmatprep.mubr.msk.f32.mxu0 %vm3840_vm3, %v18627_v8 }
 0x89c   : > { %11915 = vmatmul.mubr.msk.f32.gmra.mrb[134].mxu0 %vm3840_vm3, %v18633_v59 }
 0x89d   : > { %11961 = vmatprep.mubr.msk.f32.mxu0 %vm3840_vm3, %v18635_v48 }
 0x8a0   : > { %13556 = vrot.lane.b32.xlu1 %v22338_v15, %s21623_s27  ;;  %v22340_v15 = vld [vmem:[#allocation85_spill] sm:$0xff] }
 0x8a1   : > { %v18653_v29 = vadd.f32 %v22340_v15, %v16613_v41 }
 0x8aa   : > { %v18643_v23 = vpop.xlane.xlu1 %4121 }
 0x8ae   : > { %v18645_v14 = vpop.xlane.xlu1 %4124  ;;  %13551 = vrot.lane.b32.xlu0 %v22339_v32, %s21623_s27  ;;  %v4162_v32 = vsel %vm3840_vm3, %v18653_v29, -inf }
 0x8b2   : > { %v13537_v22 = vpop.permute.xlu1 %13536 }
 0x8b3   : > { %v13539_v17 = vunpack.i.h.bf16 %v13537_v22  ;;  %v13538_v46 = vunpack.i.l.bf16 %v13537_v22  ;;  %v22341_v22 = vld [vmem:[#allocation99_spill] sm:$0xff] }
 0x8b5   : > { %v12729_v2 = vpack.c.bf16 %v13539_v17, %v13538_v46  ;;  %v18659_v46 = vadd.f32 %v16613_v41, %v22341_v22  ;;  %v22342_v17 = vld [vmem:[#allocation75_spill] sm:$0xff] }
 0x8b7   : > { %v18649_v21 = vpop.xlane.xlu0 %4187  ;;  %12730 = vmatprep.subr.bf16.mxu0 %v12729_v2 }
 0x8b8   : > { %12732 = vmatpush3.bf16.msra.mxu0 %v12729_v2  ;;  %v18663_v2 = vadd.f32 %v16291_v30, %v22342_v17 }
 0x8bb   : > { %v13532_v61 = vpop.permute.xlu0 %13531 }
 0x8bc   : > { %v13534_v42 = vunpack.i.h.bf16 %v13532_v61  ;;  %v13533_v35 = vunpack.i.l.bf16 %v13532_v61  ;;  %v22343_v61 = vld [vmem:[#allocation149_spill] sm:$0xff] }
 0x8be   : > { %v12681_v62 = vpack.c.bf16 %v13534_v42, %v13533_v35  ;;  %v4165_v35 = vsel %vm3840_vm3, %v18659_v46, -inf  ;;  %v4195_v42 = vsel %vm3840_vm3, %v18663_v2, -inf }
 0x8c0   : > { %12682 = vmatprep.subr.bf16.mxu1 %v12681_v62 }
 0x8c1   : > { %12684 = vmatpush3.bf16.msra.mxu1 %v12681_v62 }
 0x8c4   : > { %4163 = vmax.xlane.f32.xlu1 %v4162_v32  ;;  %v22344_v32 = vld [vmem:[#allocation137_spill] sm:$0xff] }
 0x8cd   : > { %4166 = vmax.xlane.f32.xlu0 %v4165_v35 }
 0x8d1   : > { %4196 = vmax.xlane.f32.xlu0 %v4195_v42  ;;  %v22345_v42 = vld [vmem:[#allocation93_spill] sm:$0xff] }
 0x8d2   : > { %v18681_v52 = vadd.f32 %v22345_v42, %v16613_v41  ;;  %v22348_v42 = vld [vmem:[#allocation155_spill] sm:$0xff] }
 0x8d5   : > { %13561 = vrot.lane.b32.xlu1 %v22343_v61, %s21623_s27 }
 0x8e3   : > { %v18671_v62 = vpop.xlane.xlu1 %4127 }
 0x8e7   : > { %v13542_v15 = vpop.permute.xlu1 %13541  ;;  %13566 = vrot.lane.b32.xlu0 %v22344_v32, %s21623_s27  ;;  %v18685_v32 = vadd.f32 %v16613_v41, %v22346_v49 }
 0x8e8   : > { %v13544_v22 = vunpack.i.h.bf16 %v13542_v15  ;;  %v13543_v17 = vunpack.i.l.bf16 %v13542_v15  ;;  %v4168_v15 = vsel %vm3840_vm3, %v18681_v52, -inf }
 0x8ea   : > { %v12685_v34 = vpack.c.bf16 %v13544_v22, %v13543_v17  ;;  %v4171_v17 = vsel %vm3840_vm3, %v18685_v32, -inf }
 0x8ec   : > { %v18675_v12 = vpop.xlane.xlu0 %4154  ;;  %12686 = vmatprep.subr.bf16.mxu1 %v12685_v34 }
 0x8ed   : > { %12688 = vmatpush3.bf16.msra.mxu1 %v12685_v34  ;;  %v22347_v34 = vld [vmem:[#allocation63_spill] sm:$0xff] }
 0x8ee   : > { %v18691_v22 = vadd.f32 %v22347_v34, %v16613_v41  ;;  %v22350_v34 = vld [vmem:[#allocation105_spill] sm:$0xff] }
 0x8f0   : > { %v18677_v35 = vpop.xlane.xlu0 %4190  ;;  %v4174_v49 = vsel %vm3840_vm3, %v18691_v22, -inf }
 0x8f4   : > { %v13547_v61 = vpop.permute.xlu0 %13546 }
 0x8f5   : > { %v13549_v54 = vunpack.i.h.bf16 %v13547_v61  ;;  %v13548_v63 = vunpack.i.l.bf16 %v13547_v61 }
 0x8f7   : > { %v12733_v50 = vpack.c.bf16 %v13549_v54, %v13548_v63  ;;  %v18697_v63 = vadd.f32 %v16613_v41, %v22348_v42  ;;  %v22349_v54 = vld [vmem:[#allocation72_spill] sm:$0xff]  ;;  %v22351_v42 = vld [vmem:[#allocation107_spill] sm:$0xff] }
 0x8f8   : > { %v18703_v61 = vadd.f32 %v22349_v54, %v16291_v30  ;;  %v22352_v30 = vld [vmem:[#allocation103_spill] sm:$0xff] }
 0x8f9   : > { %4169 = vmax.xlane.f32.xlu1 %v4168_v15  ;;  %12734 = vmatprep.subr.bf16.mxu0 %v12733_v50 }
 0x8fa   : > { %12736 = vmatpush3.bf16.msra.mxu0 %v12733_v50  ;;  %v4201_v50 = vsel %vm3840_vm3, %v18697_v63, -inf  ;;  %v4198_v15 = vsel %vm3840_vm3, %v18703_v61, -inf }
 0x8fd   : > { %4172 = vmax.xlane.f32.xlu1 %v4171_v17 }
 0x901   : > { %4175 = vmax.xlane.f32.xlu1 %v4174_v49 }
 0x905   : > { %4202 = vmax.xlane.f32.xlu1 %v4201_v50 }
 0x906   : > { %4199 = vmax.xlane.f32.xlu0 %v4198_v15 }
 0x916   : > { %13576 = vrot.lane.b32.xlu1 %v22350_v34, %s21623_s27 }
 0x918   : > { %v18711_v17 = vpop.xlane.xlu1 %4157 }
 0x91a   : > { %13581 = vrot.lane.b32.xlu1 %v22351_v42, %s21623_s27  ;;  %v22353_v42 = vld [vmem:[#allocation116_spill] sm:$0xff] }
 0x91b   : > { %v18723_v56 = vadd.f32 %v22353_v42, %v16613_v41 }
 0x91c   : > { %v18715_v38 = vpop.xlane.xlu1 %4160  ;;  %13571 = vrot.lane.b32.xlu0 %v22352_v30, %s21623_s27  ;;  %v18727_v30 = vadd.f32 %v16613_v41, %v22354_v25  ;;  %v4314_v25 = vsub.f32 %v18331_v37, %v18459_v24  ;;  %v4318_v37 = vsub.f32 %v18441_v10, %v18643_v23  ;;  %v4320_v23 = vsub.f32 %v18469_v9, %v18671_v62 }
 0x91d   : > { %v4340_v62 = vsub.f32 %v18453_v0, %v18649_v21 }
 0x91e   : > { %v4539_v10 = vmul.f32 1.442695, %v4318_v37  ;;  %v4543_v9 = vmul.f32 1.442695, %v4320_v23 }
 0x91f   : > { %v4583_v0 = vmul.f32 1.442695, %v4340_v62 }
 0x920   : > { %v13557_v49 = vpop.permute.xlu1 %13556 }
 0x921   : > { %v13559_v54 = vunpack.i.h.bf16 %v13557_v49  ;;  %v13558_v50 = vunpack.i.l.bf16 %v13557_v49  ;;  %v4204_v49 = vsel %vm3840_vm3, %v18723_v56, -inf }
 0x923   : > { %v12737_v1 = vpack.c.bf16 %v13559_v54, %v13558_v50  ;;  %v4315_v50 = vsub.f32 %v18349_v33, %v18461_v26  ;;  %v22357_v33 = vld [vmem:[#allocation113_spill] sm:$0xff]  ;;  %v4338_v26 = vsub.f32 %v18379_v36, %v18465_v58  ;;  %v4339_v36 = vsub.f32 %v18421_v60, %v18537_v6 }
 0x924   : > { %v4341_v60 = vsub.f32 %v18479_v40, %v18677_v35 }
 0x925   : > { %v18719_v16 = vpop.xlane.xlu0 %4193  ;;  %12738 = vmatprep.subr.bf16.mxu0 %v12737_v1  ;;  %v4533_v42 = vmul.f32 1.442695, %v4315_v50 }
 0x926   : > { %12740 = vmatpush3.bf16.msra.mxu0 %v12737_v1  ;;  %v22355_v1 = vld [vmem:[#allocation157_spill] sm:$0xff]  ;;  %v4342_v40 = vsub.f32 %v18615_v19, %v18719_v16  ;;  %v4585_v35 = vmul.f32 1.442695, %v4341_v60 }
 0x927   : > { %v18733_v54 = vadd.f32 %v22355_v1, %v16613_v41  ;;  %v22374_v60 = vld [vmem:[#allocation161_spill] sm:$0xff] }
 0x928   : > { %v4587_v19 = vmul.f32 1.442695, %v4342_v40 }
 0x929   : > { %v13552_v15 = vpop.permute.xlu0 %13551 }
 0x92a   : > { %v13554_v34 = vunpack.i.h.bf16 %v13552_v15  ;;  %v13553_v57 = vunpack.i.l.bf16 %v13552_v15  ;;  %v4531_v15 = vmul.f32 1.442695, %v4314_v25 }
 0x92c   : > { %v12689_v3 = vpack.c.bf16 %v13554_v34, %v13553_v57  ;;  %v4207_v57 = vsel %vm3840_vm3, %v18727_v30, -inf  ;;  %v4316_v34 = vsub.f32 %v18411_v31, %v18495_v51  ;;  %14086 = vpow2.f32 %v4531_v15  ;;  %v22360_v15 = vld [vmem:[#allocation141_spill] sm:$0xff] }
 0x92d   : > { %14088 = vpow2.f32 %v4533_v42  ;;  %v4319_v31 = vsub.f32 %v18445_v5, %v18645_v14  ;;  %v4329_v14 = vsub.f32 %v18475_v43, %v18675_v12  ;;  %v4579_v42 = vmul.f32 1.442695, %v4338_v26 }
 0x92e   : > { %12690 = vmatprep.subr.bf16.mxu1 %v12689_v3 }
 0x92f   : > { %12692 = vmatpush3.bf16.msra.mxu1 %v12689_v3  ;;  %v4210_v3 = vsel %vm3840_vm3, %v18733_v54, -inf  ;;  %v4541_v5 = vmul.f32 1.442695, %v4319_v31  ;;  %v4561_v43 = vmul.f32 1.442695, %v4329_v14 }
 0x936   : > { %v18779_v12 = vpop.eup %14086 }
 0x937   : > { %v18785_v37 = vpop.eup %14088 }
 0x93b   : > { %4205 = vmax.xlane.f32.xlu0 %v4204_v49  ;;  %v4317_v49 = vsub.f32 %v18417_v18, %v18521_v27 }
 0x93d   : > { %v4537_v24 = vmul.f32 1.442695, %v4317_v49 }
 0x93e   : > { %4208 = vmax.xlane.f32.xlu1 %v4207_v57  ;;  %v22356_v57 = vld [vmem:[#allocation111_spill] sm:$0xff] }
 0x942   : > { %4211 = vmax.xlane.f32.xlu1 %v4210_v3  ;;  %v4535_v3 = vmul.f32 1.442695, %v4316_v34 }
 0x944   : > { %14090 = vpow2.f32 %v4535_v3  ;;  %v4581_v3 = vmul.f32 1.442695, %v4339_v36 }
 0x945   : > { %14092 = vpow2.f32 %v4537_v24 }
 0x946   : > { %14094 = vpow2.f32 %v4539_v10 }
 0x947   : > { %14096 = vpow2.f32 %v4541_v5 }
 0x948   : > { %14098 = vpow2.f32 %v4579_v42 }
 0x949   : > { %14100 = vpow2.f32 %v4543_v9 }
 0x94a   : > { %14102 = vpow2.f32 %v4561_v43 }
 0x94b   : > { %14104 = vpow2.f32 %v4581_v3 }
 0x94c   : > { %14106 = vpow2.f32 %v4583_v0 }
 0x94d   : > { %14108 = vpow2.f32 %v4585_v35 }
 0x94e   : > { %v18795_v21 = vpop.eup %14090  ;;  %14110 = vpow2.f32 %v4587_v19 }
 0x94f   : > { %v18800_v26 = vpop.eup %14092 }
 0x950   : > { %22366 = vst [vmem:[#allocation137_spill] sm:$0xff] %v18800_v26 }
 0x951   : > { %v18747_v1 = vpop.xlane.xlu1 %4163  ;;  %13586 = vrot.lane.b32.xlu0 %v22356_v57, %s21623_s27 }
 0x953   : > { %13591 = vrot.lane.b32.xlu1 %v22357_v33, %s21623_s27 }
 0x955   : > { %v13562_v51 = vpop.permute.xlu1 %13561  ;;  %v18757_v18 = vpop.f32.mrb[128].mxu1 }
 0x956   : > { %22358 = vst [vmem:[#allocation48_spill] sm:$0xff] %v18757_v18  ;;  %v13564_v27 = vunpack.i.h.bf16 %v13562_v51  ;;  %v13563_v25 = vunpack.i.l.bf16 %v13562_v51  ;;  %v18761_v50 = vpop.f32.mrb[129].mxu1  ;;  %v22383_v18 = vld [vmem:[#allocation124_spill] sm:$0xff] }
 0x957   : > { %22359 = vst [vmem:[#allocation135_spill] sm:$0xff] %v18761_v50  ;;  %13596 = vrot.lane.b32.xlu1 %v22360_v15, %s21623_s27  ;;  %v18812_v15 = vpop.eup %14094 }
 0x958   : > { %v12693_v34 = vpack.c.bf16 %v13564_v27, %v13563_v25 }
 0x959   : > { %v18771_v58 = vpop.f32.mrb[130].mxu1 }
 0x95a   : > { %22361 = vst [vmem:[#allocation134_spill] sm:$0xff] %v18771_v58  ;;  %v18773_v49 = vpop.xlane.xlu0 %4166  ;;  %v18775_v57 = vpop.f32.mrb[131].mxu1  ;;  %12694 = vmatprep.subr.bf16.mxu1 %v12693_v34 }
 0x95b   : > { %22362 = vst [vmem:[#allocation85_spill] sm:$0xff] %v18775_v57  ;;  %12696 = vmatpush3.bf16.msra.mxu1 %v12693_v34  ;;  %v18814_v34 = vpop.eup %14096 }
 0x95c   : > { %22370 = vst [vmem:[#allocation155_spill] sm:$0xff] %v18814_v34  ;;  %v18822_v42 = vpop.eup %14098 }
 0x95d   : > { %v18783_v6 = vpop.f32.mrb[132].mxu1  ;;  %v18826_v62 = vpop.eup %14100 }
 0x95e   : > { %22363 = vst [vmem:[#allocation99_spill] sm:$0xff] %v18783_v6  ;;  %v18787_v33 = vpop.f32.mrb[133].mxu1  ;;  %11878 = vmatmul.mubr.msk.f32.vlgmr.msra.gmra.mrb[136].mxu1 %vm3840_vm3, %v18779_v12  ;;  %v4197_v24 = vpop.xlane.xlu0 %4196  ;;  %22373 = vst [vmem:[#allocation107_spill] sm:$0xff] %v18826_v62  ;;  %v22381_v6 = vld [vmem:[#allocation162_spill] sm:$0xff] }
 0x95f   : > { %22364 = vst [vmem:[#allocation75_spill] sm:$0xff] %v18787_v33  ;;  %11880 = vmatprep.mubr.msk.f32.mxu1 %vm3840_vm3, %v18785_v37  ;;  %v4343_v31 = vsub.f32 %v18663_v2, %v4197_v24  ;;  %v18828_v43 = vpop.eup %14102  ;;  %v18836_v24 = vadd.f32 %v16613_v41, %v22374_v60  ;;  %v18882_v33 = vadd.f32 %v22381_v6, %v16613_v41  ;;  %v22385_v6 = vld [vmem:[#allocation86_spill] sm:$0xff] }
 0x960   : > { %v18832_v3 = vpop.eup %14104 }
 0x961   : > { %v18798_v51 = vpop.f32.mrb[134].mxu1  ;;  %v4589_v5 = vmul.f32 1.442695, %v4343_v31  ;;  %v18848_v35 = vpop.eup %14106 }
 0x962   : > { %22365 = vst [vmem:[#allocation149_spill] sm:$0xff] %v18798_v51  ;;  %v18802_v27 = vpop.f32.mrb[135].mxu1  ;;  %11881 = vmatmul.mubr.msk.f32.gmra.mrb[138].mxu1 %vm3840_vm3, %v18795_v21  ;;  %v13567_v25 = vpop.permute.xlu0 %13566  ;;  %v22380_v51 = vld [vmem:[#allocation163_spill] sm:$0xff] }
 0x963   : > { %22367 = vst [vmem:[#allocation93_spill] sm:$0xff] %v18802_v27  ;;  %v18806_v10 = vpop.f32.mrb[128].mxu0  ;;  %v13569_v23 = vunpack.i.h.bf16 %v13567_v25  ;;  %v13568_v16 = vunpack.i.l.bf16 %v13567_v25  ;;  %11883 = vmatprep.mubr.msk.f32.mxu1 %vm3840_vm3, %v18800_v26  ;;  %14112 = vpow2.f32 %v4589_v5  ;;  %v18850_v31 = vpop.eup %14108 }
 0x964   : > { %22368 = vst [vmem:[#allocation49_spill] sm:$0xff] %v18806_v10  ;;  %v18810_v2 = vpop.f32.mrb[129].mxu0  ;;  %v18862_v19 = vpop.eup %14110  ;;  %v22389_v10 = vld [vmem:[#allocation42_spill] sm:$0xff] }
 0x965   : > { %22369 = vst [vmem:[#allocation63_spill] sm:$0xff] %v18810_v2  ;;  %v12741_v14 = vpack.c.bf16 %v13569_v23, %v13568_v16  ;;  %v4213_v23 = vsel %vm3840_vm3, %v18836_v24, -inf }
 0x966   : > { %11884 = vmatmul.mubr.msk.f32.gmra.mrb[140].mxu1 %vm3840_vm3, %v18812_v15 }
 0x967   : > { %v18818_v36 = vpop.f32.mrb[130].mxu0  ;;  %11886 = vmatprep.mubr.msk.f32.mxu1 %vm3840_vm3, %v18814_v34  ;;  %12742 = vmatprep.subr.bf16.mxu0 %v12741_v14 }
 0x968   : > { %22371 = vst [vmem:[#allocation72_spill] sm:$0xff] %v18818_v36  ;;  %v18824_v9 = vpop.f32.mrb[131].mxu0  ;;  %12744 = vmatpush3.bf16.msra.mxu0 %v12741_v14  ;;  %v22379_v14 = vld [vmem:[#allocation160_spill] sm:$0xff] }
 0x969   : > { %22372 = vst [vmem:[#allocation105_spill] sm:$0xff] %v18824_v9  ;;  %v18872_v60 = vadd.f32 %v22379_v14, %v16613_v41  ;;  %v4222_v14 = vsel %vm3840_vm3, %v18882_v33, -inf }
 0x96a   : > { %11887 = vmatmul.mubr.msk.f32.gmra.mrb[142].mxu1 %vm3840_vm3, %v18826_v62  ;;  %v22388_v62 = vld [vmem:[#allocation53_spill] sm:$0xff] }
 0x96b   : > { %v18838_v0 = vpop.f32.mrb[132].mxu0  ;;  %11933 = vmatprep.mubr.msk.f32.mxu1 %vm3840_vm3, %v18828_v43  ;;  %11962 = vmatmul.mubr.msk.f32.vlgmr.msra.gmra.mrb[136].mxu0 %vm3840_vm3, %v18822_v42  ;;  %v4216_v27 = vsel %vm3840_vm3, %v18872_v60, -inf }
 0x96c   : > { %22375 = vst [vmem:[#allocation103_spill] sm:$0xff] %v18838_v0  ;;  %v18844_v40 = vpop.f32.mrb[133].mxu0  ;;  %11964 = vmatprep.mubr.msk.f32.mxu0 %vm3840_vm3, %v18832_v3  ;;  %v22387_v0 = vld [vmem:[#allocation180_spill] sm:$0xff] }
 0x96d   : > { %22376 = vst [vmem:[#allocation116_spill] sm:$0xff] %v18844_v40  ;;  %v18864_v5 = vpop.eup %14112 }
 0x96f   : > { %v18852_v25 = vpop.f32.mrb[134].mxu0  ;;  %11965 = vmatmul.mubr.msk.f32.gmra.mrb[138].mxu0 %vm3840_vm3, %v18848_v35 }
 0x970   : > { %22377 = vst [vmem:[#allocation159_spill] sm:$0xff] %v18852_v25  ;;  %v18858_v16 = vpop.f32.mrb[135].mxu0  ;;  %4214 = vmax.xlane.f32.xlu0 %v4213_v23  ;;  %11967 = vmatprep.mubr.msk.f32.mxu0 %vm3840_vm3, %v18850_v31  ;;  %v18876_v23 = vadd.f32 %v16613_v41, %v22380_v51  ;;  %v22382_v51 = vld [vmem:[#allocation114_spill] sm:$0xff]  ;;  %v22384_v41 = vld [vmem:[#allocation145_spill] sm:$0xff] }
 0x971   : > { %22378 = vst [vmem:[#allocation157_spill] sm:$0xff] %v18858_v16 }
 0x972   : > { %v4219_v58 = vsel %vm3840_vm3, %v18876_v23, -inf }
 0x973   : > { %11968 = vmatmul.mubr.msk.f32.gmra.mrb[140].mxu0 %vm3840_vm3, %v18862_v19 }
 0x974   : > { %11970 = vmatprep.mubr.msk.f32.mxu0 %vm3840_vm3, %v18864_v5 }
 0x97b   : > { %4217 = vmax.xlane.f32.xlu1 %v4216_v27  ;;  %v4660_v27 = vsel %vm3840_vm3, %v22383_v18, 0.0  ;;  %v4753_v18 = vsel %vm3840_vm3, %v22387_v0, 0.0  ;;  %v4801_v0 = vsel %vm3840_vm3, %v22389_v10, 0.0  ;;  %v4852_v10 = vsel %vm3840_vm3, %v18355_v11, 0.0 }
 0x97f   : > { %4220 = vmax.xlane.f32.xlu1 %v4219_v58  ;;  %v4705_v58 = vsel %vm3840_vm3, %v22385_v6, 0.0  ;;  %v4756_v6 = vsel %vm3840_vm3, %v22388_v62, 0.0  ;;  %v22390_v62 = vld [vmem:[#allocation43_spill] sm:$0xff] }
 0x983   : > { %4223 = vmax.xlane.f32.xlu1 %v4222_v14  ;;  %v22386_v14 = vld [vmem:[#allocation170_spill] sm:$0xff] }
 0x984   : > { %v4708_v16 = vsel %vm3840_vm3, %v22386_v14, 0.0 }
 0x986   : > { %v18888_v57 = vpop.xlane.xlu1 %4169  ;;  %13601 = vrot.lane.b32.xlu0 %v22382_v51, %s21623_s27 }
 0x987   : > { %4661 = vadd.xlane.f32.xlu1 %v4660_v27 }
 0x98a   : > { %v18894_v50 = vpop.xlane.xlu1 %4172  ;;  %13606 = vrot.lane.b32.xlu0 %v22384_v41, %s21623_s27 }
 0x98b   : > { %4706 = vadd.xlane.f32.xlu1 %v4705_v58 }
 0x98e   : > { %v18900_v25 = vpop.xlane.xlu1 %4175 }
 0x98f   : > { %4709 = vadd.xlane.f32.xlu1 %v4708_v16 }
 0x992   : > { %v18904_v51 = vpop.xlane.xlu1 %4202 }
 0x993   : > { %4754 = vadd.xlane.f32.xlu1 %v4753_v18  ;;  %v4200_v27 = vpop.xlane.xlu0 %4199 }
 0x994   : > { %v4344_v40 = vsub.f32 %v18703_v61, %v4200_v27  ;;  %v4804_v27 = vsel %vm3840_vm3, %v22390_v62, 0.0 }
 0x996   : > { %v4591_v41 = vmul.f32 1.442695, %v4344_v40  ;;  %v13577_v34 = vpop.permute.xlu1 %13576 }
 0x997   : > { %v13579_v58 = vunpack.i.h.bf16 %v13577_v34  ;;  %4757 = vadd.xlane.f32.xlu1 %v4756_v6  ;;  %v13572_v9 = vpop.permute.xlu0 %13571  ;;  %v13578_v14 = vunpack.i.l.bf16 %v13577_v34  ;;  %v22392_v6 = vld [vmem:[#allocation38_spill] sm:$0xff] }
 0x998   : > { %14114 = vpow2.f32 %v4591_v41  ;;  %v13574_v16 = vunpack.i.h.bf16 %v13572_v9  ;;  %v13573_v36 = vunpack.i.l.bf16 %v13572_v9  ;;  %v4849_v11 = vsel %vm3840_vm3, %v22392_v6, 0.0 }
 0x999   : > { %v12717_v40 = vpack.c.bf16 %v13579_v58, %v13578_v14  ;;  %v22393_v58 = vld [vmem:[#allocation164_spill] sm:$0xff]  ;;  %v4331_v6 = vsub.f32 %v18577_v20, %v18715_v38  ;;  %v4855_v38 = vsel %vm3840_vm3, %v18359_v45, 0.0  ;;  %v4903_v45 = vsel %vm3840_vm3, %v18603_v53, 0.0 }
 0x99a   : > { %v13582_v26 = vpop.permute.xlu1 %13581  ;;  %v12713_v18 = vpack.c.bf16 %v13574_v16, %v13573_v36  ;;  %v22391_v36 = vld [vmem:[#allocation92_spill] sm:$0xff]  ;;  %v4666_v14 = vsel %vm3840_vm3, %v22393_v58, 0.0  ;;  %v22394_v16 = vld [vmem:[#allocation173_spill] sm:$0xff] }
 0x99b   : > { %4802 = vadd.xlane.f32.xlu1 %v4801_v0  ;;  %v13584_v2 = vunpack.i.h.bf16 %v13582_v26  ;;  %v13583_v61 = vunpack.i.l.bf16 %v13582_v26  ;;  %v4900_v26 = vsel %vm3840_vm3, %v18597_v39, 0.0  ;;  %v4657_v9 = vsel %vm3840_vm3, %v22391_v36, 0.0 }
 0x99c   : > { %12714 = vmatprep.subr.bf16.mxu1 %v12713_v18  ;;  %v4897_v39 = vsel %vm3840_vm3, %v18391_v7, 0.0  ;;  %v4714_v0 = vsel %vm3840_vm3, %v22394_v16, 0.0  ;;  %v4565_v16 = vmul.f32 1.442695, %v4331_v6 }
 0x99d   : > { %12716 = vmatpush3.bf16.msra.mxu1 %v12713_v18  ;;  %v12721_v41 = vpack.c.bf16 %v13584_v2, %v13583_v61  ;;  %v4948_v2 = vsel %vm3840_vm3, %v18822_v42, 0.0  ;;  %v4945_v42 = vsel %vm3840_vm3, %v18635_v48, 0.0  ;;  %v22395_v18 = vld [vmem:[#allocation185_spill] sm:$0xff]  ;;  %v4858_v48 = vsel %vm3840_vm3, %v18367_v4, 0.0 }
 0x99e   : > { %12718 = vmatprep.subr.bf16.mxu1 %v12717_v40  ;;  %v4762_v61 = vsel %vm3840_vm3, %v22395_v18, 0.0 }
 0x99f   : > { %4805 = vadd.xlane.f32.xlu1 %v4804_v27  ;;  %v22397_v27 = vld [vmem:[#allocation193_spill] sm:$0xff] }
 0x9a0   : > { %v4810_v7 = vsel %vm3840_vm3, %v22397_v27, 0.0  ;;  %v4951_v27 = vsel %vm3840_vm3, %v18832_v3, 0.0 }
 0x9a1   : > { %12720 = vmatpush3.bf16.msra.mxu1 %v12717_v40  ;;  %v22396_v40 = vld [vmem:[#allocation115_spill] sm:$0xff] }
 0x9a2   : > { %v18915_v34 = vpop.eup %14114  ;;  %12722 = vmatprep.subr.bf16.mxu1 %v12721_v41  ;;  %v4663_v62 = vsel %vm3840_vm3, %v22396_v40, 0.0 }
 0x9a3   : > { %4853 = vadd.xlane.f32.xlu1 %v4852_v10  ;;  %11971 = vmatmul.mubr.msk.f32.gmra.mrb[142].mxu0 %vm3840_vm3, %v18915_v34 }
 0x9a5   : > { %12724 = vmatpush3.bf16.msra.mxu1 %v12721_v41  ;;  %v22398_v41 = vld [vmem:[#allocation171_spill] sm:$0xff] }
 0x9a6   : > { %v4711_v10 = vsel %vm3840_vm3, %v22398_v41, 0.0 }
 0x9a7   : > { %4901 = vadd.xlane.f32.xlu1 %v4900_v26  ;;  %v22399_v26 = vld [vmem:[#allocation100_spill] sm:$0xff] }
 0x9a8   : > { %v4759_v36 = vsel %vm3840_vm3, %v22399_v26, 0.0  ;;  %v22404_v26 = vld [vmem:[#allocation165_spill] sm:$0xff] }
 0x9a9   : > { %4658 = vadd.xlane.f32.xlu0 %v4657_v9  ;;  %v4330_v9 = vsub.f32 %v18547_v13, %v18711_v17  ;;  %v4333_v13 = vsub.f32 %v18659_v46, %v18773_v49  ;;  %v4334_v17 = vsub.f32 %v18681_v52, %v18888_v57  ;;  %v4335_v46 = vsub.f32 %v18685_v32, %v18894_v50 }
 0x9aa   : > { %v4336_v57 = vsub.f32 %v18691_v22, %v18900_v25  ;;  %v4345_v50 = vsub.f32 %v18697_v63, %v18904_v51  ;;  %v22403_v22 = vld [vmem:[#allocation187_spill] sm:$0xff] }
 0x9ab   : > { %4949 = vadd.xlane.f32.xlu1 %v4948_v2  ;;  %v4906_v2 = vsel %vm3840_vm3, %v18611_v28, 0.0  ;;  %v4563_v4 = vmul.f32 1.442695, %v4330_v9  ;;  %v4571_v52 = vmul.f32 1.442695, %v4334_v17  ;;  %v4768_v25 = vsel %vm3840_vm3, %v22403_v22, 0.0 }
 0x9ac   : > { %v4573_v32 = vmul.f32 1.442695, %v4335_v46  ;;  %v4593_v41 = vmul.f32 1.442695, %v4345_v50  ;;  %v22405_v9 = vld [vmem:[#allocation195_spill] sm:$0xff] }
 0x9ad   : > { %4850 = vadd.xlane.f32.xlu0 %v4849_v11  ;;  %v22400_v11 = vld [vmem:[#allocation192_spill] sm:$0xff]  ;;  %14116 = vpow2.f32 %v4563_v4 }
 0x9ae   : > { %v4807_v58 = vsel %vm3840_vm3, %v22400_v11, 0.0  ;;  %14118 = vpow2.f32 %v4565_v16 }
 0x9af   : > { %4667 = vadd.xlane.f32.xlu1 %v4666_v14  ;;  %v4332_v14 = vsub.f32 %v18653_v29, %v18747_v1  ;;  %v22401_v29 = vld [vmem:[#allocation166_spill] sm:$0xff] }
 0x9b0   : > { %v4672_v1 = vsel %vm3840_vm3, %v22401_v29, 0.0  ;;  %v22407_v29 = vld [vmem:[#allocation186_spill] sm:$0xff] }
 0x9b1   : > { %4898 = vadd.xlane.f32.xlu0 %v4897_v39  ;;  %v4954_v39 = vsel %vm3840_vm3, %v18848_v35, 0.0  ;;  %v4567_v20 = vmul.f32 1.442695, %v4332_v14  ;;  %v4569_v35 = vmul.f32 1.442695, %v4333_v13 }
 0x9b3   : > { %4715 = vadd.xlane.f32.xlu1 %v4714_v0  ;;  %14120 = vpow2.f32 %v4567_v20 }
 0x9b4   : > { %14122 = vpow2.f32 %v4569_v35 }
 0x9b5   : > { %4946 = vadd.xlane.f32.xlu0 %v4945_v42  ;;  %14124 = vpow2.f32 %v4571_v52 }
 0x9b6   : > { %14126 = vpow2.f32 %v4573_v32  ;;  %v22411_v32 = vld [vmem:[#allocation178_spill] sm:$0xff] }
 0x9b7   : > { %4763 = vadd.xlane.f32.xlu1 %v4762_v61  ;;  %v22402_v61 = vld [vmem:[#allocation176_spill] sm:$0xff]  ;;  %v18989_v63 = vpop.eup %14116  ;;  %v4726_v50 = vsel %vm3840_vm3, %v22411_v32, 0.0 }
 0x9b8   : > { %v4720_v40 = vsel %vm3840_vm3, %v22402_v61, 0.0  ;;  %v18993_v3 = vpop.eup %14118 }
 0x9b9   : > { %4664 = vadd.xlane.f32.xlu0 %v4663_v62 }
 0x9bb   : > { %4811 = vadd.xlane.f32.xlu1 %v4810_v7  ;;  %v4575_v7 = vmul.f32 1.442695, %v4336_v57  ;;  %v22410_v57 = vld [vmem:[#allocation168_spill] sm:$0xff] }
 0x9bc   : > { %v4678_v61 = vsel %vm3840_vm3, %v22410_v57, 0.0  ;;  %v4963_v57 = vsel %vm3840_vm3, %v18864_v5, 0.0 }
 0x9bd   : > { %4712 = vadd.xlane.f32.xlu0 %v4711_v10  ;;  %14128 = vpow2.f32 %v4575_v7  ;;  %v22413_v7 = vld [vmem:[#allocation167_spill] sm:$0xff] }
 0x9be   : > { %14130 = vpow2.f32 %v4593_v41  ;;  %v4675_v22 = vsel %vm3840_vm3, %v22413_v7, 0.0  ;;  %v22415_v41 = vld [vmem:[#allocation177_spill] sm:$0xff] }
 0x9bf   : > { %4859 = vadd.xlane.f32.xlu1 %v4858_v48 }
 0x9c1   : > { %4760 = vadd.xlane.f32.xlu0 %v4759_v36  ;;  %v4669_v36 = vsel %vm3840_vm3, %v22404_v26, 0.0 }
 0x9c3   : > { %4907 = vadd.xlane.f32.xlu1 %v4906_v2  ;;  %v4816_v2 = vsel %vm3840_vm3, %v22405_v9, 0.0 }
 0x9c5   : > { %4808 = vadd.xlane.f32.xlu0 %v4807_v58  ;;  %v19001_v58 = vpop.eup %14120 }
 0x9c6   : > { %v19005_v13 = vpop.eup %14122 }
 0x9c7   : > { %4955 = vadd.xlane.f32.xlu1 %v4954_v39  ;;  %v22406_v39 = vld [vmem:[#allocation175_spill] sm:$0xff]  ;;  %v19013_v17 = vpop.eup %14124 }
 0x9c8   : > { %v18963_v28 = vpop.xlane.xlu0 %4205  ;;  %v4717_v16 = vsel %vm3840_vm3, %v22406_v39, 0.0  ;;  %v19017_v35 = vpop.eup %14126 }
 0x9c9   : > { %4856 = vadd.xlane.f32.xlu0 %v4855_v38  ;;  %v4864_v38 = vsel %vm3840_vm3, %v18375_v47, 0.0  ;;  %v4912_v47 = vsel %vm3840_vm3, %v18623_v55, 0.0  ;;  %v19025_v46 = vpop.eup %14128  ;;  %v22409_v55 = vld [vmem:[#allocation13_spill] sm:$0xff]  ;;  %v4346_v9 = vsub.f32 %v18723_v56, %v18963_v28 }
 0x9ca   : > { %v4861_v52 = vsel %vm3840_vm3, %v22409_v55, 0.0  ;;  %v22419_v28 = vld [vmem:[#allocation29_spill] sm:$0xff] }
 0x9cb   : > { %v18973_v49 = vpop.xlane.xlu1 %4208  ;;  %4673 = vadd.xlane.f32.xlu1 %v4672_v1  ;;  %v4765_v1 = vsel %vm3840_vm3, %v22407_v29, 0.0  ;;  %v4595_v39 = vmul.f32 1.442695, %v4346_v9  ;;  %v22420_v29 = vld [vmem:[#allocation74_spill] sm:$0xff] }
 0x9cc   : > { %v13587_v0 = vpop.permute.xlu0 %13586 }
 0x9cd   : > { %v13589_v42 = vunpack.i.h.bf16 %v13587_v0  ;;  %v13588_v18 = vunpack.i.l.bf16 %v13587_v0  ;;  %4904 = vadd.xlane.f32.xlu0 %v4903_v45  ;;  %v22408_v0 = vld [vmem:[#allocation194_spill] sm:$0xff]  ;;  %14132 = vpow2.f32 %v4595_v39 }
 0x9ce   : > { %v4813_v45 = vsel %vm3840_vm3, %v22408_v0, 0.0 }
 0x9cf   : > { %v18983_v62 = vpop.xlane.xlu1 %4211  ;;  %4721 = vadd.xlane.f32.xlu1 %v4720_v40  ;;  %v12725_v53 = vpack.c.bf16 %v13589_v42, %v13588_v18  ;;  %v19029_v42 = vpop.eup %14130  ;;  %v4960_v18 = vsel %vm3840_vm3, %v18862_v19, 0.0  ;;  %v4909_v40 = vsel %vm3840_vm3, %v18617_v44, 0.0  ;;  %v4957_v19 = vsel %vm3840_vm3, %v18850_v31, 0.0 }
 0x9d1   : > { %4952 = vadd.xlane.f32.xlu0 %v4951_v27  ;;  %12726 = vmatprep.subr.bf16.mxu1 %v12725_v53 }
 0x9d2   : > { %12728 = vmatpush3.bf16.msra.mxu1 %v12725_v53  ;;  %v22412_v53 = vld [vmem:[#allocation188_spill] sm:$0xff] }
 0x9d3   : > { %v13592_v10 = vpop.permute.xlu1 %13591  ;;  %4769 = vadd.xlane.f32.xlu1 %v4768_v25  ;;  %v4774_v27 = vsel %vm3840_vm3, %v22412_v53, 0.0  ;;  %v22414_v25 = vld [vmem:[#allocation196_spill] sm:$0xff]  ;;  %v22423_v53 = vld [vmem:[#allocation169_spill] sm:$0xff] }
 0x9d4   : > { %v13594_v51 = vunpack.i.h.bf16 %v13592_v10  ;;  %v13593_v48 = vunpack.i.l.bf16 %v13592_v10  ;;  %v4822_v44 = vsel %vm3840_vm3, %v22414_v25, 0.0  ;;  %v4723_v10 = vsel %vm3840_vm3, %v22415_v41, 0.0 }
 0x9d5   : > { %4670 = vadd.xlane.f32.xlu0 %v4669_v36  ;;  %11934 = vmatmul.mubr.msk.f32.vlgmr.msra.gmra.mrb[144].mxu1 %vm3840_vm3, %v18989_v63  ;;  %v4918_v36 = vsel %vm3840_vm3, %v18633_v59, 0.0 }
 0x9d6   : > { %11936 = vmatprep.mubr.msk.f32.mxu1 %vm3840_vm3, %v18993_v3  ;;  %v12745_v6 = vpack.c.bf16 %v13594_v51, %v13593_v48  ;;  %v22416_v51 = vld [vmem:[#allocation200_spill] sm:$0xff]  ;;  %v22417_v48 = vld [vmem:[#allocation31_spill] sm:$0xff] }
 0x9d7   : > { %v13597_v11 = vpop.permute.xlu1 %13596  ;;  %4817 = vadd.xlane.f32.xlu1 %v4816_v2  ;;  %v4870_v31 = vsel %vm3840_vm3, %v22416_v51, 0.0  ;;  %v4771_v26 = vsel %vm3840_vm3, %v22417_v48, 0.0  ;;  %v4347_v2 = vsub.f32 %v18727_v30, %v18973_v49  ;;  %v14133_v7 = vpop.eup %14132 }
 0x9d8   : > { %v13599_v4 = vunpack.i.h.bf16 %v13597_v11  ;;  %v13598_v14 = vunpack.i.l.bf16 %v13597_v11  ;;  %12746 = vmatprep.subr.bf16.mxu1 %v12745_v6  ;;  %v4972_v39 = vsel %vm3840_vm3, %v14133_v7, 0.0 }
 0x9d9   : > { %4718 = vadd.xlane.f32.xlu0 %v4717_v16  ;;  %11937 = vmatmul.mubr.msk.f32.gmra.mrb[146].mxu1 %vm3840_vm3, %v19001_v58  ;;  %v4348_v16 = vsub.f32 %v18733_v54, %v18983_v62  ;;  %v4597_v59 = vmul.f32 1.442695, %v4347_v2  ;;  %v4915_v54 = vsel %vm3840_vm3, %v18627_v8, 0.0  ;;  %v22426_v2 = vld [vmem:[#allocation191_spill] sm:$0xff] }
 0x9da   : > { %12748 = vmatpush3.bf16.msra.mxu1 %v12745_v6  ;;  %11939 = vmatprep.mubr.msk.f32.mxu1 %vm3840_vm3, %v19005_v13  ;;  %v12749_v20 = vpack.c.bf16 %v13599_v4, %v13598_v14  ;;  %v22418_v6 = vld [vmem:[#allocation16_spill] sm:$0xff]  ;;  %v4966_v14 = vsel %vm3840_vm3, %v18915_v34, 0.0 }
 0x9db   : > { %4865 = vadd.xlane.f32.xlu1 %v4864_v38  ;;  %v4819_v11 = vsel %vm3840_vm3, %v22418_v6, 0.0  ;;  %v4867_v38 = vsel %vm3840_vm3, %v22419_v28, 0.0  ;;  %v4599_v34 = vmul.f32 1.442695, %v4348_v16  ;;  %14134 = vpow2.f32 %v4597_v59  ;;  %v22429_v28 = vld [vmem:[#allocation46_spill] sm:$0xff] }
 0x9dc   : > { %12750 = vmatprep.subr.bf16.mxu1 %v12749_v20  ;;  %v4777_v6 = vsel %vm3840_vm3, %v22426_v2, 0.0 }
 0x9dd   : > { %4766 = vadd.xlane.f32.xlu0 %v4765_v1  ;;  %11940 = vmatmul.mubr.msk.f32.gmra.mrb[148].mxu1 %vm3840_vm3, %v19013_v17  ;;  %v4684_v1 = vsel %vm3840_vm3, %v22420_v29, 0.0  ;;  %14136 = vpow2.f32 %v4599_v34  ;;  %v4921_v29 = vsel %vm3840_vm3, %v18828_v43, 0.0 }
 0x9de   : > { %12752 = vmatpush3.bf16.msra.mxu1 %v12749_v20  ;;  %11942 = vmatprep.mubr.msk.f32.mxu1 %vm3840_vm3, %v19017_v35 }
 0x9df   : > { %4913 = vadd.xlane.f32.xlu1 %v4912_v47 }
 0x9e1   : > { %4814 = vadd.xlane.f32.xlu0 %v4813_v45  ;;  %11943 = vmatmul.mubr.msk.f32.gmra.mrb[150].mxu1 %vm3840_vm3, %v19025_v46 }
 0x9e2   : > { %11989 = vmatprep.mubr.msk.f32.mxu1 %vm3840_vm3, %v19029_v42 }
 0x9e3   : > { %4961 = vadd.xlane.f32.xlu1 %v4960_v18  ;;  %v22421_v18 = vld [vmem:[#allocation19_spill] sm:$0xff] }
 0x9e4   : > { %v4732_v55 = vsel %vm3840_vm3, %v22421_v18, 0.0  ;;  %v22433_v18 = vld [vmem:[#allocation55_spill] sm:$0xff] }
 0x9e5   : > { %4862 = vadd.xlane.f32.xlu0 %v4861_v52  ;;  %v19088_v5 = vpop.eup %14134  ;;  %v4786_v43 = vsel %vm3840_vm3, %v22433_v18, 0.0 }
 0x9e7   : > { %4679 = vadd.xlane.f32.xlu1 %v4678_v61 }
 0x9e9   : > { %4910 = vadd.xlane.f32.xlu0 %v4909_v40  ;;  %v22422_v40 = vld [vmem:[#allocation60_spill] sm:$0xff] }
 0x9ea   : > { %v4780_v32 = vsel %vm3840_vm3, %v22422_v40, 0.0 }
 0x9eb   : > { %4727 = vadd.xlane.f32.xlu1 %v4726_v50 }
 0x9ed   : > { %4958 = vadd.xlane.f32.xlu0 %v4957_v19 }
 0x9ef   : > { %4775 = vadd.xlane.f32.xlu1 %v4774_v27  ;;  %v4681_v27 = vsel %vm3840_vm3, %v22423_v53, 0.0 }
 0x9f1   : > { %4676 = vadd.xlane.f32.xlu0 %v4675_v22 }
 0x9f3   : > { %4823 = vadd.xlane.f32.xlu1 %v4822_v44 }
 0x9f5   : > { %4724 = vadd.xlane.f32.xlu0 %v4723_v10  ;;  %v22425_v10 = vld [vmem:[#allocation47_spill] sm:$0xff] }
 0x9f6   : > { %v4729_v51 = vsel %vm3840_vm3, %v22425_v10, 0.0  ;;  %v22439_v10 = vld [vmem:[#allocation21_spill] sm:$0xff] }
 0x9f7   : > { %4871 = vadd.xlane.f32.xlu1 %v4870_v31  ;;  %v19097_v31 = vpop.eup %14136 }
 0x9f9   : > { %4772 = vadd.xlane.f32.xlu0 %v4771_v26  ;;  %v4876_v26 = vsel %vm3840_vm3, %v18779_v12, 0.0  ;;  %v22427_v12 = vld [vmem:[#allocation199_spill] sm:$0xff] }
 0x9fb   : > { %4919 = vadd.xlane.f32.xlu1 %v4918_v36 }
 0x9fd   : > { %4820 = vadd.xlane.f32.xlu0 %v4819_v11  ;;  %v4215_v4 = vpop.xlane.xlu0 %4214 }
 0x9fe   : > { %v4349_v56 = vsub.f32 %v18836_v24, %v4215_v4 }
 0x9ff   : > { %4967 = vadd.xlane.f32.xlu1 %v4966_v14  ;;  %v4825_v14 = vsel %vm3840_vm3, %v22427_v12, 0.0  ;;  %v22442_v12 = vld [vmem:[#allocation68_spill] sm:$0xff] }
 0xa00   : > { %v4601_v47 = vmul.f32 1.442695, %v4349_v56 }
 0xa01   : > { %4868 = vadd.xlane.f32.xlu0 %v4867_v38  ;;  %v13602_v30 = vpop.permute.xlu0 %13601  ;;  %v4690_v38 = vsel %vm3840_vm3, %v22429_v28, 0.0  ;;  %v4978_v28 = vsel %vm3840_vm3, %v19097_v31, 0.0 }
 0xa02   : > { %v13604_v49 = vunpack.i.h.bf16 %v13602_v30  ;;  %v13603_v20 = vunpack.i.l.bf16 %v13602_v30  ;;  %14138 = vpow2.f32 %v4601_v47  ;;  %v22431_v47 = vmov 0.0  }
 0xa03   : > { %4685 = vadd.xlane.f32.xlu1 %v4684_v1  ;;  %v22430_v1 = vld [vmem:[#allocation54_spill] sm:$0xff] }
 0xa04   : > { %v12753_v62 = vpack.c.bf16 %v13604_v49, %v13603_v20 }
 0xa05   : > { %4916 = vadd.xlane.f32.xlu0 %v4915_v54  ;;  %v13607_v24 = vpop.permute.xlu0 %13606  ;;  %v22432_v54 = vld [vmem:[#allocation152_spill] sm:$0xff] }
 0xa06   : > { %v13609_v0 = vunpack.i.h.bf16 %v13607_v24  ;;  %v13608_v45 = vunpack.i.l.bf16 %v13607_v24  ;;  %12754 = vmatprep.subr.bf16.mxu1 %v12753_v62 }
 0xa07   : > { %4733 = vadd.xlane.f32.xlu1 %v4732_v55  ;;  %12756 = vmatpush3.bf16.msra.mxu1 %v12753_v62  ;;  %v4738_v62 = vsel %vm3840_vm3, %v22432_v54, 0.0 }
 0xa08   : > { %v4218_v52 = vpop.xlane.xlu1 %4217  ;;  %v12757_v61 = vpack.c.bf16 %v13609_v0, %v13608_v45  ;;  %v4969_v0 = vsel %vm3840_vm3, %v19029_v42, 0.0  ;;  %v22437_v42 = vld [vmem:[#allocation148_spill] sm:$0xff] }
 0xa09   : > { %v4350_v8 = vsub.f32 %v18872_v60, %v4218_v52  ;;  %4964 = vadd.xlane.f32.xlu0 %v4963_v57  ;;  %v22424_v60 = vld [vmem:[#allocation119_spill] sm:$0xff]  ;;  %v22434_v57 = vld [vmem:[#allocation26_spill] sm:$0xff] }
 0xa0a   : > { %12758 = vmatprep.subr.bf16.mxu1 %v12757_v61  ;;  %v4828_v25 = vsel %vm3840_vm3, %v22424_v60, 0.0 }
 0xa0b   : > { %v4603_v50 = vmul.f32 1.442695, %v4350_v8  ;;  %4781 = vadd.xlane.f32.xlu1 %v4780_v32  ;;  %12760 = vmatpush3.bf16.msra.mxu1 %v12757_v61  ;;  %v4687_v61 = vsel %vm3840_vm3, %v22434_v57, 0.0  ;;  %v22435_v8 = vld [vmem:[#allocation57_spill] sm:$0xff]  ;;  %v22436_v32 = vld [vmem:[#allocation102_spill] sm:$0xff] }
 0xa0c   : > { %v4221_v19 = vpop.xlane.xlu1 %4220  ;;  %v19100_v48 = vpop.eup %14138 }
 0xa0d   : > { %14140 = vpow2.f32 %v4603_v50  ;;  %v4351_v22 = vsub.f32 %v18876_v23, %v4221_v19  ;;  %4682 = vadd.xlane.f32.xlu0 %v4681_v27  ;;  %v4834_v19 = vsel %vm3840_vm3, %v22437_v42, 0.0 }
 0xa0e   : > { %11990 = vmatmul.mubr.msk.f32.vlgmr.msra.gmra.mrb[152].mxu1 %vm3840_vm3, %v14133_v7  ;;  %v22438_v7 = vld [vmem:[#allocation52_spill] sm:$0xff] }
 0xa0f   : > { %v4605_v44 = vmul.f32 1.442695, %v4351_v22  ;;  %4829 = vadd.xlane.f32.xlu1 %v4828_v25  ;;  %11992 = vmatprep.mubr.msk.f32.mxu1 %vm3840_vm3, %v19088_v5  ;;  %v4735_v22 = vsel %vm3840_vm3, %v22438_v7, 0.0  ;;  %v4882_v25 = vsel %vm3840_vm3, %v18795_v21, 0.0  ;;  %v4930_v21 = vsel %vm3840_vm3, %v19001_v58, 0.0 }
 0xa10   : > { %v4224_v41 = vpop.xlane.xlu1 %4223 }
 0xa11   : > { %14142 = vpow2.f32 %v4605_v44  ;;  %v4352_v23 = vsub.f32 %v18882_v33, %v4224_v41  ;;  %4730 = vadd.xlane.f32.xlu0 %v4729_v51  ;;  %v4924_v33 = vsel %vm3840_vm3, %v18989_v63, 0.0  ;;  %v22428_v63 = vld [vmem:[#allocation203_spill] sm:$0xff]  ;;  %v4783_v51 = vsel %vm3840_vm3, %v22439_v10, 0.0 }
 0xa12   : > { %11993 = vmatmul.mubr.msk.f32.gmra.mrb[154].mxu1 %vm3840_vm3, %v19097_v31  ;;  %v4873_v56 = vsel %vm3840_vm3, %v22428_v63, 0.0 }
 0xa13   : > { %v4607_v36 = vmul.f32 1.442695, %v4352_v23  ;;  %4877 = vadd.xlane.f32.xlu1 %v4876_v26  ;;  %11995 = vmatprep.mubr.msk.f32.mxu1 %vm3840_vm3, %v19100_v48  ;;  %v22440_v23 = vld [vmem:[#allocation146_spill] sm:$0xff] }
 0xa14   : > { %v4662_v9 = vpop.xlane.xlu1 %4661 }
 0xa15   : > { %14144 = vpow2.f32 %v4607_v36  ;;  %4778 = vadd.xlane.f32.xlu0 %v4777_v6  ;;  %v22441_v36 = vld [vmem:[#allocation110_spill] sm:$0xff] }
 0xa16   : > { %14146 = vrcp.f32 %v4662_v9 }
 0xa17   : > { %v19112_v11 = vpop.eup %14140  ;;  %4925 = vadd.xlane.f32.xlu1 %v4924_v33 }
 0xa18   : > { %v4707_v4 = vpop.xlane.xlu1 %4706  ;;  %11996 = vmatmul.mubr.msk.f32.gmra.mrb[156].mxu1 %vm3840_vm3, %v19112_v11 }
 0xa19   : > { %4826 = vadd.xlane.f32.xlu0 %v4825_v14  ;;  %14148 = vrcp.f32 %v4707_v4  ;;  %v4831_v14 = vsel %vm3840_vm3, %v22442_v12, 0.0 }
 0xa1b   : > { %v19119_v16 = vpop.eup %14142  ;;  %4973 = vadd.xlane.f32.xlu1 %v4972_v39 }
 0xa1c   : > { %v4710_v59 = vpop.xlane.xlu1 %4709  ;;  %11998 = vmatprep.mubr.msk.f32.mxu1 %vm3840_vm3, %v19119_v16 }
 0xa1d   : > { %14150 = vrcp.f32 %v4710_v59  ;;  %4874 = vadd.xlane.f32.xlu0 %v4873_v56 }
 0xa1f   : > { %v19127_v30 = vpop.eup %14144  ;;  %4691 = vadd.xlane.f32.xlu1 %v4690_v38 }
 0xa20   : > { %v14147_v49 = vpop.eup %14146  ;;  %v4755_v20 = vpop.xlane.xlu1 %4754  ;;  %11999 = vmatmul.mubr.msk.f32.gmra.mrb[158].mxu1 %vm3840_vm3, %v19127_v30 }
 0xa21   : > { %4922 = vadd.xlane.f32.xlu0 %v4921_v29  ;;  %v19134_v34 = vmul.f32 %v14147_v49, %v22430_v1  ;;  %8850 = vmatprep.mubr.f32.mxu1 %v22431_v47  ;;  %14152 = vrcp.f32 %v4755_v20  ;;  %v4879_v49 = vsel %vm3840_vm3, %v18785_v37, 0.0  ;;  %v22443_v20 = vld [vmem:[#allocation81_spill] sm:$0xff]  ;;  %v22444_v1 = vld [vmem:[#allocation15_spill] sm:$0xff] }
 0xa22   : > { %v22496_v47 = vld [vmem:[#allocation151_spill] sm:$0xff] }
 0xa23   : > { %4739 = vadd.xlane.f32.xlu1 %v4738_v62  ;;  %v14149_v45 = vpop.eup %14148 }
 0xa24   : > { %v4758_v24 = vpop.xlane.xlu1 %4757  ;;  %v19146_v40 = vmul.f32 %v14149_v45, %v22435_v8 }
 0xa25   : > { %14154 = vrcp.f32 %v4758_v24  ;;  %4970 = vadd.xlane.f32.xlu0 %v4969_v0  ;;  %v22445_v0 = vld [vmem:[#allocation117_spill] sm:$0xff] }
 0xa26   : > { %v4696_v45 = vsel %vm3840_vm3, %v22445_v0, 0.0 }
 0xa27   : > { %v14151_v55 = vpop.eup %14150  ;;  %4787 = vadd.xlane.f32.xlu1 %v4786_v43  ;;  %v4927_v43 = vsel %vm3840_vm3, %v18993_v3, 0.0 }
 0xa28   : > { %v4803_v52 = vpop.xlane.xlu1 %4802  ;;  %v19149_v50 = vmul.f32 %v14151_v55, %v22436_v32 }
 0xa29   : > { %4688 = vadd.xlane.f32.xlu0 %v4687_v61  ;;  %14156 = vrcp.f32 %v4803_v52  ;;  %v22446_v61 = vld [vmem:[#allocation66_spill] sm:$0xff] }
 0xa2a   : > { %v4744_v8 = vsel %vm3840_vm3, %v22446_v61, 0.0  ;;  %v22487_v61 = vld [vmem:[#allocation155_spill] sm:$0xff] }
 0xa2b   : > { %4835 = vadd.xlane.f32.xlu1 %v4834_v19  ;;  %v14153_v60 = vpop.eup %14152 }
 0xa2c   : > { %v4806_v27 = vpop.xlane.xlu1 %4805  ;;  %v19162_v26 = vmul.f32 %v14153_v60, %v22440_v23 }
 0xa2d   : > { %14158 = vrcp.f32 %v4806_v27  ;;  %4736 = vadd.xlane.f32.xlu0 %v4735_v22  ;;  %v4975_v27 = vsel %vm3840_vm3, %v19088_v5, 0.0 }
 0xa2f   : > { %v14155_v44 = vpop.eup %14154  ;;  %4883 = vadd.xlane.f32.xlu1 %v4882_v25  ;;  %v22447_v25 = vld [vmem:[#allocation67_spill] sm:$0xff] }
 0xa30   : > { %v4854_v41 = vpop.xlane.xlu1 %4853  ;;  %v19165_v9 = vmul.f32 %v14155_v44, %v22441_v36  ;;  %v4792_v44 = vsel %vm3840_vm3, %v22447_v25, 0.0  ;;  %v22456_v25 = vld [vmem:[#allocation49_spill] sm:$0xff] }
 0xa31   : > { %v19167_v2 = vpop.f32.mrb[136].mxu1  ;;  %4784 = vadd.xlane.f32.xlu0 %v4783_v51 }
 0xa32   : > { %v19169_v6 = vpop.f32.mrb[137].mxu1 }
 0xa33   : > { %4931 = vadd.xlane.f32.xlu1 %v4930_v21  ;;  %v14157_v39 = vpop.eup %14156  ;;  %v22449_v21 = vld [vmem:[#allocation77_spill] sm:$0xff] }
 0xa34   : > { %v4902_v4 = vpop.xlane.xlu1 %4901  ;;  %v19186_v29 = vmul.f32 %v14157_v39, %v22443_v20 }
 0xa35   : > { %v19177_v59 = vpop.f32.mrb[138].mxu1  ;;  %4832 = vadd.xlane.f32.xlu0 %v4831_v14 }
 0xa36   : > { %v19179_v63 = vpop.f32.mrb[139].mxu1  ;;  %v4659_v56 = vpop.xlane.xlu0 %4658 }
 0xa37   : > { %v14159_v38 = vpop.eup %14158  ;;  %14160 = vrcp.f32 %v4659_v56  ;;  %4979 = vadd.xlane.f32.xlu1 %v4978_v28 }
 0xa38   : > { %14162 = vrcp.f32 %v4854_v41  ;;  %v4950_v58 = vpop.xlane.xlu1 %4949  ;;  %v19189_v54 = vmul.f32 %v14159_v38, %v22444_v1  ;;  %v22448_v41 = vld [vmem:[#allocation136_spill] sm:$0xff]  ;;  %v22450_v38 = vld [vmem:[#allocation133_spill] sm:$0xff] }
 0xa39   : > { %14164 = vrcp.f32 %v4950_v58  ;;  %v19191_v62 = vpop.f32.mrb[140].mxu1  ;;  %4880 = vadd.xlane.f32.xlu0 %v4879_v49  ;;  %v4840_v58 = vsel %vm3840_vm3, %v22450_v38, 0.0  ;;  %v22451_v49 = vld [vmem:[#allocation123_spill] sm:$0xff]  ;;  %v22452_v1 = vld [vmem:[#allocation97_spill] sm:$0xff] }
 0xa3a   : > { %v19193_v24 = vpop.f32.mrb[141].mxu1  ;;  %v4851_v31 = vpop.xlane.xlu0 %4850 }
 0xa3b   : > { %14166 = vrcp.f32 %v4851_v31  ;;  %4697 = vadd.xlane.f32.xlu1 %v4696_v45 }
 0xa3c   : > { %14168 = vrcp.f32 %v4902_v4  ;;  %v4668_v37 = vpop.xlane.xlu1 %4667  ;;  %v4693_v4 = vsel %vm3840_vm3, %v22449_v21, 0.0 }
 0xa3d   : > { %14170 = vrcp.f32 %v4668_v37  ;;  %v19201_v55 = vpop.f32.mrb[142].mxu1  ;;  %4928 = vadd.xlane.f32.xlu0 %v4927_v43  ;;  %v22453_v43 = vld [vmem:[#allocation106_spill] sm:$0xff] }
 0xa3e   : > { %v19203_v52 = vpop.f32.mrb[143].mxu1  ;;  %v4899_v57 = vpop.xlane.xlu0 %4898 }
 0xa3f   : > { %14172 = vrcp.f32 %v4899_v57  ;;  %v11963_v32 = vpop.f32.mrb[136].mxu0  ;;  %4745 = vadd.xlane.f32.xlu1 %v4744_v8  ;;  %v4741_v57 = vsel %vm3840_vm3, %v22453_v43, 0.0  ;;  %v22454_v8 = vld [vmem:[#allocation78_spill] sm:$0xff]  ;;  %v22460_v43 = vld [vmem:[#allocation41_spill] sm:$0xff] }
 0xa40   : > { %v7249_v42 = vpop.f32.mrb[137].mxu0  ;;  %v4716_v19 = vpop.xlane.xlu1 %4715 }
 0xa41   : > { %v14161_v7 = vpop.eup %14160  ;;  %14174 = vrcp.f32 %v4716_v19  ;;  %4976 = vadd.xlane.f32.xlu0 %v4975_v27 }
 0xa42   : > { %v14163_v3 = vpop.eup %14162  ;;  %v4947_v22 = vpop.xlane.xlu0 %4946  ;;  %v19214_v10 = vmul.f32 %v14161_v7, %v22448_v41  ;;  %v4888_v7 = vsel %vm3840_vm3, %v18812_v15, 0.0 }
 0xa43   : > { %v19209_v60 = vpop.f32.mrb[138].mxu0  ;;  %v14165_v51 = vpop.eup %14164  ;;  %14176 = vrcp.f32 %v4947_v22  ;;  %4793 = vadd.xlane.f32.xlu1 %v4792_v44  ;;  %v19232_v31 = vmul.f32 %v14163_v3, %v22452_v1  ;;  %v22455_v3 = vld [vmem:[#allocation63_spill] sm:$0xff] }
 0xa44   : > { %v19216_v23 = vpop.f32.mrb[139].mxu0  ;;  %v19218_v36 = vmul.f32 %v14165_v51, %v11963_v32  ;;  %v4764_v5 = vpop.xlane.xlu1 %4763 }
 0xa45   : > { %v14167_v14 = vpop.eup %14166  ;;  %14178 = vrcp.f32 %v4764_v5  ;;  %4694 = vadd.xlane.f32.xlu0 %v4693_v4  ;;  %v22457_v5 = vld [vmem:[#allocation95_spill] sm:$0xff]  ;;  %v22483_v4 = vld [vmem:[#allocation70_spill] sm:$0xff] }
 0xa46   : > { %v14169_v39 = vpop.eup %14168  ;;  %v4665_v56 = vpop.xlane.xlu0 %4664  ;;  %v19229_v20 = vmul.f32 %v14167_v14, %v22451_v49  ;;  %v4789_v21 = vsel %vm3840_vm3, %v22457_v5, 0.0  ;;  %v22458_v14 = vld [vmem:[#allocation51_spill] sm:$0xff] }
 0xa47   : > { %v19224_v28 = vpop.f32.mrb[140].mxu0  ;;  %v14171_v0 = vpop.eup %14170  ;;  %14180 = vrcp.f32 %v4665_v56  ;;  %4841 = vadd.xlane.f32.xlu1 %v4840_v58  ;;  %v19249_v44 = vmul.f32 %v14169_v39, %v22456_v25  ;;  %v4936_v39 = vsel %vm3840_vm3, %v19013_v17, 0.0  ;;  %v4984_v17 = vsel %vm3840_vm3, %v19112_v11, 0.0  ;;  %v22464_v11 = vld [vmem:[#allocation62_spill] sm:$0xff] }
 0xa48   : > { %v19234_v45 = vpop.f32.mrb[141].mxu0  ;;  %v4812_v37 = vpop.xlane.xlu1 %4811  ;;  %v19241_v32 = vmul.f32 %v14171_v0, %v22454_v8  ;;  %v22459_v0 = vld [vmem:[#allocation73_spill] sm:$0xff] }
 0xa49   : > { %v14173_v19 = vpop.eup %14172  ;;  %14182 = vrcp.f32 %v4812_v37  ;;  %4742 = vadd.xlane.f32.xlu0 %v4741_v57  ;;  %v4837_v37 = vsel %vm3840_vm3, %v22459_v0, 0.0 }
 0xa4a   : > { %v4713_v27 = vpop.xlane.xlu0 %4712  ;;  %v19246_v22 = vmul.f32 %v14173_v19, %v22455_v3 }
 0xa4b   : > { %v14175_v41 = vpop.eup %14174  ;;  %14184 = vrcp.f32 %v4713_v27  ;;  %4889 = vadd.xlane.f32.xlu1 %v4888_v7 }
 0xa4c   : > { %v4860_v51 = vpop.xlane.xlu1 %4859  ;;  %v19256_v56 = vmul.f32 %v14175_v41, %v22458_v14  ;;  %v22462_v41 = vld [vmem:[#allocation137_spill] sm:$0xff] }
 0xa4d   : > { %v14177_v15 = vpop.eup %14176  ;;  %14186 = vrcp.f32 %v4860_v51  ;;  %4790 = vadd.xlane.f32.xlu0 %v4789_v21  ;;  %v4885_v51 = vsel %vm3840_vm3, %v22462_v41, 0.0  ;;  %v22463_v21 = vld [vmem:[#allocation20_spill] sm:$0xff]  ;;  %v22467_v41 = vld [vmem:[#allocation25_spill] sm:$0xff] }
 0xa4e   : > { %v4761_v38 = vpop.xlane.xlu0 %4760  ;;  %v19260_v58 = vmul.f32 %v14177_v15, %v7249_v42  ;;  %v22461_v42 = vld [vmem:[#allocation36_spill] sm:$0xff] }
 0xa4f   : > { %v14179_v49 = vpop.eup %14178  ;;  %14188 = vrcp.f32 %v4761_v38  ;;  %4937 = vadd.xlane.f32.xlu1 %v4936_v39  ;;  %v4702_v39 = vsel %vm3840_vm3, %v22464_v11, 0.0 }
 0xa50   : > { %v4908_v1 = vpop.xlane.xlu1 %4907  ;;  %v19265_v57 = vmul.f32 %v14179_v49, %v22460_v43  ;;  %v22465_v49 = vld [vmem:[#allocation23_spill] sm:$0xff]  ;;  %v4933_v43 = vsel %vm3840_vm3, %v19005_v13, 0.0  ;;  %v4981_v13 = vsel %vm3840_vm3, %v19100_v48, 0.0 }
 0xa51   : > { %v14181_v19 = vpop.eup %14180  ;;  %14190 = vrcp.f32 %v4908_v1  ;;  %4838 = vadd.xlane.f32.xlu0 %v4837_v37  ;;  %v22472_v48 = vld [vmem:[#allocation131_spill] sm:$0xff] }
 0xa52   : > { %v4809_v27 = vpop.xlane.xlu0 %4808  ;;  %v19272_v7 = vmul.f32 %v14181_v19, %v22461_v42  ;;  %v4699_v8 = vsel %vm3840_vm3, %v22472_v48, 0.0 }
 0xa53   : > { %v14183_v3 = vpop.eup %14182  ;;  %14192 = vrcp.f32 %v4809_v27  ;;  %4985 = vadd.xlane.f32.xlu1 %v4984_v17  ;;  %v22466_v27 = vld [vmem:[#allocation65_spill] sm:$0xff] }
 0xa54   : > { %v4956_v25 = vpop.xlane.xlu1 %4955  ;;  %v19279_v14 = vmul.f32 %v14183_v3, %v22463_v21  ;;  %v22468_v21 = vld [vmem:[#allocation109_spill] sm:$0xff] }
 0xa55   : > { %v14185_v15 = vpop.eup %14184  ;;  %4886 = vadd.xlane.f32.xlu0 %v4885_v51  ;;  %v4609_v51 = vsel %vm3840_vm3, %v22467_v41, 0.0  ;;  %v22470_v41 = vld [vmem:[#allocation104_spill] sm:$0xff] }
 0xa56   : > { %v4857_v38 = vpop.xlane.xlu0 %4856  ;;  %v19284_v1 = vmul.f32 %v14185_v15, %v22465_v49  ;;  %v22469_v49 = vld [vmem:[#allocation72_spill] sm:$0xff] }
 0xa57   : > { %v14187_v0 = vpop.eup %14186  ;;  %14194 = vrcp.f32 %v4857_v38  ;;  %4703 = vadd.xlane.f32.xlu1 %v4702_v39 }
 0xa58   : > { %v4674_v37 = vpop.xlane.xlu1 %4673  ;;  %v19291_v17 = vmul.f32 %v14187_v0, %v22466_v27 }
 0xa59   : > { %v14189_v42 = vpop.eup %14188  ;;  %4934 = vadd.xlane.f32.xlu0 %v4933_v43 }
 0xa5a   : > { %v4905_v3 = vpop.xlane.xlu0 %4904  ;;  %v19296_v15 = vmul.f32 %v14189_v42, %v22468_v21  ;;  %v4795_v42 = vsel %vm3840_vm3, %v22470_v41, 0.0  ;;  %v22471_v21 = vld [vmem:[#allocation94_spill] sm:$0xff] }
 0xa5b   : > { %v14191_v38 = vpop.eup %14190  ;;  %14196 = vrcp.f32 %v4905_v3  ;;  %4610 = vadd.xlane.f32.xlu1 %v4609_v51  ;;  %v22474_v41 = vld [vmem:[#allocation82_spill] sm:$0xff] }
 0xa5c   : > { %v4722_v11 = vpop.xlane.xlu1 %4721  ;;  %v19303_v0 = vmul.f32 %v14191_v38, %v22469_v49  ;;  %14198 = vrcp.f32 %v4956_v25 }
 0xa5d   : > { %v14193_v43 = vpop.eup %14192  ;;  %4982 = vadd.xlane.f32.xlu0 %v4981_v13  ;;  %v22473_v13 = vld [vmem:[#allocation198_spill] sm:$0xff] }
 0xa5e   : > { %v4953_v27 = vpop.xlane.xlu0 %4952  ;;  %v19308_v3 = vmul.f32 %v14193_v43, %v22471_v21  ;;  %v4798_v39 = vsel %vm3840_vm3, %v22473_v13, 0.0  ;;  %v22477_v13 = vld [vmem:[#allocation105_spill] sm:$0xff] }
 0xa5f   : > { %14200 = vrcp.f32 %v4953_v27  ;;  %4796 = vadd.xlane.f32.xlu1 %v4795_v42  ;;  %v22475_v27 = vld [vmem:[#allocation27_spill] sm:$0xff] }
 0xa60   : > { %v4770_v51 = vpop.xlane.xlu1 %4769  ;;  %14202 = vrcp.f32 %v4674_v37  ;;  %v4747_v42 = vsel %vm3840_vm3, %v22475_v27, 0.0  ;;  %v22476_v37 = vld [vmem:[#allocation202_spill] sm:$0xff] }
 0xa61   : > { %v14195_v49 = vpop.eup %14194  ;;  %4700 = vadd.xlane.f32.xlu0 %v4699_v8  ;;  %v4846_v38 = vsel %vm3840_vm3, %v22476_v37, 0.0 }
 0xa62   : > { %v4671_v25 = vpop.xlane.xlu0 %4670  ;;  %v19317_v19 = vmul.f32 %v14195_v49, %v22474_v41 }
 0xa63   : > { %14204 = vrcp.f32 %v4671_v25  ;;  %4799 = vadd.xlane.f32.xlu1 %v4798_v39  ;;  %v22478_v25 = vld [vmem:[#allocation190_spill] sm:$0xff] }
 0xa64   : > { %v4818_v43 = vpop.xlane.xlu1 %4817  ;;  %14206 = vrcp.f32 %v4722_v11  ;;  %v4750_v41 = vsel %vm3840_vm3, %v22478_v25, 0.0  ;;  %v22480_v25 = vld [vmem:[#allocation150_spill] sm:$0xff] }
 0xa65   : > { %v14197_v48 = vpop.eup %14196  ;;  %4748 = vadd.xlane.f32.xlu0 %v4747_v42  ;;  %v22479_v42 = vld [vmem:[#allocation107_spill] sm:$0xff]  ;;  %v4612_v27 = vsel %vm3840_vm3, %v22480_v25, 0.0 }
 0xa66   : > { %v4719_v8 = vpop.xlane.xlu0 %4718  ;;  %v19326_v5 = vmul.f32 %v14197_v48, %v22477_v13  ;;  %v14199_v49 = vpop.eup %14198  ;;  %v4894_v37 = vsel %vm3840_vm3, %v22479_v42, 0.0 }
 0xa67   : > { %14208 = vrcp.f32 %v4719_v8  ;;  %4847 = vadd.xlane.f32.xlu1 %v4846_v38  ;;  %v19338_v8 = vmul.f32 %v14199_v49, %v19209_v60  ;;  %v22482_v49 = vld [vmem:[#allocation101_spill] sm:$0xff] }
 0xa68   : > { %v4866_v39 = vpop.xlane.xlu1 %4865  ;;  %14210 = vrcp.f32 %v4770_v51  ;;  %v4843_v51 = vsel %vm3840_vm3, %v22483_v4, 0.0 }
 0xa69   : > { %v14201_v21 = vpop.eup %14200  ;;  %4751 = vadd.xlane.f32.xlu0 %v4750_v41 }
 0xa6a   : > { %v4767_v11 = vpop.xlane.xlu0 %4766  ;;  %v19335_v48 = vmul.f32 %v14201_v21, %v19216_v23  ;;  %v14203_v38 = vpop.eup %14202  ;;  %v4942_v23 = vsel %vm3840_vm3, %v19025_v46, 0.0  ;;  %v22481_v21 = vld [vmem:[#allocation44_spill] sm:$0xff] }
 0xa6b   : > { %14212 = vrcp.f32 %v4767_v11  ;;  %4895 = vadd.xlane.f32.xlu1 %v4894_v37  ;;  %v19350_v11 = vmul.f32 %v14203_v38, %v22482_v49  ;;  %v22486_v49 = vld [vmem:[#allocation87_spill] sm:$0xff] }
 0xa6c   : > { %v4914_v13 = vpop.xlane.xlu1 %4913  ;;  %14214 = vrcp.f32 %v4818_v43  ;;  %v4891_v43 = vsel %vm3840_vm3, %v22487_v61, 0.0 }
 0xa6d   : > { %v14205_v41 = vpop.eup %14204  ;;  %4613 = vadd.xlane.f32.xlu0 %v4612_v27 }
 0xa6e   : > { %v4815_v42 = vpop.xlane.xlu0 %4814  ;;  %v19347_v60 = vmul.f32 %v14205_v41, %v22481_v21  ;;  %v14207_v37 = vpop.eup %14206  ;;  %v4990_v41 = vsel %vm3840_vm3, %v19127_v30, 0.0  ;;  %v22484_v21 = vld [vmem:[#allocation126_spill] sm:$0xff] }
 0xa6f   : > { %14216 = vrcp.f32 %v4815_v42  ;;  %4943 = vadd.xlane.f32.xlu1 %v4942_v23  ;;  %v19362_v42 = vmul.f32 %v14207_v37, %v22486_v49 }
 0xa70   : > { %v4962_v25 = vpop.xlane.xlu1 %4961  ;;  %14218 = vrcp.f32 %v4866_v39 }
 0xa71   : > { %v14209_v27 = vpop.eup %14208  ;;  %4844 = vadd.xlane.f32.xlu0 %v4843_v51 }
 0xa72   : > { %v4863_v46 = vpop.xlane.xlu0 %4862  ;;  %v19359_v38 = vmul.f32 %v14209_v27, %v22484_v21  ;;  %v14211_v23 = vpop.eup %14210  ;;  %v22488_v27 = vld [vmem:[#allocation61_spill] sm:$0xff]  ;;  %v22489_v21 = vld [vmem:[#allocation28_spill] sm:$0xff] }
 0xa73   : > { %14220 = vrcp.f32 %v4863_v46  ;;  %4991 = vadd.xlane.f32.xlu1 %v4990_v41  ;;  %v4618_v37 = vsel %vm3840_vm3, %v22488_v27, 0.0  ;;  %v22491_v46 = vld [vmem:[#allocation147_spill] sm:$0xff]  ;;  %v22493_v27 = vld [vmem:[#allocation120_spill] sm:$0xff] }
 0xa74   : > { %22485 = vst [vmem:[#allocation111_spill] sm:$0xff] %v19359_v38  ;;  %v4680_v4 = vpop.xlane.xlu1 %4679  ;;  %14222 = vrcp.f32 %v4914_v13  ;;  %v19376_v41 = vmul.f32 %v14211_v23, %v22491_v46  ;;  %v4939_v13 = vsel %vm3840_vm3, %v19017_v35, 0.0  ;;  %v4624_v23 = vsel %vm3840_vm3, %v22493_v27, 0.0 }
 0xa75   : > { %v14213_v51 = vpop.eup %14212  ;;  %4892 = vadd.xlane.f32.xlu0 %v4891_v43  ;;  %v4987_v43 = vsel %vm3840_vm3, %v19119_v16, 0.0 }
 0xa76   : > { %v4911_v30 = vpop.xlane.xlu0 %4910  ;;  %v19368_v12 = vpop.f32.mrb[142].mxu0  ;;  %v19373_v49 = vmul.f32 %v14213_v51, %v22489_v21  ;;  %22492 = vst [vmem:[#allocation141_spill] sm:$0xff] %v19376_v41  ;;  %v22494_v21 = vld [vmem:[#allocation24_spill] sm:$0xff] }
 0xa77   : > { %v14215_v18 = vpop.eup %14214  ;;  %14224 = vrcp.f32 %v4911_v30  ;;  %4619 = vadd.xlane.f32.xlu1 %v4618_v37  ;;  %v19378_v61 = vpop.f32.mrb[143].mxu0  ;;  %v22495_v30 = vld [vmem:[#allocation45_spill] sm:$0xff]  ;;  %v22500_v41 = vld [vmem:[#allocation116_spill] sm:$0xff] }
 0xa78   : > { %22490 = vst [vmem:[#allocation113_spill] sm:$0xff] %v19373_v49  ;;  %v4728_v39 = vpop.xlane.xlu1 %4727  ;;  %14226 = vrcp.f32 %v4962_v25  ;;  %v19390_v37 = vmul.f32 %v14215_v18, %v22495_v30  ;;  %v22498_v30 = vld [vmem:[#allocation17_spill] sm:$0xff]  ;;  %v22499_v49 = vld [vmem:[#allocation18_spill] sm:$0xff] }
 0xa79   : > { %v14217_v33 = vpop.eup %14216  ;;  %4940 = vadd.xlane.f32.xlu0 %v4939_v13  ;;  %v4615_v25 = vsel %vm3840_vm3, %v22499_v49, 0.0 }
 0xa7a   : > { %v4959_v51 = vpop.xlane.xlu0 %4958  ;;  %v19387_v46 = vmul.f32 %v14217_v33, %v22494_v21  ;;  %v14219_v53 = vpop.eup %14218  ;;  %v4630_v33 = vsel %vm3840_vm3, %v22496_v47, 0.0  ;;  %v22497_v21 = vld [vmem:[#allocation201_spill] sm:$0xff] }
 0xa7b   : > { %14228 = vrcp.f32 %v4959_v51  ;;  %4625 = vadd.xlane.f32.xlu1 %v4624_v23  ;;  %v19402_v51 = vmul.f32 %v14219_v53, %v22498_v30 }
 0xa7c   : > { %v4776_v35 = vpop.xlane.xlu1 %4775  ;;  %14230 = vrcp.f32 %v4680_v4 }
 0xa7d   : > { %v14221_v13 = vpop.eup %14220  ;;  %4988 = vadd.xlane.f32.xlu0 %v4987_v43 }
 0xa7e   : > { %v4677_v27 = vpop.xlane.xlu0 %4676  ;;  %v19399_v18 = vmul.f32 %v14221_v13, %v22497_v21  ;;  %v14223_v23 = vpop.eup %14222  ;;  %v22502_v21 = vld [vmem:[#allocation103_spill] sm:$0xff] }
 0xa7f   : > { %14232 = vrcp.f32 %v4677_v27  ;;  %4631 = vadd.xlane.f32.xlu1 %v4630_v33  ;;  %v19412_v53 = vmul.f32 %v14223_v23, %v22502_v21  ;;  %v22504_v33 = vld [vmem:[#allocation153_spill] sm:$0xff] }
 0xa80   : > { %v4824_v16 = vpop.xlane.xlu1 %4823  ;;  %14234 = vrcp.f32 %v4728_v39  ;;  %v4621_v38 = vsel %vm3840_vm3, %v22504_v33, 0.0  ;;  %v22510_v33 = vld [vmem:[#allocation122_spill] sm:$0xff] }
 0xa81   : > { %v14225_v43 = vpop.eup %14224  ;;  %4616 = vadd.xlane.f32.xlu0 %v4615_v25  ;;  %22503 = vst [vmem:[#allocation160_spill] sm:$0xff] %v19412_v53 }
 0xa82   : > { %v4725_v47 = vpop.xlane.xlu0 %4724  ;;  %v19409_v13 = vmul.f32 %v14225_v43, %v22500_v41  ;;  %v14227_v30 = vpop.eup %14226 }
 0xa83   : > { %14236 = vrcp.f32 %v4725_v47  ;;  %v19422_v41 = vmul.f32 %v14227_v30, %v19224_v28  ;;  %v22507_v47 = vld [vmem:[#allocation118_spill] sm:$0xff] }
 0xa84   : > { %22501 = vst [vmem:[#allocation161_spill] sm:$0xff] %v19409_v13  ;;  %v4872_v27 = vpop.xlane.xlu1 %4871  ;;  %14238 = vrcp.f32 %v4776_v35  ;;  %v4627_v21 = vsel %vm3840_vm3, %v22507_v47, 0.0  ;;  %v22508_v35 = vld [vmem:[#allocation128_spill] sm:$0xff] }
 0xa85   : > { %v14229_v4 = vpop.eup %14228  ;;  %4622 = vadd.xlane.f32.xlu0 %v4621_v38  ;;  %22506 = vst [vmem:[#allocation162_spill] sm:$0xff] %v19422_v41 }
 0xa86   : > { %v4773_v39 = vpop.xlane.xlu0 %4772  ;;  %v19419_v25 = vmul.f32 %v14229_v4, %v19234_v45  ;;  %v14231_v23 = vpop.eup %14230  ;;  %v22509_v45 = vld [vmem:[#allocation142_spill] sm:$0xff] }
 0xa87   : > { %14240 = vrcp.f32 %v4773_v39  ;;  %v19432_v4 = vmul.f32 %v14231_v23, %v22509_v45  ;;  %v22512_v23 = vpack.i.bf16 %v19149_v50, %v19146_v40  ;;  %v22513_v39 = vld [vmem:[#allocation189_spill] sm:$0xff]  ;;  %v22515_v40 = vpack.i.bf16 %v19165_v9, %v19162_v26 }
 0xa88   : > { %22505 = vst [vmem:[#allocation163_spill] sm:$0xff] %v19419_v25  ;;  %v4920_v43 = vpop.xlane.xlu1 %4919  ;;  %14242 = vrcp.f32 %v4824_v16  ;;  %v22511_v16 = vld [vmem:[#allocation143_spill] sm:$0xff]  ;;  %v22520_v26 = vpack.i.bf16 %v19189_v54, %v19186_v29  ;;  %v22521_v50 = vld [vmem:[#allocation205_spill] sm:$0xff] }
 0xa89   : > { %v14233_v49 = vpop.eup %14232  ;;  %4628 = vadd.xlane.f32.xlu0 %v4627_v21 }
 0xa8a   : > { %v4821_v38 = vpop.xlane.xlu0 %4820  ;;  %v19429_v13 = vmul.f32 %v14233_v49, %v22508_v35  ;;  %v14235_v28 = vpop.eup %14234 }
 0xa8b   : > { %14244 = vrcp.f32 %v4821_v38  ;;  %v19440_v21 = vmul.f32 %v14235_v28, %v22511_v16  ;;  %v22516_v38 = vld [vmem:[#allocation197_spill] sm:$0xff] }
 0xa8c   : > { %v4968_v30 = vpop.xlane.xlu1 %4967  ;;  %14246 = vrcp.f32 %v4872_v27 }
 0xa8d   : > { %v14237_v47 = vpop.eup %14236 }
 0xa8e   : > { %v4869_v53 = vpop.xlane.xlu0 %4868  ;;  %v19437_v25 = vmul.f32 %v14237_v47, %v22510_v33  ;;  %v14239_v49 = vpop.eup %14238  ;;  %v22514_v47 = vld [vmem:[#allocation127_spill] sm:$0xff] }
 0xa8f   : > { %14248 = vrcp.f32 %v4869_v53  ;;  %v19452_v28 = vmul.f32 %v14239_v49, %v22514_v47 }
 0xa90   : > { %v4686_v35 = vpop.xlane.xlu1 %4685  ;;  %13616 = vrot.lane.b32.xlu1 %v22512_v23, %s14547_s25  ;;  %14250 = vrcp.f32 %v4920_v43 }
 0xa91   : > { %v14241_v45 = vpop.eup %14240 }
 0xa92   : > { %v4917_v27 = vpop.xlane.xlu0 %4916  ;;  %v19449_v33 = vmul.f32 %v14241_v45, %v22513_v39  ;;  %v14243_v16 = vpop.eup %14242  ;;  %v22518_v45 = vld [vmem:[#allocation59_spill] sm:$0xff] }
 0xa93   : > { %14252 = vrcp.f32 %v4917_v27  ;;  %v19464_v49 = vmul.f32 %v14243_v16, %v22518_v45 }
 0xa94   : > { %v4734_v53 = vpop.xlane.xlu1 %4733  ;;  %13621 = vrot.lane.b32.xlu1 %v22515_v40, %s14552_s29  ;;  %14254 = vrcp.f32 %v4968_v30 }
 0xa95   : > { %v14245_v23 = vpop.eup %14244  ;;  %22519 = vst [vmem:[#allocation124_spill] sm:$0xff] %v19464_v49 }
 0xa96   : > { %v4965_v43 = vpop.xlane.xlu0 %4964  ;;  %v19461_v39 = vmul.f32 %v14245_v23, %v22516_v38  ;;  %v14247_v47 = vpop.eup %14246  ;;  %v22523_v23 = vld [vmem:[#allocation204_spill] sm:$0xff] }
 0xa97   : > { %14256 = vrcp.f32 %v4965_v43  ;;  %v19476_v16 = vmul.f32 %v14247_v47, %v22523_v23  ;;  %v22529_v47 = vpack.i.bf16 %v19134_v34, %v19214_v10  ;;  %v22532_v34 = vpack.i.bf16 %v19232_v31, %v19229_v20 }
 0xa98   : > { %22517 = vst [vmem:[#allocation114_spill] sm:$0xff] %v19461_v39  ;;  %v4782_v27 = vpop.xlane.xlu1 %4781  ;;  %13626 = vrot.lane.b32.xlu1 %v22520_v26, %s21621_s24  ;;  %14258 = vrcp.f32 %v4686_v35  ;;  %v22525_v26 = vld [vmem:[#allocation157_spill] sm:$0xff]  ;;  %v22527_v35 = vld [vmem:[#allocation159_spill] sm:$0xff]  ;;  %v22537_v20 = vpack.i.bf16 %v19249_v44, %v19246_v22  ;;  %s22576_s24 = smov 64  }
 0xa99   : > { %v14249_v40 = vpop.eup %14248  ;;  %22524 = vst [vmem:[#allocation86_spill] sm:$0xff] %v19476_v16 }
 0xa9a   : > { %v4683_v30 = vpop.xlane.xlu0 %4682  ;;  %v19473_v38 = vmul.f32 %v14249_v40, %v22521_v50  ;;  %v14251_v45 = vpop.eup %14250 }
 0xa9b   : > { %14260 = vrcp.f32 %v4683_v30  ;;  %v19484_v39 = vmul.f32 %v14251_v45, %v22527_v35 }
 0xa9c   : > { %22522 = vst [vmem:[#allocation145_spill] sm:$0xff] %v19473_v38  ;;  %v4830_v43 = vpop.xlane.xlu1 %4829  ;;  %14262 = vrcp.f32 %v4734_v53 }
 0xa9d   : > { %v14253_v29 = vpop.eup %14252  ;;  %22528 = vst [vmem:[#allocation180_spill] sm:$0xff] %v19484_v39 }
 0xa9e   : > { %v4731_v54 = vpop.xlane.xlu0 %4730  ;;  %v19481_v9 = vmul.f32 %v14253_v29, %v22525_v26  ;;  %v14255_v50 = vpop.eup %14254 }
 0xa9f   : > { %14264 = vrcp.f32 %v4731_v54  ;;  %13611 = vrot.lane.b32.xlu0 %v22529_v47, %s14549_s26  ;;  %v19496_v45 = vmul.f32 %v14255_v50, %v19368_v12  ;;  %v22533_v47 = vld [vmem:[#allocation125_spill] sm:$0xff]  ;;  %v22538_v54 = vld [vmem:[#allocation58_spill] sm:$0xff] }
 0xaa0   : > { %22526 = vst [vmem:[#allocation170_spill] sm:$0xff] %v19481_v9  ;;  %v4878_v40 = vpop.xlane.xlu1 %4877  ;;  %14266 = vrcp.f32 %v4782_v27 }
 0xaa1   : > { %v14257_v23 = vpop.eup %14256  ;;  %22531 = vst [vmem:[#allocation42_spill] sm:$0xff] %v19496_v45 }
 0xaa2   : > { %v4779_v53 = vpop.xlane.xlu0 %4778  ;;  %v19493_v29 = vmul.f32 %v14257_v23, %v19378_v61  ;;  %v14259_v26 = vpop.eup %14258  ;;  %v22535_v23 = vld [vmem:[#allocation132_spill] sm:$0xff] }
 0xaa3   : > { %14268 = vrcp.f32 %v4779_v53  ;;  %13631 = vrot.lane.b32.xlu0 %v22532_v34, %s14548_s15  ;;  %v19508_v12 = vmul.f32 %v14259_v26, %v22535_v23  ;;  %v22540_v23 = vld [vmem:[#allocation89_spill] sm:$0xff] }
 0xaa4   : > { %22530 = vst [vmem:[#allocation53_spill] sm:$0xff] %v19493_v29  ;;  %v4926_v10 = vpop.xlane.xlu1 %4925  ;;  %14270 = vrcp.f32 %v4830_v43  ;;  %v22542_v29 = vld [vmem:[#allocation91_spill] sm:$0xff] }
 0xaa5   : > { %v14261_v35 = vpop.eup %14260  ;;  %22536 = vst [vmem:[#allocation92_spill] sm:$0xff] %v19508_v12 }
 0xaa6   : > { %v4827_v27 = vpop.xlane.xlu0 %4826  ;;  %v19505_v61 = vmul.f32 %v14261_v35, %v22533_v47  ;;  %v14263_v50 = vpop.eup %14262 }
 0xaa7   : > { %14272 = vrcp.f32 %v4827_v27  ;;  %13636 = vrot.lane.b32.xlu0 %v22537_v20, %s21623_s27  ;;  %v19522_v27 = vmul.f32 %v14263_v50, %v22540_v23 }
 0xaa8   : > { %22534 = vst [vmem:[#allocation43_spill] sm:$0xff] %v19505_v61  ;;  %v19514_v31 = vpop.xlane.xlu1 %4973  ;;  %v11935_v53 = vpop.f32.mrb[144].mxu1  ;;  %14274 = vrcp.f32 %v4878_v40 }
 0xaa9   : > { %v14265_v34 = vpop.eup %14264  ;;  %v7096_v35 = vpop.f32.mrb[145].mxu1  ;;  %22541 = vst [vmem:[#allocation164_spill] sm:$0xff] %v19522_v27  ;;  %v22546_v27 = vld [vmem:[#allocation135_spill] sm:$0xff] }
 0xaaa   : > { %v4875_v47 = vpop.xlane.xlu0 %4874  ;;  %v19519_v26 = vmul.f32 %v14265_v34, %v22538_v54  ;;  %v14267_v30 = vpop.eup %14266  ;;  %v22544_v54 = vld [vmem:[#allocation112_spill] sm:$0xff] }
 0xaab   : > { %14276 = vrcp.f32 %v4875_v47  ;;  %v19534_v34 = vmul.f32 %v14267_v30, %v22544_v54 }
 0xaac   : > { %22539 = vst [vmem:[#allocation38_spill] sm:$0xff] %v19519_v26  ;;  %v4692_v22 = vpop.xlane.xlu1 %4691  ;;  %v19524_v44 = vpop.f32.mrb[146].mxu1  ;;  %14278 = vrcp.f32 %v4926_v10 }
 0xaad   : > { %v14269_v41 = vpop.eup %14268  ;;  %v19528_v43 = vpop.f32.mrb[147].mxu1  ;;  %22545 = vst [vmem:[#allocation185_spill] sm:$0xff] %v19534_v34 }
 0xaae   : > { %v4923_v40 = vpop.xlane.xlu0 %4922  ;;  %v19531_v45 = vmul.f32 %v14269_v41, %v22542_v29  ;;  %v14271_v50 = vpop.eup %14270  ;;  %v22548_v41 = vld [vmem:[#allocation48_spill] sm:$0xff] }
 0xaaf   : > { %14280 = vrcp.f32 %v4923_v40  ;;  %v19548_v29 = vmul.f32 %v14271_v50, %v22548_v41 }
 0xab0   : > { %22543 = vst [vmem:[#allocation173_spill] sm:$0xff] %v19531_v45  ;;  %v4740_v47 = vpop.xlane.xlu1 %4739  ;;  %v19536_v23 = vpop.f32.mrb[148].mxu1  ;;  %14282 = vrcp.f32 %v4692_v22 }
 0xab1   : > { %v14273_v20 = vpop.eup %14272  ;;  %v19540_v26 = vpop.f32.mrb[149].mxu1  ;;  %22549 = vst [vmem:[#allocation193_spill] sm:$0xff] %v19548_v29  ;;  %v22556_v29 = vld [vmem:[#allocation56_spill] sm:$0xff] }
 0xab2   : > { %v19542_v10 = vpop.xlane.xlu0 %4970  ;;  %v19545_v12 = vmul.f32 %v14273_v20, %v22546_v27  ;;  %v14275_v30 = vpop.eup %14274 }
 0xab3   : > { %v19560_v27 = vmul.f32 %v14275_v30, %v19167_v2  ;;  %v8262_v2 = vld [vmem:[%s21314_s4 + $0x8] sm:$0xff]  ;;  %v8264_v30 = vld [vmem:[%s21314_s4 + $0x18] sm:$0xff] }
 0xab4   : > { %22547 = vst [vmem:[#allocation115_spill] sm:$0xff] %v19545_v12  ;;  %v4788_v54 = vpop.xlane.xlu1 %4787  ;;  %v19550_v40 = vpop.f32.mrb[150].mxu1  ;;  %v8261_v12 = vld [vmem:[%s21314_s4] sm:$0xff] }
 0xab5   : > { %v14277_v9 = vpop.eup %14276  ;;  %v19554_v61 = vpop.f32.mrb[151].mxu1  ;;  %22551 = vst [vmem:[#allocation100_spill] sm:$0xff] %v19560_v27 }
 0xab6   : > { %v4689_v45 = vpop.xlane.xlu0 %4688  ;;  %v19557_v34 = vmul.f32 %v14277_v9, %v19169_v6  ;;  %v14279_v20 = vpop.eup %14278  ;;  %v8263_v6 = vld [vmem:[%s21314_s4 + $0x10] sm:$0xff] }
 0xab7   : > { %14284 = vrcp.f32 %v4689_v45  ;;  %v19564_v49 = vmul.f32 %v14279_v20, %v11935_v53  ;;  %v22554_v45 = vld [vmem:[#allocation34_spill] sm:$0xff]  ;;  %v12765_v41 = vpack.c.bf16 %v8264_v30, %v8263_v6  ;;  %v22555_v30 = vld [vmem:[#allocation108_spill] sm:$0xff] }
 0xab8   : > { %22550 = vst [vmem:[#allocation171_spill] sm:$0xff] %v19557_v34  ;;  %v4836_v50 = vpop.xlane.xlu1 %4835  ;;  %14286 = vrcp.f32 %v4740_v47  ;;  %v4633_v53 = vsel %vm3840_vm3, %v22554_v45, 0.0  ;;  %v12761_v47 = vpack.c.bf16 %v8262_v2, %v8261_v12  ;;  %v8265_v34 = vld [vmem:[%s21314_s4 + $0x20] sm:$0xff] }
 0xab9   : > { %v14281_v39 = vpop.eup %14280  ;;  %22552 = vst [vmem:[#allocation192_spill] sm:$0xff] %v19564_v49 }
 0xaba   : > { %v4737_v22 = vpop.xlane.xlu0 %4736  ;;  %v19575_v9 = vmul.f32 %v14281_v39, %v7096_v35  ;;  %v8266_v39 = vld [vmem:[%s21314_s4 + $0x28] sm:$0xff]  ;;  %12762 = vmatprep.subr.bf16.mxu0 %v12761_v47 }
 0xabb   : > { %14288 = vrcp.f32 %v4737_v22  ;;  %12764 = vmatpush3.bf16.msra.mxu0 %v12761_v47  ;;  %v14283_v22 = vpop.eup %14282  ;;  %v12769_v2 = vpack.c.bf16 %v8266_v39, %v8265_v34  ;;  %v8267_v34 = vld [vmem:[%s21314_s4 + $0x30] sm:$0xff] }
 0xabc   : > { %22553 = vst [vmem:[#allocation166_spill] sm:$0xff] %v19575_v9  ;;  %4634 = vadd.xlane.f32.xlu1 %v4633_v53  ;;  %v4884_v20 = vpop.xlane.xlu1 %4883  ;;  %14290 = vrcp.f32 %v4788_v54  ;;  %12766 = vmatprep.subr.bf16.mxu0 %v12765_v41  ;;  %v19594_v38 = vmul.f32 %v14283_v22, %v22556_v29  ;;  %v22557_v29 = vld [vmem:[#allocation139_spill] sm:$0xff] }
 0xabd   : > { %v4636_v39 = vsel %vm3840_vm3, %v22557_v29, 0.0 }
 0xabe   : > { %v4785_v12 = vpop.xlane.xlu0 %4784 }
 0xabf   : > { %14292 = vrcp.f32 %v4785_v12  ;;  %12768 = vmatpush3.bf16.msra.mxu0 %v12765_v41 }
 0xac0   : > { %v4932_v6 = vpop.xlane.xlu1 %4931  ;;  %14294 = vrcp.f32 %v4836_v50  ;;  %12770 = vmatprep.subr.bf16.mxu0 %v12769_v2  ;;  %v8268_v50 = vld [vmem:[%s21314_s4 + $0x38] sm:$0xff] }
 0xac1   : > { %v14285_v45 = vpop.eup %14284  ;;  %v12773_v12 = vpack.c.bf16 %v8268_v50, %v8267_v34  ;;  %v22562_v34 = vld [vmem:[#allocation39_spill] sm:$0xff] }
 0xac2   : > { %v4833_v53 = vpop.xlane.xlu0 %4832  ;;  %v19591_v27 = vmul.f32 %v14285_v45, %v22555_v30  ;;  %v14287_v35 = vpop.eup %14286  ;;  %v22558_v45 = vld [vmem:[#allocation37_spill] sm:$0xff]  ;;  %v22560_v30 = vld [vmem:[#allocation76_spill] sm:$0xff] }
 0xac3   : > { %14296 = vrcp.f32 %v4833_v53  ;;  %12772 = vmatpush3.bf16.msra.mxu0 %v12769_v2  ;;  %v19612_v9 = vmul.f32 %v14287_v35, %v22560_v30  ;;  %v22563_v2 = vld [vmem:[#allocation71_spill] sm:$0xff] }
 0xac4   : > { %v19596_v54 = vpop.xlane.xlu1 %4979  ;;  %14298 = vrcp.f32 %v4884_v20  ;;  %12774 = vmatprep.subr.bf16.mxu0 %v12773_v12  ;;  %v8269_v35 = vld [vmem:[%s21314_s4 + $0x40] sm:$0xff] }
 0xac5   : > { %v14289_v47 = vpop.eup %14288  ;;  %22561 = vst [vmem:[#allocation187_spill] sm:$0xff] %v19612_v9 }
 0xac6   : > { %4637 = vadd.xlane.f32.xlu0 %v4636_v39  ;;  %v4881_v22 = vpop.xlane.xlu0 %4880  ;;  %v19609_v53 = vmul.f32 %v14289_v47, %v22558_v45  ;;  %v14291_v49 = vpop.eup %14290 }
 0xac7   : > { %14300 = vrcp.f32 %v4881_v22  ;;  %12776 = vmatpush3.bf16.msra.mxu0 %v12773_v12  ;;  %v19620_v47 = vmul.f32 %v14291_v49, %v22563_v2  ;;  %v8270_v22 = vld [vmem:[%s21314_s4 + $0x48] sm:$0xff]  ;;  %v22564_v49 = vpack.i.bf16 %v19241_v32, %v19272_v7  ;;  %v22566_v2 = vld [vmem:[#allocation134_spill] sm:$0xff] }
 0xac8   : > { %22559 = vst [vmem:[#allocation176_spill] sm:$0xff] %v19609_v53  ;;  %v4698_v16 = vpop.xlane.xlu1 %4697  ;;  %14302 = vrcp.f32 %v4932_v6  ;;  %v12777_v6 = vpack.c.bf16 %v8270_v22, %v8269_v35  ;;  %v8271_v22 = vld [vmem:[%s21314_s4 + $0x50] sm:$0xff]  ;;  %v8272_v32 = vld [vmem:[%s21314_s4 + $0x58] sm:$0xff] }
 0xac9   : > { %v14293_v41 = vpop.eup %14292 }
 0xaca   : > { %v4929_v29 = vpop.xlane.xlu0 %4928  ;;  %v19617_v50 = vmul.f32 %v14293_v41, %v22562_v34  ;;  %v14295_v39 = vpop.eup %14294  ;;  %12778 = vmatprep.subr.bf16.mxu0 %v12777_v6 }
 0xacb   : > { %14304 = vrcp.f32 %v4929_v29  ;;  %v22565_v29 = vld [vmem:[#allocation85_spill] sm:$0xff]  ;;  %v19638_v20 = vmul.f32 %v14295_v39, %v22566_v2  ;;  %12780 = vmatpush3.bf16.msra.mxu0 %v12777_v6  ;;  %v22567_v39 = vpack.i.bf16 %v19256_v56, %v19284_v1  ;;  %v12781_v6 = vpack.c.bf16 %v8272_v32, %v8271_v22  ;;  %v8274_v56 = vld [vmem:[%s21314_s4 + $0x68] sm:$0xff] }
 0xacc   : > { %v4746_v45 = vpop.xlane.xlu1 %4745  ;;  %14306 = vrcp.f32 %v4698_v16  ;;  %v8273_v16 = vld [vmem:[%s21314_s4 + $0x60] sm:$0xff] }
 0xacd   : > { %v14297_v41 = vpop.eup %14296  ;;  %13646 = vrot.lane.b32.xlu1 %v22564_v49, %s14549_s26  ;;  %12782 = vmatprep.subr.bf16.mxu0 %v12781_v6 }
 0xace   : > { %v4977_v30 = vpop.xlane.xlu0 %4976  ;;  %v19635_v34 = vmul.f32 %v14297_v41, %v22565_v29  ;;  %v14299_v53 = vpop.eup %14298 }
 0xacf   : > { %v19656_v2 = vmul.f32 %v14299_v53, %v19177_v59  ;;  %12784 = vmatpush3.bf16.msra.mxu0 %v12781_v6  ;;  %v22568_v59 = vpack.i.bf16 %v19265_v57, %v19296_v15  ;;  %v12785_v53 = vpack.c.bf16 %v8274_v56, %v8273_v16  ;;  %v8275_v57 = vld [vmem:[%s21314_s4 + $0x70] sm:$0xff]  ;;  %v8276_v15 = vld [vmem:[%s21314_s4 + $0x78] sm:$0xff]  ;;  %v22571_v6 = vpack.i.bf16 %v19218_v36, %v19260_v58 }
 0xad0   : > { %v4794_v35 = vpop.xlane.xlu1 %4793  ;;  %v22575_v16 = vld [vmem:[#allocation30_spill] sm:$0xff]  ;;  %v22577_v58 = vpack.i.bf16 %v19279_v14, %v19308_v3 }
 0xad1   : > { %v14301_v49 = vpop.eup %14300  ;;  %13651 = vrot.lane.b32.xlu1 %v22567_v39, %s14547_s25  ;;  %12786 = vmatprep.subr.bf16.mxu0 %v12785_v53 }
 0xad2   : > { %v4695_v41 = vpop.xlane.xlu0 %4694  ;;  %v19653_v29 = vmul.f32 %v14301_v49, %v19179_v63  ;;  %v14303_v12 = vpop.eup %14302 }
 0xad3   : > { %14308 = vrcp.f32 %v4695_v41  ;;  %v19675_v49 = vmul.f32 %v14303_v12, %v19524_v44  ;;  %12788 = vmatpush3.bf16.msra.mxu0 %v12785_v53  ;;  %v12789_v44 = vpack.c.bf16 %v8276_v15, %v8275_v57  ;;  %v22578_v15 = vld [vmem:[#allocation32_spill] sm:$0xff] }
 0xad4   : > { %v4842_v9 = vpop.xlane.xlu1 %4841  ;;  %14310 = vrcp.f32 %v4746_v45 }
 0xad5   : > { %v14305_v1 = vpop.eup %14304  ;;  %13656 = vrot.lane.b32.xlu1 %v22568_v59, %s14552_s29  ;;  %14312 = vrcp.f32 %v19514_v31  ;;  %12790 = vmatprep.subr.bf16.mxu0 %v12789_v44 }
 0xad6   : > { %v4743_v22 = vpop.xlane.xlu0 %4742  ;;  %v19672_v32 = vmul.f32 %v14305_v1, %v19528_v43  ;;  %v22569_v43 = vpack.i.bf16 %v19291_v17, %v19317_v19  ;;  %v14307_v12 = vpop.eup %14306  ;;  %v22573_v19 = vpack.i.bf16 %v19303_v0, %v19326_v5 }
 0xad7   : > { %14314 = vrcp.f32 %v4743_v22  ;;  %12792 = vmatpush3.bf16.msra.mxu0 %v12789_v44  ;;  %v22579_v44 = vld [vmem:[#allocation22_spill] sm:$0xff] }
 0xad8   : > { %14316 = vrcp.f32 %v19542_v10  ;;  %v4890_v45 = vpop.xlane.xlu1 %4889 }
 0xad9   : > { %14318 = vrcp.f32 %v4794_v35  ;;  %13666 = vrot.lane.b32.xlu1 %v22569_v43, %s14548_s15 }
 0xada   : > { %14320 = vrcp.f32 %v19596_v54  ;;  %v4791_v10 = vpop.xlane.xlu0 %4790  ;;  %v22574_v54 = vld [vmem:[#allocation64_spill] sm:$0xff] }
 0xadb   : > { %14322 = vrcp.f32 %v4791_v10 }
 0xadc   : > { %14324 = vrcp.f32 %v4977_v30  ;;  %v4938_v39 = vpop.xlane.xlu1 %4937  ;;  %13641 = vrot.lane.b32.xlu0 %v22571_v6, %s22570_s21  ;;  %v19703_v30 = vmul.f32 %v14307_v12, %v22575_v16 }
 0xadd   : > { %v14309_v35 = vpop.eup %14308  ;;  %14326 = vrcp.f32 %v4842_v9  ;;  %13671 = vrot.lane.b32.xlu1 %v22573_v19, %s22572_s20 }
 0xade   : > { %v4839_v17 = vpop.xlane.xlu0 %4838  ;;  %v19700_v41 = vmul.f32 %v14309_v35, %v22574_v54  ;;  %v14311_v56 = vpop.eup %14310 }
 0xadf   : > { %14328 = vrcp.f32 %v4839_v17  ;;  %v14313_v1 = vpop.eup %14312  ;;  %v19717_v10 = vmul.f32 %v14311_v56, %v22579_v44 }
 0xae0   : > { %v4986_v36 = vpop.xlane.xlu1 %4985  ;;  %13661 = vrot.lane.b32.xlu0 %v22577_v58, %s22576_s24  ;;  %14330 = vrcp.f32 %v4890_v45  ;;  %v22580_v58 = vld [vmem:[#allocation144_spill] sm:$0xff] }
 0xae1   : > { %v14315_v0 = vpop.eup %14314  ;;  %v11991_v9 = vpop.f32.mrb[152].mxu1 }
 0xae2   : > { %v14317_v59 = vpop.eup %14316  ;;  %v19711_v53 = vmul.f32 %v14313_v1, %v11991_v9  ;;  %v4887_v22 = vpop.xlane.xlu0 %4886  ;;  %v19714_v43 = vmul.f32 %v14315_v0, %v22578_v15  ;;  %v22582_v9 = vld [vmem:[#allocation33_spill] sm:$0xff] }
 0xae3   : > { %v7402_v57 = vpop.f32.mrb[153].mxu1  ;;  %v14319_v12 = vpop.eup %14318  ;;  %14332 = vrcp.f32 %v4887_v22 }
 0xae4   : > { %v19719_v14 = vmul.f32 %v14317_v59, %v7402_v57  ;;  %v14321_v3 = vpop.eup %14320  ;;  %v4704_v6 = vpop.xlane.xlu1 %4703  ;;  %14334 = vrcp.f32 %v4938_v39  ;;  %v19731_v59 = vmul.f32 %v14319_v12, %v22582_v9  ;;  %v22584_v12 = vld [vmem:[#allocation99_spill] sm:$0xff] }
 0xae5   : > { %v14323_v35 = vpop.eup %14322  ;;  %v11994_v17 = vpop.f32.mrb[154].mxu1 }
 0xae6   : > { %v14325_v54 = vpop.eup %14324  ;;  %v19725_v16 = vmul.f32 %v14321_v3, %v11994_v17  ;;  %v4935_v56 = vpop.xlane.xlu0 %4934  ;;  %v19728_v0 = vmul.f32 %v14323_v35, %v22580_v58  ;;  %v22583_v35 = vld [vmem:[#allocation75_spill] sm:$0xff] }
 0xae7   : > { %v7412_v1 = vpop.f32.mrb[155].mxu1  ;;  %v14327_v22 = vpop.eup %14326  ;;  %14336 = vrcp.f32 %v4935_v56 }
 0xae8   : > { %22581 = vst [vmem:[#allocation165_spill] sm:$0xff] %v19728_v0  ;;  %v19733_v57 = vmul.f32 %v14325_v54, %v7412_v1  ;;  %v19735_v39 = vpop.xlane.xlu1 %4610  ;;  %14338 = vrcp.f32 %v4986_v36  ;;  %v19745_v9 = vmul.f32 %v14327_v22, %v22584_v12 }
 0xae9   : > { %v14329_v44 = vpop.eup %14328 }
 0xaea   : > { %v4983_v17 = vpop.xlane.xlu0 %4982  ;;  %v19742_v58 = vmul.f32 %v14329_v44, %v22583_v35  ;;  %v14331_v56 = vpop.eup %14330 }
 0xaeb   : > { %14340 = vrcp.f32 %v4983_v17  ;;  %v11997_v54 = vpop.f32.mrb[156].mxu1  ;;  %v19753_v44 = vmul.f32 %v14331_v56, %v19191_v62 }
 0xaec   : > { %v4797_v1 = vpop.xlane.xlu1 %4796  ;;  %v7422_v5 = vpop.f32.mrb[157].mxu1  ;;  %14342 = vrcp.f32 %v4704_v6 }
 0xaed   : > { %v14333_v31 = vpop.eup %14332  ;;  %14344 = vrcp.f32 %v4797_v1  ;;  %22586 = vst [vmem:[#allocation175_spill] sm:$0xff] %v19753_v44  ;;  %v22591_v1 = vld [vmem:[#allocation14_spill] sm:$0xff] }
 0xaee   : > { %v4701_v36 = vpop.xlane.xlu0 %4700  ;;  %v19750_v45 = vmul.f32 %v14333_v31, %v19193_v24  ;;  %v14335_v22 = vpop.eup %14334 }
 0xaef   : > { %14346 = vrcp.f32 %v4701_v36  ;;  %v19761_v6 = vmul.f32 %v14335_v22, %v19536_v23 }
 0xaf0   : > { %22585 = vst [vmem:[#allocation195_spill] sm:$0xff] %v19750_v45  ;;  %v4800_v35 = vpop.xlane.xlu1 %4799  ;;  %v22589_v45 = vld [vmem:[#allocation130_spill] sm:$0xff] }
 0xaf1   : > { %v14337_v12 = vpop.eup %14336  ;;  %14348 = vrcp.f32 %v4800_v35 }
 0xaf2   : > { %v4749_v7 = vpop.xlane.xlu0 %4748  ;;  %v19758_v15 = vmul.f32 %v14337_v12, %v19540_v26  ;;  %v14339_v24 = vpop.eup %14338 }
 0xaf3   : > { %v19763_v31 = vpop.f32.mrb[158].mxu1  ;;  %14350 = vrcp.f32 %v4749_v7  ;;  %v19769_v17 = vmul.f32 %v14339_v24, %v11997_v54  ;;  %v22592_v24 = vld [vmem:[#allocation40_spill] sm:$0xff] }
 0xaf4   : > { %v4848_v62 = vpop.xlane.xlu1 %4847  ;;  %v19765_v56 = vpop.f32.mrb[159].mxu1 }
 0xaf5   : > { %v14341_v36 = vpop.eup %14340  ;;  %22587 = vst [vmem:[#allocation186_spill] sm:$0xff] %v19769_v17 }
 0xaf6   : > { %v19771_v35 = vmul.f32 %v14341_v36, %v7422_v5  ;;  %v4752_v26 = vpop.xlane.xlu0 %4751  ;;  %v14343_v12 = vpop.eup %14342 }
 0xaf7   : > { %14352 = vrcp.f32 %v4752_v26  ;;  %v14345_v23 = vpop.eup %14344  ;;  %v19781_v7 = vmul.f32 %v14343_v12, %v22591_v1  ;;  %v22594_v26 = vld [vmem:[#allocation84_spill] sm:$0xff]  ;;  %v22596_v12 = vld [vmem:[#allocation138_spill] sm:$0xff] }
 0xaf8   : > { %22588 = vst [vmem:[#allocation194_spill] sm:$0xff] %v19771_v35  ;;  %v4896_v63 = vpop.xlane.xlu1 %4895  ;;  %v19786_v36 = vmul.f32 %v14345_v23, %v22592_v24  ;;  %14354 = vrcp.f32 %v4848_v62  ;;  %v22595_v35 = vld [vmem:[#allocation154_spill] sm:$0xff]  ;;  %v4642_v5 = vsel %vm3840_vm3, %v22596_v12, 0.0  ;;  %v22597_v24 = vld [vmem:[#allocation83_spill] sm:$0xff] }
 0xaf9   : > { %v14347_v3 = vpop.eup %14346  ;;  %v4639_v17 = vsel %vm3840_vm3, %v22595_v35, 0.0 }
 0xafa   : > { %v19775_v19 = vpop.xlane.xlu0 %4613  ;;  %v19778_v44 = vmul.f32 %v14347_v3, %v22589_v45  ;;  %22593 = vst [vmem:[#allocation168_spill] sm:$0xff] %v19786_v36 }
 0xafb   : > { %v14349_v54 = vpop.eup %14348 }
 0xafc   : > { %22590 = vst [vmem:[#allocation13_spill] sm:$0xff] %v19778_v44  ;;  %v19789_v0 = vmul.f32 %v14349_v54, %v22594_v26  ;;  %v4944_v1 = vpop.xlane.xlu1 %4943  ;;  %v22598_v26 = vld [vmem:[#allocation140_spill] sm:$0xff] }
 0xafd   : > { %v14351_v3 = vpop.eup %14350 }
 0xafe   : > { %v4845_v22 = vpop.xlane.xlu0 %4844  ;;  %v19798_v62 = vmul.f32 %v14351_v3, %v22597_v24  ;;  %v22600_v3 = vld [vmem:[#allocation149_spill] sm:$0xff] }
 0xaff   : > { %14356 = vrcp.f32 %v4845_v22  ;;  %4640 = vadd.xlane.f32.xlu0 %v4639_v17 }
 0xb00   : > { %14358 = vrcp.f32 %v4896_v63  ;;  %v4992_v17 = vpop.xlane.xlu1 %4991 }
 0xb01   : > { %v14353_v23 = vpop.eup %14352  ;;  %4643 = vadd.xlane.f32.xlu1 %v4642_v5  ;;  %v22599_v5 = vld [vmem:[#allocation93_spill] sm:$0xff] }
 0xb02   : > { %v4893_v54 = vpop.xlane.xlu0 %4892  ;;  %v19801_v44 = vmul.f32 %v14353_v23, %v22598_v26  ;;  %v14355_v45 = vpop.eup %14354 }
 0xb03   : > { %14360 = vrcp.f32 %v4893_v54  ;;  %v19809_v24 = vmul.f32 %v14355_v45, %v22600_v3  ;;  %v22601_v45 = vpack.i.bf16 %v19350_v11, %v19347_v60  ;;  %v22603_v60 = vpack.i.bf16 %v19390_v37, %v19387_v46  ;;  %v22610_v37 = vld [vmem:[#allocation160_spill] sm:$0xff] }
 0xb04   : > { %14362 = vrcp.f32 %v4944_v1  ;;  %v22609_v46 = vpack.i.bf16 %v19402_v51, %v19399_v18  ;;  %v22618_v54 = vld [vmem:[#allocation88_spill] sm:$0xff] }
 0xb06   : > { %v4941_v22 = vpop.xlane.xlu0 %4940 }
 0xb07   : > { %14364 = vrcp.f32 %v4941_v22 }
 0xb08   : > { %14366 = vrcp.f32 %v4992_v17 }
 0xb09   : > { %v14357_v12 = vpop.eup %14356 }
 0xb0a   : > { %v4989_v63 = vpop.xlane.xlu0 %4988  ;;  %v19806_v36 = vmul.f32 %v14357_v12, %v22599_v5  ;;  %v14359_v23 = vpop.eup %14358 }
 0xb0b   : > { %14368 = vrcp.f32 %v4989_v63  ;;  %v19817_v22 = vmul.f32 %v14359_v23, %v19201_v55  ;;  %v22617_v55 = vld [vmem:[#allocation96_spill] sm:$0xff] }
 0xb0c   : > { %14370 = vrcp.f32 %v19735_v39 }
 0xb0d   : > { %v14361_v26 = vpop.eup %14360  ;;  %14372 = vrcp.f32 %v19775_v19 }
 0xb0e   : > { %v19814_v1 = vmul.f32 %v14361_v26, %v19203_v52  ;;  %v14363_v17 = vpop.eup %14362  ;;  %v22602_v26 = vpack.i.bf16 %v19338_v8, %v19335_v48  ;;  %v22606_v48 = vld [vmem:[#allocation141_spill] sm:$0xff] }
 0xb0f   : > { %v19829_v3 = vmul.f32 %v14363_v17, %v19550_v40  ;;  %v22604_v17 = vld [vmem:[#allocation111_spill] sm:$0xff]  ;;  %v22607_v8 = vld [vmem:[#allocation113_spill] sm:$0xff]  ;;  %v22619_v40 = vpack.i.bf16 %v19432_v4, %v19429_v13 }
 0xb11   : > { %v14365_v5 = vpop.eup %14364 }
 0xb12   : > { %13681 = vrot.lane.b32.xlu1 %v22601_v45, %s14549_s26  ;;  %v19826_v63 = vmul.f32 %v14365_v5, %v19554_v61  ;;  %v14367_v52 = vpop.eup %14366  ;;  %v22605_v5 = vpack.i.bf16 %v19362_v42, %v22604_v17  ;;  %v22608_v45 = vpack.i.bf16 %v22606_v48, %v22607_v8  ;;  %v22616_v48 = vld [vmem:[#allocation80_spill] sm:$0xff] }
 0xb13   : > { %v19845_v61 = vmul.f32 %v14367_v52, %v19763_v31  ;;  %v22611_v31 = vld [vmem:[#allocation161_spill] sm:$0xff]  ;;  %v19865_v52 = vpop.xlane.xlu0 %4616  ;;  %v4648_v8 = vsel %vm3840_vm3, %v22616_v48, 0.0 }
 0xb15   : > { %v14369_v23 = vpop.eup %14368  ;;  %13676 = vrot.lane.b32.xlu0 %v22602_v26, %s22570_s21 }
 0xb16   : > { %13696 = vrot.lane.b32.xlu1 %v22603_v60, %s22576_s24  ;;  %v19842_v11 = vmul.f32 %v14369_v23, %v19765_v56  ;;  %v22612_v56 = vpack.i.bf16 %v22610_v37, %v22611_v31  ;;  %v19867_v23 = vpop.xlane.xlu1 %4619  ;;  %v22613_v60 = vld [vmem:[#allocation79_spill] sm:$0xff] }
 0xb17   : > { %v19869_v42 = vpop.xlane.xlu0 %4622  ;;  %v4645_v17 = vsel %vm3840_vm3, %v22613_v60, 0.0  ;;  %14374 = vrcp.f32 %v19867_v23 }
 0xb18   : > { %14376 = vrcp.f32 %v19865_v52  ;;  %v22637_v52 = vld [vmem:[#allocation69_spill] sm:$0xff] }
 0xb19   : > { %13686 = vrot.lane.b32.xlu0 %v22605_v5, %s14547_s25 }
 0xb1a   : > { %v19871_v26 = vpop.xlane.xlu1 %4625 }
 0xb1b   : > { %v19877_v18 = vpop.xlane.xlu0 %4628  ;;  %14378 = vrcp.f32 %v19871_v26 }
 0xb1c   : > { %22614 = vst [vmem:[#allocation178_spill] sm:$0xff] %v19877_v18  ;;  %14380 = vrcp.f32 %v19869_v42  ;;  %v22687_v42 = vpack.i.bf16 %v19845_v61, %v19842_v11  ;;  %v22691_v11 = vld [vmem:[#allocation98_spill] sm:$0xff] }
 0xb1d   : > { %13691 = vrot.lane.b32.xlu0 %v22608_v45, %s14552_s29 }
 0xb1e   : > { %v19879_v51 = vpop.xlane.xlu1 %4631 }
 0xb1f   : > { %22615 = vst [vmem:[#allocation188_spill] sm:$0xff] %v19879_v51  ;;  %v13612_v5 = vpop.permute.xlu0 %13611 }
 0xb20   : > { %v13614_v31 = vunpack.i.h.bf16 %v13612_v5 }
 0xb21   : > { %13701 = vrot.lane.b32.xlu0 %v22609_v46, %s14548_s15  ;;  %v14371_v46 = vpop.eup %14370 }
 0xb22   : > { %v13617_v45 = vpop.permute.xlu1 %13616  ;;  %v14373_v37 = vpop.eup %14372  ;;  %v7569_v39 = vmul.f32 %v14371_v46, %v22617_v55 }
 0xb23   : > { %v13632_v60 = vpop.permute.xlu0 %13631  ;;  %v7570_v19 = vmul.f32 %v14373_v37, %v22618_v54  ;;  %v13618_v12 = vunpack.i.l.bf16 %v13617_v45  ;;  %v22620_v54 = vpack.i.bf16 %v19440_v21, %v19437_v25 }
 0xb24   : > { %v13633_v25 = vunpack.i.l.bf16 %v13632_v60 }
 0xb25   : > { %13706 = vrot.lane.b32.xlu0 %v22612_v56, %s22572_s20  ;;  %v13613_v56 = vunpack.i.l.bf16 %v13612_v5  ;;  %v8146_v35 = vsel %vm1167_vm0, %v7570_v19, %v13614_v31  ;;  %v13634_v31 = vunpack.i.h.bf16 %v13632_v60  ;;  %v22623_v19 = vld [vmem:[#allocation145_spill] sm:$0xff] }
 0xb27   : > { %v8145_v48 = vsel %vm1167_vm0, %v7569_v39, %v13613_v56  ;;  %v13637_v51 = vpop.permute.xlu0 %13636  ;;  %v22622_v39 = vld [vmem:[#allocation86_spill] sm:$0xff] }
 0xb28   : > { %v8161_v5 = vsel %vm1006_vm2, %v8145_v48, %v13618_v12  ;;  %v13639_v56 = vunpack.i.h.bf16 %v13637_v51  ;;  %v22624_v48 = vpack.i.bf16 %v22622_v39, %v22623_v19  ;;  %v22634_v39 = vld [vmem:[#allocation35_spill] sm:$0xff] }
 0xb29   : > { %v4651_v19 = vsel %vm3840_vm3, %v22634_v39, 0.0 }
 0xb3a   : > { %4646 = vadd.xlane.f32.xlu1 %v4645_v17  ;;  %v13622_v17 = vpop.permute.xlu1 %13621 }
 0xb3b   : > { %v13624_v55 = vunpack.i.h.bf16 %v13622_v17  ;;  %v13623_v13 = vunpack.i.l.bf16 %v13622_v17  ;;  %v13638_v17 = vunpack.i.l.bf16 %v13637_v51 }
 0xb3d   : > { %v8178_v46 = vsel %vm8177_vm4, %v8161_v5, %v13623_v13  ;;  %v22626_v13 = vld [vmem:[#allocation163_spill] sm:$0xff] }
 0xb3e   : > { %v13627_v4 = vpop.permute.xlu1 %13626 }
 0xb3f   : > { %v13629_v37 = vunpack.i.h.bf16 %v13627_v4 }
 0xb44   : > { %4649 = vadd.xlane.f32.xlu0 %v4648_v8  ;;  %v13619_v8 = vunpack.i.h.bf16 %v13617_v45  ;;  %v13628_v45 = vunpack.i.l.bf16 %v13627_v4 }
 0xb46   : > { %v8162_v18 = vsel %vm1006_vm2, %v8146_v35, %v13619_v8  ;;  %v22621_v35 = vpack.i.bf16 %v19452_v28, %v19449_v33 }
 0xb4b   : > { %13716 = vrot.lane.b32.xlu1 %v22619_v40, %s14549_s26  ;;  %v8179_v40 = vsel %vm8177_vm4, %v8162_v18, %v13624_v55  ;;  %v8194_v18 = vsel %vm3840_vm3, %v8178_v46, %v13628_v45  ;;  %v22625_v55 = vld [vmem:[#allocation162_spill] sm:$0xff] }
 0xb4c   : > { %v8195_v21 = vsel %vm3840_vm3, %v8179_v40, %v13629_v37  ;;  %v8211_v60 = vsel %vm8210_vm5, %v8194_v18, %v13633_v25  ;;  %v22627_v4 = vpack.i.bf16 %v22625_v55, %v22626_v13  ;;  %v22628_v37 = vld [vmem:[#allocation180_spill] sm:$0xff]  ;;  %v22629_v45 = vld [vmem:[#allocation170_spill] sm:$0xff] }
 0xb4d   : > { %v8212_v33 = vsel %vm8210_vm5, %v8195_v21, %v13634_v31  ;;  %v22631_v31 = vld [vmem:[#allocation124_spill] sm:$0xff]  ;;  %v22632_v25 = vld [vmem:[#allocation114_spill] sm:$0xff] }
 0xb4e   : > { %v8229_v51 = vsel %vm8227_vm6, %v8212_v33, %v13639_v56  ;;  %v22633_v21 = vpack.i.bf16 %v22631_v31, %v22632_v25  ;;  %v19929_v56 = vpop.xlane.xlu1 %4634 }
 0xb4f   : > { %13721 = vrot.lane.b32.xlu1 %v22620_v54, %s14547_s25  ;;  %v8228_v54 = vsel %vm8227_vm6, %v8211_v60, %v13638_v17 }
 0xb52   : > { %v13647_v17 = vpop.permute.xlu1 %13646 }
 0xb53   : > { %13726 = vrot.lane.b32.xlu1 %v22621_v35, %s14552_s29  ;;  %v19903_v12 = vpop.xlane.xlu0 %4637  ;;  %v22630_v35 = vpack.i.bf16 %v22628_v37, %v22629_v45  ;;  %v13649_v60 = vunpack.i.h.bf16 %v13647_v17 }
 0xb56   : > { %v13652_v18 = vpop.permute.xlu1 %13651 }
 0xb57   : > { %13736 = vrot.lane.b32.xlu1 %v22624_v48, %s14548_s15  ;;  %v13642_v8 = vpop.permute.xlu0 %13641  ;;  %v22635_v48 = vld [vmem:[#allocation121_spill] sm:$0xff]  ;;  %v13654_v13 = vunpack.i.h.bf16 %v13652_v18  ;;  %v13653_v23 = vunpack.i.l.bf16 %v13652_v18 }
 0xb58   : > { %v13644_v28 = vunpack.i.h.bf16 %v13642_v8  ;;  %v13643_v5 = vunpack.i.l.bf16 %v13642_v8  ;;  %v4654_v8 = vsel %vm3840_vm3, %v22635_v48, 0.0 }
 0xb5a   : > { %13711 = vrot.lane.b32.xlu0 %v22627_v4, %s22570_s21  ;;  %v8245_v40 = vsel %vm8244_vm7, %v8228_v54, %v13643_v5  ;;  %v8246_v46 = vsel %vm8244_vm7, %v8229_v51, %v13644_v28  ;;  %v13657_v33 = vpop.permute.xlu1 %13656  ;;  %v14375_v28 = vpop.eup %14374  ;;  %v13648_v54 = vunpack.i.l.bf16 %v13647_v17  ;;  %v22636_v4 = vld [vmem:[#allocation50_spill] sm:$0xff] }
 0xb5b   : > { %13741 = vrot.lane.b32.xlu1 %v22630_v35, %s22572_s20  ;;  %12033 = vmatprep.mubr.f32.mxu0 %v8245_v40  ;;  %v14377_v5 = vpop.eup %14376  ;;  %v13662_v55 = vpop.permute.xlu0 %13661  ;;  %v7572_v40 = vmul.f32 %v14375_v28, %v22636_v4  ;;  %v13659_v37 = vunpack.i.h.bf16 %v13657_v33  ;;  %v13658_v45 = vunpack.i.l.bf16 %v13657_v33 }
 0xb5c   : > { %12034 = vmatmul.mubr.f32.vlgmr.msra.gmra.mrb[144].mxu0 %v8246_v46  ;;  %v7571_v46 = vmul.f32 %v14377_v5, %v22637_v52  ;;  %v13664_v35 = vunpack.i.h.bf16 %v13662_v55  ;;  %v13663_v31 = vunpack.i.l.bf16 %v13662_v55 }
 0xb5d   : > { %v8148_v25 = vsel %vm1167_vm0, %v7572_v40, %v13649_v60  ;;  %v22639_v40 = vld [vmem:[#allocation43_spill] sm:$0xff] }
 0xb5e   : > { %13731 = vrot.lane.b32.xlu0 %v22633_v21, %s22576_s24  ;;  %v13667_v51 = vpop.permute.xlu1 %13666  ;;  %v8147_v21 = vsel %vm1167_vm0, %v7571_v46, %v13648_v54  ;;  %v8164_v39 = vsel %vm1006_vm2, %v8148_v25, %v13654_v13  ;;  %v22642_v25 = vld [vmem:[#allocation53_spill] sm:$0xff] }
 0xb5f   : > { %v8163_v17 = vsel %vm1006_vm2, %v8147_v21, %v13653_v23  ;;  %v13669_v5 = vunpack.i.h.bf16 %v13667_v51  ;;  %v13668_v55 = vunpack.i.l.bf16 %v13667_v51  ;;  %v22638_v23 = vld [vmem:[#allocation92_spill] sm:$0xff]  ;;  %v22641_v51 = vld [vmem:[#allocation42_spill] sm:$0xff] }
 0xb60   : > { %v8180_v18 = vsel %vm8177_vm4, %v8163_v17, %v13658_v45  ;;  %v22640_v52 = vpack.i.bf16 %v22638_v23, %v22639_v40  ;;  %v22643_v21 = vpack.i.bf16 %v22641_v51, %v22642_v25  ;;  %v22656_v40 = vpack.i.bf16 %v19594_v38, %v19591_v27  ;;  %v22663_v27 = vld [vmem:[#allocation187_spill] sm:$0xff] }
 0xb61   : > { %v8196_v28 = vsel %vm3840_vm3, %v8180_v18, %v13663_v31  ;;  %v22645_v18 = vld [vmem:[#allocation115_spill] sm:$0xff]  ;;  %v22662_v38 = vpack.i.bf16 %v19656_v2, %v19653_v29  ;;  %v22668_v29 = vpack.i.bf16 %v19717_v10, %v19714_v43  ;;  %v22669_v2 = vpack.i.bf16 %v19675_v49, %v19672_v32  ;;  %v22673_v43 = vld [vmem:[#allocation165_spill] sm:$0xff] }
 0xb62   : > { %v13672_v48 = vpop.permute.xlu1 %13671  ;;  %v8213_v54 = vsel %vm8210_vm5, %v8196_v28, %v13668_v55  ;;  %v22648_v28 = vld [vmem:[#allocation38_spill] sm:$0xff]  ;;  %v22650_v55 = vld [vmem:[#allocation192_spill] sm:$0xff]  ;;  %v22674_v32 = vpack.i.bf16 %v19731_v59, %v22673_v43  ;;  %v22675_v49 = vld [vmem:[#allocation13_spill] sm:$0xff] }
 0xb63   : > { %v13674_v60 = vunpack.i.h.bf16 %v13672_v48  ;;  %v13673_v4 = vunpack.i.l.bf16 %v13672_v48  ;;  %v22676_v10 = vpack.i.bf16 %v19781_v7, %v22675_v49  ;;  %v22682_v59 = vld [vmem:[#allocation186_spill] sm:$0xff]  ;;  %v22692_v49 = vld [vmem:[#allocation188_spill] sm:$0xff] }
 0xb64   : > { %14382 = vrcp.f32 %v22692_v49 }
 0xb7d   : > { %4652 = vadd.xlane.f32.xlu0 %v4651_v19  ;;  %v8181_v19 = vsel %vm8177_vm4, %v8164_v39, %v13659_v37 }
 0xb7f   : > { %4655 = vadd.xlane.f32.xlu1 %v4654_v8  ;;  %v8197_v8 = vsel %vm3840_vm3, %v8181_v19, %v13664_v35  ;;  %v8230_v35 = vsel %vm8227_vm6, %v8213_v54, %v13673_v4  ;;  %v22644_v19 = vld [vmem:[#allocation193_spill] sm:$0xff] }
 0xb80   : > { %v8214_v13 = vsel %vm8210_vm5, %v8197_v8, %v13669_v5  ;;  %v22646_v48 = vpack.i.bf16 %v22644_v19, %v22645_v18  ;;  %v22647_v8 = vld [vmem:[#allocation164_spill] sm:$0xff]  ;;  %v22653_v54 = vld [vmem:[#allocation185_spill] sm:$0xff] }
 0xb81   : > { %v8231_v31 = vsel %vm8227_vm6, %v8214_v13, %v13674_v60  ;;  %v22649_v5 = vpack.i.bf16 %v22647_v8, %v22648_v28  ;;  %v22651_v60 = vld [vmem:[#allocation166_spill] sm:$0xff]  ;;  %v22654_v13 = vld [vmem:[#allocation173_spill] sm:$0xff] }
 0xb82   : > { %v22652_v4 = vpack.i.bf16 %v22650_v55, %v22651_v60  ;;  %v22655_v23 = vpack.i.bf16 %v22653_v54, %v22654_v13 }
 0xb8c   : > { %v19947_v33 = vpop.xlane.xlu0 %4640 }
 0xb8e   : > { %v20057_v7 = vpop.xlane.xlu1 %4643 }
 0xb90   : > { %13751 = vrot.lane.b32.xlu1 %v22640_v52, %s14549_s26  ;;  %v13677_v46 = vpop.permute.xlu0 %13676  ;;  %v22657_v52 = vld [vmem:[#allocation100_spill] sm:$0xff] }
 0xb91   : > { %v13679_v37 = vunpack.i.h.bf16 %v13677_v46  ;;  %v13678_v45 = vunpack.i.l.bf16 %v13677_v46  ;;  %v22658_v46 = vld [vmem:[#allocation171_spill] sm:$0xff] }
 0xb92   : > { %v13682_v26 = vpop.permute.xlu1 %13681 }
 0xb93   : > { %13746 = vrot.lane.b32.xlu0 %v22643_v21, %s22570_s21  ;;  %v8247_v39 = vsel %vm8244_vm7, %v8230_v35, %v13678_v45  ;;  %v8248_v17 = vsel %vm8244_vm7, %v8231_v31, %v13679_v37  ;;  %v22659_v37 = vpack.i.bf16 %v22657_v52, %v22658_v46  ;;  %v22660_v45 = vpack.i.bf16 %v19620_v47, %v19617_v50  ;;  %v22664_v31 = vld [vmem:[#allocation176_spill] sm:$0xff] }
 0xb94   : > { %13766 = vrot.lane.b32.xlu1 %v22646_v48, %s22576_s24  ;;  %12036 = vmatprep.mubr.f32.mxu0 %v8247_v39  ;;  %v22661_v35 = vpack.i.bf16 %v19711_v53, %v19719_v14  ;;  %v22665_v51 = vpack.i.bf16 %v22663_v27, %v22664_v31  ;;  %v22666_v50 = vpack.i.bf16 %v19725_v16, %v19733_v57  ;;  %v13687_v14 = vpop.permute.xlu0 %13686  ;;  %v22677_v16 = vld [vmem:[#allocation175_spill] sm:$0xff]  ;;  %v22680_v57 = vld [vmem:[#allocation168_spill] sm:$0xff]  ;;  %v13683_v19 = vunpack.i.l.bf16 %v13682_v26 }
 0xb95   : > { %12037 = vmatmul.mubr.f32.gmra.mrb[146].mxu0 %v8248_v17  ;;  %v22667_v47 = vpack.i.bf16 %v19638_v20, %v19635_v34  ;;  %v22670_v53 = vpack.i.bf16 %v19745_v9, %v19742_v58  ;;  %v22671_v20 = vpack.i.bf16 %v19703_v30, %v19700_v41  ;;  %v22672_v34 = vpack.i.bf16 %v19761_v6, %v19758_v15  ;;  %v22678_v41 = vld [vmem:[#allocation195_spill] sm:$0xff]  ;;  %v22683_v58 = vld [vmem:[#allocation194_spill] sm:$0xff] }
 0xb96   : > { %v22679_v30 = vpack.i.bf16 %v22677_v16, %v22678_v41  ;;  %v22681_v15 = vpack.i.bf16 %v19789_v0, %v22680_v57  ;;  %v22684_v9 = vpack.i.bf16 %v22682_v59, %v22683_v58  ;;  %v22685_v6 = vpack.i.bf16 %v19817_v22, %v19814_v1  ;;  %v14379_v22 = vpop.eup %14378  ;;  %v13697_v60 = vpop.permute.xlu1 %13696  ;;  %v22694_v58 = vld [vmem:[#allocation156_spill] sm:$0xff] }
 0xb97   : > { %13756 = vrot.lane.b32.xlu0 %v22649_v5, %s14547_s25  ;;  %v22686_v0 = vpack.i.bf16 %v19801_v44, %v19798_v62  ;;  %v22688_v1 = vpack.i.bf16 %v19809_v24, %v19806_v36  ;;  %v14381_v39 = vpop.eup %14380  ;;  %v13684_v17 = vunpack.i.h.bf16 %v13682_v26  ;;  %v22689_v44 = vpack.i.bf16 %v19829_v3, %v19826_v63  ;;  %v22690_v62 = vld [vmem:[#allocation90_spill] sm:$0xff] }
 0xb98   : > { %13776 = vrot.lane.b32.xlu1 %v22652_v4, %s22572_s20  ;;  %v13692_v25 = vpop.permute.xlu0 %13691  ;;  %v7574_v18 = vmul.f32 %v14379_v22, %v22690_v62  ;;  %v7573_v61 = vmul.f32 %v14381_v39, %v22691_v11  ;;  %v13689_v48 = vunpack.i.h.bf16 %v13687_v14  ;;  %v13688_v8 = vunpack.i.l.bf16 %v13687_v14  ;;  %v14383_v16 = vpop.eup %14382 }
 0xb99   : > { %v13694_v24 = vunpack.i.h.bf16 %v13692_v25  ;;  %v13693_v55 = vunpack.i.l.bf16 %v13692_v25  ;;  %v13699_v52 = vunpack.i.h.bf16 %v13697_v60  ;;  %v13698_v46 = vunpack.i.l.bf16 %v13697_v60 }
 0xb9a   : > { %v8150_v5 = vsel %vm1167_vm0, %v7574_v18, %v13684_v17  ;;  %v8149_v36 = vsel %vm1167_vm0, %v7573_v61, %v13683_v19 }
 0xb9b   : > { %13761 = vrot.lane.b32.xlu0 %v22655_v23, %s14552_s29  ;;  %v8166_v4 = vsel %vm1006_vm2, %v8150_v5, %v13689_v48  ;;  %v8165_v54 = vsel %vm1006_vm2, %v8149_v36, %v13688_v8 }
 0xb9c   : > { %13786 = vrot.lane.b32.xlu1 %v22656_v40, %s14549_s26  ;;  %v13702_v21 = vpop.permute.xlu0 %13701  ;;  %v8182_v3 = vsel %vm8177_vm4, %v8165_v54, %v13693_v55  ;;  %v8183_v13 = vsel %vm8177_vm4, %v8166_v4, %v13694_v24 }
 0xb9d   : > { %v13704_v23 = vunpack.i.h.bf16 %v13702_v21  ;;  %v13703_v40 = vunpack.i.l.bf16 %v13702_v21  ;;  %v8199_v27 = vsel %vm3840_vm3, %v8183_v13, %v13699_v52 }
 0xb9f   : > { %13771 = vrot.lane.b32.xlu0 %v22659_v37, %s14548_s15 }
 0xba0   : > { %13796 = vrot.lane.b32.xlu1 %v22660_v45, %s14552_s29  ;;  %v13707_v28 = vpop.permute.xlu0 %13706 }
 0xba1   : > { %v13709_v37 = vunpack.i.h.bf16 %v13707_v28  ;;  %v13708_v45 = vunpack.i.l.bf16 %v13707_v28 }
 0xba3   : > { %13781 = vrot.lane.b32.xlu0 %v22661_v35, %s22570_s21 }
 0xba4   : > { %13806 = vrot.lane.b32.xlu1 %v22662_v38, %s14548_s15  ;;  %v8198_v38 = vsel %vm3840_vm3, %v8182_v3, %v13698_v46 }
 0xba7   : > { %13791 = vrot.lane.b32.xlu0 %v22665_v51, %s14547_s25 }
 0xba8   : > { %13816 = vrot.lane.b32.xlu1 %v22666_v50, %s22570_s21  ;;  %v8215_v50 = vsel %vm8210_vm5, %v8198_v38, %v13703_v40 }
 0xbab   : > { %13801 = vrot.lane.b32.xlu0 %v22667_v47, %s22576_s24  ;;  %v8216_v47 = vsel %vm8210_vm5, %v8199_v27, %v13704_v23  ;;  %v22696_v27 = vld [vmem:[#allocation174_spill] sm:$0xff] }
 0xbac   : > { %13826 = vrot.lane.b32.xlu1 %v22668_v29, %s14547_s25  ;;  %v8232_v29 = vsel %vm8227_vm6, %v8215_v50, %v13708_v45 }
 0xbaf   : > { %13811 = vrot.lane.b32.xlu0 %v22669_v2, %s22572_s20  ;;  %v8233_v2 = vsel %vm8227_vm6, %v8216_v47, %v13709_v37 }
 0xbb0   : > { %13836 = vrot.lane.b32.xlu1 %v22670_v53, %s22576_s24 }
 0xbb3   : > { %13821 = vrot.lane.b32.xlu0 %v22671_v20, %s14549_s26 }
 0xbb4   : > { %13846 = vrot.lane.b32.xlu1 %v22672_v34, %s22572_s20 }
 0xbb7   : > { %13831 = vrot.lane.b32.xlu0 %v22674_v32, %s14552_s29 }
 0xbb8   : > { %13856 = vrot.lane.b32.xlu1 %v22676_v10, %s14549_s26  ;;  %v22693_v10 = vld [vmem:[#allocation178_spill] sm:$0xff] }
 0xbb9   : > { %14384 = vrcp.f32 %v22693_v10 }
 0xbba   : > { %14386 = vrcp.f32 %v19929_v56 }
 0xbbb   : > { %13841 = vrot.lane.b32.xlu0 %v22679_v30, %s14548_s15  ;;  %14388 = vrcp.f32 %v19903_v12 }
 0xbbc   : > { %13866 = vrot.lane.b32.xlu1 %v22681_v15, %s14552_s29  ;;  %14390 = vrcp.f32 %v19947_v33  ;;  %s21269_s29 = scalar_lea.sflag [#allocation3], %s475_s22 }
 0xbbd   : > { %14392 = vrcp.f32 %v20057_v7 }
 0xbbf   : > { %13851 = vrot.lane.b32.xlu0 %v22684_v9, %s22570_s21  ;;  %v7576_v9 = vmul.f32 %v14383_v16, %v22694_v58 }
 0xbc0   : > { %13876 = vrot.lane.b32.xlu1 %v22685_v6, %s14548_s15 }
 0xbc3   : > { %13861 = vrot.lane.b32.xlu0 %v22686_v0, %s14547_s25  ;;  %v14385_v41 = vpop.eup %14384  ;;  %v22695_v0 = vld [vmem:[#allocation158_spill] sm:$0xff] }
 0xbc4   : > { %13886 = vrot.lane.b32.xlu1 %v22687_v42, %s22570_s21  ;;  %v7575_v42 = vmul.f32 %v14385_v41, %v22695_v0  ;;  %v14387_v4 = vpop.eup %14386  ;;  %s21168_s21 = scalar_lea.vmem [#allocation2], %s9909_s28 }
 0xbc5   : > { %v14389_v13 = vpop.eup %14388 }
 0xbc7   : > { %13871 = vrot.lane.b32.xlu0 %v22688_v1, %s22576_s24  ;;  %v20093_v34 = vpop.xlane.xlu1 %4646  ;;  %s9834_s24 = sshll.u32 %s21168_s21, 4  ;;  %s21263_s24 = int_to_ptr.vmem [resolvable:$true] %s9834_s24 }
 0xbc8   : > { %14394 = vrcp.f32 %v20093_v34 }
 0xbcb   : > { %13881 = vrot.lane.b32.xlu0 %v22689_v44, %s22572_s20  ;;  %v13717_v43 = vpop.permute.xlu1 %13716  ;;  %s10312_s20 = sshll.u32 %s14653_s17, 11  ;;  %s14482_s17 = scalar_lea.vmem %s21263_s24, 2048 }
 0xbcc   : > { %v13719_v57 = vunpack.i.h.bf16 %v13717_v43  ;;  %v13718_v15 = vunpack.i.l.bf16 %v13717_v43  ;;  %s21261_s26 = scalar_lea.hbm %s21324_s14, %s10312_s20  ;;  %p14483_p11 = scmp.ne.s32.totalorder %s21263_s24, %s14482_s17 }
 0xbce   : > { %v8152_v39 = vsel %vm1167_vm0, %v7576_v9, %v13719_v57  ;;  %v8151_v17 = vsel %vm1167_vm0, %v7575_v42, %v13718_v15  ;;  %v14391_v42 = vpop.eup %14390  ;;  %p14484_p12 = pnand %p14483_p11, %p14670_p5 }
 0xbcf   : > { %v13722_v32 = vpop.permute.xlu1 %13721 }
 0xbd0   : > { %v13724_v6 = vunpack.i.h.bf16 %v13722_v32  ;;  %v13723_v25 = vunpack.i.l.bf16 %v13722_v32  ;;  %p14485_p13 = pneg %p14484_p12 }
 0xbd1   : > { %v20081_v63 = vpop.xlane.xlu0 %4649 }
 0xbd2   : > { %v8168_v19 = vsel %vm1006_vm2, %v8152_v39, %v13724_v6  ;;  %v8167_v44 = vsel %vm1006_vm2, %v8151_v17, %v13723_v25  ;;  %14396 = vrcp.f32 %v20081_v63 }
 0xbd3   : > { %v13727_v14 = vpop.permute.xlu1 %13726 }
 0xbd4   : > { %v13729_v26 = vunpack.i.h.bf16 %v13727_v14  ;;  %v13728_v21 = vunpack.i.l.bf16 %v13727_v14 }
 0xbd5   : > { %v13712_v35 = vpop.permute.xlu0 %13711 }
 0xbd6   : > { %v13714_v31 = vunpack.i.h.bf16 %v13712_v35  ;;  %v13713_v51 = vunpack.i.l.bf16 %v13712_v35  ;;  %v8185_v18 = vsel %vm8177_vm4, %v8168_v19, %v13729_v26  ;;  %v8184_v56 = vsel %vm8177_vm4, %v8167_v44, %v13728_v21 }
 0xbd7   : > { %v13737_v30 = vpop.permute.xlu1 %13736 }
 0xbd8   : > { %v8249_v53 = vsel %vm8244_vm7, %v8232_v29, %v13713_v51  ;;  %v8250_v20 = vsel %vm8244_vm7, %v8233_v2, %v13714_v31  ;;  %v13739_v48 = vunpack.i.h.bf16 %v13737_v30  ;;  %v13738_v8 = vunpack.i.l.bf16 %v13737_v30  ;;  %v22697_v51 = vld [vmem:[#allocation172_spill] sm:$0xff] }
 0xbd9   : > { %12039 = vmatprep.mubr.f32.mxu0 %v8249_v53  ;;  %v13732_v59 = vpop.permute.xlu0 %13731  ;;  %v7577_v31 = vmul.f32 %v14387_v4, %v22696_v27  ;;  %v7578_v50 = vmul.f32 %v14389_v13, %v22697_v51 }
 0xbda   : > { %12040 = vmatmul.mubr.f32.gmra.mrb[148].mxu0 %v8250_v20  ;;  %v13734_v1 = vunpack.i.h.bf16 %v13732_v59  ;;  %v13733_v22 = vunpack.i.l.bf16 %v13732_v59 }
 0xbdb   : > { %v13742_v62 = vpop.permute.xlu1 %13741 }
 0xbdc   : > { %v8201_v11 = vsel %vm3840_vm3, %v8185_v18, %v13734_v1  ;;  %v8200_v61 = vsel %vm3840_vm3, %v8184_v56, %v13733_v22  ;;  %v13744_v28 = vunpack.i.h.bf16 %v13742_v62  ;;  %v13743_v5 = vunpack.i.l.bf16 %v13742_v62  ;;  %v14393_v22 = vpop.eup %14392 }
 0xbdd   : > { %v8217_v24 = vsel %vm8210_vm5, %v8200_v61, %v13738_v8  ;;  %v8218_v55 = vsel %vm8210_vm5, %v8201_v11, %v13739_v48  ;;  %v22698_v48 = vld [vmem:[#allocation179_spill] sm:$0xff] }
 0xbde   : > { %v8234_v40 = vsel %vm8227_vm6, %v8217_v24, %v13743_v5  ;;  %v8235_v52 = vsel %vm8227_vm6, %v8218_v55, %v13744_v28  ;;  %v7580_v8 = vmul.f32 %v14393_v22, %v22698_v48  ;;  %v22699_v28 = vld [vmem:[#allocation181_spill] sm:$0xff] }
 0xbdf   : > { %v7579_v5 = vmul.f32 %v14391_v42, %v22699_v28 }
 0xc0a   : > { %v20109_v12 = vpop.xlane.xlu0 %4652 }
 0xc0c   : > { %v20111_v36 = vpop.xlane.xlu1 %4655 }
 0xc0d   : > { %14398 = vrcp.f32 %v20111_v36  ;;  %v14466_v36 = vld [vmem:[%s14794_s16] sm:$0xff] }
 0xc0e   : > { %v13747_v60 = vpop.permute.xlu0 %13746  ;;  %14400 = vrcp.f32 %v20109_v12 }
 0xc0f   : > { %v13749_v54 = vunpack.i.h.bf16 %v13747_v60  ;;  %v13748_v3 = vunpack.i.l.bf16 %v13747_v60 }
 0xc10   : > { %v13752_v23 = vpop.permute.xlu1 %13751 }
 0xc11   : > { %v13754_v46 = vunpack.i.h.bf16 %v13752_v23  ;;  %v13753_v37 = vunpack.i.l.bf16 %v13752_v23  ;;  %v8251_v45 = vsel %vm8244_vm7, %v8234_v40, %v13748_v3  ;;  %v8252_v35 = vsel %vm8244_vm7, %v8235_v52, %v13749_v54 }
 0xc12   : > { %v13757_v38 = vpop.permute.xlu0 %13756  ;;  %12042 = vmatprep.mubr.f32.mxu0 %v8251_v45 }
 0xc13   : > { %12043 = vmatmul.mubr.f32.gmra.mrb[150].mxu0 %v8252_v35  ;;  %v13759_v47 = vunpack.i.h.bf16 %v13757_v38  ;;  %v13758_v29 = vunpack.i.l.bf16 %v13757_v38  ;;  %v8153_v53 = vsel %vm1167_vm0, %v7577_v31, %v13753_v37  ;;  %v8154_v20 = vsel %vm1167_vm0, %v7578_v50, %v13754_v46 }
 0xc14   : > { %v13767_v2 = vpop.permute.xlu1 %13766 }
 0xc15   : > { %v8170_v10 = vsel %vm1006_vm2, %v8154_v20, %v13759_v47  ;;  %v8169_v14 = vsel %vm1006_vm2, %v8153_v53, %v13758_v29  ;;  %v13769_v30 = vunpack.i.h.bf16 %v13767_v2  ;;  %v13768_v57 = vunpack.i.l.bf16 %v13767_v2  ;;  %v14395_v47 = vpop.eup %14394 }
 0xc16   : > { %v13762_v43 = vpop.permute.xlu0 %13761  ;;  %v14397_v53 = vpop.eup %14396 }
 0xc17   : > { %v13764_v32 = vunpack.i.h.bf16 %v13762_v43  ;;  %v13763_v49 = vunpack.i.l.bf16 %v13762_v43 }
 0xc18   : > { %v13777_v16 = vpop.permute.xlu1 %13776 }
 0xc19   : > { %v8186_v41 = vsel %vm8177_vm4, %v8169_v14, %v13763_v49  ;;  %v8187_v33 = vsel %vm8177_vm4, %v8170_v10, %v13764_v32  ;;  %v13779_v26 = vunpack.i.h.bf16 %v13777_v16  ;;  %v13778_v21 = vunpack.i.l.bf16 %v13777_v16 }
 0xc1a   : > { %v13772_v15 = vpop.permute.xlu0 %13771  ;;  %v8202_v9 = vsel %vm3840_vm3, %v8186_v41, %v13768_v57  ;;  %v8203_v6 = vsel %vm3840_vm3, %v8187_v33, %v13769_v30  ;;  %v22700_v57 = vld [vmem:[#allocation183_spill] sm:$0xff] }
 0xc1b   : > { %v13774_v7 = vunpack.i.h.bf16 %v13772_v15  ;;  %v13773_v59 = vunpack.i.l.bf16 %v13772_v15  ;;  %v7581_v15 = vmul.f32 %v14395_v47, %v22700_v57  ;;  %v8700_v47 = vld [vmem:[%s21318_s8] sm:$0xff] }
 0xc1c   : > { %v13787_v58 = vpop.permute.xlu1 %13786 }
 0xc1d   : > { %v8219_v25 = vsel %vm8210_vm5, %v8202_v9, %v13773_v59  ;;  %v8220_v0 = vsel %vm8210_vm5, %v8203_v6, %v13774_v7  ;;  %v13789_v19 = vunpack.i.h.bf16 %v13787_v58  ;;  %v13788_v44 = vunpack.i.l.bf16 %v13787_v58  ;;  %v22701_v7 = vld [vmem:[#allocation182_spill] sm:$0xff] }
 0xc1e   : > { %v13782_v1 = vpop.permute.xlu0 %13781  ;;  %v8236_v18 = vsel %vm8227_vm6, %v8219_v25, %v13778_v21  ;;  %v8237_v56 = vsel %vm8227_vm6, %v8220_v0, %v13779_v26  ;;  %v7582_v59 = vmul.f32 %v14397_v53, %v22701_v7  ;;  %v20160_v25 = vld [vmem:[%s21315_s5] ss:$0 sm:$0xff]  ;;  %v8711_v7 = vld [vmem:[%s21318_s8 + $0x58] sm:$0xff] }
 0xc1f   : > { %v13784_v39 = vunpack.i.h.bf16 %v13782_v1  ;;  %v13783_v17 = vunpack.i.l.bf16 %v13782_v1  ;;  %v8156_v4 = vsel %vm1167_vm0, %v7580_v8, %v13789_v19  ;;  %v8155_v54 = vsel %vm1167_vm0, %v7579_v5, %v13788_v44  ;;  %v14467_v8 = vld [vmem:[%s14794_s16 + $0x8] sm:$0xff] }
 0xc20   : > { %v13797_v62 = vpop.permute.xlu1 %13796 }
 0xc21   : > { %v8253_v11 = vsel %vm8244_vm7, %v8236_v18, %v13783_v17  ;;  %v8254_v61 = vsel %vm8244_vm7, %v8237_v56, %v13784_v39  ;;  %v13799_v23 = vunpack.i.h.bf16 %v13797_v62  ;;  %v13798_v63 = vunpack.i.l.bf16 %v13797_v62 }
 0xc22   : > { %v13792_v24 = vpop.permute.xlu0 %13791  ;;  %12045 = vmatprep.mubr.f32.mxu0 %v8253_v11 }
 0xc23   : > { %v13794_v55 = vunpack.i.h.bf16 %v13792_v24  ;;  %v13793_v60 = vunpack.i.l.bf16 %v13792_v24  ;;  %12046 = vmatmul.mubr.f32.gmra.mrb[152].mxu0 %v8254_v61 }
 0xc24   : > { %v13807_v34 = vpop.permute.xlu1 %13806 }
 0xc25   : > { %v8172_v3 = vsel %vm1006_vm2, %v8156_v4, %v13794_v55  ;;  %v8171_v13 = vsel %vm1006_vm2, %v8155_v54, %v13793_v60  ;;  %v13809_v31 = vunpack.i.h.bf16 %v13807_v34  ;;  %v13808_v51 = vunpack.i.l.bf16 %v13807_v34 }
 0xc26   : > { %v13802_v40 = vpop.permute.xlu0 %13801  ;;  %v8188_v37 = vsel %vm8177_vm4, %v8171_v13, %v13798_v63  ;;  %v8189_v45 = vsel %vm8177_vm4, %v8172_v3, %v13799_v23 }
 0xc27   : > { %v13804_v52 = vunpack.i.h.bf16 %v13802_v40  ;;  %v13803_v46 = vunpack.i.l.bf16 %v13802_v40 }
 0xc28   : > { %v13817_v35 = vpop.permute.xlu1 %13816 }
 0xc29   : > { %v8204_v38 = vsel %vm3840_vm3, %v8188_v37, %v13803_v46  ;;  %v8205_v27 = vsel %vm3840_vm3, %v8189_v45, %v13804_v52  ;;  %v13819_v20 = vunpack.i.h.bf16 %v13817_v35  ;;  %v13818_v43 = vunpack.i.l.bf16 %v13817_v35  ;;  %v8701_v52 = vld [vmem:[%s21318_s8 + $0x8] sm:$0xff]  ;;  %v8703_v37 = vld [vmem:[%s21318_s8 + $0x18] sm:$0xff]  ;;  %v14399_v45 = vpop.eup %14398 }
 0xc2a   : > { %v13812_v50 = vpop.permute.xlu0 %13811  ;;  %v8221_v49 = vsel %vm8210_vm5, %v8204_v38, %v13808_v51  ;;  %v8222_v10 = vsel %vm8210_vm5, %v8205_v27, %v13809_v31  ;;  %v8705_v46 = vld [vmem:[%s21318_s8 + $0x28] sm:$0xff] }
 0xc2b   : > { %v13814_v29 = vunpack.i.h.bf16 %v13812_v50  ;;  %v13813_v2 = vunpack.i.l.bf16 %v13812_v50  ;;  %v12793_v51 = vpack.c.bf16 %v8705_v46, %v8701_v52  ;;  %v8707_v50 = vld [vmem:[%s21318_s8 + $0x38] sm:$0xff] }
 0xc2c   : > { %v13827_v32 = vpop.permute.xlu1 %13826 }
 0xc2d   : > { %v8238_v14 = vsel %vm8227_vm6, %v8221_v49, %v13813_v2  ;;  %v8239_v16 = vsel %vm8227_vm6, %v8222_v10, %v13814_v29  ;;  %v13829_v1 = vunpack.i.h.bf16 %v13827_v32  ;;  %v13828_v22 = vunpack.i.l.bf16 %v13827_v32  ;;  %v8704_v29 = vld [vmem:[%s21318_s8 + $0x20] sm:$0xff]  ;;  %v14401_v2 = vpop.eup %14400  ;;  %v8702_v49 = vld [vmem:[%s21318_s8 + $0x10] sm:$0xff]  ;;  %12794 = vmatprep.subr.bf16.mxu1 %v12793_v51 }
 0xc2e   : > { %v13822_v41 = vpop.permute.xlu0 %13821  ;;  %v8255_v33 = vsel %vm8244_vm7, %v8238_v14, %v13818_v43  ;;  %v8256_v30 = vsel %vm8244_vm7, %v8239_v16, %v13819_v20  ;;  %v8706_v10 = vld [vmem:[%s21318_s8 + $0x30] sm:$0xff]  ;;  %v8709_v14 = vld [vmem:[%s21318_s8 + $0x48] sm:$0xff] }
 0xc2f   : > { %v13824_v58 = vunpack.i.h.bf16 %v13822_v41  ;;  %v13823_v9 = vunpack.i.l.bf16 %v13822_v41  ;;  %v12035_v6 = vpop.f32.mrb[144].mxu0  ;;  %12048 = vmatprep.mubr.f32.mxu0 %v8255_v33  ;;  %v12825_v33 = vpack.c.bf16 %v8707_v50, %v8703_v37  ;;  %v12827_v57 = vpack.c.bf16 %v8706_v10, %v8702_v49  ;;  %v8718_v49 = vld [vmem:[%s21318_s8 + $0x90] sm:$0xff] }
 0xc30   : > { %v13837_v0 = vpop.permute.xlu1 %13836  ;;  %v8350_v42 = vpop.f32.mrb[145].mxu0  ;;  %12049 = vmatmul.mubr.f32.gmra.mrb[154].mxu0 %v8256_v30  ;;  %v8356_v39 = vadd.f32 %v12035_v6, %v20160_v25  ;;  %v12795_v30 = vpack.c.bf16 %v8704_v29, %v8700_v47  ;;  %v8723_v47 = vld [vmem:[%s21318_s8 + $0xb8] sm:$0xff]  ;;  %v8716_v29 = vld [vmem:[%s21318_s8 + $0x80] sm:$0xff]  ;;  %v8722_v10 = vld [vmem:[%s21318_s8 + $0xb0] sm:$0xff] }
 0xc31   : > { %v8158_v26 = vsel %vm1167_vm0, %v7582_v59, %v13824_v58  ;;  %v8157_v21 = vsel %vm1167_vm0, %v7581_v15, %v13823_v9  ;;  %v8351_v17 = vadd.f32 %v20160_v25, %v8350_v42  ;;  %v13839_v5 = vunpack.i.h.bf16 %v13837_v0  ;;  %v8713_v15 = vld [vmem:[%s21318_s8 + $0x68] sm:$0xff]  ;;  %v8715_v59 = vld [vmem:[%s21318_s8 + $0x78] sm:$0xff]  ;;  %v22702_v58 = vld [vmem:[#allocation129_spill] sm:$0xff]  ;;  %12826 = vmatprep.subr.bf16.mxu0 %v12825_v33 }
 0xc32   : > { %v13832_v19 = vpop.permute.xlu0 %13831  ;;  %v8173_v56 = vsel %vm1006_vm2, %v8157_v21, %v13828_v22  ;;  %v8174_v12 = vsel %vm1006_vm2, %v8158_v26, %v13829_v1  ;;  %v20176_v28 = vadd.f32 %v14467_v8, %v8356_v39  ;;  %v13838_v24 = vunpack.i.l.bf16 %v13837_v0  ;;  %v8708_v42 = vld [vmem:[%s21318_s8 + $0x40] sm:$0xff]  ;;  %v8710_v21 = vld [vmem:[%s21318_s8 + $0x50] sm:$0xff]  ;;  %v22703_v1 = vld [vmem:[#allocation184_spill] sm:$0xff]  ;;  %12796 = vmatpush1.bf16.msra.mxu1 %v12795_v30  ;;  %12828 = vmatpush1.bf16.msra.mxu0 %v12827_v57 }
 0xc33   : > { %v13834_v44 = vunpack.i.h.bf16 %v13832_v19  ;;  %v13833_v62 = vunpack.i.l.bf16 %v13832_v19  ;;  %v20169_v18 = vadd.f32 %v14466_v36, %v8351_v17  ;;  %v7584_v9 = vmul.f32 %v14399_v45, %v22702_v58  ;;  %v8712_v26 = vld [vmem:[%s21318_s8 + $0x60] sm:$0xff]  ;;  %v8717_v45 = vld [vmem:[%s21318_s8 + $0x88] sm:$0xff]  ;;  %v8731_v58 = vld [vmem:[%s21318_s8 + $0xf8] sm:$0xff] }
 0xc34   : > { %v13847_v11 = vpop.permute.xlu1 %13846  ;;  %v8497_v31 = vmul.f32 %v20176_v28, %v20176_v28  ;;  %v7583_v22 = vmul.f32 %v14401_v2, %v22703_v1  ;;  %v12797_v17 = vpack.c.bf16 %v8713_v15, %v8709_v14  ;;  %v12829_v19 = vpack.c.bf16 %v8715_v59, %v8711_v7  ;;  %v8720_v2 = vld [vmem:[%s21318_s8 + $0xa0] sm:$0xff]  ;;  %v8725_v57 = vld [vmem:[%s21318_s8 + $0xc8] sm:$0xff]  ;;  %v8727_v7 = vld [vmem:[%s21318_s8 + $0xd8] sm:$0xff] }
 0xc35   : > { %v8190_v61 = vsel %vm8177_vm4, %v8173_v56, %v13833_v62  ;;  %v8191_v48 = vsel %vm8177_vm4, %v8174_v12, %v13834_v44  ;;  %8447 = vadd.xlane.f32.xlu0 %v20169_v18  ;;  %v8496_v60 = vmul.f32 %v20169_v18, %v20169_v18  ;;  %v13848_v23 = vunpack.i.l.bf16 %v13847_v11  ;;  %v8714_v44 = vld [vmem:[%s21318_s8 + $0x70] sm:$0xff]  ;;  %v8729_v15 = vld [vmem:[%s21318_s8 + $0xe8] sm:$0xff] }
 0xc36   : > { %v13842_v55 = vpop.permute.xlu0 %13841  ;;  %v8206_v3 = vsel %vm3840_vm3, %v8190_v61, %v13838_v24  ;;  %v8207_v13 = vsel %vm3840_vm3, %v8191_v48, %v13839_v5  ;;  %v13849_v35 = vunpack.i.h.bf16 %v13847_v11  ;;  %v12799_v61 = vpack.c.bf16 %v8712_v26, %v8708_v42  ;;  %12798 = vmatprep.subr.bf16.mxu1 %v12797_v17  ;;  %12830 = vmatprep.subr.bf16.mxu0 %v12829_v19  ;;  %v8726_v26 = vld [vmem:[%s21318_s8 + $0xd0] sm:$0xff]  ;;  %v8737_v17 = vld [vmem:[%s21318_s8 + $0x128] sm:$0xff]  ;;  %v8735_v19 = vld [vmem:[%s21318_s8 + $0x118] sm:$0xff] }
 0xc37   : > { %v13844_v4 = vunpack.i.h.bf16 %v13842_v55  ;;  %v13843_v54 = vunpack.i.l.bf16 %v13842_v55  ;;  %8512 = vadd.xlane.f32.xlu1 %v8496_v60  ;;  %v12831_v48 = vpack.c.bf16 %v8714_v44, %v8710_v21  ;;  %v12805_v59 = vpack.c.bf16 %v8729_v15, %v8725_v57  ;;  %v8730_v21 = vld [vmem:[%s21318_s8 + $0xf0] sm:$0xff] }
 0xc38   : > { %v13857_v34 = vpop.permute.xlu1 %13856  ;;  %12800 = vmatpush1.bf16.msra.mxu1 %v12799_v61  ;;  %v12839_v1 = vpack.c.bf16 %v8730_v21, %v8726_v26  ;;  %v8734_v61 = vld [vmem:[%s21318_s8 + $0x110] sm:$0xff] }
 0xc39   : > { %v8223_v63 = vsel %vm8210_vm5, %v8206_v3, %v13843_v54  ;;  %v8224_v40 = vsel %vm8210_vm5, %v8207_v13, %v13844_v4  ;;  %v13859_v38 = vunpack.i.h.bf16 %v13857_v34  ;;  %8449 = vadd.xlane.f32.xlu0 %v20176_v28  ;;  %v13858_v53 = vunpack.i.l.bf16 %v13857_v34  ;;  %12832 = vmatpush1.bf16.msra.mxu0 %v12831_v48  ;;  %v8738_v48 = vld [vmem:[%s21318_s8 + $0x130] sm:$0xff] }
 0xc3a   : > { %v13852_v27 = vpop.permute.xlu0 %13851  ;;  %v8240_v32 = vsel %vm8227_vm6, %v8223_v63, %v13848_v23  ;;  %v8241_v41 = vsel %vm8227_vm6, %v8224_v40, %v13849_v35  ;;  %v8721_v35 = vld [vmem:[%s21318_s8 + $0xa8] sm:$0xff] }
 0xc3b   : > { %v13854_v20 = vunpack.i.h.bf16 %v13852_v27  ;;  %v13853_v43 = vunpack.i.l.bf16 %v13852_v27  ;;  %v8160_v62 = vsel %vm1167_vm0, %v7584_v9, %v13859_v38  ;;  %v8159_v12 = vsel %vm1167_vm0, %v7583_v22, %v13858_v53  ;;  %v8719_v38 = vld [vmem:[%s21318_s8 + $0x98] sm:$0xff]  ;;  %v8724_v9 = vld [vmem:[%s21318_s8 + $0xc0] sm:$0xff] }
 0xc3c   : > { %v13867_v16 = vpop.permute.xlu1 %13866  ;;  %v12801_v50 = vpack.c.bf16 %v8721_v35, %v8717_v45  ;;  %v22704_v22 = vmov 0.0   ;;  %v8755_v35 = vld [vmem:[%s21318_s8 + $0x1b8] sm:$0xff] }
 0xc3d   : > { %v8257_v6 = vsel %vm8244_vm7, %v8240_v32, %v13853_v43  ;;  %v8258_v0 = vsel %vm8244_vm7, %v8241_v41, %v13854_v20  ;;  %8514 = vadd.xlane.f32.xlu0 %v8497_v31  ;;  %v13869_v24 = vunpack.i.h.bf16 %v13867_v16  ;;  %v13868_v55 = vunpack.i.l.bf16 %v13867_v16 }
 0xc3e   : > { %v13862_v39 = vpop.permute.xlu0 %13861  ;;  %12051 = vmatprep.mubr.f32.mxu0 %v8257_v6  ;;  %v12833_v43 = vpack.c.bf16 %v8723_v47, %v8719_v38  ;;  %v12803_v32 = vpack.c.bf16 %v8720_v2, %v8716_v29  ;;  %12802 = vmatprep.subr.bf16.mxu1 %v12801_v50  ;;  %v12835_v41 = vpack.c.bf16 %v8722_v10, %v8718_v49  ;;  %v8728_v6 = vld [vmem:[%s21318_s8 + $0xe0] sm:$0xff]  ;;  %v8750_v50 = vld [vmem:[%s21318_s8 + $0x190] sm:$0xff]  ;;  %v8757_v29 = vld [vmem:[%s21318_s8 + $0x1c8] sm:$0xff] }
 0xc3f   : > { %v13864_v36 = vunpack.i.h.bf16 %v13862_v39  ;;  %v13863_v56 = vunpack.i.l.bf16 %v13862_v39  ;;  %12052 = vmatmul.mubr.f32.gmra.mrb[156].mxu0 %v8258_v0  ;;  %v12837_v0 = vpack.c.bf16 %v8731_v58, %v8727_v7  ;;  %v12807_v42 = vpack.c.bf16 %v8728_v6, %v8724_v9  ;;  %v8733_v39 = vld [vmem:[%s21318_s8 + $0x108] sm:$0xff]  ;;  %v8748_v38 = vld [vmem:[%s21318_s8 + $0x180] sm:$0xff]  ;;  %v8754_v47 = vld [vmem:[%s21318_s8 + $0x1b0] sm:$0xff] }
 0xc40   : > { %v13877_v11 = vpop.permute.xlu1 %13876  ;;  %12834 = vmatprep.subr.bf16.mxu0 %v12833_v43  ;;  %12804 = vmatpush1.bf16.msra.mxu1 %v12803_v32  ;;  %v12809_v44 = vpack.c.bf16 %v8737_v17, %v8733_v39  ;;  %v12851_v2 = vpack.c.bf16 %v8754_v47, %v8750_v50  ;;  %v8763_v43 = vld [vmem:[%s21318_s8 + $0x1f8] sm:$0xff]  ;;  %v8756_v10 = vld [vmem:[%s21318_s8 + $0x1c0] sm:$0xff]  ;;  %v14468_v58 = vld [vmem:[%s14794_s16 + $0x10] sm:$0xff] }
 0xc41   : > { %v8176_v8 = vsel %vm1006_vm2, %v8160_v62, %v13864_v36  ;;  %v8175_v5 = vsel %vm1006_vm2, %v8159_v12, %v13863_v56  ;;  %v13879_v40 = vunpack.i.h.bf16 %v13877_v11  ;;  %v13878_v52 = vunpack.i.l.bf16 %v13877_v11  ;;  %12836 = vmatpush1.bf16.msra.mxu0 %v12835_v41  ;;  %12806 = vmatprep.subr.bf16.mxu1 %v12805_v59  ;;  %v8739_v62 = vld [vmem:[%s21318_s8 + $0x138] sm:$0xff]  ;;  %v8732_v36 = vld [vmem:[%s21318_s8 + $0x100] sm:$0xff] }
 0xc42   : > { %v13872_v60 = vpop.permute.xlu0 %13871  ;;  %v8192_v34 = vsel %vm8177_vm4, %v8175_v5, %v13868_v55  ;;  %v8193_v3 = vsel %vm8177_vm4, %v8176_v8, %v13869_v24  ;;  %12838 = vmatprep.subr.bf16.mxu0 %v12837_v0  ;;  %v8736_v56 = vld [vmem:[%s21318_s8 + $0x120] sm:$0xff]  ;;  %v12841_v12 = vpack.c.bf16 %v8739_v62, %v8735_v19  ;;  %v12843_v8 = vpack.c.bf16 %v8738_v48, %v8734_v61  ;;  %v8741_v5 = vld [vmem:[%s21318_s8 + $0x148] sm:$0xff]  ;;  %v8743_v55 = vld [vmem:[%s21318_s8 + $0x158] sm:$0xff] }
 0xc43   : > { %v13874_v4 = vunpack.i.h.bf16 %v13872_v60  ;;  %v13873_v54 = vunpack.i.l.bf16 %v13872_v60  ;;  %v12811_v11 = vpack.c.bf16 %v8736_v56, %v8732_v36  ;;  %v8745_v24 = vld [vmem:[%s21318_s8 + $0x168] sm:$0xff]  ;;  %v14469_v6 = vld [vmem:[%s14794_s16 + $0x18] sm:$0xff]  ;;  %v14470_v19 = vld [vmem:[%s14794_s16 + $0x20] sm:$0xff] }
 0xc44   : > { %v13887_v13 = vpop.permute.xlu1 %13886  ;;  %12808 = vmatpush1.bf16.msra.mxu1 %v12807_v42  ;;  %v12813_v60 = vpack.c.bf16 %v8745_v24, %v8741_v5  ;;  %v14471_v62 = vld [vmem:[%s14794_s16 + $0x28] sm:$0xff] }
 0xc45   : > { %v8208_v23 = vsel %vm3840_vm3, %v8192_v34, %v13873_v54  ;;  %v8209_v63 = vsel %vm3840_vm3, %v8193_v3, %v13874_v4  ;;  %v13889_v46 = vunpack.i.h.bf16 %v13887_v13  ;;  %v13888_v27 = vunpack.i.l.bf16 %v13887_v13  ;;  %12840 = vmatpush1.bf16.msra.mxu0 %v12839_v1  ;;  %12810 = vmatprep.subr.bf16.mxu1 %v12809_v44  ;;  %v8747_v4 = vld [vmem:[%s21318_s8 + $0x178] sm:$0xff]  ;;  %v8740_v54 = vld [vmem:[%s21318_s8 + $0x140] sm:$0xff] }
 0xc46   : > { %v13882_v37 = vpop.permute.xlu0 %13881  ;;  %v8225_v53 = vsel %vm8210_vm5, %v8208_v23, %v13878_v52  ;;  %v8226_v20 = vsel %vm8210_vm5, %v8209_v63, %v13879_v40  ;;  %12842 = vmatprep.subr.bf16.mxu0 %v12841_v12  ;;  %v8744_v34 = vld [vmem:[%s21318_s8 + $0x160] sm:$0xff]  ;;  %v12845_v3 = vpack.c.bf16 %v8747_v4, %v8743_v55  ;;  %v8742_v23 = vld [vmem:[%s21318_s8 + $0x150] sm:$0xff]  ;;  %v8749_v52 = vld [vmem:[%s21318_s8 + $0x188] sm:$0xff] }
 0xc47   : > { %v13884_v31 = vunpack.i.h.bf16 %v13882_v37  ;;  %v13883_v51 = vunpack.i.l.bf16 %v13882_v37  ;;  %v12815_v13 = vpack.c.bf16 %v8744_v34, %v8740_v54  ;;  %v8746_v63 = vld [vmem:[%s21318_s8 + $0x170] sm:$0xff]  ;;  %v8751_v37 = vld [vmem:[%s21318_s8 + $0x198] sm:$0xff] }
 0xc48   : > { %12812 = vmatpush1.bf16.msra.mxu1 %v12811_v11  ;;  %v12847_v40 = vpack.c.bf16 %v8746_v63, %v8742_v23 }
 0xc49   : > { %v8242_v14 = vsel %vm8227_vm6, %v8225_v53, %v13883_v51  ;;  %v8243_v16 = vsel %vm8227_vm6, %v8226_v20, %v13884_v31  ;;  %12844 = vmatpush1.bf16.msra.mxu0 %v12843_v8  ;;  %12814 = vmatprep.subr.bf16.mxu1 %v12813_v60  ;;  %v12849_v31 = vpack.c.bf16 %v8755_v35, %v8751_v37  ;;  %v8761_v53 = vld [vmem:[%s21318_s8 + $0x1e8] sm:$0xff]  ;;  %v8759_v20 = vld [vmem:[%s21318_s8 + $0x1d8] sm:$0xff]  ;;  %v20438_v37 = vld [vmem:[%s21317_s7] ss:$0 sm:$0xff] }
 0xc4a   : > { %v8259_v33 = vsel %vm8244_vm7, %v8242_v14, %v13888_v27  ;;  %v8260_v30 = vsel %vm8244_vm7, %v8243_v16, %v13889_v46  ;;  %12846 = vmatprep.subr.bf16.mxu0 %v12845_v3  ;;  %v8753_v46 = vld [vmem:[%s21318_s8 + $0x1a8] sm:$0xff]  ;;  %v8752_v27 = vld [vmem:[%s21318_s8 + $0x1a0] sm:$0xff]  ;;  %v12821_v32 = vpack.c.bf16 %v8761_v53, %v8757_v29  ;;  %v12853_v49 = vpack.c.bf16 %v8763_v43, %v8759_v20  ;;  %v8758_v16 = vld [vmem:[%s21318_s8 + $0x1d0] sm:$0xff] }
 0xc4b   : > { %12054 = vmatprep.mubr.f32.mxu0 %v8259_v33  ;;  %v12817_v45 = vpack.c.bf16 %v8753_v46, %v8749_v52  ;;  %v12819_v51 = vpack.c.bf16 %v8752_v27, %v8748_v38  ;;  %v8760_v14 = vld [vmem:[%s21318_s8 + $0x1e0] sm:$0xff]  ;;  %v8762_v33 = vld [vmem:[%s21318_s8 + $0x1f0] sm:$0xff]  ;;  %v14473_v20 = vld [vmem:[%s14794_s16 + $0x38] sm:$0xff] }
 0xc4c   : > { %12055 = vmatmul.mubr.f32.gmra.mrb[158].mxu0 %v8260_v30  ;;  %12816 = vmatpush1.bf16.msra.mxu1 %v12815_v13  ;;  %v12823_v41 = vpack.c.bf16 %v8760_v14, %v8756_v10  ;;  %v12855_v30 = vpack.c.bf16 %v8762_v33, %v8758_v16  ;;  %v20433_v52 = vld [vmem:[%s21316_s6] ss:$0 sm:$0xff] }
 0xc4d   : > { %9011 = vmatprep.mubr.f32.mxu0 %v22704_v22  ;;  %12848 = vmatpush1.bf16.msra.mxu0 %v12847_v40  ;;  %v14474_v33 = vld [vmem:[%s14794_s16 + $0x40] sm:$0xff] }
 0xc4e   : > { %12818 = vmatprep.subr.bf16.mxu1 %v12817_v45  ;;  %12850 = vmatprep.subr.bf16.mxu0 %v12849_v31 }
 0xc50   : > { %12820 = vmatpush1.bf16.msra.mxu1 %v12819_v51 }
 0xc51   : > { %12852 = vmatpush1.bf16.msra.mxu0 %v12851_v2  ;;  %12822 = vmatprep.subr.bf16.mxu1 %v12821_v32  ;;  %v14472_v2 = vld [vmem:[%s14794_s16 + $0x30] sm:$0xff] }
 0xc52   : > { %12854 = vmatprep.subr.bf16.mxu0 %v12853_v49 }
 0xc54   : > { %12824 = vmatpush1.bf16.msra.mxu1 %v12823_v41 }
 0xc55   : > { %12856 = vmatpush1.bf16.msra.mxu0 %v12855_v30 }
 0xc68   : > { %v12038_v57 = vpop.f32.mrb[146].mxu0 }
 0xc69   : > { %v8360_v15 = vpop.f32.mrb[147].mxu0  ;;  %v8366_v7 = vadd.f32 %v12038_v57, %v20160_v25 }
 0xc6a   : > { %v8361_v59 = vadd.f32 %v20160_v25, %v8360_v15  ;;  %v14475_v15 = vld [vmem:[%s14794_s16 + $0x48] sm:$0xff] }
 0xc6b   : > { %v20407_v0 = vadd.f32 %v14469_v6, %v8366_v7 }
 0xc6c   : > { %v20404_v9 = vadd.f32 %v14468_v58, %v8361_v59 }
 0xc6d   : > { %v8499_v26 = vmul.f32 %v20407_v0, %v20407_v0 }
 0xc6e   : > { %8451 = vadd.xlane.f32.xlu0 %v20404_v9  ;;  %v8498_v42 = vmul.f32 %v20404_v9, %v20404_v9 }
 0xc70   : > { %8516 = vadd.xlane.f32.xlu1 %v8498_v42 }
 0xc72   : > { %8453 = vadd.xlane.f32.xlu0 %v20407_v0 }
 0xc74   : > { %8518 = vadd.xlane.f32.xlu1 %v8499_v26 }
 0xcad   : > { %v12041_v21 = vpop.f32.mrb[148].mxu0 }
 0xcae   : > { %v8370_v1 = vpop.f32.mrb[149].mxu0  ;;  %v8376_v39 = vadd.f32 %v12041_v21, %v20160_v25 }
 0xcaf   : > { %v8371_v17 = vadd.f32 %v20160_v25, %v8370_v1 }
 0xcb0   : > { %v20421_v36 = vadd.f32 %v14471_v62, %v8376_v39 }
 0xcb1   : > { %v20418_v44 = vadd.f32 %v14470_v19, %v8371_v17 }
 0xcb2   : > { %v8501_v12 = vmul.f32 %v20421_v36, %v20421_v36 }
 0xcb3   : > { %8455 = vadd.xlane.f32.xlu0 %v20418_v44  ;;  %v8500_v56 = vmul.f32 %v20418_v44, %v20418_v44 }
 0xcb5   : > { %8520 = vadd.xlane.f32.xlu1 %v8500_v56 }
 0xcb7   : > { %8457 = vadd.xlane.f32.xlu0 %v20421_v36 }
 0xcb9   : > { %8522 = vadd.xlane.f32.xlu1 %v8501_v12 }
 0xcc2   : > { %v8448_v11 = vpop.xlane.xlu0 %8447 }
 0xcc3   : > { %v8480_v61 = vmul.f32 0.0078125, %v8448_v11 }
 0xcc4   : > { %v8513_v48 = vpop.xlane.xlu1 %8512 }
 0xcc5   : > { %v8560_v8 = vmul.f32 %v8480_v61, %v8480_v61  ;;  %v8544_v5 = vmul.f32 0.0078125, %v8513_v48  ;;  %v8592_v63 = vsub.f32 %v20169_v18, %v8480_v61 }
 0xcc6   : > { %v8450_v24 = vpop.xlane.xlu0 %8449 }
 0xcc7   : > { %v8576_v55 = vsub.f32 %v8544_v5, %v8560_v8  ;;  %v8481_v60 = vmul.f32 0.0078125, %v8450_v24 }
 0xcc9   : > { %v8608_v4 = vadd.f32 1e-06, %v8576_v55  ;;  %v8561_v34 = vmul.f32 %v8481_v60, %v8481_v60  ;;  %v8593_v35 = vsub.f32 %v20176_v28, %v8481_v60  ;;  %v14476_v55 = vld [vmem:[%s14794_s16 + $0x50] sm:$0xff] }
 0xcca   : > { %v8515_v54 = vpop.xlane.xlu0 %8514 }
 0xccb   : > { %14402 = vrsqrt.f32 %v8608_v4  ;;  %v8545_v3 = vmul.f32 0.0078125, %v8515_v54  ;;  %v14477_v4 = vld [vmem:[%s14794_s16 + $0x58] sm:$0xff] }
 0xccd   : > { %v8577_v13 = vsub.f32 %v8545_v3, %v8561_v34 }
 0xccf   : > { %v8609_v23 = vadd.f32 1e-06, %v8577_v13 }
 0xcd1   : > { %14404 = vrsqrt.f32 %v8609_v23 }
 0xcd5   : > { %v14403_v40 = vpop.eup %14402 }
 0xcd6   : > { %v8640_v46 = vmul.f32 %v14403_v40, %v8592_v63 }
 0xcd8   : > { %v8662_v45 = vmul.f32 %v20433_v52, %v8640_v46 }
 0xcda   : > { %v20443_v38 = vadd.f32 %v20438_v37, %v8662_v45 }
 0xcdb   : > { %v14405_v18 = vpop.eup %14404 }
 0xcdc   : > { %8851 = vmatmul.mubr.f32.vlgmr.msra.gmra.mrb[160].mxu1 %v20443_v38  ;;  %9012 = vmatmul.mubr.f32.vlgmr.msra.gmra.mrb[160].mxu0 %v20443_v38  ;;  %v8641_v27 = vmul.f32 %v14405_v18, %v8593_v35 }
 0xcdd   : > { %8856 = vmatprep.mubr.f32.mxu1 %v22704_v22  ;;  %9017 = vmatprep.mubr.f32.mxu0 %v22704_v22 }
 0xcde   : > { %v8663_v31 = vmul.f32 %v20433_v52, %v8641_v27 }
 0xce0   : > { %v20451_v51 = vadd.f32 %v20438_v37, %v8663_v31 }
 0xce2   : > { %8857 = vmatmul.mubr.f32.gmra.mrb[162].mxu1 %v20451_v51  ;;  %9018 = vmatmul.mubr.f32.gmra.mrb[162].mxu0 %v20451_v51 }
 0xce3   : > { %8862 = vmatprep.mubr.f32.mxu1 %v22704_v22  ;;  %9023 = vmatprep.mubr.f32.mxu0 %v22704_v22 }
 0xce6   : > { %v12044_v28 = vpop.f32.mrb[150].mxu0 }
 0xce7   : > { %v8380_v50 = vpop.f32.mrb[151].mxu0  ;;  %v8386_v47 = vadd.f32 %v12044_v28, %v20160_v25 }
 0xce8   : > { %v8381_v29 = vadd.f32 %v20160_v25, %v8380_v50  ;;  %v14478_v50 = vld [vmem:[%s14794_s16 + $0x60] sm:$0xff] }
 0xce9   : > { %v20463_v43 = vadd.f32 %v14473_v20, %v8386_v47 }
 0xcea   : > { %v20460_v53 = vadd.f32 %v14472_v2, %v8381_v29  ;;  %v14479_v2 = vld [vmem:[%s14794_s16 + $0x68] sm:$0xff] }
 0xceb   : > { %v8503_v49 = vmul.f32 %v20463_v43, %v20463_v43 }
 0xcec   : > { %8459 = vadd.xlane.f32.xlu0 %v20460_v53  ;;  %v8502_v32 = vmul.f32 %v20460_v53, %v20460_v53 }
 0xcee   : > { %8524 = vadd.xlane.f32.xlu1 %v8502_v32 }
 0xcf0   : > { %8461 = vadd.xlane.f32.xlu0 %v20463_v43 }
 0xcf2   : > { %8526 = vadd.xlane.f32.xlu1 %v8503_v49 }
 0xcf6   : > { %v12047_v10 = vpop.f32.mrb[152].mxu0 }
 0xcf7   : > { %v8390_v14 = vpop.f32.mrb[153].mxu0  ;;  %v8396_v16 = vadd.f32 %v12047_v10, %v20160_v25 }
 0xcf8   : > { %v8391_v41 = vadd.f32 %v20160_v25, %v8390_v14 }
 0xcf9   : > { %v20477_v7 = vadd.f32 %v14475_v15, %v8396_v16  ;;  %v14481_v15 = vld [vmem:[%s14794_s16 + $0x78] sm:$0xff] }
 0xcfa   : > { %v20474_v30 = vadd.f32 %v14474_v33, %v8391_v41  ;;  %v14480_v33 = vld [vmem:[%s14794_s16 + $0x70] sm:$0xff]  ;;  %s14554_s16 = smov [#allocation2]  }
 0xcfb   : > { %v8452_v57 = vpop.xlane.xlu0 %8451  ;;  %v8505_v17 = vmul.f32 %v20477_v7, %v20477_v7  ;;  %s14486_s27 = sshll.u32 %s14554_s16, 4  ;;  %s14487_s27 = int_to_ptr.vmem [resolvable:$false] %s14486_s27 }
 0xcfc   : > { %v8482_v59 = vmul.f32 0.0078125, %v8452_v57  ;;  %8463 = vadd.xlane.f32.xlu0 %v20474_v30  ;;  %v8504_v58 = vmul.f32 %v20474_v30, %v20474_v30  ;;  %s14488_s28 = scalar_lea.vmem %s14487_s27, 4096  ;;  %p14489_p0 = scmp.lt.s32.totalorder %s21263_s24, %s14487_s27 }
 0xcfd   : > { %v8517_v6 = vpop.xlane.xlu1 %8516  ;;  %p14490_p1 = scmp.lt.s32.totalorder %s14488_s28, %s14482_s17 }
 0xcfe   : > { %v8562_v42 = vmul.f32 %v8482_v59, %v8482_v59  ;;  %v8546_v26 = vmul.f32 0.0078125, %v8517_v6  ;;  %8528 = vadd.xlane.f32.xlu1 %v8504_v58  ;;  %v8594_v3 = vsub.f32 %v20404_v9, %v8482_v59 }
 0xcff   : > { %v8454_v21 = vpop.xlane.xlu0 %8453  ;;  %p14491_p2 = por %p14490_p1, %p14489_p0 }
 0xd00   : > { %v8578_v1 = vsub.f32 %v8546_v26, %v8562_v42  ;;  %v8483_v39 = vmul.f32 0.0078125, %v8454_v21  ;;  %8465 = vadd.xlane.f32.xlu0 %v20477_v7  ;;  %v9189_v42 = vld [vmem:[%s21320_s10 + $0x88] sm:$0xff]  ;;  %v9220_v26 = vld [vmem:[%s21320_s10 + $0x180] sm:$0xff] }
 0xd01   : > { %v8519_v19 = vpop.xlane.xlu1 %8518  ;;  %p14492_p3 = pnand %p14491_p2, %p14485_p13 }
 0xd02   : > { %v8610_v62 = vadd.f32 1e-06, %v8578_v1  ;;  %v8563_v56 = vmul.f32 %v8483_v39, %v8483_v39  ;;  %v8547_v12 = vmul.f32 0.0078125, %v8519_v19  ;;  %8530 = vadd.xlane.f32.xlu1 %v8505_v17  ;;  %v8595_v40 = vsub.f32 %v20407_v0, %v8483_v39  ;;  %v9221_v1 = vld [vmem:[%s21320_s10 + $0x188] sm:$0xff]  ;;  %v9172_v17 = vld [vmem:[%s21320_s10] sm:$0xff] }
 0xd03   : > { %v12050_v11 = vpop.f32.mrb[154].mxu0  ;;  %v12889_v39 = vpack.c.bf16 %v9221_v1, %v9220_v26  ;;  %v9173_v19 = vld [vmem:[%s21320_s10 + $0x8] sm:$0xff]  ;;  %v9210_v1 = vld [vmem:[%s21320_s10 + $0x130] sm:$0xff] }
 0xd04   : > { %14406 = vrsqrt.f32 %v8610_v62  ;;  %v8579_v61 = vsub.f32 %v8547_v12, %v8563_v56  ;;  %v8400_v48 = vpop.f32.mrb[155].mxu0  ;;  %v8406_v8 = vadd.f32 %v12050_v11, %v20160_v25  ;;  %v9204_v62 = vld [vmem:[%s21320_s10 + $0x100] sm:$0xff]  ;;  %v12859_v56 = vpack.c.bf16 %v9173_v19, %v9172_v17  ;;  %v9205_v12 = vld [vmem:[%s21320_s10 + $0x108] sm:$0xff] }
 0xd05   : > { %v8401_v5 = vadd.f32 %v20160_v25, %v8400_v48  ;;  %12890 = vmatprep.subr.bf16.mxu0 %v12889_v39  ;;  %v12891_v11 = vpack.c.bf16 %v9205_v12, %v9204_v62  ;;  %v9191_v48 = vld [vmem:[%s21320_s10 + $0x98] sm:$0xff]  ;;  %v9197_v12 = vld [vmem:[%s21320_s10 + $0xc8] sm:$0xff] }
 0xd06   : > { %v8611_v24 = vadd.f32 1e-06, %v8579_v61  ;;  %v20491_v54 = vadd.f32 %v14477_v4, %v8406_v8  ;;  %v9190_v61 = vld [vmem:[%s21320_s10 + $0x90] sm:$0xff]  ;;  %v9175_v4 = vld [vmem:[%s21320_s10 + $0x18] sm:$0xff] }
 0xd07   : > { %v20488_v60 = vadd.f32 %v14476_v55, %v8401_v5  ;;  %v9222_v8 = vld [vmem:[%s21320_s10 + $0x190] sm:$0xff]  ;;  %12892 = vmatpush3.bf16.msra.mxu0 %v12891_v11  ;;  %v12861_v5 = vpack.c.bf16 %v9191_v48, %v9190_v61  ;;  %v9211_v39 = vld [vmem:[%s21320_s10 + $0x138] sm:$0xff]  ;;  %v9228_v11 = vld [vmem:[%s21320_s10 + $0x1c0] sm:$0xff] }
 0xd08   : > { %14408 = vrsqrt.f32 %v8611_v24  ;;  %v8507_v13 = vmul.f32 %v20491_v54, %v20491_v54  ;;  %v9223_v24 = vld [vmem:[%s21320_s10 + $0x198] sm:$0xff]  ;;  %v9174_v55 = vld [vmem:[%s21320_s10 + $0x10] sm:$0xff]  ;;  %v12903_v62 = vpack.c.bf16 %v9211_v39, %v9210_v1 }
 0xd09   : > { %8467 = vadd.xlane.f32.xlu0 %v20488_v60  ;;  %v8506_v34 = vmul.f32 %v20488_v60, %v20488_v60 }
 0xd0b   : > { %8532 = vadd.xlane.f32.xlu1 %v8506_v34  ;;  %v12893_v34 = vpack.c.bf16 %v9223_v24, %v9222_v8  ;;  %v9180_v24 = vld [vmem:[%s21320_s10 + $0x40] sm:$0xff] }
 0xd0d   : > { %8469 = vadd.xlane.f32.xlu0 %v20491_v54  ;;  %12894 = vmatprep.subr.bf16.mxu0 %v12893_v34 }
 0xd0e   : > { %v14407_v23 = vpop.eup %14406 }
 0xd0f   : > { %8534 = vadd.xlane.f32.xlu1 %v8507_v13  ;;  %v8642_v63 = vmul.f32 %v14407_v23, %v8594_v3  ;;  %v12863_v3 = vpack.c.bf16 %v9175_v4, %v9174_v55  ;;  %v9206_v13 = vld [vmem:[%s21320_s10 + $0x110] sm:$0xff]  ;;  %v9207_v23 = vld [vmem:[%s21320_s10 + $0x118] sm:$0xff]  ;;  %v9181_v55 = vld [vmem:[%s21320_s10 + $0x48] sm:$0xff] }
 0xd11   : > { %v8664_v46 = vmul.f32 %v20433_v52, %v8642_v63  ;;  %v12895_v63 = vpack.c.bf16 %v9207_v23, %v9206_v13  ;;  %v9212_v13 = vld [vmem:[%s21320_s10 + $0x140] sm:$0xff]  ;;  %v9213_v23 = vld [vmem:[%s21320_s10 + $0x148] sm:$0xff] }
 0xd12   : > { %v14409_v45 = vpop.eup %14408  ;;  %v12053_v35 = vpop.f32.mrb[156].mxu0 }
 0xd13   : > { %v8410_v18 = vpop.f32.mrb[157].mxu0  ;;  %v20503_v27 = vadd.f32 %v20438_v37, %v8664_v46  ;;  %v8643_v9 = vmul.f32 %v14409_v45, %v8595_v40  ;;  %v8416_v31 = vadd.f32 %v12053_v35, %v20160_v25  ;;  %v9192_v40 = vld [vmem:[%s21320_s10 + $0xa0] sm:$0xff]  ;;  %v9193_v46 = vld [vmem:[%s21320_s10 + $0xa8] sm:$0xff]  ;;  %12896 = vmatpush3.bf16.msra.mxu0 %v12895_v63  ;;  %v9198_v63 = vld [vmem:[%s21320_s10 + $0xd0] sm:$0xff] }
 0xd14   : > { %v8411_v28 = vadd.f32 %v20160_v25, %v8410_v18  ;;  %v9224_v45 = vld [vmem:[%s21320_s10 + $0x1a0] sm:$0xff]  ;;  %v12865_v35 = vpack.c.bf16 %v9193_v46, %v9192_v40  ;;  %v9225_v18 = vld [vmem:[%s21320_s10 + $0x1a8] sm:$0xff] }
 0xd15   : > { %8863 = vmatmul.mubr.f32.gmra.mrb[164].mxu1 %v20503_v27  ;;  %9024 = vmatmul.mubr.f32.gmra.mrb[164].mxu0 %v20503_v27  ;;  %v8665_v0 = vmul.f32 %v20433_v52, %v8643_v9  ;;  %v20519_v20 = vadd.f32 %v14479_v2, %v8416_v31  ;;  %v9176_v9 = vld [vmem:[%s21320_s10 + $0x20] sm:$0xff]  ;;  %v9177_v31 = vld [vmem:[%s21320_s10 + $0x28] sm:$0xff] }
 0xd16   : > { %v20511_v47 = vadd.f32 %v14478_v50, %v8411_v28  ;;  %8868 = vmatprep.mubr.f32.mxu1 %v22704_v22  ;;  %9029 = vmatprep.mubr.f32.mxu0 %v22704_v22  ;;  %v12867_v50 = vpack.c.bf16 %v9177_v31, %v9176_v9  ;;  %v9208_v2 = vld [vmem:[%s21320_s10 + $0x120] sm:$0xff]  ;;  %v9231_v9 = vld [vmem:[%s21320_s10 + $0x1d8] sm:$0xff]  ;;  %v12907_v31 = vpack.c.bf16 %v9213_v23, %v9212_v13 }
 0xd17   : > { %v20516_v29 = vadd.f32 %v20438_v37, %v8665_v0  ;;  %v8509_v49 = vmul.f32 %v20519_v20, %v20519_v20  ;;  %v12897_v0 = vpack.c.bf16 %v9225_v18, %v9224_v45  ;;  %v9230_v18 = vld [vmem:[%s21320_s10 + $0x1d0] sm:$0xff]  ;;  %v9219_v13 = vld [vmem:[%s21320_s10 + $0x178] sm:$0xff] }
 0xd18   : > { %8471 = vadd.xlane.f32.xlu0 %v20511_v47  ;;  %v8508_v32 = vmul.f32 %v20511_v47, %v20511_v47 }
 0xd19   : > { %8869 = vmatmul.mubr.f32.gmra.mrb[166].mxu1 %v20516_v29  ;;  %9030 = vmatmul.mubr.f32.gmra.mrb[166].mxu0 %v20516_v29 }
 0xd1a   : > { %8536 = vadd.xlane.f32.xlu1 %v8508_v32  ;;  %8874 = vmatprep.mubr.f32.mxu1 %v22704_v22  ;;  %v9209_v32 = vld [vmem:[%s21320_s10 + $0x128] sm:$0xff] }
 0xd1b   : > { %9035 = vmatprep.mubr.f32.mxu0 %v22704_v22  ;;  %12898 = vmatprep.subr.bf16.mxu0 %v12897_v0  ;;  %v12909_v0 = vpack.c.bf16 %v9231_v9, %v9230_v18 }
 0xd1c   : > { %8473 = vadd.xlane.f32.xlu0 %v20519_v20 }
 0xd1e   : > { %8538 = vadd.xlane.f32.xlu1 %v8509_v49 }
 0xd1f   : > { %v12056_v10 = vpop.f32.mrb[158].mxu0 }
 0xd20   : > { %v8420_v14 = vpop.f32.mrb[159].mxu0  ;;  %v8426_v16 = vadd.f32 %v12056_v10, %v20160_v25  ;;  %v12899_v10 = vpack.c.bf16 %v9209_v32, %v9208_v2  ;;  %v9183_v2 = vld [vmem:[%s21320_s10 + $0x58] sm:$0xff]  ;;  %v9214_v32 = vld [vmem:[%s21320_s10 + $0x150] sm:$0xff] }
 0xd21   : > { %v8421_v41 = vadd.f32 %v20160_v25, %v8420_v14  ;;  %v9188_v25 = vld [vmem:[%s21320_s10 + $0x80] sm:$0xff]  ;;  %v9194_v14 = vld [vmem:[%s21320_s10 + $0xb0] sm:$0xff] }
 0xd22   : > { %v20537_v59 = vadd.f32 %v14481_v15, %v8426_v16  ;;  %v12857_v21 = vpack.c.bf16 %v9189_v42, %v9188_v25  ;;  %v9195_v16 = vld [vmem:[%s21320_s10 + $0xb8] sm:$0xff]  ;;  %12900 = vmatpush3.bf16.msra.mxu0 %v12899_v10 }
 0xd23   : > { %v20534_v57 = vadd.f32 %v14480_v33, %v8421_v41  ;;  %v9226_v41 = vld [vmem:[%s21320_s10 + $0x1b0] sm:$0xff]  ;;  %v12869_v15 = vpack.c.bf16 %v9195_v16, %v9194_v14  ;;  %v9179_v25 = vld [vmem:[%s21320_s10 + $0x38] sm:$0xff] }
 0xd24   : > { %v8511_v6 = vmul.f32 %v20537_v59, %v20537_v59  ;;  %12858 = vmatprep.subr.bf16.mxu1 %v12857_v21  ;;  %v9215_v14 = vld [vmem:[%s21320_s10 + $0x158] sm:$0xff] }
 0xd25   : > { %8475 = vadd.xlane.f32.xlu0 %v20534_v57  ;;  %v8510_v58 = vmul.f32 %v20534_v57, %v20534_v57  ;;  %12860 = vmatpush3.bf16.msra.mxu1 %v12859_v56  ;;  %v9196_v56 = vld [vmem:[%s21320_s10 + $0xc0] sm:$0xff] }
 0xd26   : > { %12862 = vmatprep.subr.bf16.mxu1 %v12861_v5  ;;  %v12873_v8 = vpack.c.bf16 %v9197_v12, %v9196_v56  ;;  %v9229_v5 = vld [vmem:[%s21320_s10 + $0x1c8] sm:$0xff]  ;;  %v9202_v12 = vld [vmem:[%s21320_s10 + $0xf0] sm:$0xff] }
 0xd27   : > { %8540 = vadd.xlane.f32.xlu1 %v8510_v58  ;;  %v9227_v58 = vld [vmem:[%s21320_s10 + $0x1b8] sm:$0xff]  ;;  %v12905_v34 = vpack.c.bf16 %v9229_v5, %v9228_v11 }
 0xd28   : > { %v12901_v21 = vpack.c.bf16 %v9227_v58, %v9226_v41  ;;  %v9201_v58 = vld [vmem:[%s21320_s10 + $0xe8] sm:$0xff]  ;;  %v9203_v11 = vld [vmem:[%s21320_s10 + $0xf8] sm:$0xff] }
 0xd29   : > { %8477 = vadd.xlane.f32.xlu0 %v20537_v59  ;;  %12864 = vmatpush3.bf16.msra.mxu1 %v12863_v3  ;;  %v12875_v3 = vpack.c.bf16 %v9181_v55, %v9180_v24  ;;  %v12885_v5 = vpack.c.bf16 %v9203_v11, %v9202_v12  ;;  %v9187_v24 = vld [vmem:[%s21320_s10 + $0x78] sm:$0xff] }
 0xd2a   : > { %12866 = vmatprep.subr.bf16.mxu1 %v12865_v35  ;;  %12902 = vmatprep.subr.bf16.mxu0 %v12901_v21  ;;  %v9199_v35 = vld [vmem:[%s21320_s10 + $0xd8] sm:$0xff]  ;;  %v9185_v21 = vld [vmem:[%s21320_s10 + $0x68] sm:$0xff] }
 0xd2b   : > { %8542 = vadd.xlane.f32.xlu1 %v8511_v6  ;;  %v9178_v6 = vld [vmem:[%s21320_s10 + $0x30] sm:$0xff]  ;;  %12904 = vmatpush3.bf16.msra.mxu0 %v12903_v62 }
 0xd2c   : > { %v12871_v19 = vpack.c.bf16 %v9179_v25, %v9178_v6  ;;  %12906 = vmatprep.subr.bf16.mxu0 %v12905_v34  ;;  %v9232_v6 = vld [vmem:[%s21320_s10 + $0x1e0] sm:$0xff] }
 0xd2d   : > { %12868 = vmatpush3.bf16.msra.mxu1 %v12867_v50  ;;  %v9182_v50 = vld [vmem:[%s21320_s10 + $0x50] sm:$0xff] }
 0xd2e   : > { %12870 = vmatprep.subr.bf16.mxu1 %v12869_v15  ;;  %v12879_v16 = vpack.c.bf16 %v9183_v2, %v9182_v50  ;;  %v9200_v15 = vld [vmem:[%s21320_s10 + $0xe0] sm:$0xff] }
 0xd2f   : > { %12908 = vmatpush3.bf16.msra.mxu0 %v12907_v31  ;;  %v12881_v25 = vpack.c.bf16 %v9201_v58, %v9200_v15 }
 0xd30   : > { %12910 = vmatprep.subr.bf16.mxu0 %v12909_v0 }
 0xd31   : > { %12872 = vmatpush3.bf16.msra.mxu1 %v12871_v19  ;;  %v9217_v19 = vld [vmem:[%s21320_s10 + $0x168] sm:$0xff] }
 0xd32   : > { %12874 = vmatprep.subr.bf16.mxu1 %v12873_v8 }
 0xd35   : > { %12876 = vmatpush3.bf16.msra.mxu1 %v12875_v3  ;;  %v9218_v3 = vld [vmem:[%s21320_s10 + $0x170] sm:$0xff] }
 0xd36   : > { %v12919_v23 = vpack.c.bf16 %v9219_v13, %v9218_v3 }
 0xd40   : > { %v8456_v28 = vpop.xlane.xlu0 %8455 }
 0xd41   : > { %v20617_v49 = vmul.f32 0.0078125, %v8456_v28  ;;  %v12877_v28 = vpack.c.bf16 %v9199_v35, %v9198_v63 }
 0xd42   : > { %v8521_v33 = vpop.xlane.xlu1 %8520 }
 0xd43   : > { %v8564_v42 = vmul.f32 %v20617_v49, %v20617_v49  ;;  %v8548_v26 = vmul.f32 0.0078125, %v8521_v33  ;;  %12878 = vmatprep.subr.bf16.mxu1 %v12877_v28  ;;  %v12911_v33 = vpack.c.bf16 %v9215_v14, %v9214_v32  ;;  %v8596_v56 = vsub.f32 %v20418_v44, %v20617_v49  ;;  %v9235_v44 = vld [vmem:[%s21320_s10 + $0x1f8] sm:$0xff]  ;;  %v9186_v49 = vld [vmem:[%s21320_s10 + $0x70] sm:$0xff] }
 0xd44   : > { %v8458_v17 = vpop.xlane.xlu0 %8457  ;;  %12880 = vmatpush3.bf16.msra.mxu1 %v12879_v16  ;;  %v12887_v34 = vpack.c.bf16 %v9187_v24, %v9186_v49 }
 0xd45   : > { %v8580_v61 = vsub.f32 %v8548_v26, %v8564_v42  ;;  %v20654_v48 = vmul.f32 0.0078125, %v8458_v17  ;;  %v9233_v42 = vld [vmem:[%s21320_s10 + $0x1e8] sm:$0xff]  ;;  %v9184_v26 = vld [vmem:[%s21320_s10 + $0x60] sm:$0xff]  ;;  %12912 = vmatpush3.bf16.msra.mxu0 %v12911_v33  ;;  %12882 = vmatprep.subr.bf16.mxu1 %v12881_v25 }
 0xd46   : > { %v8523_v4 = vpop.xlane.xlu1 %8522  ;;  %v12913_v1 = vpack.c.bf16 %v9233_v42, %v9232_v6  ;;  %v12883_v39 = vpack.c.bf16 %v9185_v21, %v9184_v26  ;;  %v9216_v17 = vld [vmem:[%s21320_s10 + $0x160] sm:$0xff] }
 0xd47   : > { %v8612_v40 = vadd.f32 1e-06, %v8580_v61  ;;  %v8565_v46 = vmul.f32 %v20654_v48, %v20654_v48  ;;  %v8549_v45 = vmul.f32 0.0078125, %v8523_v4  ;;  %v12915_v62 = vpack.c.bf16 %v9217_v19, %v9216_v17  ;;  %v9234_v61 = vld [vmem:[%s21320_s10 + $0x1f0] sm:$0xff] }
 0xd48   : > { %12914 = vmatprep.subr.bf16.mxu0 %v12913_v1  ;;  %12884 = vmatpush3.bf16.msra.mxu1 %v12883_v39  ;;  %v12917_v4 = vpack.c.bf16 %v9235_v44, %v9234_v61  ;;  %v8597_v63 = vsub.f32 %v20421_v36, %v20654_v48 }
 0xd49   : > { %14410 = vrsqrt.f32 %v8612_v40  ;;  %v8581_v10 = vsub.f32 %v8549_v45, %v8565_v46  ;;  %12916 = vmatpush3.bf16.msra.mxu0 %v12915_v62  ;;  %12886 = vmatprep.subr.bf16.mxu1 %v12885_v5 }
 0xd4a   : > { %12918 = vmatprep.subr.bf16.mxu0 %v12917_v4 }
 0xd4b   : > { %v8613_v41 = vadd.f32 1e-06, %v8581_v10 }
 0xd4c   : > { %12888 = vmatpush3.bf16.msra.mxu1 %v12887_v34 }
 0xd4d   : > { %14412 = vrsqrt.f32 %v8613_v41  ;;  %12920 = vmatpush3.bf16.msra.mxu0 %v12919_v23 }
 0xd53   : > { %v14411_v8 = vpop.eup %14410 }
 0xd54   : > { %v8644_v55 = vmul.f32 %v14411_v8, %v8596_v56 }
 0xd56   : > { %v8666_v40 = vmul.f32 %v20433_v52, %v8644_v55 }
 0xd57   : > { %v14413_v46 = vpop.eup %14412 }
 0xd58   : > { %v20751_v45 = vadd.f32 %v20438_v37, %v8666_v40  ;;  %v8645_v35 = vmul.f32 %v14413_v46, %v8597_v63 }
 0xd5a   : > { %8875 = vmatmul.mubr.f32.gmra.mrb[168].mxu1 %v20751_v45  ;;  %9036 = vmatmul.mubr.f32.gmra.mrb[168].mxu0 %v20751_v45  ;;  %v8667_v18 = vmul.f32 %v20433_v52, %v8645_v35 }
 0xd5b   : > { %8880 = vmatprep.mubr.f32.mxu1 %v22704_v22  ;;  %9041 = vmatprep.mubr.f32.mxu0 %v22704_v22 }
 0xd5c   : > { %v20759_v36 = vadd.f32 %v20438_v37, %v8667_v18 }
 0xd5e   : > { %8881 = vmatmul.mubr.f32.gmra.mrb[170].mxu1 %v20759_v36  ;;  %9042 = vmatmul.mubr.f32.gmra.mrb[170].mxu0 %v20759_v36 }
 0xd5f   : > { %8886 = vmatprep.mubr.f32.mxu1 %v22704_v22  ;;  %9047 = vmatprep.mubr.f32.mxu0 %v22704_v22 }
 0xd79   : > { %v8460_v48 = vpop.xlane.xlu0 %8459 }
 0xd7a   : > { %v8486_v9 = vmul.f32 0.0078125, %v8460_v48 }
 0xd7b   : > { %v8525_v31 = vpop.xlane.xlu1 %8524 }
 0xd7c   : > { %v8566_v28 = vmul.f32 %v8486_v9, %v8486_v9  ;;  %v8550_v0 = vmul.f32 0.0078125, %v8525_v31  ;;  %v8598_v25 = vsub.f32 %v20460_v53, %v8486_v9 }
 0xd7d   : > { %v8462_v50 = vpop.xlane.xlu0 %8461 }
 0xd7e   : > { %v8582_v2 = vsub.f32 %v8550_v0, %v8566_v28  ;;  %v8487_v32 = vmul.f32 0.0078125, %v8462_v50 }
 0xd7f   : > { %v8527_v10 = vpop.xlane.xlu1 %8526 }
 0xd80   : > { %v8614_v14 = vadd.f32 1e-06, %v8582_v2  ;;  %v8567_v16 = vmul.f32 %v8487_v32, %v8487_v32  ;;  %v8551_v41 = vmul.f32 0.0078125, %v8527_v10  ;;  %v8599_v56 = vsub.f32 %v20463_v43, %v8487_v32 }
 0xd82   : > { %14414 = vrsqrt.f32 %v8614_v14  ;;  %v8583_v33 = vsub.f32 %v8551_v41, %v8567_v16 }
 0xd84   : > { %v8615_v15 = vadd.f32 1e-06, %v8583_v33 }
 0xd86   : > { %14416 = vrsqrt.f32 %v8615_v15 }
 0xd89   : > { %v8464_v58 = vpop.xlane.xlu0 %8463 }
 0xd8a   : > { %v8488_v6 = vmul.f32 0.0078125, %v8464_v58 }
 0xd8b   : > { %v8529_v42 = vpop.xlane.xlu1 %8528 }
 0xd8c   : > { %v14415_v26 = vpop.eup %14414  ;;  %v8568_v21 = vmul.f32 %v8488_v6, %v8488_v6  ;;  %v8552_v1 = vmul.f32 0.0078125, %v8529_v42  ;;  %v8600_v48 = vsub.f32 %v20474_v30, %v8488_v6 }
 0xd8d   : > { %v8466_v39 = vpop.xlane.xlu0 %8465  ;;  %v8646_v17 = vmul.f32 %v14415_v26, %v8598_v25 }
 0xd8e   : > { %v8584_v19 = vsub.f32 %v8552_v1, %v8568_v21  ;;  %v8489_v62 = vmul.f32 0.0078125, %v8466_v39 }
 0xd8f   : > { %v8531_v12 = vpop.xlane.xlu1 %8530  ;;  %v8668_v11 = vmul.f32 %v20433_v52, %v8646_v17 }
 0xd90   : > { %v14417_v61 = vpop.eup %14416  ;;  %v8616_v8 = vadd.f32 1e-06, %v8584_v19  ;;  %v8569_v5 = vmul.f32 %v8489_v62, %v8489_v62  ;;  %v8553_v44 = vmul.f32 0.0078125, %v8531_v12  ;;  %v8601_v2 = vsub.f32 %v20477_v7, %v8489_v62 }
 0xd91   : > { %v20769_v49 = vadd.f32 %v20438_v37, %v8668_v11  ;;  %v8647_v53 = vmul.f32 %v14417_v61, %v8599_v56 }
 0xd92   : > { %14418 = vrsqrt.f32 %v8616_v8  ;;  %v8585_v24 = vsub.f32 %v8553_v44, %v8569_v5 }
 0xd93   : > { %8887 = vmatmul.mubr.f32.gmra.mrb[172].mxu1 %v20769_v49  ;;  %9048 = vmatmul.mubr.f32.gmra.mrb[172].mxu0 %v20769_v49  ;;  %v8669_v55 = vmul.f32 %v20433_v52, %v8647_v53 }
 0xd94   : > { %v8617_v43 = vadd.f32 1e-06, %v8585_v24  ;;  %8892 = vmatprep.mubr.f32.mxu1 %v22704_v22  ;;  %9053 = vmatprep.mubr.f32.mxu0 %v22704_v22 }
 0xd95   : > { %v20777_v4 = vadd.f32 %v20438_v37, %v8669_v55 }
 0xd96   : > { %14420 = vrsqrt.f32 %v8617_v43  ;;  %v8468_v34 = vpop.xlane.xlu0 %8467 }
 0xd97   : > { %v8490_v3 = vmul.f32 0.0078125, %v8468_v34  ;;  %8893 = vmatmul.mubr.f32.gmra.mrb[174].mxu1 %v20777_v4  ;;  %9054 = vmatmul.mubr.f32.gmra.mrb[174].mxu0 %v20777_v4 }
 0xd98   : > { %v8533_v13 = vpop.xlane.xlu1 %8532  ;;  %8898 = vmatprep.mubr.f32.mxu1 %v22704_v22  ;;  %9059 = vmatprep.mubr.f32.mxu0 %v22704_v22 }
 0xd99   : > { %v8570_v23 = vmul.f32 %v8490_v3, %v8490_v3  ;;  %v8554_v63 = vmul.f32 0.0078125, %v8533_v13  ;;  %v8602_v25 = vsub.f32 %v20488_v60, %v8490_v3 }
 0xd9a   : > { %v8470_v40 = vpop.xlane.xlu0 %8469 }
 0xd9b   : > { %v8586_v46 = vsub.f32 %v8554_v63, %v8570_v23  ;;  %v8491_v35 = vmul.f32 0.0078125, %v8470_v40 }
 0xd9c   : > { %v14419_v18 = vpop.eup %14418  ;;  %v8535_v9 = vpop.xlane.xlu1 %8534 }
 0xd9d   : > { %v8618_v31 = vadd.f32 1e-06, %v8586_v46  ;;  %v8571_v28 = vmul.f32 %v8491_v35, %v8491_v35  ;;  %v8555_v0 = vmul.f32 0.0078125, %v8535_v9  ;;  %v8648_v50 = vmul.f32 %v14419_v18, %v8600_v48 }
 0xd9e   : > { %v8603_v56 = vsub.f32 %v20491_v54, %v8491_v35 }
 0xd9f   : > { %14422 = vrsqrt.f32 %v8618_v31  ;;  %v8587_v32 = vsub.f32 %v8555_v0, %v8571_v28  ;;  %v8670_v14 = vmul.f32 %v20433_v52, %v8648_v50 }
 0xda0   : > { %v14421_v10 = vpop.eup %14420 }
 0xda1   : > { %v8619_v16 = vadd.f32 1e-06, %v8587_v32  ;;  %v8649_v41 = vmul.f32 %v14421_v10, %v8601_v2  ;;  %v20787_v33 = vadd.f32 %v20438_v37, %v8670_v14 }
 0xda3   : > { %14424 = vrsqrt.f32 %v8619_v16  ;;  %v8671_v30 = vmul.f32 %v20433_v52, %v8649_v41  ;;  %8899 = vmatmul.mubr.f32.gmra.mrb[176].mxu1 %v20787_v33  ;;  %9060 = vmatmul.mubr.f32.gmra.mrb[176].mxu0 %v20787_v33 }
 0xda4   : > { %8904 = vmatprep.mubr.f32.mxu1 %v22704_v22  ;;  %9065 = vmatprep.mubr.f32.mxu0 %v22704_v22 }
 0xda5   : > { %v8472_v15 = vpop.xlane.xlu0 %8471  ;;  %v20795_v7 = vadd.f32 %v20438_v37, %v8671_v30 }
 0xda6   : > { %v8492_v58 = vmul.f32 0.0078125, %v8472_v15 }
 0xda7   : > { %v8537_v6 = vpop.xlane.xlu1 %8536  ;;  %8905 = vmatmul.mubr.f32.gmra.mrb[178].mxu1 %v20795_v7  ;;  %9066 = vmatmul.mubr.f32.gmra.mrb[178].mxu0 %v20795_v7 }
 0xda8   : > { %v8572_v42 = vmul.f32 %v8492_v58, %v8492_v58  ;;  %v8556_v26 = vmul.f32 0.0078125, %v8537_v6  ;;  %8910 = vmatprep.mubr.f32.mxu1 %v22704_v22  ;;  %9071 = vmatprep.mubr.f32.mxu0 %v22704_v22  ;;  %v8604_v50 = vsub.f32 %v20511_v47, %v8492_v58 }
 0xda9   : > { %v14423_v21 = vpop.eup %14422  ;;  %v8474_v1 = vpop.xlane.xlu0 %8473 }
 0xdaa   : > { %v8588_v39 = vsub.f32 %v8556_v26, %v8572_v42  ;;  %v8493_v17 = vmul.f32 0.0078125, %v8474_v1  ;;  %v8650_v19 = vmul.f32 %v14423_v21, %v8602_v25 }
 0xdab   : > { %v8539_v62 = vpop.xlane.xlu1 %8538 }
 0xdac   : > { %v8620_v12 = vadd.f32 1e-06, %v8588_v39  ;;  %v8573_v60 = vmul.f32 %v8493_v17, %v8493_v17  ;;  %v8557_v11 = vmul.f32 0.0078125, %v8539_v62  ;;  %v8672_v8 = vmul.f32 %v20433_v52, %v8650_v19  ;;  %v8764_v62 = vld [vmem:[%s21319_s9] sm:$0xf] }
 0xdad   : > { %v14425_v61 = vpop.eup %14424  ;;  %v8605_v30 = vsub.f32 %v20519_v20, %v8493_v17  ;;  %v22705_v17 = vld [vmem:[#allocation11_spill] sm:$0xff] }
 0xdae   : > { %14426 = vrsqrt.f32 %v8620_v12  ;;  %v8589_v5 = vsub.f32 %v8557_v11, %v8573_v60  ;;  %v8651_v44 = vmul.f32 %v14425_v61, %v8603_v56  ;;  %v20805_v53 = vadd.f32 %v20438_v37, %v8672_v8 }
 0xdaf   : > { %v20807_v55 = vpop.f32.mrb[160].mxu1  ;;  %v20809_v43 = vpop.f32.mrb[160].mxu0  ;;  %v8780_v19 = vsub.s32 3, %v22705_v17 }
 0xdb0   : > { %v8621_v24 = vadd.f32 1e-06, %v8589_v5  ;;  %v8673_v34 = vmul.f32 %v20433_v52, %v8651_v44  ;;  %v20812_v54 = vpop.f32.mrb[161].mxu1  ;;  %8911 = vmatmul.mubr.f32.gmra.mrb[180].mxu1 %v20805_v53  ;;  %v20815_v3 = vpop.f32.mrb[161].mxu0  ;;  %9072 = vmatmul.mubr.f32.gmra.mrb[180].mxu0 %v20805_v53  ;;  %v22707_v44 = vld [vmem:[#allocation12_spill] sm:$0xff] }
 0xdb1   : > { %8916 = vmatprep.mubr.f32.mxu1 %v22704_v22  ;;  %9077 = vmatprep.mubr.f32.mxu0 %v22704_v22  ;;  %v20859_v11 = vrot.slane %v8764_v62, %v8780_v19 }
 0xdb2   : > { %14428 = vrsqrt.f32 %v8621_v24  ;;  %v8476_v13 = vpop.xlane.xlu0 %8475  ;;  %v20821_v23 = vadd.f32 %v20438_v37, %v8673_v34  ;;  %v20866_v24 = vrot.slane %v8764_v62, %v22707_v44  ;;  %v22708_v34 = vsub.s32 2, %v22705_v17 }
 0xdb3   : > { %v8494_v63 = vmul.f32 0.0078125, %v8476_v13 }
 0xdb4   : > { %v8541_v40 = vpop.xlane.xlu1 %8540  ;;  %8917 = vmatmul.mubr.f32.gmra.mrb[182].mxu1 %v20821_v23  ;;  %9078 = vmatmul.mubr.f32.gmra.mrb[182].mxu0 %v20821_v23  ;;  %v20870_v13 = vrot.slane %v8764_v62, %v22708_v34 }
 0xdb5   : > { %v8574_v46 = vmul.f32 %v8494_v63, %v8494_v63  ;;  %v8558_v35 = vmul.f32 0.0078125, %v8541_v40  ;;  %v20825_v18 = vpop.f32.mrb[162].mxu1  ;;  %v20827_v48 = vpop.f32.mrb[162].mxu0  ;;  %8922 = vmatprep.mubr.f32.mxu1 %v22704_v22  ;;  %9083 = vmatprep.mubr.f32.mxu0 %v22704_v22  ;;  %v8606_v58 = vsub.f32 %v20534_v57, %v8494_v63  ;;  %v22706_v57 = vsub.s32 1, %v22705_v17 }
 0xdb6   : > { %v8860_v31 = vpop.f32.mrb[163].mxu1  ;;  %v9021_v28 = vpop.f32.mrb[163].mxu0 }
 0xdb7   : > { %v8590_v9 = vsub.f32 %v8558_v35, %v8574_v46  ;;  %v8478_v2 = vpop.xlane.xlu0 %8477  ;;  %v20857_v60 = vrot.slane %v8764_v62, %v22706_v57  ;;  %v8853_v35 = vadd.f32 %v20807_v55, %v20866_v24  ;;  %v8859_v55 = vadd.f32 %v20825_v18, %v20866_v24 }
 0xdb8   : > { %v14427_v0 = vpop.eup %14426  ;;  %v8543_v32 = vpop.xlane.xlu1 %8542  ;;  %v8495_v14 = vmul.f32 0.0078125, %v8478_v2 }
 0xdb9   : > { %v8622_v10 = vadd.f32 1e-06, %v8590_v9  ;;  %v8559_v16 = vmul.f32 0.0078125, %v8543_v32  ;;  %v8652_v41 = vmul.f32 %v14427_v0, %v8604_v50  ;;  %v8855_v40 = vadd.f32 %v20812_v54, %v20857_v60 }
 0xdba   : > { %v8575_v15 = vmul.f32 %v8495_v14, %v8495_v14  ;;  %v8607_v61 = vsub.f32 %v20537_v59, %v8495_v14  ;;  %v9016_v59 = vadd.f32 %v20815_v3, %v20859_v11  ;;  %v9014_v9 = vadd.f32 %v20809_v43, %v20870_v13 }
 0xdbb   : > { %14430 = vrsqrt.f32 %v8622_v10  ;;  %v8674_v25 = vmul.f32 %v20433_v52, %v8652_v41  ;;  %v9109_v50 = vmax.f32 %v8855_v40, 0.0  ;;  %v8861_v2 = vadd.f32 %v8860_v31, %v20857_v60 }
 0xdbc   : > { %v14429_v6 = vpop.eup %14428  ;;  %v8591_v42 = vsub.f32 %v8559_v16, %v8575_v15  ;;  %v9111_v54 = vmax.f32 %v9016_v59, 0.0  ;;  %v9022_v3 = vadd.f32 %v9021_v28, %v20859_v11  ;;  %v9112_v31 = vmax.f32 %v8859_v55, 0.0 }
 0xdbd   : > { %v8653_v26 = vmul.f32 %v14429_v6, %v8605_v30  ;;  %v20835_v21 = vadd.f32 %v20438_v37, %v8674_v25  ;;  %v9113_v43 = vmax.f32 %v8861_v2, 0.0 }
 0xdbe   : > { %v8623_v1 = vadd.f32 1e-06, %v8591_v42  ;;  %v9115_v32 = vmax.f32 %v9022_v3, 0.0 }
 0xdbf   : > { %v8675_v47 = vmul.f32 %v20433_v52, %v8653_v26  ;;  %8923 = vmatmul.mubr.f32.gmra.mrb[184].mxu1 %v20835_v21  ;;  %9084 = vmatmul.mubr.f32.gmra.mrb[184].mxu0 %v20835_v21 }
 0xdc0   : > { %14432 = vrsqrt.f32 %v8623_v1  ;;  %8928 = vmatprep.mubr.f32.mxu1 %v22704_v22  ;;  %9089 = vmatprep.mubr.f32.mxu0 %v22704_v22 }
 0xdc1   : > { %v20843_v20 = vadd.f32 %v20438_v37, %v8675_v47 }
 0xdc3   : > { %8929 = vmatmul.mubr.f32.gmra.mrb[186].mxu1 %v20843_v20  ;;  %9090 = vmatmul.mubr.f32.gmra.mrb[186].mxu0 %v20843_v20 }
 0xdc4   : > { %8934 = vmatprep.mubr.f32.mxu1 %v22704_v22  ;;  %9095 = vmatprep.mubr.f32.mxu0 %v22704_v22 }
 0xdc5   : > { %v14431_v39 = vpop.eup %14430 }
 0xdc6   : > { %v8654_v56 = vmul.f32 %v14431_v39, %v8606_v58 }
 0xdc8   : > { %v8676_v12 = vmul.f32 %v20433_v52, %v8654_v56 }
 0xdca   : > { %v20863_v8 = vadd.f32 %v20438_v37, %v8676_v12  ;;  %v14433_v5 = vpop.eup %14432 }
 0xdcb   : > { %v8655_v63 = vmul.f32 %v14433_v5, %v8607_v61 }
 0xdcc   : > { %8935 = vmatmul.mubr.f32.gmra.mrb[188].mxu1 %v20863_v8  ;;  %9096 = vmatmul.mubr.f32.gmra.mrb[188].mxu0 %v20863_v8 }
 0xdcd   : > { %8940 = vmatprep.mubr.f32.mxu1 %v22704_v22  ;;  %9101 = vmatprep.mubr.f32.mxu0 %v22704_v22  ;;  %v8677_v46 = vmul.f32 %v20433_v52, %v8655_v63  ;;  %v9108_v22 = vmax.f32 %v8853_v35, 0.0  ;;  %v9110_v52 = vmax.f32 %v9014_v9, 0.0 }
 0xdcf   : > { %v20886_v0 = vadd.f32 %v20438_v37, %v8677_v46  ;;  %v9020_v37 = vadd.f32 %v20827_v48, %v20870_v13 }
 0xdd1   : > { %8941 = vmatmul.mubr.f32.gmra.mrb[190].mxu1 %v20886_v0  ;;  %9102 = vmatmul.mubr.f32.gmra.mrb[190].mxu0 %v20886_v0  ;;  %v9114_v28 = vmax.f32 %v9020_v37, 0.0 }
 0xdd2   : > { %9307 = vmatprep.mubr.f32.mxu1 %v9109_v50  ;;  %9452 = vmatprep.mubr.f32.mxu0 %v9111_v54 }
 0xdd5   : > { %9308 = vmatmul.mubr.f32.vlgmr.msra.gmra.mrb[192].mxu1 %v9108_v22  ;;  %9453 = vmatmul.mubr.f32.vlgmr.msra.gmra.mrb[192].mxu0 %v9110_v52 }
 0xdd6   : > { %9312 = vmatprep.mubr.f32.mxu1 %v9113_v43  ;;  %9457 = vmatprep.mubr.f32.mxu0 %v9115_v32 }
 0xdd9   : > { %9313 = vmatmul.mubr.f32.gmra.mrb[194].mxu1 %v9112_v31  ;;  %9458 = vmatmul.mubr.f32.gmra.mrb[194].mxu0 %v9114_v28 }
 0xde8   : > { %v8864_v10 = vpop.f32.mrb[164].mxu1  ;;  %v9025_v14 = vpop.f32.mrb[164].mxu0 }
 0xde9   : > { %v8865_v16 = vadd.f32 %v8864_v10, %v20866_v24  ;;  %v9026_v41 = vadd.f32 %v9025_v14, %v20870_v13  ;;  %v8866_v18 = vpop.f32.mrb[165].mxu1  ;;  %v9027_v30 = vpop.f32.mrb[165].mxu0 }
 0xdea   : > { %v8867_v48 = vadd.f32 %v8866_v18, %v20857_v60  ;;  %v9028_v15 = vadd.f32 %v9027_v30, %v20859_v11 }
 0xdeb   : > { %v9116_v1 = vmax.f32 %v8865_v16, 0.0  ;;  %v9118_v47 = vmax.f32 %v9026_v41, 0.0 }
 0xdec   : > { %v9117_v6 = vmax.f32 %v8867_v48, 0.0  ;;  %v9119_v25 = vmax.f32 %v9028_v15, 0.0  ;;  %v8870_v42 = vpop.f32.mrb[166].mxu1  ;;  %v9031_v26 = vpop.f32.mrb[166].mxu0 }
 0xded   : > { %v8871_v58 = vadd.f32 %v8870_v42, %v20866_v24  ;;  %v9032_v39 = vadd.f32 %v9031_v26, %v20870_v13  ;;  %v8872_v17 = vpop.f32.mrb[167].mxu1  ;;  %v9033_v19 = vpop.f32.mrb[167].mxu0 }
 0xdee   : > { %v8873_v62 = vadd.f32 %v8872_v17, %v20857_v60  ;;  %v9034_v56 = vadd.f32 %v9033_v19, %v20859_v11  ;;  %9317 = vmatprep.mubr.f32.mxu1 %v9117_v6  ;;  %9462 = vmatprep.mubr.f32.mxu0 %v9119_v25 }
 0xdef   : > { %9318 = vmatmul.mubr.f32.gmra.mrb[196].mxu1 %v9116_v1  ;;  %9463 = vmatmul.mubr.f32.gmra.mrb[196].mxu0 %v9118_v47  ;;  %v9120_v61 = vmax.f32 %v8871_v58, 0.0  ;;  %v9122_v5 = vmax.f32 %v9032_v39, 0.0 }
 0xdf0   : > { %v9121_v12 = vmax.f32 %v8873_v62, 0.0  ;;  %v9123_v57 = vmax.f32 %v9034_v56, 0.0 }
 0xdf2   : > { %9322 = vmatprep.mubr.f32.mxu1 %v9121_v12  ;;  %9467 = vmatprep.mubr.f32.mxu0 %v9123_v57 }
 0xdf3   : > { %9323 = vmatmul.mubr.f32.gmra.mrb[198].mxu1 %v9120_v61  ;;  %9468 = vmatmul.mubr.f32.gmra.mrb[198].mxu0 %v9122_v5 }
 0xe2d   : > { %v8876_v44 = vpop.f32.mrb[168].mxu1  ;;  %v9037_v34 = vpop.f32.mrb[168].mxu0 }
 0xe2e   : > { %v8877_v63 = vadd.f32 %v8876_v44, %v20866_v24  ;;  %v9038_v40 = vadd.f32 %v9037_v34, %v20870_v13  ;;  %v8878_v59 = vpop.f32.mrb[169].mxu1  ;;  %v9039_v46 = vpop.f32.mrb[169].mxu0 }
 0xe2f   : > { %v8879_v35 = vadd.f32 %v8878_v59, %v20857_v60  ;;  %v9040_v9 = vadd.f32 %v9039_v46, %v20859_v11 }
 0xe30   : > { %v9124_v22 = vmax.f32 %v8877_v63, 0.0  ;;  %v9126_v52 = vmax.f32 %v9038_v40, 0.0 }
 0xe31   : > { %v9125_v50 = vmax.f32 %v8879_v35, 0.0  ;;  %v9127_v54 = vmax.f32 %v9040_v9, 0.0  ;;  %v8882_v2 = vpop.f32.mrb[170].mxu1  ;;  %v9043_v3 = vpop.f32.mrb[170].mxu0 }
 0xe32   : > { %v8883_v55 = vadd.f32 %v8882_v2, %v20866_v24  ;;  %v9044_v37 = vadd.f32 %v9043_v3, %v20870_v13  ;;  %v8884_v43 = vpop.f32.mrb[171].mxu1  ;;  %v9045_v32 = vpop.f32.mrb[171].mxu0 }
 0xe33   : > { %v8885_v31 = vadd.f32 %v8884_v43, %v20857_v60  ;;  %v9046_v28 = vadd.f32 %v9045_v32, %v20859_v11  ;;  %9327 = vmatprep.mubr.f32.mxu1 %v9125_v50  ;;  %9472 = vmatprep.mubr.f32.mxu0 %v9127_v54 }
 0xe34   : > { %9328 = vmatmul.mubr.f32.gmra.mrb[200].mxu1 %v9124_v22  ;;  %9473 = vmatmul.mubr.f32.gmra.mrb[200].mxu0 %v9126_v52  ;;  %v9128_v16 = vmax.f32 %v8883_v55, 0.0  ;;  %v9130_v41 = vmax.f32 %v9044_v37, 0.0 }
 0xe35   : > { %v9129_v10 = vmax.f32 %v8885_v31, 0.0  ;;  %v9131_v14 = vmax.f32 %v9046_v28, 0.0 }
 0xe37   : > { %9332 = vmatprep.mubr.f32.mxu1 %v9129_v10  ;;  %9477 = vmatprep.mubr.f32.mxu0 %v9131_v14 }
 0xe38   : > { %9333 = vmatmul.mubr.f32.gmra.mrb[202].mxu1 %v9128_v16  ;;  %9478 = vmatmul.mubr.f32.gmra.mrb[202].mxu0 %v9130_v41 }
 0xe66   : > { %v8888_v18 = vpop.f32.mrb[172].mxu1  ;;  %v9049_v30 = vpop.f32.mrb[172].mxu0 }
 0xe67   : > { %v8889_v48 = vadd.f32 %v8888_v18, %v20866_v24  ;;  %v9050_v15 = vadd.f32 %v9049_v30, %v20870_v13  ;;  %v8890_v6 = vpop.f32.mrb[173].mxu1  ;;  %v9051_v25 = vpop.f32.mrb[173].mxu0 }
 0xe68   : > { %v8891_v42 = vadd.f32 %v8890_v6, %v20857_v60  ;;  %v9052_v26 = vadd.f32 %v9051_v25, %v20859_v11 }
 0xe69   : > { %v9132_v17 = vmax.f32 %v8889_v48, 0.0  ;;  %v9134_v19 = vmax.f32 %v9050_v15, 0.0 }
 0xe6a   : > { %v9133_v1 = vmax.f32 %v8891_v42, 0.0  ;;  %v9135_v47 = vmax.f32 %v9052_v26, 0.0  ;;  %v8894_v58 = vpop.f32.mrb[174].mxu1  ;;  %v9055_v39 = vpop.f32.mrb[174].mxu0 }
 0xe6b   : > { %v8895_v62 = vadd.f32 %v8894_v58, %v20866_v24  ;;  %v9056_v56 = vadd.f32 %v9055_v39, %v20870_v13  ;;  %v8896_v12 = vpop.f32.mrb[175].mxu1  ;;  %v9057_v57 = vpop.f32.mrb[175].mxu0 }
 0xe6c   : > { %v8897_v61 = vadd.f32 %v8896_v12, %v20857_v60  ;;  %v9058_v5 = vadd.f32 %v9057_v57, %v20859_v11  ;;  %9337 = vmatprep.mubr.f32.mxu1 %v9133_v1  ;;  %9482 = vmatprep.mubr.f32.mxu0 %v9135_v47 }
 0xe6d   : > { %9338 = vmatmul.mubr.f32.gmra.mrb[204].mxu1 %v9132_v17  ;;  %9483 = vmatmul.mubr.f32.gmra.mrb[204].mxu0 %v9134_v19  ;;  %v9136_v63 = vmax.f32 %v8895_v62, 0.0  ;;  %v9138_v40 = vmax.f32 %v9056_v56, 0.0 }
 0xe6e   : > { %v9137_v44 = vmax.f32 %v8897_v61, 0.0  ;;  %v9139_v34 = vmax.f32 %v9058_v5, 0.0 }
 0xe70   : > { %9342 = vmatprep.mubr.f32.mxu1 %v9137_v44  ;;  %9487 = vmatprep.mubr.f32.mxu0 %v9139_v34 }
 0xe71   : > { %9343 = vmatmul.mubr.f32.gmra.mrb[206].mxu1 %v9136_v63  ;;  %9488 = vmatmul.mubr.f32.gmra.mrb[206].mxu0 %v9138_v40 }
 0xe76   : > { %v8900_v59 = vpop.f32.mrb[176].mxu1  ;;  %v9061_v46 = vpop.f32.mrb[176].mxu0 }
 0xe77   : > { %v8901_v35 = vadd.f32 %v8900_v59, %v20866_v24  ;;  %v9062_v9 = vadd.f32 %v9061_v46, %v20870_v13  ;;  %v8902_v50 = vpop.f32.mrb[177].mxu1  ;;  %v9063_v54 = vpop.f32.mrb[177].mxu0 }
 0xe78   : > { %v8903_v2 = vadd.f32 %v8902_v50, %v20857_v60  ;;  %v9064_v3 = vadd.f32 %v9063_v54, %v20859_v11 }
 0xe79   : > { %v9140_v43 = vmax.f32 %v8901_v35, 0.0  ;;  %v9142_v32 = vmax.f32 %v9062_v9, 0.0 }
 0xe7a   : > { %v9141_v22 = vmax.f32 %v8903_v2, 0.0  ;;  %v9143_v52 = vmax.f32 %v9064_v3, 0.0  ;;  %v8906_v55 = vpop.f32.mrb[178].mxu1  ;;  %v9067_v37 = vpop.f32.mrb[178].mxu0 }
 0xe7b   : > { %v8907_v31 = vadd.f32 %v8906_v55, %v20866_v24  ;;  %v9068_v28 = vadd.f32 %v9067_v37, %v20870_v13  ;;  %v8908_v10 = vpop.f32.mrb[179].mxu1  ;;  %v9069_v14 = vpop.f32.mrb[179].mxu0 }
 0xe7c   : > { %v8909_v16 = vadd.f32 %v8908_v10, %v20857_v60  ;;  %v9070_v41 = vadd.f32 %v9069_v14, %v20859_v11  ;;  %9347 = vmatprep.mubr.f32.mxu1 %v9141_v22  ;;  %9492 = vmatprep.mubr.f32.mxu0 %v9143_v52 }
 0xe7d   : > { %9348 = vmatmul.mubr.f32.gmra.mrb[208].mxu1 %v9140_v43  ;;  %9493 = vmatmul.mubr.f32.gmra.mrb[208].mxu0 %v9142_v32  ;;  %v9144_v48 = vmax.f32 %v8907_v31, 0.0  ;;  %v9146_v15 = vmax.f32 %v9068_v28, 0.0 }
 0xe7e   : > { %v9145_v18 = vmax.f32 %v8909_v16, 0.0  ;;  %v9147_v30 = vmax.f32 %v9070_v41, 0.0 }
 0xe80   : > { %9352 = vmatprep.mubr.f32.mxu1 %v9145_v18  ;;  %9497 = vmatprep.mubr.f32.mxu0 %v9147_v30 }
 0xe81   : > { %9353 = vmatmul.mubr.f32.gmra.mrb[210].mxu1 %v9144_v48  ;;  %9498 = vmatmul.mubr.f32.gmra.mrb[210].mxu0 %v9146_v15 }
 0xe83   : > { %v8912_v6 = vpop.f32.mrb[180].mxu1  ;;  %v9073_v25 = vpop.f32.mrb[180].mxu0 }
 0xe84   : > { %v8913_v42 = vadd.f32 %v8912_v6, %v20866_v24  ;;  %v9074_v26 = vadd.f32 %v9073_v25, %v20870_v13  ;;  %v8914_v1 = vpop.f32.mrb[181].mxu1  ;;  %v9075_v47 = vpop.f32.mrb[181].mxu0 }
 0xe85   : > { %v8915_v58 = vadd.f32 %v8914_v1, %v20857_v60  ;;  %v9076_v39 = vadd.f32 %v9075_v47, %v20859_v11 }
 0xe86   : > { %v9148_v12 = vmax.f32 %v8913_v42, 0.0  ;;  %v9150_v57 = vmax.f32 %v9074_v26, 0.0 }
 0xe87   : > { %v9149_v17 = vmax.f32 %v8915_v58, 0.0  ;;  %v9151_v19 = vmax.f32 %v9076_v39, 0.0  ;;  %v8918_v62 = vpop.f32.mrb[182].mxu1  ;;  %v9079_v56 = vpop.f32.mrb[182].mxu0 }
 0xe88   : > { %v8919_v61 = vadd.f32 %v8918_v62, %v20866_v24  ;;  %v9080_v5 = vadd.f32 %v9079_v56, %v20870_v13  ;;  %v8920_v44 = vpop.f32.mrb[183].mxu1  ;;  %v9081_v34 = vpop.f32.mrb[183].mxu0 }
 0xe89   : > { %v8921_v63 = vadd.f32 %v8920_v44, %v20857_v60  ;;  %v9082_v40 = vadd.f32 %v9081_v34, %v20859_v11  ;;  %9357 = vmatprep.mubr.f32.mxu1 %v9149_v17  ;;  %9502 = vmatprep.mubr.f32.mxu0 %v9151_v19 }
 0xe8a   : > { %9358 = vmatmul.mubr.f32.gmra.mrb[212].mxu1 %v9148_v12  ;;  %9503 = vmatmul.mubr.f32.gmra.mrb[212].mxu0 %v9150_v57  ;;  %v9152_v35 = vmax.f32 %v8919_v61, 0.0  ;;  %v9154_v9 = vmax.f32 %v9080_v5, 0.0 }
 0xe8b   : > { %v9153_v59 = vmax.f32 %v8921_v63, 0.0  ;;  %v9155_v46 = vmax.f32 %v9082_v40, 0.0 }
 0xe8d   : > { %9362 = vmatprep.mubr.f32.mxu1 %v9153_v59  ;;  %9507 = vmatprep.mubr.f32.mxu0 %v9155_v46 }
 0xe8e   : > { %9363 = vmatmul.mubr.f32.gmra.mrb[214].mxu1 %v9152_v35  ;;  %9508 = vmatmul.mubr.f32.gmra.mrb[214].mxu0 %v9154_v9 }
 0xe92   : > { %v8924_v50 = vpop.f32.mrb[184].mxu1  ;;  %v9085_v54 = vpop.f32.mrb[184].mxu0 }
 0xe93   : > { %v8925_v2 = vadd.f32 %v8924_v50, %v20866_v24  ;;  %v9086_v3 = vadd.f32 %v9085_v54, %v20870_v13  ;;  %v8926_v22 = vpop.f32.mrb[185].mxu1  ;;  %v9087_v52 = vpop.f32.mrb[185].mxu0 }
 0xe94   : > { %v8927_v55 = vadd.f32 %v8926_v22, %v20857_v60  ;;  %v9088_v37 = vadd.f32 %v9087_v52, %v20859_v11 }
 0xe95   : > { %v9156_v10 = vmax.f32 %v8925_v2, 0.0  ;;  %v9158_v14 = vmax.f32 %v9086_v3, 0.0 }
 0xe96   : > { %v9157_v43 = vmax.f32 %v8927_v55, 0.0  ;;  %v9159_v32 = vmax.f32 %v9088_v37, 0.0  ;;  %v8930_v31 = vpop.f32.mrb[186].mxu1  ;;  %v9091_v28 = vpop.f32.mrb[186].mxu0 }
 0xe97   : > { %v8931_v16 = vadd.f32 %v8930_v31, %v20866_v24  ;;  %v9092_v41 = vadd.f32 %v9091_v28, %v20870_v13  ;;  %v8932_v18 = vpop.f32.mrb[187].mxu1  ;;  %v9093_v30 = vpop.f32.mrb[187].mxu0 }
 0xe98   : > { %v8933_v48 = vadd.f32 %v8932_v18, %v20857_v60  ;;  %v9094_v15 = vadd.f32 %v9093_v30, %v20859_v11  ;;  %9367 = vmatprep.mubr.f32.mxu1 %v9157_v43  ;;  %9512 = vmatprep.mubr.f32.mxu0 %v9159_v32 }
 0xe99   : > { %9368 = vmatmul.mubr.f32.gmra.mrb[216].mxu1 %v9156_v10  ;;  %9513 = vmatmul.mubr.f32.gmra.mrb[216].mxu0 %v9158_v14  ;;  %v9160_v42 = vmax.f32 %v8931_v16, 0.0  ;;  %v9162_v26 = vmax.f32 %v9092_v41, 0.0 }
 0xe9a   : > { %v9161_v6 = vmax.f32 %v8933_v48, 0.0  ;;  %v9163_v25 = vmax.f32 %v9094_v15, 0.0 }
 0xe9c   : > { %9372 = vmatprep.mubr.f32.mxu1 %v9161_v6  ;;  %9517 = vmatprep.mubr.f32.mxu0 %v9163_v25 }
 0xe9d   : > { %9373 = vmatmul.mubr.f32.gmra.mrb[218].mxu1 %v9160_v42  ;;  %9518 = vmatmul.mubr.f32.gmra.mrb[218].mxu0 %v9162_v26 }
 0xe9f   : > { %v8936_v1 = vpop.f32.mrb[188].mxu1  ;;  %v9097_v47 = vpop.f32.mrb[188].mxu0 }
 0xea0   : > { %v8937_v58 = vadd.f32 %v8936_v1, %v20866_v24  ;;  %v9098_v39 = vadd.f32 %v9097_v47, %v20870_v13  ;;  %v8938_v17 = vpop.f32.mrb[189].mxu1  ;;  %v9099_v19 = vpop.f32.mrb[189].mxu0 }
 0xea1   : > { %v8939_v62 = vadd.f32 %v8938_v17, %v20857_v60  ;;  %v9100_v56 = vadd.f32 %v9099_v19, %v20859_v11 }
 0xea2   : > { %v9164_v61 = vmax.f32 %v8937_v58, 0.0  ;;  %v9166_v5 = vmax.f32 %v9098_v39, 0.0 }
 0xea3   : > { %v9165_v12 = vmax.f32 %v8939_v62, 0.0  ;;  %v9167_v57 = vmax.f32 %v9100_v56, 0.0 }
 0xea4   : > { %v8942_v44 = vpop.f32.mrb[190].mxu1  ;;  %v9103_v34 = vpop.f32.mrb[190].mxu0 }
 0xea5   : > { %9377 = vmatprep.mubr.f32.mxu1 %v9165_v12  ;;  %9522 = vmatprep.mubr.f32.mxu0 %v9167_v57  ;;  %v8943_v63 = vadd.f32 %v8942_v44, %v20866_v24  ;;  %v9104_v40 = vadd.f32 %v9103_v34, %v20870_v13  ;;  %v8944_v59 = vpop.f32.mrb[191].mxu1  ;;  %v9105_v46 = vpop.f32.mrb[191].mxu0  ;;  %v20955_v24 = vld [vmem:[%s21321_s11] ss:$0 sm:$0xff] }
 0xea6   : > { %9378 = vmatmul.mubr.f32.gmra.mrb[220].mxu1 %v9164_v61  ;;  %9523 = vmatmul.mubr.f32.gmra.mrb[220].mxu0 %v9166_v5  ;;  %v8945_v35 = vadd.f32 %v8944_v59, %v20857_v60  ;;  %v9106_v9 = vadd.f32 %v9105_v46, %v20859_v11 }
 0xea7   : > { %v9168_v22 = vmax.f32 %v8943_v63, 0.0  ;;  %v9170_v52 = vmax.f32 %v9104_v40, 0.0 }
 0xea8   : > { %v9169_v50 = vmax.f32 %v8945_v35, 0.0  ;;  %v9171_v54 = vmax.f32 %v9106_v9, 0.0  ;;  %v10921_v2 = vpop.f32.mrb[192].mxu1  ;;  %v11001_v3 = vpop.f32.mrb[192].mxu0 }
 0xea9   : > { %v10922_v13 = vpop.f32.mrb[193].mxu1  ;;  %v11002_v55 = vpop.f32.mrb[193].mxu0 }
 0xeaa   : > { %v10923_v37 = vadd.f32 %v10922_v13, %v10921_v2  ;;  %v11003_v43 = vadd.f32 %v11002_v55, %v11001_v3  ;;  %9382 = vmatprep.mubr.f32.mxu1 %v9169_v50  ;;  %9527 = vmatprep.mubr.f32.mxu0 %v9171_v54 }
 0xeab   : > { %9383 = vmatmul.mubr.f32.gmra.mrb[222].mxu1 %v9168_v22  ;;  %9528 = vmatmul.mubr.f32.gmra.mrb[222].mxu0 %v9170_v52 }
 0xeac   : > { %v9310_v60 = vadd.f32 %v10923_v37, %v20955_v24  ;;  %v10924_v11 = vpop.f32.mrb[194].mxu1  ;;  %v11004_v32 = vpop.f32.mrb[194].mxu0 }
 0xead   : > { %v10925_v31 = vpop.f32.mrb[195].mxu1  ;;  %v11005_v28 = vpop.f32.mrb[195].mxu0 }
 0xeae   : > { %v9455_v10 = vadd.f32 %v11003_v43, %v9310_v60  ;;  %v10926_v14 = vadd.f32 %v10925_v31, %v10924_v11  ;;  %v11006_v16 = vadd.f32 %v11005_v28, %v11004_v32 }
 0xeb0   : > { %v9315_v41 = vadd.f32 %v10926_v14, %v20955_v24  ;;  %v20960_v18 = vadd.f32 %v9455_v10, %v20443_v38 }
 0xeb2   : > { %v9460_v30 = vadd.f32 %v11006_v16, %v9315_v41  ;;  %9551 = vadd.xlane.f32.xlu0 %v20960_v18 }
 0xeb4   : > { %v20964_v48 = vadd.f32 %v9460_v30, %v20451_v51 }
 0xeb6   : > { %9553 = vadd.xlane.f32.xlu1 %v20964_v48 }
 0xec2   : > { %v10927_v15 = vpop.f32.mrb[196].mxu1  ;;  %v11007_v6 = vpop.f32.mrb[196].mxu0 }
 0xec3   : > { %v10928_v25 = vpop.f32.mrb[197].mxu1  ;;  %v11008_v42 = vpop.f32.mrb[197].mxu0 }
 0xec4   : > { %v10929_v26 = vadd.f32 %v10928_v25, %v10927_v15  ;;  %v11009_v1 = vadd.f32 %v11008_v42, %v11007_v6 }
 0xec6   : > { %v9320_v47 = vadd.f32 %v10929_v26, %v20955_v24  ;;  %v10930_v58 = vpop.f32.mrb[198].mxu1  ;;  %v11010_v39 = vpop.f32.mrb[198].mxu0 }
 0xec7   : > { %v10931_v38 = vpop.f32.mrb[199].mxu1  ;;  %v11011_v17 = vpop.f32.mrb[199].mxu0 }
 0xec8   : > { %v9465_v19 = vadd.f32 %v11009_v1, %v9320_v47  ;;  %v10932_v62 = vadd.f32 %v10931_v38, %v10930_v58  ;;  %v11012_v56 = vadd.f32 %v11011_v17, %v11010_v39 }
 0xeca   : > { %v9325_v51 = vadd.f32 %v10932_v62, %v20955_v24  ;;  %v20970_v12 = vadd.f32 %v9465_v19, %v20503_v27 }
 0xecc   : > { %v9470_v57 = vadd.f32 %v11012_v56, %v9325_v51  ;;  %9555 = vadd.xlane.f32.xlu0 %v20970_v12 }
 0xece   : > { %v20974_v61 = vadd.f32 %v9470_v57, %v20516_v29 }
 0xed0   : > { %9557 = vadd.xlane.f32.xlu1 %v20974_v61 }
 0xf07   : > { %v10933_v5 = vpop.f32.mrb[200].mxu1  ;;  %v11013_v44 = vpop.f32.mrb[200].mxu0 }
 0xf08   : > { %v10934_v34 = vpop.f32.mrb[201].mxu1  ;;  %v11014_v63 = vpop.f32.mrb[201].mxu0 }
 0xf09   : > { %v10935_v40 = vadd.f32 %v10934_v34, %v10933_v5  ;;  %v11015_v59 = vadd.f32 %v11014_v63, %v11013_v44 }
 0xf0b   : > { %v9330_v46 = vadd.f32 %v10935_v40, %v20955_v24  ;;  %v10936_v35 = vpop.f32.mrb[202].mxu1  ;;  %v11016_v9 = vpop.f32.mrb[202].mxu0 }
 0xf0c   : > { %v10937_v27 = vpop.f32.mrb[203].mxu1  ;;  %v11017_v50 = vpop.f32.mrb[203].mxu0 }
 0xf0d   : > { %v9475_v54 = vadd.f32 %v11015_v59, %v9330_v46  ;;  %v10938_v2 = vadd.f32 %v10937_v27, %v10936_v35  ;;  %v11018_v3 = vadd.f32 %v11017_v50, %v11016_v9 }
 0xf0f   : > { %v9335_v29 = vadd.f32 %v10938_v2, %v20955_v24  ;;  %v20980_v22 = vadd.f32 %v9475_v54, %v20751_v45 }
 0xf11   : > { %v9480_v52 = vadd.f32 %v11018_v3, %v9335_v29  ;;  %9559 = vadd.xlane.f32.xlu0 %v20980_v22 }
 0xf13   : > { %v20984_v13 = vadd.f32 %v9480_v52, %v20759_v36 }
 0xf15   : > { %9561 = vadd.xlane.f32.xlu1 %v20984_v13 }
 0xf40   : > { %v10939_v55 = vpop.f32.mrb[204].mxu1  ;;  %v11019_v37 = vpop.f32.mrb[204].mxu0 }
 0xf41   : > { %v10940_v43 = vpop.f32.mrb[205].mxu1  ;;  %v11020_v11 = vpop.f32.mrb[205].mxu0 }
 0xf42   : > { %v10941_v60 = vadd.f32 %v10940_v43, %v10939_v55  ;;  %v11021_v32 = vadd.f32 %v11020_v11, %v11019_v37 }
 0xf44   : > { %v9340_v31 = vadd.f32 %v10941_v60, %v20955_v24  ;;  %v10942_v28 = vpop.f32.mrb[206].mxu1  ;;  %v11022_v10 = vpop.f32.mrb[206].mxu0 }
 0xf45   : > { %v10943_v45 = vpop.f32.mrb[207].mxu1  ;;  %v11023_v41 = vpop.f32.mrb[207].mxu0 }
 0xf46   : > { %v9485_v14 = vadd.f32 %v11021_v32, %v9340_v31  ;;  %v10944_v16 = vadd.f32 %v10943_v45, %v10942_v28  ;;  %v11024_v30 = vadd.f32 %v11023_v41, %v11022_v10 }
 0xf48   : > { %v9345_v36 = vadd.f32 %v10944_v16, %v20955_v24  ;;  %v20990_v15 = vadd.f32 %v9485_v14, %v20769_v49 }
 0xf4a   : > { %v9490_v6 = vadd.f32 %v11024_v30, %v9345_v36  ;;  %9563 = vadd.xlane.f32.xlu0 %v20990_v15 }
 0xf4c   : > { %v20994_v25 = vadd.f32 %v9490_v6, %v20777_v4 }
 0xf4e   : > { %9565 = vadd.xlane.f32.xlu1 %v20994_v25 }
 0xf50   : > { %v10945_v42 = vpop.f32.mrb[208].mxu1  ;;  %v11025_v26 = vpop.f32.mrb[208].mxu0 }
 0xf51   : > { %v10946_v1 = vpop.f32.mrb[209].mxu1  ;;  %v11026_v47 = vpop.f32.mrb[209].mxu0 }
 0xf52   : > { %v10947_v58 = vadd.f32 %v10946_v1, %v10945_v42  ;;  %v11027_v39 = vadd.f32 %v11026_v47, %v11025_v26 }
 0xf54   : > { %v9350_v38 = vadd.f32 %v10947_v58, %v20955_v24  ;;  %v10948_v17 = vpop.f32.mrb[210].mxu1  ;;  %v11028_v19 = vpop.f32.mrb[210].mxu0 }
 0xf55   : > { %v10949_v49 = vpop.f32.mrb[211].mxu1  ;;  %v11029_v62 = vpop.f32.mrb[211].mxu0 }
 0xf56   : > { %v9495_v56 = vadd.f32 %v11027_v39, %v9350_v38  ;;  %v10950_v51 = vadd.f32 %v10949_v49, %v10948_v17  ;;  %v11030_v57 = vadd.f32 %v11029_v62, %v11028_v19 }
 0xf58   : > { %v9355_v4 = vadd.f32 %v10950_v51, %v20955_v24  ;;  %v21000_v5 = vadd.f32 %v9495_v56, %v20787_v33 }
 0xf5a   : > { %v9500_v44 = vadd.f32 %v11030_v57, %v9355_v4  ;;  %9567 = vadd.xlane.f32.xlu0 %v21000_v5 }
 0xf5c   : > { %v21004_v34 = vadd.f32 %v9500_v44, %v20795_v7 }
 0xf5d   : > { %v10951_v63 = vpop.f32.mrb[212].mxu1  ;;  %v11031_v40 = vpop.f32.mrb[212].mxu0 }
 0xf5e   : > { %v10952_v59 = vpop.f32.mrb[213].mxu1  ;;  %v11032_v46 = vpop.f32.mrb[213].mxu0  ;;  %9569 = vadd.xlane.f32.xlu1 %v21004_v34 }
 0xf5f   : > { %v10953_v35 = vadd.f32 %v10952_v59, %v10951_v63  ;;  %v11033_v9 = vadd.f32 %v11032_v46, %v11031_v40  ;;  %v9599_v59 = vmul.f32 %v20960_v18, %v20960_v18 }
 0xf61   : > { %v9360_v27 = vadd.f32 %v10953_v35, %v20955_v24  ;;  %v10954_v50 = vpop.f32.mrb[214].mxu1  ;;  %v11034_v54 = vpop.f32.mrb[214].mxu0  ;;  %v9601_v35 = vmul.f32 %v20970_v12, %v20970_v12 }
 0xf62   : > { %v10955_v33 = vpop.f32.mrb[215].mxu1  ;;  %v11035_v2 = vpop.f32.mrb[215].mxu0 }
 0xf63   : > { %v9505_v3 = vadd.f32 %v11033_v9, %v9360_v27  ;;  %v10956_v29 = vadd.f32 %v10955_v33, %v10954_v50  ;;  %v11036_v52 = vadd.f32 %v11035_v2, %v11034_v54  ;;  %v9602_v9 = vmul.f32 %v20974_v61, %v20974_v61 }
 0xf64   : > { %v9604_v27 = vmul.f32 %v20984_v13, %v20984_v13  ;;  %v9607_v50 = vmul.f32 %v21000_v5, %v21000_v5  ;;  %v9606_v54 = vmul.f32 %v20994_v25, %v20994_v25  ;;  %v9608_v2 = vmul.f32 %v21004_v34, %v21004_v34 }
 0xf65   : > { %v9365_v7 = vadd.f32 %v10956_v29, %v20955_v24  ;;  %v21010_v55 = vadd.f32 %v9505_v3, %v20805_v53 }
 0xf67   : > { %v9510_v37 = vadd.f32 %v11036_v52, %v9365_v7  ;;  %9571 = vadd.xlane.f32.xlu0 %v21010_v55  ;;  %v9609_v33 = vmul.f32 %v21010_v55, %v21010_v55 }
 0xf69   : > { %v21014_v43 = vadd.f32 %v9510_v37, %v20821_v23 }
 0xf6b   : > { %9573 = vadd.xlane.f32.xlu1 %v21014_v43  ;;  %v9610_v29 = vmul.f32 %v21014_v43, %v21014_v43 }
 0xf6c   : > { %v10957_v60 = vpop.f32.mrb[216].mxu1  ;;  %v11037_v11 = vpop.f32.mrb[216].mxu0 }
 0xf6d   : > { %v10958_v32 = vpop.f32.mrb[217].mxu1  ;;  %v11038_v31 = vpop.f32.mrb[217].mxu0 }
 0xf6e   : > { %v10959_v28 = vadd.f32 %v10958_v32, %v10957_v60  ;;  %v11039_v10 = vadd.f32 %v11038_v31, %v11037_v11  ;;  %v9552_v60 = vpop.xlane.xlu0 %9551  ;;  %v9554_v32 = vpop.xlane.xlu1 %9553 }
 0xf70   : > { %v9370_v45 = vadd.f32 %v10959_v28, %v20955_v24  ;;  %v10960_v14 = vpop.f32.mrb[218].mxu1  ;;  %v11040_v16 = vpop.f32.mrb[218].mxu0 }
 0xf71   : > { %v10961_v53 = vpop.f32.mrb[219].mxu1  ;;  %v11041_v41 = vpop.f32.mrb[219].mxu0 }
 0xf72   : > { %v9515_v30 = vadd.f32 %v11039_v10, %v9370_v45  ;;  %v10962_v36 = vadd.f32 %v10961_v53, %v10960_v14  ;;  %v11042_v6 = vadd.f32 %v11041_v41, %v11040_v16  ;;  %v9556_v11 = vpop.xlane.xlu0 %9555  ;;  %v9558_v28 = vpop.xlane.xlu1 %9557 }
 0xf74   : > { %v9375_v23 = vadd.f32 %v10962_v36, %v20955_v24  ;;  %v21020_v42 = vadd.f32 %v9515_v30, %v20835_v21 }
 0xf76   : > { %v9520_v26 = vadd.f32 %v11042_v6, %v9375_v23  ;;  %9575 = vadd.xlane.f32.xlu0 %v21020_v42  ;;  %v9611_v3 = vmul.f32 %v21020_v42, %v21020_v42  ;;  %v21075_v23 = vmul.f32 0.0078125, %v9552_v60 }
 0xf78   : > { %v21024_v58 = vadd.f32 %v9520_v26, %v20843_v20 }
 0xf79   : > { %v10963_v1 = vpop.f32.mrb[220].mxu1  ;;  %v11043_v47 = vpop.f32.mrb[220].mxu0 }
 0xf7a   : > { %v10964_v39 = vpop.f32.mrb[221].mxu1  ;;  %v11044_v38 = vpop.f32.mrb[221].mxu0  ;;  %9577 = vadd.xlane.f32.xlu1 %v21024_v58  ;;  %v9612_v7 = vmul.f32 %v21024_v58, %v21024_v58 }
 0xf7b   : > { %v10965_v17 = vadd.f32 %v10964_v39, %v10963_v1  ;;  %v11045_v19 = vadd.f32 %v11044_v38, %v11043_v47  ;;  %v9663_v47 = vmul.f32 %v21075_v23, %v21075_v23  ;;  %v21081_v39 = vmul.f32 0.0078125, %v9556_v11 }
 0xf7d   : > { %v9380_v49 = vadd.f32 %v10965_v17, %v20955_v24 }
 0xf7e   : > { %v10966_v56 = vpop.f32.mrb[222].mxu1  ;;  %v11046_v21 = vpop.f32.mrb[222].mxu0 }
 0xf7f   : > { %v9525_v62 = vadd.f32 %v11045_v19, %v9380_v49  ;;  %v10967_v51 = vpop.f32.mrb[223].mxu1  ;;  %v11047_v57 = vpop.f32.mrb[223].mxu0  ;;  %v21085_v19 = vmul.f32 0.0078125, %v9554_v32 }
 0xf80   : > { %v10968_v4 = vadd.f32 %v10967_v51, %v10966_v56  ;;  %v11048_v44 = vadd.f32 %v11047_v57, %v11046_v21  ;;  %v9665_v56 = vmul.f32 %v21081_v39, %v21081_v39 }
 0xf81   : > { %v21029_v63 = vadd.f32 %v9525_v62, %v20863_v8  ;;  %v9600_v8 = vmul.f32 %v20964_v48, %v20964_v48 }
 0xf82   : > { %v9385_v20 = vadd.f32 %v10968_v4, %v20955_v24  ;;  %v9603_v24 = vmul.f32 %v20980_v22, %v20980_v22  ;;  %v21091_v4 = vmul.f32 0.0078125, %v9558_v28 }
 0xf83   : > { %9579 = vadd.xlane.f32.xlu0 %v21029_v63  ;;  %v9613_v52 = vmul.f32 %v21029_v63, %v21029_v63 }
 0xf84   : > { %v9530_v40 = vadd.f32 %v11048_v44, %v9385_v20  ;;  %v9664_v20 = vmul.f32 %v21085_v19, %v21085_v19 }
 0xf86   : > { %v21036_v46 = vadd.f32 %v9530_v40, %v20886_v0  ;;  %v9605_v0 = vmul.f32 %v20990_v15, %v20990_v15 }
 0xf87   : > { %9615 = vadd.xlane.f32.xlu0 %v9599_v59 }
 0xf88   : > { %9581 = vadd.xlane.f32.xlu1 %v21036_v46  ;;  %v9614_v37 = vmul.f32 %v21036_v46, %v21036_v46 }
 0xf8b   : > { %9619 = vadd.xlane.f32.xlu0 %v9601_v35 }
 0xf8c   : > { %9617 = vadd.xlane.f32.xlu1 %v9600_v8 }
 0xf8f   : > { %9623 = vadd.xlane.f32.xlu0 %v9603_v24 }
 0xf90   : > { %9621 = vadd.xlane.f32.xlu1 %v9602_v9 }
 0xf93   : > { %9627 = vadd.xlane.f32.xlu0 %v9605_v0 }
 0xf94   : > { %9625 = vadd.xlane.f32.xlu1 %v9604_v27 }
 0xf97   : > { %9631 = vadd.xlane.f32.xlu0 %v9607_v50  ;;  %v9695_v50 = vsub.f32 %v20960_v18, %v21075_v23 }
 0xf98   : > { %9629 = vadd.xlane.f32.xlu1 %v9606_v54  ;;  %v9666_v54 = vmul.f32 %v21091_v4, %v21091_v4 }
 0xf9b   : > { %9635 = vadd.xlane.f32.xlu0 %v9609_v33 }
 0xf9c   : > { %9633 = vadd.xlane.f32.xlu1 %v9608_v2 }
 0xf9e   : > { %v9560_v31 = vpop.xlane.xlu0 %9559 }
 0xf9f   : > { %9639 = vadd.xlane.f32.xlu0 %v9611_v3  ;;  %v21089_v21 = vmul.f32 0.0078125, %v9560_v31 }
 0xfa0   : > { %9637 = vadd.xlane.f32.xlu1 %v9610_v29 }
 0xfa1   : > { %v9667_v24 = vmul.f32 %v21089_v21, %v21089_v21 }
 0xfa2   : > { %v9562_v45 = vpop.xlane.xlu1 %9561 }
 0xfa3   : > { %9643 = vadd.xlane.f32.xlu0 %v9613_v52  ;;  %v21103_v33 = vmul.f32 0.0078125, %v9562_v45  ;;  %v9699_v45 = vsub.f32 %v20980_v22, %v21089_v21 }
 0xfa4   : > { %9641 = vadd.xlane.f32.xlu1 %v9612_v7  ;;  %v9696_v7 = vsub.f32 %v20964_v48, %v21085_v19 }
 0xfa5   : > { %v9668_v23 = vmul.f32 %v21103_v33, %v21103_v33 }
 0xfa8   : > { %9645 = vadd.xlane.f32.xlu1 %v9614_v37  ;;  %v9697_v37 = vsub.f32 %v20970_v12, %v21081_v39 }
 0xfd7   : > { %v9564_v10 = vpop.xlane.xlu0 %9563 }
 0xfd8   : > { %v21095_v35 = vmul.f32 0.0078125, %v9564_v10  ;;  %v9698_v10 = vsub.f32 %v20974_v61, %v21091_v4 }
 0xfda   : > { %v9669_v18 = vmul.f32 %v21095_v35, %v21095_v35 }
 0xfdb   : > { %v9566_v16 = vpop.xlane.xlu1 %9565 }
 0xfdc   : > { %v21119_v12 = vmul.f32 0.0078125, %v9566_v16 }
 0xfe7   : > { %v9568_v14 = vpop.xlane.xlu0 %9567 }
 0xfe8   : > { %v21111_v60 = vmul.f32 0.0078125, %v9568_v14 }
 0xfeb   : > { %v9570_v41 = vpop.xlane.xlu1 %9569 }
 0xff4   : > { %v9572_v53 = vpop.xlane.xlu0 %9571 }
 0xff8   : > { %v21071_v36 = vpop.xlane.xlu1 %9573 }
0x1003   : > { %v21069_v30 = vpop.xlane.xlu0 %9575 }
0x1007   : > { %v21077_v26 = vpop.xlane.xlu1 %9577 }
0x1010   : > { %v21073_v6 = vpop.xlane.xlu0 %9579 }
0x1014   : > { %v9616_v1 = vpop.xlane.xlu0 %9615 }
0x1015   : > { %v9647_v38 = vmul.f32 0.0078125, %v9616_v1  ;;  %v21083_v17 = vpop.xlane.xlu1 %9581 }
0x1017   : > { %v9679_v49 = vsub.f32 %v9647_v38, %v9663_v47  ;;  %v9700_v38 = vsub.f32 %v20984_v13, %v21103_v33 }
0x1018   : > { %v9620_v62 = vpop.xlane.xlu0 %9619 }
0x1019   : > { %v9711_v51 = vadd.f32 1e-06, %v9679_v49  ;;  %v9649_v57 = vmul.f32 0.0078125, %v9620_v62  ;;  %v9618_v44 = vpop.xlane.xlu1 %9617  ;;  %v9671_v49 = vmul.f32 %v21111_v60, %v21111_v60  ;;  %v21126_v62 = vmul.f32 0.0078125, %v9570_v41 }
0x101a   : > { %v9648_v59 = vmul.f32 0.0078125, %v9618_v44  ;;  %v9670_v41 = vmul.f32 %v21119_v12, %v21119_v12 }
0x101b   : > { %14434 = vrsqrt.f32 %v9711_v51  ;;  %v9681_v40 = vsub.f32 %v9649_v57, %v9665_v56  ;;  %v21128_v56 = vmul.f32 0.0078125, %v9572_v53  ;;  %v21133_v57 = vld [vmem:[%s21322_s12] ss:$0 sm:$0xff]  ;;  %v21140_v53 = vmul.f32 0.0078125, %v21071_v36 }
0x101c   : > { %v9624_v8 = vpop.xlane.xlu0 %9623  ;;  %v9680_v0 = vsub.f32 %v9648_v59, %v9664_v20  ;;  %v9701_v59 = vsub.f32 %v20990_v15, %v21095_v35 }
0x101d   : > { %v9713_v9 = vadd.f32 1e-06, %v9681_v40  ;;  %v9651_v27 = vmul.f32 0.0078125, %v9624_v8  ;;  %v9622_v2 = vpop.xlane.xlu1 %9621  ;;  %v9673_v36 = vmul.f32 %v21128_v56, %v21128_v56 }
0x101e   : > { %v9712_v3 = vadd.f32 1e-06, %v9680_v0  ;;  %v9650_v52 = vmul.f32 0.0078125, %v9622_v2  ;;  %v9672_v2 = vmul.f32 %v21126_v62, %v21126_v62 }
0x101f   : > { %14436 = vrsqrt.f32 %v9713_v9  ;;  %v9683_v29 = vsub.f32 %v9651_v27, %v9667_v24  ;;  %v21147_v9 = vld [vmem:[%s21323_s13] ss:$0 sm:$0xff] }
0x1020   : > { %v9628_v11 = vpop.xlane.xlu0 %9627  ;;  %14438 = vrsqrt.f32 %v9712_v3  ;;  %v9682_v31 = vsub.f32 %v9650_v52, %v9666_v54  ;;  %v21154_v3 = vmul.f32 0.0078125, %v21069_v30 }
0x1021   : > { %v9715_v32 = vadd.f32 1e-06, %v9683_v29  ;;  %v9653_v28 = vmul.f32 0.0078125, %v9628_v11  ;;  %v9626_v1 = vpop.xlane.xlu1 %9625 }
0x1022   : > { %v9714_v14 = vadd.f32 1e-06, %v9682_v31  ;;  %v9652_v39 = vmul.f32 0.0078125, %v9626_v1  ;;  %v9674_v31 = vmul.f32 %v21140_v53, %v21140_v53 }
0x1023   : > { %14440 = vrsqrt.f32 %v9715_v32  ;;  %v9685_v47 = vsub.f32 %v9653_v28, %v9669_v18  ;;  %v21160_v28 = vmul.f32 0.0078125, %v21077_v26 }
0x1024   : > { %v9632_v51 = vpop.xlane.xlu0 %9631  ;;  %14442 = vrsqrt.f32 %v9714_v14  ;;  %v9684_v20 = vsub.f32 %v9652_v39, %v9668_v23 }
0x1025   : > { %v14435_v16 = vpop.eup %14434  ;;  %v9717_v44 = vadd.f32 1e-06, %v9685_v47  ;;  %v9655_v40 = vmul.f32 0.0078125, %v9632_v51  ;;  %v9630_v24 = vpop.xlane.xlu1 %9629  ;;  %v9675_v51 = vmul.f32 %v21154_v3, %v21154_v3 }
0x1026   : > { %v9743_v8 = vmul.f32 %v14435_v16, %v9695_v50  ;;  %v9716_v0 = vadd.f32 1e-06, %v9684_v20  ;;  %v9654_v54 = vmul.f32 0.0078125, %v9630_v24  ;;  %v21166_v16 = vmul.f32 0.0078125, %v21073_v6 }
0x1027   : > { %14444 = vrsqrt.f32 %v9717_v44  ;;  %v9687_v27 = vsub.f32 %v9655_v40, %v9671_v49  ;;  %v9676_v6 = vmul.f32 %v21160_v28, %v21160_v28 }
0x1028   : > { %v9765_v50 = vmul.f32 %v21133_v57, %v9743_v8  ;;  %v9636_v29 = vpop.xlane.xlu0 %9635  ;;  %14446 = vrsqrt.f32 %v9716_v0  ;;  %v9686_v11 = vsub.f32 %v9654_v54, %v9670_v41 }
0x1029   : > { %v14437_v52 = vpop.eup %14436  ;;  %v9719_v18 = vadd.f32 1e-06, %v9687_v27  ;;  %v9657_v32 = vmul.f32 0.0078125, %v9636_v29  ;;  %v9634_v14 = vpop.xlane.xlu1 %9633 }
0x102a   : > { %v9787_v23 = vadd.f32 %v21147_v9, %v9765_v50  ;;  %v9745_v1 = vmul.f32 %v14437_v52, %v9697_v37  ;;  %v14439_v30 = vpop.eup %14438  ;;  %v9718_v47 = vadd.f32 1e-06, %v9686_v11  ;;  %v9656_v49 = vmul.f32 0.0078125, %v9634_v14 }
0x102b   : > { %14448 = vrsqrt.f32 %v9719_v18  ;;  %v9689_v39 = vsub.f32 %v9657_v32, %v9673_v36  ;;  %v9744_v37 = vmul.f32 %v14439_v30, %v9696_v7  ;;  %v21191_v32 = vmul.f32 0.0078125, %v21083_v17 }
0x102c   : > { %9803 = vst [vmem:[%s21168_s21] sm:$0xff] %v9787_v23  ;;  %v9767_v26 = vmul.f32 %v21133_v57, %v9745_v1  ;;  %v9640_v44 = vpop.xlane.xlu0 %9639  ;;  %14450 = vrsqrt.f32 %v9718_v47  ;;  %v9688_v41 = vsub.f32 %v9656_v49, %v9672_v2  ;;  %v9677_v2 = vmul.f32 %v21166_v16, %v21166_v16 }
0x102d   : > { %v14441_v20 = vpop.eup %14440  ;;  %v9721_v40 = vadd.f32 1e-06, %v9689_v39  ;;  %v9659_v8 = vmul.f32 0.0078125, %v9640_v44  ;;  %v9766_v0 = vmul.f32 %v21133_v57, %v9744_v37  ;;  %v9638_v48 = vpop.xlane.xlu1 %9637  ;;  %v9703_v17 = vsub.f32 %v21000_v5, %v21111_v60 }
0x102e   : > { %v9789_v24 = vadd.f32 %v21147_v9, %v9767_v26  ;;  %v9747_v27 = vmul.f32 %v14441_v20, %v9699_v45  ;;  %v14443_v19 = vpop.eup %14442  ;;  %v9720_v7 = vadd.f32 1e-06, %v9688_v41  ;;  %v9658_v36 = vmul.f32 0.0078125, %v9638_v48 }
0x102f   : > { %14452 = vrsqrt.f32 %v9721_v40  ;;  %v9691_v54 = vsub.f32 %v9659_v8, %v9675_v51  ;;  %v9788_v50 = vadd.f32 %v21147_v9, %v9766_v0  ;;  %v9746_v22 = vmul.f32 %v14443_v19, %v9698_v10 }
0x1030   : > { %9805 = vst [vmem:[%s21168_s21 + $0x10] sm:$0xff] %v9789_v24  ;;  %v9769_v29 = vmul.f32 %v21133_v57, %v9747_v27  ;;  %v9644_v21 = vpop.xlane.xlu0 %9643  ;;  %14454 = vrsqrt.f32 %v9720_v7  ;;  %v9690_v18 = vsub.f32 %v9658_v36, %v9674_v31  ;;  %v9702_v51 = vsub.f32 %v20994_v25, %v21119_v12 }
0x1031   : > { %v14445_v45 = vpop.eup %14444  ;;  %v9723_v52 = vadd.f32 1e-06, %v9691_v54  ;;  %v9661_v11 = vmul.f32 0.0078125, %v9644_v21  ;;  %9804 = vst [vmem:[%s21168_s21 + $0x8] sm:$0xff] %v9788_v50  ;;  %v9768_v1 = vmul.f32 %v21133_v57, %v9746_v22  ;;  %v9642_v4 = vpop.xlane.xlu1 %9641  ;;  %v9678_v13 = vmul.f32 %v21191_v32, %v21191_v32 }
0x1032   : > { %v9791_v23 = vadd.f32 %v21147_v9, %v9769_v29  ;;  %v9749_v61 = vmul.f32 %v14445_v45, %v9701_v59  ;;  %v14447_v10 = vpop.eup %14446  ;;  %v9722_v14 = vadd.f32 1e-06, %v9690_v18  ;;  %v9660_v31 = vmul.f32 0.0078125, %v9642_v4 }
0x1033   : > { %14456 = vrsqrt.f32 %v9723_v52  ;;  %v9693_v30 = vsub.f32 %v9661_v11, %v9677_v2  ;;  %v9790_v47 = vadd.f32 %v21147_v9, %v9768_v1  ;;  %v9748_v15 = vmul.f32 %v14447_v10, %v9700_v38 }
0x1034   : > { %9807 = vst [vmem:[%s21168_s21 + $0x20] sm:$0xff] %v9791_v23  ;;  %v9771_v39 = vmul.f32 %v21133_v57, %v9749_v61  ;;  %14458 = vrsqrt.f32 %v9722_v14  ;;  %v9692_v49 = vsub.f32 %v9660_v31, %v9676_v6  ;;  %v9705_v20 = vsub.f32 %v21010_v55, %v21128_v56 }
0x1035   : > { %v14449_v35 = vpop.eup %14448  ;;  %v9725_v59 = vadd.f32 1e-06, %v9693_v30  ;;  %9806 = vst [vmem:[%s21168_s21 + $0x18] sm:$0xff] %v9790_v47  ;;  %v9770_v60 = vmul.f32 %v21133_v57, %v9748_v15  ;;  %v9646_v37 = vpop.xlane.xlu1 %9645  ;;  %v9704_v6 = vsub.f32 %v21004_v34, %v21126_v62  ;;  %v9707_v48 = vsub.f32 %v21020_v42, %v21154_v3 }
0x1036   : > { %v9793_v5 = vadd.f32 %v21147_v9, %v9771_v39  ;;  %v9751_v26 = vmul.f32 %v14449_v35, %v9703_v17  ;;  %v14451_v44 = vpop.eup %14450  ;;  %v9724_v33 = vadd.f32 1e-06, %v9692_v49  ;;  %v9662_v38 = vmul.f32 0.0078125, %v9646_v37 }
0x1037   : > { %14460 = vrsqrt.f32 %v9725_v59  ;;  %v9792_v25 = vadd.f32 %v21147_v9, %v9770_v60  ;;  %v9750_v40 = vmul.f32 %v14451_v44, %v9702_v51  ;;  %v9706_v62 = vsub.f32 %v21014_v43, %v21140_v53 }
0x1038   : > { %9809 = vst [vmem:[%s21168_s21 + $0x30] sm:$0xff] %v9793_v5  ;;  %v9773_v12 = vmul.f32 %v21133_v57, %v9751_v26  ;;  %14462 = vrsqrt.f32 %v9724_v33  ;;  %v9694_v8 = vsub.f32 %v9662_v38, %v9678_v13  ;;  %v9709_v3 = vsub.f32 %v21029_v63, %v21166_v16 }
0x1039   : > { %v14453_v41 = vpop.eup %14452  ;;  %9808 = vst [vmem:[%s21168_s21 + $0x28] sm:$0xff] %v9792_v25  ;;  %v9772_v0 = vmul.f32 %v21133_v57, %v9750_v40  ;;  %v9708_v43 = vsub.f32 %v21024_v58, %v21160_v28  ;;  %v9710_v58 = vsub.f32 %v21036_v46, %v21191_v32 }
0x103a   : > { %v9795_v24 = vadd.f32 %v21147_v9, %v9773_v12  ;;  %v9753_v55 = vmul.f32 %v14453_v41, %v9705_v20  ;;  %v14455_v56 = vpop.eup %14454  ;;  %v9726_v27 = vadd.f32 1e-06, %v9694_v8 }
0x103b   : > { %v9794_v19 = vadd.f32 %v21147_v9, %v9772_v0  ;;  %v9752_v54 = vmul.f32 %v14455_v56, %v9704_v6 }
0x103c   : > { %9811 = vst [vmem:[%s21168_s21 + $0x40] sm:$0xff] %v9795_v24  ;;  %v9775_v7 = vmul.f32 %v21133_v57, %v9753_v55  ;;  %14464 = vrsqrt.f32 %v9726_v27 }
0x103d   : > { %v14457_v34 = vpop.eup %14456  ;;  %9810 = vst [vmem:[%s21168_s21 + $0x38] sm:$0xff] %v9794_v19  ;;  %v9774_v2 = vmul.f32 %v21133_v57, %v9752_v54 }
0x103e   : > { %v9797_v36 = vadd.f32 %v21147_v9, %v9775_v7  ;;  %v9755_v50 = vmul.f32 %v14457_v34, %v9707_v48  ;;  %v14459_v42 = vpop.eup %14458 }
0x103f   : > { %v9796_v29 = vadd.f32 %v21147_v9, %v9774_v2  ;;  %v9754_v21 = vmul.f32 %v14459_v42, %v9706_v62 }
0x1040   : > { %9813 = vst [vmem:[%s21168_s21 + $0x50] sm:$0xff] %v9797_v36  ;;  %v9777_v22 = vmul.f32 %v21133_v57, %v9755_v50 }
0x1041   : > { %v14461_v45 = vpop.eup %14460  ;;  %9812 = vst [vmem:[%s21168_s21 + $0x48] sm:$0xff] %v9796_v29  ;;  %v9776_v52 = vmul.f32 %v21133_v57, %v9754_v21 }
0x1042   : > { %v9799_v53 = vadd.f32 %v21147_v9, %v9777_v22  ;;  %v9757_v63 = vmul.f32 %v14461_v45, %v9709_v3  ;;  %v14463_v16 = vpop.eup %14462 }
0x1043   : > { %v9798_v18 = vadd.f32 %v21147_v9, %v9776_v52  ;;  %v9756_v23 = vmul.f32 %v14463_v16, %v9708_v43 }
0x1044   : > { %9815 = vst [vmem:[%s21168_s21 + $0x60] sm:$0xff] %v9799_v53  ;;  %v9779_v11 = vmul.f32 %v21133_v57, %v9757_v63 }
0x1045   : > { %9814 = vst [vmem:[%s21168_s21 + $0x58] sm:$0xff] %v9798_v18  ;;  %v9778_v1 = vmul.f32 %v21133_v57, %v9756_v23 }
0x1046   : > { %v9801_v28 = vadd.f32 %v21147_v9, %v9779_v11  ;;  %v14465_v61 = vpop.eup %14464 }
0x1047   : > { %v9800_v4 = vadd.f32 %v21147_v9, %v9778_v1  ;;  %v9758_v10 = vmul.f32 %v14465_v61, %v9710_v58 }
0x1048   : > { %9817 = vst [vmem:[%s21168_s21 + $0x70] sm:$0xff] %v9801_v28 }
0x1049   : > { %9816 = vst [vmem:[%s21168_s21 + $0x68] sm:$0xff] %v9800_v4  ;;  %v9780_v14 = vmul.f32 %v21133_v57, %v9758_v10 }
0x104b   : > { %v9802_v46 = vadd.f32 %v21147_v9, %v9780_v14 }
0x104d   : > { %9818 = vst [vmem:[%s21168_s21 + $0x78] sm:$0xff] %v9802_v46 }
0x104e   : > { %14495 = shalt.err (!%p14492_p3)
}
0x104f   : > { %s14496_s22 = scalar_lea.hbm %s21261_s26, 2048  ;;  %s14500_s21 = scalar_lea.hbm %s21324_s14, 4096 }
0x1050   : > { %p14497_p4 = scmp.ne.s32.totalorder %s21261_s26, %s14496_s22  ;;  %p14501_p9 = scmp.lt.u32.totalorder %s21261_s26, %s21324_s14 }
0x1051   : > { %p14502_p10 = scmp.lt.u32.totalorder %s14500_s21, %s14496_s22  ;;  %p14504_p12 = scmp.lt.u32.totalorder %s14496_s22, %s21261_s26 }
0x1052   : > { %p14498_p7 = pnand %p14497_p4, %p14670_p5 }
0x1053   : > { %p14503_p11 = por %p14502_p10, %p14501_p9 }
0x1054   : > { %p14499_p8 = pneg %p14498_p7 }
0x1055   : > { %p14505_p13 = por %p14504_p12, %p14503_p11 }
0x1057   : > { %p14506_p0 = pnand %p14505_p13, %p14499_p8 }
0x1059   : > { %14509 = shalt.err (!%p14506_p0)
}
0x105a   : > { %s14555_s15 = smov 128   ;;  %s14556_s17 = smov 8  }
0x105b   : > { %12921 = dma.vmem_to_hbm [thread:$0]  (%p14670_p5), %s21263_s24, 2048, %s21261_s26, %s21269_s29, %s14555_s15, %s14555_s15, %s14556_s17  }
0x105c PF: > { %s22709_s16 = sld [smem:[#allocation7_spill]]  ;;  %s22710_s27 = sld [smem:[#allocation5_spill]] }
0x1062   : > { %p12927_p1 = scmp.ge.s32.totalorder %s22709_s16, 2  ;;  %s9849_s18 = sand.u32 1, %s22710_s27  }
0x1063   : > { %s9850_s22 = scalar_lea.sflag [#allocation3], %s9849_s18 }
0x1064   : > { %p12924_p2 = pnand %p12927_p1, %p14674_p6 }
0x1066   : > { %14527 = dma.done.wait (!%p12924_p2), %s9850_s22, 2048  }
0x1067   : > { %14529 = vsyncadd (!%p12924_p2), %s9850_s22, 4294965248  ;;  %s22712_s16 = sld [smem:[#allocation8_spill]]  ;;  %s22713_s19 = sld [smem:[#allocation6_spill]] }
0x1068   : > { %s22714_s15 = sld [smem:[#allocation9_spill]]  ;;  %s22715_s29 = smov %s14536_s30 }
0x106d   : > { %p24_p3 = scmp.ge.s32.totalorder %s22712_s16, 4   ;;  %s22716_s30 = smov %s22713_s19 }
0x106f   :  { %26 = sbr.rel (!%p24_p3) target bundleno = 3 (0x3), region = 114 }
0x1076   :  { %9855 = vsyncpa [#allocation3], 1 }
0x1077   :  { %9857 = vsyncpa [#allocation3 + $0x1], 1 }

</bundles_post_ra>
